<compile_context>
chip_gen: v6e
topology: v6e:2x2x1
jax: 0.10.0
libtpu: 0.0.40
codegen_flags: <defaults>
</compile_context>

<pallas_src>
import functools

import jax
import jax.numpy as jnp
from jax.experimental import pallas as pl
from jax.experimental.pallas import tpu as pltpu


def residual_block_kernel(x_ref, w1_ref, w2_ref, o_ref):
    """y = x + relu(relu(x @ W1) @ W2) for one (tm, C) row tile."""
    x = x_ref[...]                                             # bf16 (tm, C)
    # First linear + ReLU: bf16 x bf16 -> f32 accumulate on the MXU.
    h = jnp.dot(x, w1_ref[...], preferred_element_type=jnp.float32)
    h = jnp.maximum(h, 0.0)
    # Re-cast the intermediate to bf16 for the second MXU pass (halves
    # vreg/VMEM pressure of h; accumulation stays f32).
    h = h.astype(w2_ref.dtype)
    t = jnp.dot(h, w2_ref[...], preferred_element_type=jnp.float32)
    t = jnp.maximum(t, 0.0)
    # Residual add in f32, store in the output dtype.
    o_ref[...] = (x.astype(jnp.float32) + t).astype(o_ref.dtype)


def _build_call(N, C, dtype, w_dtype, tm, single_buffer_weights):
    grid = (pl.cdiv(N, tm),)

    # Both (C, C) weights are grid-invariant; single-buffer them so resident
    # weight VMEM is C*C*itemsize each instead of 2x (matters for v7x as C grows).
    w_mode = pl.Buffered(1) if single_buffer_weights else None
    w_spec = lambda: pl.BlockSpec((C, C), lambda i: (0, 0), pipeline_mode=w_mode)

    itemsize = jnp.dtype(dtype).itemsize
    w_itemsize = jnp.dtype(w_dtype).itemsize
    cost = pl.CostEstimate(
        flops=4 * N * C * C,                 # two N x C x C matmuls
        transcendentals=0,
        bytes_accessed=2 * N * C * itemsize + 2 * C * C * w_itemsize,
    )

    return pl.pallas_call(
        residual_block_kernel,
        out_shape=jax.ShapeDtypeStruct((N, C), dtype),
        grid_spec=pltpu.PrefetchScalarGridSpec(
            num_scalar_prefetch=0,
            grid=grid,
            in_specs=[
                pl.BlockSpec((tm, C), lambda i: (i, 0)),   # x row tile
                w_spec(),                                  # W1^T resident
                w_spec(),                                  # W2^T resident
            ],
            out_specs=pl.BlockSpec((tm, C), lambda i: (i, 0)),
        ),
        compiler_params=pltpu.CompilerParams(
            dimension_semantics=("parallel",)),            # row tiles across TCs (v7x)
        cost_estimate=cost,
    )


def residual_block(x, w1_t, w2_t, *, tm=256, single_buffer_weights=True):
    """x: (N, C) bf16; w1_t, w2_t: (C, C) bf16, already transposed to (in, out).

    tm is the row-tile size; sweep 128-512 (128 is the v5e sweet spot,
    256-512 for v6e/v7x).  Keep tm <= N/2 when possible so v7x gets >= 2
    grid steps to shard across its two TensorCores.
    """
    N, C = x.shape
    tm = min(tm, N)   # tm == N is a single full-extent block (still legal)
    call = _build_call(N, C, x.dtype, w1_t.dtype, tm, single_buffer_weights)
    return call(x, w1_t, w2_t)


def reference(x, w1_t, w2_t):
    """Pure-JAX mirror of the kernel's bf16-in / f32-accumulate datapath."""
    h = jnp.maximum(jnp.dot(x, w1_t, preferred_element_type=jnp.float32), 0.0)
    h = h.astype(w2_t.dtype)
    t = jnp.maximum(jnp.dot(h, w2_t, preferred_element_type=jnp.float32), 0.0)
    return (x.astype(jnp.float32) + t).astype(x.dtype)


if __name__ == "__main__":
    nChn = 512   # matches the PyTorch module default (nChn=512)
    N = 512      # rows (instances); 2 grid steps at tm=256
    tm = 256

    key = jax.random.PRNGKey(0)
    kx, k1, k2 = jax.random.split(key, 3)

    x_f32 = jax.random.normal(kx, (N, nChn), dtype=jnp.float32)
    # nn.Linear weights are (out, in); transpose once on the host so the
    # kernel does x @ W directly, and cast everything to bf16 for the MXU.
    w1 = jax.random.normal(k1, (nChn, nChn), dtype=jnp.float32) * 0.02
    w2 = jax.random.normal(k2, (nChn, nChn), dtype=jnp.float32) * 0.02

    x = x_f32.astype(jnp.bfloat16)
    w1_t = w1.T.astype(jnp.bfloat16)
    w2_t = w2.T.astype(jnp.bfloat16)

    try:
        out = residual_block(x, w1_t, w2_t, tm=tm)
    except Exception:
        # Fallback for jax builds where pl.Buffered(1) on a top-level BlockSpec
        # is unsupported; weights are tiny at this C so double-buffering is fine.
        out = residual_block(x, w1_t, w2_t, tm=tm, single_buffer_weights=False)
    out = jax.block_until_ready(out)

    ref = reference(x, w1_t, w2_t)
    assert out.shape == (N, nChn)
    assert jnp.allclose(out.astype(jnp.float32), ref.astype(jnp.float32),
                        atol=2e-2, rtol=2e-2)
    print("KERNEL_OK")
</pallas_src>

<mosaic_0001>
module attributes {stable_mosaic.version = 11 : i64} {
  func.func @residual_block_kernel(%arg0: i32, %arg1: memref<256x512xbf16, #tpu.memory_space<vmem>>, %arg2: memref<512x512xbf16, #tpu.memory_space<vmem>>, %arg3: memref<512x512xbf16, #tpu.memory_space<vmem>>, %arg4: memref<256x512xbf16, #tpu.memory_space<vmem>>) attributes {dimension_semantics = [#tpu.dimension_semantics<parallel>], iteration_bounds = array<i64: 2>, scalar_prefetch = 0 : i64, scratch_operands = 0 : i64, tpu.core_type = #tpu.core_type<tc>, window_params = [{transform_indices = @transform_0, window_bounds = array<i64: 256, 512>}, {pipeline_mode = #tpu.pipeline_mode<synchronous>, transform_indices = @transform_1, window_bounds = array<i64: 512, 512>}, {pipeline_mode = #tpu.pipeline_mode<synchronous>, transform_indices = @transform_2, window_bounds = array<i64: 512, 512>}, {transform_indices = @transform_3, window_bounds = array<i64: 256, 512>}]} {
    %c0 = arith.constant 0 : index
    %c0_0 = arith.constant 0 : index
    %0 = vector.load %arg1[%c0, %c0_0] : memref<256x512xbf16, #tpu.memory_space<vmem>>, vector<256x512xbf16>
    %c0_1 = arith.constant 0 : index
    %c0_2 = arith.constant 0 : index
    %1 = vector.load %arg2[%c0_1, %c0_2] : memref<512x512xbf16, #tpu.memory_space<vmem>>, vector<512x512xbf16>
    %cst = arith.constant dense<0.000000e+00> : vector<256x512xf32>
    %2 = tpu.matmul %0, %1, %cst {dimension_numbers = #tpu.dot_dimension_numbers<[1], [0], [0], [1], [0, 0, 1, 1], [], []>} : vector<256x512xbf16>, vector<512x512xbf16>, vector<256x512xf32> -> vector<256x512xf32>
    %cst_3 = arith.constant 0.000000e+00 : f32
    %3 = vector.broadcast %cst_3 : f32 to vector<256x512xf32>
    %4 = arith.maximumf %2, %3 : vector<256x512xf32>
    %5 = arith.truncf %4 : vector<256x512xf32> to vector<256x512xbf16>
    %c0_4 = arith.constant 0 : index
    %c0_5 = arith.constant 0 : index
    %6 = vector.load %arg3[%c0_4, %c0_5] : memref<512x512xbf16, #tpu.memory_space<vmem>>, vector<512x512xbf16>
    %cst_6 = arith.constant dense<0.000000e+00> : vector<256x512xf32>
    %7 = tpu.matmul %5, %6, %cst_6 {dimension_numbers = #tpu.dot_dimension_numbers<[1], [0], [0], [1], [0, 0, 1, 1], [], []>} : vector<256x512xbf16>, vector<512x512xbf16>, vector<256x512xf32> -> vector<256x512xf32>
    %cst_7 = arith.constant 0.000000e+00 : f32
    %8 = vector.broadcast %cst_7 : f32 to vector<256x512xf32>
    %9 = arith.maximumf %7, %8 : vector<256x512xf32>
    %10 = arith.extf %0 : vector<256x512xbf16> to vector<256x512xf32>
    %11 = arith.addf %10, %9 : vector<256x512xf32>
    %12 = arith.truncf %11 : vector<256x512xf32> to vector<256x512xbf16>
    %c0_8 = arith.constant 0 : index
    %c0_9 = arith.constant 0 : index
    %13 = vector.load %arg4[%c0_8, %c0_9] : memref<256x512xbf16, #tpu.memory_space<vmem>>, vector<256x512xbf16>
    tpu.vector_store %arg4[%c0_8, %c0_9], %12 {strides = array<i32>} : memref<256x512xbf16, #tpu.memory_space<vmem>>, vector<256x512xbf16>,
    return
  }
  func.func @transform_0(%arg0: i32) -> (i32, i32) {
    %c0_i32 = arith.constant 0 : i32
    %c0_i32_0 = arith.constant 0 : i32
    return %arg0, %c0_i32 : i32, i32
  }
  func.func @transform_1(%arg0: i32) -> (i32, i32) {
    %c0_i32 = arith.constant 0 : i32
    %c0_i32_0 = arith.constant 0 : i32
    %c0_i32_1 = arith.constant 0 : i32
    return %c0_i32, %c0_i32_0 : i32, i32
  }
  func.func @transform_2(%arg0: i32) -> (i32, i32) {
    %c0_i32 = arith.constant 0 : i32
    %c0_i32_0 = arith.constant 0 : i32
    %c0_i32_1 = arith.constant 0 : i32
    return %c0_i32, %c0_i32_0 : i32, i32
  }
  func.func @transform_3(%arg0: i32) -> (i32, i32) {
    %c0_i32 = arith.constant 0 : i32
    %c0_i32_0 = arith.constant 0 : i32
    return %arg0, %c0_i32 : i32, i32
  }
}

module attributes {stable_mosaic.version = 11 : i64} {
  func.func @residual_block_kernel(%arg0: i32, %arg1: memref<256x512xbf16, #tpu.memory_space<vmem>>, %arg2: memref<512x512xbf16, #tpu.memory_space<vmem>>, %arg3: memref<512x512xbf16, #tpu.memory_space<vmem>>, %arg4: memref<256x512xbf16, #tpu.memory_space<vmem>>) attributes {dimension_semantics = [#tpu.dimension_semantics<parallel>], iteration_bounds = array<i64: 2>, scalar_prefetch = 0 : i64, scratch_operands = 0 : i64, tpu.core_type = #tpu.core_type<tc>, window_params = [{transform_indices = @transform_0, window_bounds = array<i64: 256, 512>}, {pipeline_mode = #tpu.pipeline_mode<synchronous>, transform_indices = @transform_1, window_bounds = array<i64: 512, 512>}, {pipeline_mode = #tpu.pipeline_mode<synchronous>, transform_indices = @transform_2, window_bounds = array<i64: 512, 512>}, {transform_indices = @transform_3, window_bounds = array<i64: 256, 512>}]} {
    %c0 = arith.constant 0 : index
    %c0_0 = arith.constant 0 : index
    %0 = vector.load %arg1[%c0, %c0_0] : memref<256x512xbf16, #tpu.memory_space<vmem>>, vector<256x512xbf16>
    %c0_1 = arith.constant 0 : index
    %c0_2 = arith.constant 0 : index
    %1 = vector.load %arg2[%c0_1, %c0_2] : memref<512x512xbf16, #tpu.memory_space<vmem>>, vector<512x512xbf16>
    %cst = arith.constant dense<0.000000e+00> : vector<256x512xf32>
    %2 = tpu.matmul %0, %1, %cst {dimension_numbers = #tpu.dot_dimension_numbers<[1], [0], [0], [1], [0, 0, 1, 1], [], []>} : vector<256x512xbf16>, vector<512x512xbf16>, vector<256x512xf32> -> vector<256x512xf32>
    %cst_3 = arith.constant 0.000000e+00 : f32
    %3 = vector.broadcast %cst_3 : f32 to vector<256x512xf32>
    %4 = arith.maximumf %2, %3 : vector<256x512xf32>
    %5 = arith.truncf %4 : vector<256x512xf32> to vector<256x512xbf16>
    %c0_4 = arith.constant 0 : index
    %c0_5 = arith.constant 0 : index
    %6 = vector.load %arg3[%c0_4, %c0_5] : memref<512x512xbf16, #tpu.memory_space<vmem>>, vector<512x512xbf16>
    %cst_6 = arith.constant dense<0.000000e+00> : vector<256x512xf32>
    %7 = tpu.matmul %5, %6, %cst_6 {dimension_numbers = #tpu.dot_dimension_numbers<[1], [0], [0], [1], [0, 0, 1, 1], [], []>} : vector<256x512xbf16>, vector<512x512xbf16>, vector<256x512xf32> -> vector<256x512xf32>
    %cst_7 = arith.constant 0.000000e+00 : f32
    %8 = vector.broadcast %cst_7 : f32 to vector<256x512xf32>
    %9 = arith.maximumf %7, %8 : vector<256x512xf32>
    %10 = arith.extf %0 : vector<256x512xbf16> to vector<256x512xf32>
    %11 = arith.addf %10, %9 : vector<256x512xf32>
    %12 = arith.truncf %11 : vector<256x512xf32> to vector<256x512xbf16>
    %c0_8 = arith.constant 0 : index
    %c0_9 = arith.constant 0 : index
    %13 = vector.load %arg4[%c0_8, %c0_9] : memref<256x512xbf16, #tpu.memory_space<vmem>>, vector<256x512xbf16>
    tpu.vector_store %arg4[%c0_8, %c0_9], %12 {strides = array<i32>} : memref<256x512xbf16, #tpu.memory_space<vmem>>, vector<256x512xbf16>,
    return
  }
  func.func @transform_0(%arg0: i32) -> (i32, i32) {
    %c0_i32 = arith.constant 0 : i32
    %c0_i32_0 = arith.constant 0 : i32
    return %arg0, %c0_i32 : i32, i32
  }
  func.func @transform_1(%arg0: i32) -> (i32, i32) {
    %c0_i32 = arith.constant 0 : i32
    %c0_i32_0 = arith.constant 0 : i32
    %c0_i32_1 = arith.constant 0 : i32
    return %c0_i32, %c0_i32_0 : i32, i32
  }
  func.func @transform_2(%arg0: i32) -> (i32, i32) {
    %c0_i32 = arith.constant 0 : i32
    %c0_i32_0 = arith.constant 0 : i32
    %c0_i32_1 = arith.constant 0 : i32
    return %c0_i32, %c0_i32_0 : i32, i32
  }
  func.func @transform_3(%arg0: i32) -> (i32, i32) {
    %c0_i32 = arith.constant 0 : i32
    %c0_i32_0 = arith.constant 0 : i32
    return %arg0, %c0_i32 : i32, i32
  }
}

</mosaic_0001>

<bundles_post_ra>
// kernel: tpu_custom_call.1
= control target key start
LH: loop header
LB: loop body
LE: loop exit
PB: predicated region body
PF: predicated region fallthrough
CT: control target
= control target key end

     0   :  { %8 = vsyncpa [#allocation3], 0  ;;  %s7703_s0 = inlined_call_operand.hbm [shape: bf16[512,512], index: 0, kind: input, shape index: {}]   ;;  %s7704_s1 = inlined_call_operand.hbm [shape: bf16[512,512], index: 1, kind: input, shape index: {}]   ;;  %s7705_s2 = inlined_call_operand.hbm [shape: bf16[512,512], index: 2, kind: input, shape index: {}]   ;;  %s7706_s3 = inlined_call_operand.hbm [shape: bf16[512,512], index: 3, kind: output, shape index: {}]  }
   0x1   :  { %10 = vsyncpa [#allocation3 + $0x1], 0 }
   0x2   :  { %11 = vsyncpa [#allocation6], 0 }
   0x3   :  { %12 = vsyncpa [#allocation4], 0 }
   0x4   :  { %14 = vsyncpa [#allocation4 + $0x1], 0  ;;  %s6049_s12 = smov 0   ;;  %s6051_s13 = smov 0  }
   0x5   :  { %s6053_s14 = smov 0   ;;  %s6055_s15 = smov 0  }
   0x6 LB: > { %s6070_s16 = sadd.s32 4294967295, %s6019_s15   ;;  %s4816_s17 = sadd.s32 4294967294, %s6019_s15   ;;  %s6019_s15 = sphi %s6055_s15, %s7836_s15   ;;  %s6015_s14 = sphi %s6053_s14, %s7835_s14   ;;  %s6011_s13 = sphi %s6051_s13, %s7834_s13   ;;  %s6007_s12 = sphi %s6049_s12, %s7833_s12  }
   0x7   : > { %p40_p0 = scmp.ne.s32.totalorder %s6011_s13, %s6007_s12  ;;  %p7707_p1 = scmp.eq.s32.totalorder %s6070_s16, 0 }
   0x8   : > { %p106_p2 = scmp.eq.s32.totalorder %s6070_s16, 1  ;;  %p112_p3 = scmp.eq.s32.totalorder %s4816_s17, 1 }
   0x9   : > { %p6079_p4 = por %p7707_p1, %p40_p0  ;;  %p4817_p5 = scmp.ge.s32.totalorder %s6019_s15, 1 }
   0xa   : > { %p6084_p6 = por %p112_p3, %p40_p0  ;;  %p119_p7 = scmp.lt.s32.totalorder %s6019_s15, 3 }
   0xb   : > { %s7738_s18 = scalar_select %p6079_p4, 1, 0 }
   0xc   : > { %s7739_s19 = scalar_select %p6084_p6, 1, 0 }
   0xd   : > { %p6089_p8 = pnand %p4817_p5, %p119_p7  ;;  %s6021_s21 = smov [#allocation5]  }
   0xe   : > { %s131_s22 = sshll.u32 %s6021_s21, 4  ;;  %s6022_s24 = smov [#allocation7]   ;;  %s132_s22 = int_to_ptr.vmem [resolvable:$true] %s131_s22 }
   0xf   : > { %s7740_s20 = scalar_select %p6089_p8, 1, 0 }
  0x10   : > { %p5300_p9 = pneg %p6089_p8  ;;  %s144_s25 = sshll.u32 %s6022_s24, 4  ;;  %s145_s25 = int_to_ptr.vmem [resolvable:$true] %s144_s25 }
  0x11   : > { %s5882_s26 = scalar_lea.vmem %s132_s22, 16384  ;;  %p5890_p5 = scmp.lt.s32.totalorder %s132_s22, %s132_s22 }
  0x12   : > { %p6098_p11 = pnand %p5300_p9, %p7707_p1  ;;  %p5883_p13 = scmp.ne.s32.totalorder %s132_s22, %s5882_s26 }
  0x13   : > { %p5891_p7 = scmp.lt.s32.totalorder %s5882_s26, %s5882_s26 }
  0x14   : > { %p5873_p12 = pneg %p6098_p11 }
  0x15   : > { %p5892_p10 = por %p5891_p7, %p5890_p5 }
  0x16   : > { %p5885_p0 = pnand %p5883_p13, %p5873_p12 }
  0x18   : > { %p5886_p3 = pneg %p5885_p0 }
  0x1a   : > { %p5893_p9 = pnand %p5892_p10, %p5886_p3 }
  0x1c   : > { %5896 = shalt.err (!%p5893_p9)
}
  0x1d   : > { %s6023_s27 = smov 256   ;;  %s6024_s28 = smov 16  }
  0x1e   : > { %5303 = dma.hbm_to_vmem [thread:$0]  (!%p6098_p11), %s7704_s1, 16384, %s132_s22, [#allocation6], %s6023_s27, %s6023_s27, %s6024_s28  }
  0x1f   : > { %s5908_s4 = scalar_lea.vmem %s145_s25, 16384  ;;  %p5916_p10 = scmp.lt.s32.totalorder %s145_s25, %s145_s25 }
  0x20   : > { %p5909_p13 = scmp.ne.s32.totalorder %s145_s25, %s5908_s4  ;;  %p5917_p3 = scmp.lt.s32.totalorder %s5908_s4, %s5908_s4 }
  0x22   : > { %p5911_p0 = pnand %p5909_p13, %p5873_p12  ;;  %p5918_p7 = por %p5917_p3, %p5916_p10 }
  0x24   : > { %p5912_p5 = pneg %p5911_p0 }
  0x26   : > { %p5919_p9 = pnand %p5918_p7, %p5912_p5 }
  0x28   : > { %5922 = shalt.err (!%p5919_p9)
}
  0x29   : > { %5306 = dma.hbm_to_vmem [thread:$0]  (!%p6098_p11), %s7705_s2, 16384, %s145_s25, [#allocation6], %s6023_s27, %s6023_s27, %s6024_s28  }
  0x2a   : > { %s6127_s7 = sadd.s32 1, %s6019_s15   ;;  %s27_s8 = sadd.s32 1, %s6015_s14 }
  0x2b   : > { %s24_s9 = ssub.s32 %s6019_s15, %s6127_s7  ;;  %p34_p12 = scmp.ne.s32.totalorder %s6015_s14, %s6011_s13 }
  0x2c   : > { %p25_p13 = scmp.eq.s32.totalorder %s24_s9, 0  ;;  %p35_p0 = scmp.eq.s32.totalorder %s6019_s15, 0 }
  0x2d   : > { %p6137_p5 = por %p106_p2, %p34_p12  ;;  %p5317_p10 = scmp.lt.s32.totalorder %s6019_s15, 2 }
  0x2e   : > { %s6143_s11 = scalar_select %p25_p13, %s6015_s14, %s27_s8  }
  0x2f   : > { %s7742_s10 = scalar_select %p6137_p5, 1, 0 }
  0x30   : > { %p36_p3 = por %p35_p0, %p34_p12  ;;  %s158_s17 = sand.u32 1, %s6015_s14  }
  0x31   : > { %s4821_s21 = sshll.u32 %s158_s17, 9  ;;  %s5221_s22 = sshll.u32 %s6019_s15, 13 }
  0x32   : > { %s6150_s25 = scalar_lea.hbm %s7703_s0, %s5221_s22  ;;  %s162_s26 = scalar_lea.vmem [#allocation2], %s4821_s21 }
  0x33   : > { %s170_s29 = sshll.u32 %s162_s26, 4  ;;  %p6154_p2 = pnand %p5317_p10, %p36_p3  ;;  %s6152_s29 = int_to_ptr.vmem [resolvable:$true] %s170_s29 }
  0x34   : > { %s6158_s4 = scalar_lea.sflag [#allocation3], %s158_s17  ;;  %s5923_s5 = scalar_lea.hbm %s6150_s25, 8192 }
  0x35   : > { %p5924_p11 = scmp.ne.s32.totalorder %s6150_s25, %s5923_s5  ;;  %p5925_p7 = pneg %p6154_p2 }
  0x36   : > { %s5928_s9 = scalar_lea.hbm %s7703_s0, 16384  ;;  %p5929_p13 = scmp.lt.s32.totalorder %s6150_s25, %s7703_s0 }
  0x37   : > { %p5926_p9 = pnand %p5925_p7, %p5924_p11  ;;  %p5930_p0 = scmp.lt.s32.totalorder %s5928_s9, %s5923_s5 }
  0x39   : > { %p5927_p12 = pneg %p5926_p9  ;;  %p5931_p10 = por %p5930_p0, %p5929_p13 }
  0x3b   : > { %p5932_p3 = pnand %p5931_p10, %p5927_p12 }
  0x3d   : > { %5935 = shalt.err (!%p5932_p3)
}
  0x3e   : > { %s5936_s17 = scalar_lea.vmem %s6152_s29, 8192  ;;  %s6025_s23 = smov [#allocation2]  }
  0x3f   : > { %p5937_p1 = scmp.ne.s32.totalorder %s6152_s29, %s5936_s17  ;;  %s5941_s24 = sshll.u32 %s6025_s23, 4  ;;  %s5942_s24 = int_to_ptr.vmem [resolvable:$false] %s5941_s24 }
  0x40   : > { %s5943_s26 = scalar_lea.vmem %s5942_s24, 16384  ;;  %p5944_p9 = scmp.lt.s32.totalorder %s6152_s29, %s5942_s24 }
  0x41   : > { %p5939_p6 = pnand %p5937_p1, %p5925_p7  ;;  %p5945_p5 = scmp.lt.s32.totalorder %s5943_s26, %s5936_s17 }
  0x43   : > { %p5940_p11 = pneg %p5939_p6  ;;  %p5946_p4 = por %p5945_p5, %p5944_p9 }
  0x45   : > { %p5947_p8 = pnand %p5946_p4, %p5940_p11 }
  0x47   : > { %5950 = shalt.err (!%p5947_p8)
}
  0x48   : > { %5310 = dma.hbm_to_vmem [thread:$0]  (!%p6154_p2), %s6150_s25, 8192, %s6152_s29, %s6158_s4, %s6023_s27, %s6023_s27, %s6024_s28  }
  0x49   : > { %p7744_p1 = scmp.ne.s32.totalorder %s7740_s20, 0 }
  0x4b   : > { %182 = sbr.rel (%p7744_p1) target bundleno = 956 (0x3bc), region = 32 }
  0x50   : > { %s6185_s5 = sand.u32 1, %s6011_s13   ;;  %p7745_p4 = scmp.ne.s32.totalorder %s7738_s18, 0 }
  0x51   : > { %s4826_s6 = sshll.u32 %s6185_s5, 9  ;;  %s185_s8 = scalar_lea.sflag [#allocation3], %s6185_s5 }
  0x52   : > { %s6191_s30 = scalar_lea.vmem [#allocation2], %s4826_s6 }
  0x53   : > { %5994 = dma.done.wait (%p7745_p4), %s185_s8, 8192  }
  0x54   : > { %5996 = vsyncadd (%p7745_p4), %s185_s8, 4294959104  ;;  %p7746_p6 = scmp.eq.s32.totalorder %s6070_s16, 0 }
  0x56   : > { %5998 = dma.done.wait (%p7746_p6), [#allocation6], 32768   ;;  %p7747_p8 = pmov %p7746_p6 }
  0x57   : > { %v5359_v0 = vld [vmem:[#allocation5 + $0xe4] ss:$16 sps:$4 sm:$0xff]   ;;  %v5363_v2 = vld [vmem:[#allocation5 + $0xe0] ss:$16 sps:$4 sm:$0xff]   ;;  %v222_v50 = vld [vmem:[%s6191_s30 + $0x8] sm:$0xff]  ;;  %s7250_s18 = scalar_lea.vmem [#allocation8], %s4826_s6 }
  0x58   : > { %6000 = vsyncadd (%p7747_p8), [#allocation6], 4294934528  ;;  %v5361_v1 = vld [vmem:[#allocation5 + $0x2e4] ss:$16 sps:$4 sm:$0xff]   ;;  %1373 = vmatprep.subr.bf16.mxu0 %v5359_v0  ;;  %v5364_v3 = vld [vmem:[#allocation5 + $0x2e0] ss:$16 sps:$4 sm:$0xff]  }
  0x59   : > { %1566 = vmatprep.subr.bf16.mxu1 %v5361_v1  ;;  %v5365_v4 = vld [vmem:[#allocation5 + $0xc4] ss:$16 sps:$4 sm:$0xff]   ;;  %1374 = vmatpush1.bf16.msra.mxu0 %v5363_v2  ;;  %v5369_v6 = vld [vmem:[#allocation5 + $0xc0] ss:$16 sps:$4 sm:$0xff]   ;;  %v224_v51 = vld [vmem:[%s6191_s30 + $0x18] sm:$0xff]  ;;  %s5287_s20 = sshll.u32 %s6070_s16, 13 }
  0x5a   : > { %1567 = vmatpush1.bf16.msra.mxu1 %v5364_v3  ;;  %v5367_v5 = vld [vmem:[#allocation5 + $0x2c4] ss:$16 sps:$4 sm:$0xff]   ;;  %1375 = vmatprep.subr.bf16.mxu0 %v5365_v4  ;;  %v5370_v7 = vld [vmem:[#allocation5 + $0x2c0] ss:$16 sps:$4 sm:$0xff]   ;;  %v6207_v54 = vcombine.high %v222_v50, %v224_v51  ;;  %s4724_s27 = sshll.u32 %s7250_s18, 4  ;;  %s7657_s29 = scalar_lea.hbm %s7706_s3, %s5287_s20  ;;  %s7659_s27 = int_to_ptr.vmem [resolvable:$true] %s4724_s27 }
  0x5b   : > { %1568 = vmatprep.subr.bf16.mxu1 %v5367_v5  ;;  %v5371_v8 = vld [vmem:[#allocation5 + $0xa4] ss:$16 sps:$4 sm:$0xff]   ;;  %v5375_v10 = vld [vmem:[#allocation5 + $0xa0] ss:$16 sps:$4 sm:$0xff]   ;;  %s4710_s4 = scalar_lea.sflag [#allocation4], %s6185_s5  ;;  %s5951_s9 = scalar_lea.vmem %s7659_s27, 8192 }
  0x5c   : > { %v5373_v9 = vld [vmem:[#allocation5 + $0x2a4] ss:$16 sps:$4 sm:$0xff]   ;;  %v5376_v11 = vld [vmem:[#allocation5 + $0x2a0] ss:$16 sps:$4 sm:$0xff]   ;;  %1598 = vmatprep.mubr.bf16.mxu1 %v6207_v54  ;;  %p5952_p5 = scmp.ne.s32.totalorder %s7659_s27, %s5951_s9  ;;  %p7830_p2 = scmp.ne.s32.totalorder %s7742_s10, 0 }
  0x5d   : > { %1376 = vmatpush1.bf16.msra.mxu0 %v5369_v6  ;;  %v5377_v12 = vld [vmem:[#allocation5 + $0x84] ss:$16 sps:$4 sm:$0xff]   ;;  %v5381_v14 = vld [vmem:[#allocation5 + $0x80] ss:$16 sps:$4 sm:$0xff]   ;;  %v5461_v6 = vld [vmem:[#allocation5 + $0xec] ss:$16 sps:$4 sm:$0xff]  }
  0x5e   : > { %1569 = vmatpush1.bf16.msra.mxu1 %v5370_v7  ;;  %1377 = vmatprep.subr.bf16.mxu0 %v5371_v8  ;;  %v5379_v13 = vld [vmem:[#allocation5 + $0x284] ss:$16 sps:$4 sm:$0xff]   ;;  %v5382_v15 = vld [vmem:[#allocation5 + $0x280] ss:$16 sps:$4 sm:$0xff]   ;;  %v5464_v7 = vld [vmem:[#allocation5 + $0x2ec] ss:$16 sps:$4 sm:$0xff]   ;;  %p5953_p7 = pnand %p5952_p5, %p7830_p2 }
  0x5f   : > { %1570 = vmatprep.subr.bf16.mxu1 %v5373_v9  ;;  %v5383_v16 = vld [vmem:[#allocation5 + $0x64] ss:$16 sps:$4 sm:$0xff]   ;;  %v5387_v18 = vld [vmem:[#allocation5 + $0x60] ss:$16 sps:$4 sm:$0xff]   ;;  %s6026_s16 = smov [#allocation8]  }
  0x60   : > { %v5385_v17 = vld [vmem:[#allocation5 + $0x264] ss:$16 sps:$4 sm:$0xff]   ;;  %v5388_v19 = vld [vmem:[#allocation5 + $0x260] ss:$16 sps:$4 sm:$0xff]   ;;  %p5954_p12 = pneg %p5953_p7  ;;  %s5955_s21 = sshll.u32 %s6026_s16, 4  ;;  %s5956_s21 = int_to_ptr.vmem [resolvable:$false] %s5955_s21 }
  0x61   : > { %1378 = vmatpush1.bf16.msra.mxu0 %v5375_v10  ;;  %v5389_v20 = vld [vmem:[#allocation5 + $0x44] ss:$16 sps:$4 sm:$0xff]   ;;  %v5393_v22 = vld [vmem:[#allocation5 + $0x40] ss:$16 sps:$4 sm:$0xff]   ;;  %v226_v10 = vld [vmem:[%s6191_s30 + $0x28] sm:$0xff]  ;;  %s5957_s22 = scalar_lea.vmem %s5956_s21, 16384  ;;  %p5958_p13 = scmp.lt.s32.totalorder %s7659_s27, %s5956_s21 }
  0x62   : > { %1571 = vmatpush1.bf16.msra.mxu1 %v5376_v11  ;;  %1379 = vmatprep.subr.bf16.mxu0 %v5377_v12  ;;  %v5391_v21 = vld [vmem:[#allocation5 + $0x244] ss:$16 sps:$4 sm:$0xff]   ;;  %v5394_v23 = vld [vmem:[#allocation5 + $0x240] ss:$16 sps:$4 sm:$0xff]   ;;  %v228_v11 = vld [vmem:[%s6191_s30 + $0x38] sm:$0xff]  ;;  %p5959_p0 = scmp.lt.s32.totalorder %s5957_s22, %s5951_s9 }
  0x63   : > { %1572 = vmatprep.subr.bf16.mxu1 %v5379_v13  ;;  %v5395_v24 = vld [vmem:[#allocation5 + $0x24] ss:$16 sps:$4 sm:$0xff]   ;;  %v5399_v26 = vld [vmem:[#allocation5 + $0x20] ss:$16 sps:$4 sm:$0xff]   ;;  %v6217_v13 = vcombine.low %v222_v50, %v224_v51  ;;  %v5511_v50 = vld [vmem:[#allocation5 + $0x4c] ss:$16 sps:$4 sm:$0xff]  }
  0x64   : > { %v5397_v25 = vld [vmem:[#allocation5 + $0x224] ss:$16 sps:$4 sm:$0xff]   ;;  %v5400_v27 = vld [vmem:[#allocation5 + $0x220] ss:$16 sps:$4 sm:$0xff]   ;;  %v5514_v51 = vld [vmem:[#allocation5 + $0x24c] ss:$16 sps:$4 sm:$0xff]   ;;  %p5960_p10 = por %p5959_p0, %p5958_p13 }
  0x65   : > { %1380 = vmatpush1.bf16.msra.mxu0 %v5381_v14  ;;  %v5401_v28 = vld [vmem:[#allocation5 + $0x4] ss:$16 sps:$4 sm:$0xff]   ;;  %v5405_v30 = vld [vmem:[#allocation5] ss:$16 sps:$4 sm:$0xff]   ;;  %v5459_v14 = vld [vmem:[#allocation5 + $0xe8] ss:$16 sps:$4 sm:$0xff]  }
  0x66   : > { %1573 = vmatpush1.bf16.msra.mxu1 %v5382_v15  ;;  %1381 = vmatprep.subr.bf16.mxu0 %v5383_v16  ;;  %v5403_v29 = vld [vmem:[#allocation5 + $0x204] ss:$16 sps:$4 sm:$0xff]   ;;  %v5406_v31 = vld [vmem:[#allocation5 + $0x200] ss:$16 sps:$4 sm:$0xff]   ;;  %v5462_v15 = vld [vmem:[#allocation5 + $0x2e8] ss:$16 sps:$4 sm:$0xff]   ;;  %p5961_p3 = pnand %p5960_p10, %p5954_p12 }
  0x67   : > { %1574 = vmatprep.subr.bf16.mxu1 %v5385_v17  ;;  %v5407_v32 = vld [vmem:[#allocation5 + $0x1e4] ss:$16 sps:$4 sm:$0xff]   ;;  %v5411_v34 = vld [vmem:[#allocation5 + $0x1e0] ss:$16 sps:$4 sm:$0xff]   ;;  %v6221_v17 = vcombine.high %v226_v10, %v228_v11 }
  0x68   : > { %v5409_v33 = vld [vmem:[#allocation5 + $0x3e4] ss:$16 sps:$4 sm:$0xff]   ;;  %v5412_v35 = vld [vmem:[#allocation5 + $0x3e0] ss:$16 sps:$4 sm:$0xff]  }
  0x69   : > { %1382 = vmatpush1.bf16.msra.mxu0 %v5387_v18  ;;  %v5413_v36 = vld [vmem:[#allocation5 + $0x1c4] ss:$16 sps:$4 sm:$0xff]   ;;  %v5417_v38 = vld [vmem:[#allocation5 + $0x1c0] ss:$16 sps:$4 sm:$0xff]   ;;  %v5469_v18 = vld [vmem:[#allocation5 + $0xc8] ss:$16 sps:$4 sm:$0xff]  }
  0x6a   : > { %1575 = vmatpush1.bf16.msra.mxu1 %v5388_v19  ;;  %1383 = vmatprep.subr.bf16.mxu0 %v5389_v20  ;;  %v5415_v37 = vld [vmem:[#allocation5 + $0x3c4] ss:$16 sps:$4 sm:$0xff]   ;;  %v5418_v39 = vld [vmem:[#allocation5 + $0x3c0] ss:$16 sps:$4 sm:$0xff]   ;;  %v5471_v19 = vld [vmem:[#allocation5 + $0xcc] ss:$16 sps:$4 sm:$0xff]  }
  0x6b   : > { %1576 = vmatprep.subr.bf16.mxu1 %v5391_v21  ;;  %v5419_v40 = vld [vmem:[#allocation5 + $0x1a4] ss:$16 sps:$4 sm:$0xff]   ;;  %v5423_v42 = vld [vmem:[#allocation5 + $0x1a0] ss:$16 sps:$4 sm:$0xff]   ;;  %v5472_v20 = vld [vmem:[#allocation5 + $0x2c8] ss:$16 sps:$4 sm:$0xff]  }
  0x6c   : > { %v5421_v41 = vld [vmem:[#allocation5 + $0x3a4] ss:$16 sps:$4 sm:$0xff]   ;;  %v5424_v43 = vld [vmem:[#allocation5 + $0x3a0] ss:$16 sps:$4 sm:$0xff]   ;;  %v5474_v21 = vld [vmem:[#allocation5 + $0x2cc] ss:$16 sps:$4 sm:$0xff]  }
  0x6d   : > { %1384 = vmatpush1.bf16.msra.mxu0 %v5393_v22  ;;  %v5425_v44 = vld [vmem:[#allocation5 + $0x184] ss:$16 sps:$4 sm:$0xff]   ;;  %v5429_v46 = vld [vmem:[#allocation5 + $0x180] ss:$16 sps:$4 sm:$0xff]  }
  0x6e   : > { %1577 = vmatpush1.bf16.msra.mxu1 %v5394_v23  ;;  %1385 = vmatprep.subr.bf16.mxu0 %v5395_v24  ;;  %v5427_v45 = vld [vmem:[#allocation5 + $0x384] ss:$16 sps:$4 sm:$0xff]   ;;  %v5430_v47 = vld [vmem:[#allocation5 + $0x380] ss:$16 sps:$4 sm:$0xff]   ;;  %v230_v24 = vld [vmem:[%s6191_s30 + $0x48] sm:$0xff] }
  0x6f   : > { %1578 = vmatprep.subr.bf16.mxu1 %v5397_v25  ;;  %v221_v48 = vld [vmem:[%s6191_s30] sm:$0xff]  ;;  %v223_v49 = vld [vmem:[%s6191_s30 + $0x10] sm:$0xff]  ;;  %v232_v25 = vld [vmem:[%s6191_s30 + $0x58] sm:$0xff] }
  0x70   : > { %v5431_v52 = vld [vmem:[#allocation5 + $0x164] ss:$16 sps:$4 sm:$0xff]   ;;  %v6205_v53 = vcombine.high %v221_v48, %v223_v49  ;;  %v5435_v56 = vld [vmem:[#allocation5 + $0x160] ss:$16 sps:$4 sm:$0xff]   ;;  %v6215_v12 = vcombine.low %v221_v48, %v223_v49  ;;  %v5499_v48 = vld [vmem:[#allocation5 + $0x68] ss:$16 sps:$4 sm:$0xff]  }
  0x71   : > { %1386 = vmatpush1.bf16.msra.mxu0 %v5399_v26  ;;  %v5433_v55 = vld [vmem:[#allocation5 + $0x364] ss:$16 sps:$4 sm:$0xff]   ;;  %v5436_v57 = vld [vmem:[#allocation5 + $0x360] ss:$16 sps:$4 sm:$0xff]   ;;  %v5481_v26 = vld [vmem:[#allocation5 + $0xac] ss:$16 sps:$4 sm:$0xff]  }
  0x72   : > { %1579 = vmatpush1.bf16.msra.mxu1 %v5400_v27  ;;  %1387 = vmatprep.subr.bf16.mxu0 %v5401_v28  ;;  %v5437_v58 = vld [vmem:[#allocation5 + $0x144] ss:$16 sps:$4 sm:$0xff]   ;;  %v5441_v60 = vld [vmem:[#allocation5 + $0x140] ss:$16 sps:$4 sm:$0xff]   ;;  %v5484_v27 = vld [vmem:[#allocation5 + $0x2ac] ss:$16 sps:$4 sm:$0xff]  }
  0x73   : > { %1580 = vmatprep.subr.bf16.mxu1 %v5403_v29  ;;  %1405 = vmatprep.mubr.bf16.mxu0 %v6205_v53  ;;  %v5439_v59 = vld [vmem:[#allocation5 + $0x344] ss:$16 sps:$4 sm:$0xff]   ;;  %v5442_v61 = vld [vmem:[#allocation5 + $0x340] ss:$16 sps:$4 sm:$0xff]   ;;  %v6233_v29 = vcombine.low %v226_v10, %v228_v11  ;;  %v5502_v49 = vld [vmem:[#allocation5 + $0x268] ss:$16 sps:$4 sm:$0xff]  }
  0x74   : > { %v5443_v62 = vld [vmem:[#allocation5 + $0x124] ss:$16 sps:$4 sm:$0xff]   ;;  %v5447_v0 = vld [vmem:[#allocation5 + $0x120] ss:$16 sps:$4 sm:$0xff]   ;;  %v5529_v10 = vld [vmem:[#allocation5 + $0x8] ss:$16 sps:$4 sm:$0xff]  }
  0x75   : > { %1388 = vmatpush1.bf16.msra.mxu0 %v5405_v30  ;;  %v5445_v63 = vld [vmem:[#allocation5 + $0x324] ss:$16 sps:$4 sm:$0xff]   ;;  %v5448_v1 = vld [vmem:[#allocation5 + $0x320] ss:$16 sps:$4 sm:$0xff]   ;;  %v5532_v11 = vld [vmem:[#allocation5 + $0x208] ss:$16 sps:$4 sm:$0xff]  }
  0x76   : > { %1581 = vmatpush1.bf16.msra.mxu1 %v5406_v31  ;;  %1389 = vmatprep.subr.bf16.mxu0 %v5407_v32  ;;  %v5449_v2 = vld [vmem:[#allocation5 + $0x104] ss:$16 sps:$4 sm:$0xff]   ;;  %v5453_v4 = vld [vmem:[#allocation5 + $0x100] ss:$16 sps:$4 sm:$0xff]   ;;  %v6237_v31 = vcombine.high %v230_v24, %v232_v25  ;;  %v5479_v32 = vld [vmem:[#allocation5 + $0xa8] ss:$16 sps:$4 sm:$0xff]  }
  0x77   : > { %1582 = vmatprep.subr.bf16.mxu1 %v5409_v33  ;;  %v5451_v3 = vld [vmem:[#allocation5 + $0x304] ss:$16 sps:$4 sm:$0xff]   ;;  %v5454_v5 = vld [vmem:[#allocation5 + $0x300] ss:$16 sps:$4 sm:$0xff]   ;;  %v5482_v33 = vld [vmem:[#allocation5 + $0x2a8] ss:$16 sps:$4 sm:$0xff]  }
  0x78   : > { %v225_v8 = vld [vmem:[%s6191_s30 + $0x20] sm:$0xff]  ;;  %v227_v9 = vld [vmem:[%s6191_s30 + $0x30] sm:$0xff] }
  0x79   : > { %1390 = vmatpush2.bf16.msra.mxu0 %v5411_v34  ;;  %v6219_v16 = vcombine.high %v225_v8, %v227_v9  ;;  %v229_v22 = vld [vmem:[%s6191_s30 + $0x40] sm:$0xff]  ;;  %v231_v23 = vld [vmem:[%s6191_s30 + $0x50] sm:$0xff]  ;;  %v6231_v28 = vcombine.low %v225_v8, %v227_v9  ;;  %v5491_v34 = vld [vmem:[#allocation5 + $0x8c] ss:$16 sps:$4 sm:$0xff]  }
  0x7a   : > { %1583 = vmatpush2.bf16.msra.mxu1 %v5412_v35  ;;  %1391 = vmatprep.subr.bf16.mxu0 %v5413_v36  ;;  %v6235_v30 = vcombine.high %v229_v22, %v231_v23  ;;  %v5494_v35 = vld [vmem:[#allocation5 + $0x28c] ss:$16 sps:$4 sm:$0xff]   ;;  %v233_v36 = vld [vmem:[%s6191_s30 + $0x60] sm:$0xff] }
  0x7b   : > { %1584 = vmatprep.subr.bf16.mxu1 %v5415_v37  ;;  %v235_v37 = vld [vmem:[%s6191_s30 + $0x70] sm:$0xff]  ;;  %v242_v8 = vld [vmem:[%s6191_s30 + $0xa8] sm:$0xff]  ;;  %v244_v9 = vld [vmem:[%s6191_s30 + $0xb8] sm:$0xff] }
  0x7d   : > { %1392 = vmatpush2.bf16.msra.mxu0 %v5417_v38  ;;  %v234_v38 = vld [vmem:[%s6191_s30 + $0x68] sm:$0xff] }
  0x7e   : > { %1585 = vmatpush2.bf16.msra.mxu1 %v5418_v39  ;;  %1393 = vmatprep.subr.bf16.mxu0 %v5419_v40  ;;  %v236_v39 = vld [vmem:[%s6191_s30 + $0x78] sm:$0xff] }
  0x7f   : > { %1586 = vmatprep.subr.bf16.mxu1 %v5421_v41  ;;  %v5489_v40 = vld [vmem:[#allocation5 + $0x88] ss:$16 sps:$4 sm:$0xff]  }
  0x80   : > { %v5492_v41 = vld [vmem:[#allocation5 + $0x288] ss:$16 sps:$4 sm:$0xff]  }
  0x81   : > { %1394 = vmatpush2.bf16.msra.mxu0 %v5423_v42  ;;  %v5501_v42 = vld [vmem:[#allocation5 + $0x6c] ss:$16 sps:$4 sm:$0xff]  }
  0x82   : > { %1587 = vmatpush2.bf16.msra.mxu1 %v5424_v43  ;;  %1395 = vmatprep.subr.bf16.mxu0 %v5425_v44  ;;  %v5504_v43 = vld [vmem:[#allocation5 + $0x26c] ss:$16 sps:$4 sm:$0xff]   ;;  %v6247_v44 = vcombine.low %v229_v22, %v231_v23  ;;  %v5539_v22 = vld [vmem:[#allocation5 + $0x1e8] ss:$16 sps:$4 sm:$0xff]  }
  0x83   : > { %1588 = vmatprep.subr.bf16.mxu1 %v5427_v45  ;;  %v6249_v45 = vcombine.low %v230_v24, %v232_v25  ;;  %v5542_v23 = vld [vmem:[#allocation5 + $0x3e8] ss:$16 sps:$4 sm:$0xff]   ;;  %v5551_v24 = vld [vmem:[#allocation5 + $0x1cc] ss:$16 sps:$4 sm:$0xff]  }
  0x84   : > { %v5554_v25 = vld [vmem:[#allocation5 + $0x3cc] ss:$16 sps:$4 sm:$0xff]  }
  0x85   : > { %1396 = vmatpush2.bf16.msra.mxu0 %v5429_v46  ;;  %v6251_v46 = vcombine.high %v233_v36, %v235_v37 }
  0x86   : > { %1589 = vmatpush2.bf16.msra.mxu1 %v5430_v47  ;;  %1397 = vmatprep.subr.bf16.mxu0 %v5431_v52  ;;  %v6253_v47 = vcombine.high %v234_v38, %v236_v39  ;;  %v237_v52 = vld [vmem:[%s6191_s30 + $0x80] sm:$0xff] }
  0x87   : > { %1590 = vmatprep.subr.bf16.mxu1 %v5433_v55  ;;  %v239_v55 = vld [vmem:[%s6191_s30 + $0x90] sm:$0xff] }
  0x89   : > { %1398 = vmatpush2.bf16.msra.mxu0 %v5435_v56  ;;  %v238_v56 = vld [vmem:[%s6191_s30 + $0x88] sm:$0xff] }
  0x8a   : > { %1591 = vmatpush2.bf16.msra.mxu1 %v5436_v57  ;;  %1399 = vmatprep.subr.bf16.mxu0 %v5437_v58  ;;  %v240_v57 = vld [vmem:[%s6191_s30 + $0x98] sm:$0xff] }
  0x8b   : > { %1592 = vmatprep.subr.bf16.mxu1 %v5439_v59  ;;  %v5509_v58 = vld [vmem:[#allocation5 + $0x48] ss:$16 sps:$4 sm:$0xff]  }
  0x8c   : > { %v5512_v59 = vld [vmem:[#allocation5 + $0x248] ss:$16 sps:$4 sm:$0xff]  }
  0x8d   : > { %1400 = vmatpush2.bf16.msra.mxu0 %v5441_v60  ;;  %v5521_v60 = vld [vmem:[#allocation5 + $0x2c] ss:$16 sps:$4 sm:$0xff]  }
  0x8e   : > { %1593 = vmatpush2.bf16.msra.mxu1 %v5442_v61  ;;  %1401 = vmatprep.subr.bf16.mxu0 %v5443_v62  ;;  %v5524_v61 = vld [vmem:[#allocation5 + $0x22c] ss:$16 sps:$4 sm:$0xff]   ;;  %v6263_v62 = vcombine.low %v233_v36, %v235_v37 }
  0x8f   : > { %1594 = vmatprep.subr.bf16.mxu1 %v5445_v63  ;;  %v6265_v63 = vcombine.low %v234_v38, %v236_v39  ;;  %v5561_v36 = vld [vmem:[#allocation5 + $0x1ac] ss:$16 sps:$4 sm:$0xff]   ;;  %v6297_v39 = vcombine.low %v242_v8, %v244_v9 }
  0x90   : > { %v5564_v37 = vld [vmem:[#allocation5 + $0x3ac] ss:$16 sps:$4 sm:$0xff]  }
  0x91   : > { %1402 = vmatpush2.bf16.msra.mxu0 %v5447_v0  ;;  %v6267_v0 = vcombine.high %v237_v52, %v239_v55 }
  0x92   : > { %1595 = vmatpush2.bf16.msra.mxu1 %v5448_v1  ;;  %1403 = vmatprep.subr.bf16.mxu0 %v5449_v2  ;;  %v6269_v1 = vcombine.high %v238_v56, %v240_v57  ;;  %v5519_v2 = vld [vmem:[#allocation5 + $0x28] ss:$16 sps:$4 sm:$0xff]  }
  0x93   : > { %1596 = vmatprep.subr.bf16.mxu1 %v5451_v3  ;;  %v5522_v3 = vld [vmem:[#allocation5 + $0x228] ss:$16 sps:$4 sm:$0xff]  }
  0x95   : > { %1404 = vmatpush2.bf16.msra.mxu0 %v5453_v4  ;;  %v5531_v4 = vld [vmem:[#allocation5 + $0xc] ss:$16 sps:$4 sm:$0xff]  }
  0x96   : > { %1597 = vmatpush2.bf16.msra.mxu1 %v5454_v5  ;;  %1759 = vmatprep.subr.bf16.mxu0 %v5461_v6  ;;  %v5534_v5 = vld [vmem:[#allocation5 + $0x20c] ss:$16 sps:$4 sm:$0xff]   ;;  %v241_v6 = vld [vmem:[%s6191_s30 + $0xa0] sm:$0xff] }
  0x97   : > { %1952 = vmatprep.subr.bf16.mxu1 %v5464_v7  ;;  %v243_v7 = vld [vmem:[%s6191_s30 + $0xb0] sm:$0xff] }
  0x98   : > { %1406 = vmatmul.mubr.bf16.vlgmr.msra.gmra.mxu0 %v6215_v12  ;;  %v6295_v38 = vcombine.low %v241_v6, %v243_v7 }
  0x99   : > { %1599 = vmatmul.mubr.bf16.vlgmr.msra.gmra.mxu1 %v6217_v13  ;;  %1760 = vmatpush1.bf16.msra.mxu0 %v5459_v14  ;;  %v5541_v14 = vld [vmem:[#allocation5 + $0x1ec] ss:$16 sps:$4 sm:$0xff]  }
  0x9a   : > { %1953 = vmatpush1.bf16.msra.mxu1 %v5462_v15  ;;  %1415 = vmatprep.mubr.bf16.mxu0 %v6219_v16  ;;  %v5544_v15 = vld [vmem:[#allocation5 + $0x3ec] ss:$16 sps:$4 sm:$0xff]  }
  0x9b   : > { %1608 = vmatprep.mubr.bf16.mxu1 %v6221_v17  ;;  %1761 = vmatprep.subr.bf16.mxu0 %v5471_v19  ;;  %v6281_v19 = vcombine.low %v238_v56, %v240_v57  ;;  %v5569_v56 = vld [vmem:[#allocation5 + $0x188] ss:$16 sps:$4 sm:$0xff]  }
  0x9c   : > { %1954 = vmatprep.subr.bf16.mxu1 %v5474_v21  ;;  %v6285_v21 = vcombine.high %v242_v8, %v244_v9  ;;  %v5572_v57 = vld [vmem:[#allocation5 + $0x388] ss:$16 sps:$4 sm:$0xff]   ;;  %v253_v8 = vld [vmem:[%s6191_s30 + $0x100] sm:$0xff]  ;;  %v255_v9 = vld [vmem:[%s6191_s30 + $0x110] sm:$0xff] }
  0x9d   : > { %1762 = vmatpush1.bf16.msra.mxu0 %v5469_v18  ;;  %v6279_v18 = vcombine.low %v237_v52, %v239_v55  ;;  %v250_v52 = vld [vmem:[%s6191_s30 + $0xe8] sm:$0xff]  ;;  %v252_v55 = vld [vmem:[%s6191_s30 + $0xf8] sm:$0xff] }
  0x9e   : > { %1955 = vmatpush1.bf16.msra.mxu1 %v5472_v20  ;;  %1763 = vmatprep.subr.bf16.mxu0 %v5481_v26  ;;  %v6283_v20 = vcombine.high %v241_v6, %v243_v7  ;;  %v245_v26 = vld [vmem:[%s6191_s30 + $0xc0] sm:$0xff]  ;;  %v5591_v6 = vld [vmem:[#allocation5 + $0x14c] ss:$16 sps:$4 sm:$0xff]  }
  0x9f   : > { %1956 = vmatprep.subr.bf16.mxu1 %v5484_v27  ;;  %v247_v27 = vld [vmem:[%s6191_s30 + $0xd0] sm:$0xff]  ;;  %v5594_v7 = vld [vmem:[#allocation5 + $0x34c] ss:$16 sps:$4 sm:$0xff]  }
  0xa0   : > { %1416 = vmatmul.mubr.bf16.gmra.mxu0 %v6231_v28 }
  0xa1   : > { %1609 = vmatmul.mubr.bf16.gmra.mxu1 %v6233_v29  ;;  %1425 = vmatprep.mubr.bf16.mxu0 %v6235_v30 }
  0xa2   : > { %1618 = vmatprep.mubr.bf16.mxu1 %v6237_v31  ;;  %1764 = vmatpush1.bf16.msra.mxu0 %v5479_v32  ;;  %v246_v32 = vld [vmem:[%s6191_s30 + $0xc8] sm:$0xff] }
  0xa3   : > { %1957 = vmatpush1.bf16.msra.mxu1 %v5482_v33  ;;  %1765 = vmatprep.subr.bf16.mxu0 %v5491_v34  ;;  %v248_v33 = vld [vmem:[%s6191_s30 + $0xd8] sm:$0xff] }
  0xa4   : > { %1958 = vmatprep.subr.bf16.mxu1 %v5494_v35  ;;  %v5549_v34 = vld [vmem:[#allocation5 + $0x1c8] ss:$16 sps:$4 sm:$0xff]  }
  0xa5   : > { %v5552_v35 = vld [vmem:[#allocation5 + $0x3c8] ss:$16 sps:$4 sm:$0xff]  }
  0xa6   : > { %1766 = vmatpush1.bf16.msra.mxu0 %v5489_v40  ;;  %v6299_v40 = vcombine.high %v245_v26, %v247_v27 }
  0xa7   : > { %1959 = vmatpush1.bf16.msra.mxu1 %v5492_v41  ;;  %1767 = vmatprep.subr.bf16.mxu0 %v5501_v42  ;;  %v6301_v41 = vcombine.high %v246_v32, %v248_v33  ;;  %v5559_v42 = vld [vmem:[#allocation5 + $0x1a8] ss:$16 sps:$4 sm:$0xff]  }
  0xa8   : > { %1960 = vmatprep.subr.bf16.mxu1 %v5504_v43  ;;  %1426 = vmatmul.mubr.bf16.gmra.mxu0 %v6247_v44  ;;  %v5562_v43 = vld [vmem:[#allocation5 + $0x3a8] ss:$16 sps:$4 sm:$0xff]  }
  0xa9   : > { %1619 = vmatmul.mubr.bf16.gmra.mxu1 %v6249_v45  ;;  %1435 = vmatprep.mubr.bf16.mxu0 %v6251_v46 }
  0xaa   : > { %1628 = vmatprep.mubr.bf16.mxu1 %v6253_v47  ;;  %1768 = vmatpush1.bf16.msra.mxu0 %v5499_v48  ;;  %v5571_v48 = vld [vmem:[#allocation5 + $0x18c] ss:$16 sps:$4 sm:$0xff]  }
  0xab   : > { %1961 = vmatpush1.bf16.msra.mxu1 %v5502_v49  ;;  %1769 = vmatprep.subr.bf16.mxu0 %v5511_v50  ;;  %v5574_v49 = vld [vmem:[#allocation5 + $0x38c] ss:$16 sps:$4 sm:$0xff]   ;;  %v249_v50 = vld [vmem:[%s6191_s30 + $0xe0] sm:$0xff] }
  0xac   : > { %1962 = vmatprep.subr.bf16.mxu1 %v5514_v51  ;;  %v251_v51 = vld [vmem:[%s6191_s30 + $0xf0] sm:$0xff] }
  0xae   : > { %1770 = vmatpush1.bf16.msra.mxu0 %v5509_v58  ;;  %v5581_v58 = vld [vmem:[#allocation5 + $0x16c] ss:$16 sps:$4 sm:$0xff]  }
  0xaf   : > { %1963 = vmatpush1.bf16.msra.mxu1 %v5512_v59  ;;  %1771 = vmatprep.subr.bf16.mxu0 %v5521_v60  ;;  %v5584_v59 = vld [vmem:[#allocation5 + $0x36c] ss:$16 sps:$4 sm:$0xff]   ;;  %v6311_v60 = vcombine.low %v245_v26, %v247_v27  ;;  %v5599_v26 = vld [vmem:[#allocation5 + $0x128] ss:$16 sps:$4 sm:$0xff]  }
  0xb0   : > { %1964 = vmatprep.subr.bf16.mxu1 %v5524_v61  ;;  %1436 = vmatmul.mubr.bf16.gmra.mxu0 %v6263_v62  ;;  %v6313_v61 = vcombine.low %v246_v32, %v248_v33  ;;  %v5602_v27 = vld [vmem:[#allocation5 + $0x328] ss:$16 sps:$4 sm:$0xff]   ;;  %v6331_v32 = vcombine.high %v253_v8, %v255_v9 }
  0xb1   : > { %1629 = vmatmul.mubr.bf16.gmra.mxu1 %v6265_v63  ;;  %1445 = vmatprep.mubr.bf16.mxu0 %v6267_v0 }
  0xb2   : > { %1638 = vmatprep.mubr.bf16.mxu1 %v6269_v1  ;;  %1772 = vmatpush1.bf16.msra.mxu0 %v5519_v2  ;;  %v5579_v2 = vld [vmem:[#allocation5 + $0x168] ss:$16 sps:$4 sm:$0xff]  }
  0xb3   : > { %1965 = vmatpush1.bf16.msra.mxu1 %v5522_v3  ;;  %1773 = vmatprep.subr.bf16.mxu0 %v5531_v4  ;;  %v5582_v3 = vld [vmem:[#allocation5 + $0x368] ss:$16 sps:$4 sm:$0xff]   ;;  %v6315_v4 = vcombine.high %v249_v50, %v251_v51 }
  0xb4   : > { %1966 = vmatprep.subr.bf16.mxu1 %v5534_v5  ;;  %v6317_v5 = vcombine.high %v250_v52, %v252_v55 }
  0xb6   : > { %1774 = vmatpush1.bf16.msra.mxu0 %v5529_v10  ;;  %v254_v10 = vld [vmem:[%s6191_s30 + $0x108] sm:$0xff] }
  0xb7   : > { %1967 = vmatpush1.bf16.msra.mxu1 %v5532_v11  ;;  %1775 = vmatprep.subr.bf16.mxu0 %v5541_v14  ;;  %v256_v11 = vld [vmem:[%s6191_s30 + $0x118] sm:$0xff] }
  0xb8   : > { %1968 = vmatprep.subr.bf16.mxu1 %v5544_v15  ;;  %1446 = vmatmul.mubr.bf16.gmra.mxu0 %v6279_v18  ;;  %v5589_v14 = vld [vmem:[#allocation5 + $0x148] ss:$16 sps:$4 sm:$0xff]   ;;  %v6333_v33 = vcombine.high %v254_v10, %v256_v11 }
  0xb9   : > { %1639 = vmatmul.mubr.bf16.gmra.mxu1 %v6281_v19  ;;  %1455 = vmatprep.mubr.bf16.mxu0 %v6283_v20  ;;  %v5592_v15 = vld [vmem:[#allocation5 + $0x348] ss:$16 sps:$4 sm:$0xff]  }
  0xba   : > { %1648 = vmatprep.mubr.bf16.mxu1 %v6285_v21  ;;  %1776 = vmatpush2.bf16.msra.mxu0 %v5539_v22  ;;  %v5601_v22 = vld [vmem:[#allocation5 + $0x12c] ss:$16 sps:$4 sm:$0xff]  }
  0xbb   : > { %1969 = vmatpush2.bf16.msra.mxu1 %v5542_v23  ;;  %1777 = vmatprep.subr.bf16.mxu0 %v5551_v24  ;;  %v5604_v23 = vld [vmem:[#allocation5 + $0x32c] ss:$16 sps:$4 sm:$0xff]   ;;  %v6327_v24 = vcombine.low %v249_v50, %v251_v51  ;;  %v6343_v50 = vcombine.low %v253_v8, %v255_v9  ;;  %v6345_v51 = vcombine.low %v254_v10, %v256_v11  ;;  %v265_v9 = vld [vmem:[%s6191_s30 + $0x160] sm:$0xff]  ;;  %v267_v10 = vld [vmem:[%s6191_s30 + $0x170] sm:$0xff] }
  0xbc   : > { %1970 = vmatprep.subr.bf16.mxu1 %v5554_v25  ;;  %v6329_v25 = vcombine.low %v250_v52, %v252_v55  ;;  %v266_v11 = vld [vmem:[%s6191_s30 + $0x168] sm:$0xff] }
  0xbe   : > { %1778 = vmatpush2.bf16.msra.mxu0 %v5549_v34  ;;  %v5611_v34 = vld [vmem:[#allocation5 + $0x10c] ss:$16 sps:$4 sm:$0xff]  }
  0xbf   : > { %1971 = vmatpush2.bf16.msra.mxu1 %v5552_v35  ;;  %1779 = vmatprep.subr.bf16.mxu0 %v5561_v36  ;;  %v5614_v35 = vld [vmem:[#allocation5 + $0x30c] ss:$16 sps:$4 sm:$0xff]   ;;  %v257_v36 = vld [vmem:[%s6191_s30 + $0x120] sm:$0xff] }
  0xc0   : > { %1972 = vmatprep.subr.bf16.mxu1 %v5564_v37  ;;  %1456 = vmatmul.mubr.bf16.gmra.mxu0 %v6295_v38  ;;  %v259_v37 = vld [vmem:[%s6191_s30 + $0x130] sm:$0xff] }
  0xc1   : > { %1649 = vmatmul.mubr.bf16.gmra.mxu1 %v6297_v39  ;;  %1465 = vmatprep.mubr.bf16.mxu0 %v6299_v40  ;;  %v6347_v52 = vcombine.high %v257_v36, %v259_v37 }
  0xc2   : > { %1658 = vmatprep.mubr.bf16.mxu1 %v6301_v41  ;;  %1780 = vmatpush2.bf16.msra.mxu0 %v5559_v42  ;;  %v258_v42 = vld [vmem:[%s6191_s30 + $0x128] sm:$0xff] }
  0xc3   : > { %1973 = vmatpush2.bf16.msra.mxu1 %v5562_v43  ;;  %1781 = vmatprep.subr.bf16.mxu0 %v5571_v48  ;;  %v260_v43 = vld [vmem:[%s6191_s30 + $0x138] sm:$0xff] }
  0xc4   : > { %1974 = vmatprep.subr.bf16.mxu1 %v5574_v49  ;;  %v5609_v48 = vld [vmem:[#allocation5 + $0x108] ss:$16 sps:$4 sm:$0xff]   ;;  %v6349_v55 = vcombine.high %v258_v42, %v260_v43 }
  0xc5   : > { %v5612_v49 = vld [vmem:[#allocation5 + $0x308] ss:$16 sps:$4 sm:$0xff]  }
  0xc6   : > { %1782 = vmatpush2.bf16.msra.mxu0 %v5569_v56  ;;  %v5617_v56 = vld [vmem:[#allocation7 + $0xe4] ss:$16 sps:$4 sm:$0xff]  }
  0xc7   : > { %1975 = vmatpush2.bf16.msra.mxu1 %v5572_v57  ;;  %1783 = vmatprep.subr.bf16.mxu0 %v5581_v58  ;;  %v261_v57 = vld [vmem:[%s6191_s30 + $0x140] sm:$0xff]  ;;  %v263_v58 = vld [vmem:[%s6191_s30 + $0x150] sm:$0xff] }
  0xc8   : > { %1976 = vmatprep.subr.bf16.mxu1 %v5584_v59  ;;  %1466 = vmatmul.mubr.bf16.gmra.mxu0 %v6311_v60  ;;  %v262_v59 = vld [vmem:[%s6191_s30 + $0x148] sm:$0xff] }
  0xc9   : > { %1659 = vmatmul.mubr.bf16.gmra.mxu1 %v6313_v61  ;;  %1475 = vmatprep.mubr.bf16.mxu0 %v6315_v4 }
  0xca   : > { %1668 = vmatprep.mubr.bf16.mxu1 %v6317_v5  ;;  %1784 = vmatpush2.bf16.msra.mxu0 %v5579_v2  ;;  %v264_v2 = vld [vmem:[%s6191_s30 + $0x158] sm:$0xff] }
  0xcb   : > { %1977 = vmatpush2.bf16.msra.mxu1 %v5582_v3  ;;  %1785 = vmatprep.subr.bf16.mxu0 %v5591_v6  ;;  %v6359_v3 = vcombine.low %v257_v36, %v259_v37  ;;  %v6361_v6 = vcombine.low %v258_v42, %v260_v43  ;;  %v6365_v8 = vcombine.high %v262_v59, %v264_v2  ;;  %v5629_v36 = vld [vmem:[#allocation7 + $0x2e4] ss:$16 sps:$4 sm:$0xff]   ;;  %v272_v37 = vld [vmem:[%s6191_s30 + $0x198] sm:$0xff] }
  0xcc   : > { %1978 = vmatprep.subr.bf16.mxu1 %v5594_v7  ;;  %v6363_v7 = vcombine.high %v261_v57, %v263_v58  ;;  %v6391_v42 = vcombine.low %v265_v9, %v267_v10 }
  0xce   : > { %1786 = vmatpush2.bf16.msra.mxu0 %v5589_v14  ;;  %v268_v14 = vld [vmem:[%s6191_s30 + $0x178] sm:$0xff] }
  0xcf   : > { %1979 = vmatpush2.bf16.msra.mxu1 %v5592_v15  ;;  %1787 = vmatprep.subr.bf16.mxu0 %v5601_v22  ;;  %v6375_v15 = vcombine.low %v261_v57, %v263_v58  ;;  %v6377_v22 = vcombine.low %v262_v59, %v264_v2  ;;  %v6393_v43 = vcombine.low %v266_v11, %v268_v14  ;;  %v275_v57 = vld [vmem:[%s6191_s30 + $0x1b0] sm:$0xff]  ;;  %v274_v58 = vld [vmem:[%s6191_s30 + $0x1a8] sm:$0xff]  ;;  %v276_v59 = vld [vmem:[%s6191_s30 + $0x1b8] sm:$0xff] }
  0xd0   : > { %1980 = vmatprep.subr.bf16.mxu1 %v5604_v23  ;;  %1476 = vmatmul.mubr.bf16.gmra.mxu0 %v6327_v24  ;;  %v6379_v23 = vcombine.high %v265_v9, %v267_v10 }
  0xd1   : > { %1669 = vmatmul.mubr.bf16.gmra.mxu1 %v6329_v25  ;;  %1485 = vmatprep.mubr.bf16.mxu0 %v6331_v32 }
  0xd2   : > { %1678 = vmatprep.mubr.bf16.mxu1 %v6333_v33  ;;  %1788 = vmatpush2.bf16.msra.mxu0 %v5599_v26  ;;  %v6381_v26 = vcombine.high %v266_v11, %v268_v14  ;;  %v6413_v11 = vcombine.high %v274_v58, %v276_v59  ;;  %v277_v14 = vld [vmem:[%s6191_s30 + $0x1c0] sm:$0xff] }
  0xd3   : > { %1981 = vmatpush2.bf16.msra.mxu1 %v5602_v27  ;;  %1789 = vmatprep.subr.bf16.mxu0 %v5611_v34  ;;  %v269_v27 = vld [vmem:[%s6191_s30 + $0x180] sm:$0xff]  ;;  %v271_v34 = vld [vmem:[%s6191_s30 + $0x190] sm:$0xff] }
  0xd4   : > { %1982 = vmatprep.subr.bf16.mxu1 %v5614_v35  ;;  %v270_v35 = vld [vmem:[%s6191_s30 + $0x188] sm:$0xff]  ;;  %v6407_v2 = vcombine.low %v269_v27, %v271_v34  ;;  %7753 = vst [vmem:[#allocation17_spill] sm:$0xff] %v6413_v11 }
  0xd5   : > { %v6409_v9 = vcombine.low %v270_v35, %v272_v37 }
  0xd6   : > { %1790 = vmatpush2.bf16.msra.mxu0 %v5609_v48  ;;  %v6395_v48 = vcombine.high %v269_v27, %v271_v34  ;;  %7750 = vst [vmem:[#allocation14_spill] sm:$0xff] %v6407_v2  ;;  %v279_v27 = vld [vmem:[%s6191_s30 + $0x1d0] sm:$0xff]  ;;  %v278_v34 = vld [vmem:[%s6191_s30 + $0x1c8] sm:$0xff] }
  0xd7   : > { %1983 = vmatpush2.bf16.msra.mxu1 %v5612_v49  ;;  %3105 = vmatprep.subr.bf16.mxu0 %v5617_v56  ;;  %v6397_v49 = vcombine.high %v270_v35, %v272_v37  ;;  %v273_v56 = vld [vmem:[%s6191_s30 + $0x1a0] sm:$0xff]  ;;  %7751 = vst [vmem:[#allocation15_spill] sm:$0xff] %v6409_v9  ;;  %v280_v35 = vld [vmem:[%s6191_s30 + $0x1d8] sm:$0xff]  ;;  %v6425_v37 = vcombine.low %v274_v58, %v276_v59 }
  0xd8   : > { %1486 = vmatmul.mubr.bf16.gmra.mxu0 %v6343_v50  ;;  %3298 = vmatprep.subr.bf16.mxu1 %v5629_v36  ;;  %7748 = vst [vmem:[#allocation12_spill] sm:$0xff] %v6395_v48  ;;  %v6411_v10 = vcombine.high %v273_v56, %v275_v57  ;;  %v6423_v36 = vcombine.low %v273_v56, %v275_v57 }
  0xd9   : > { %1679 = vmatmul.mubr.bf16.gmra.mxu1 %v6345_v51  ;;  %1495 = vmatprep.mubr.bf16.mxu0 %v6347_v52  ;;  %7749 = vst [vmem:[#allocation13_spill] sm:$0xff] %v6397_v49  ;;  %v6439_v56 = vcombine.low %v277_v14, %v279_v27  ;;  %v6441_v57 = vcombine.low %v278_v34, %v280_v35 }
  0xda   : > { %1688 = vmatprep.mubr.bf16.mxu1 %v6349_v55  ;;  %7752 = vst [vmem:[#allocation16_spill] sm:$0xff] %v6411_v10 }
  0xe0   : > { %1496 = vmatmul.mubr.bf16.gmra.mxu0 %v6359_v3 }
  0xe1   : > { %1689 = vmatmul.mubr.bf16.gmra.mxu1 %v6361_v6  ;;  %1505 = vmatprep.mubr.bf16.mxu0 %v6363_v7 }
  0xe2   : > { %1698 = vmatprep.mubr.bf16.mxu1 %v6365_v8 }
  0xe8   : > { %1506 = vmatmul.mubr.bf16.gmra.mxu0 %v6375_v15 }
  0xe9   : > { %1699 = vmatmul.mubr.bf16.gmra.mxu1 %v6377_v22  ;;  %1515 = vmatprep.mubr.bf16.mxu0 %v6379_v23 }
  0xea   : > { %1708 = vmatprep.mubr.bf16.mxu1 %v6381_v26 }
  0xf0   : > { %1516 = vmatmul.mubr.bf16.gmra.mxu0 %v6391_v42 }
  0xf1   : > { %1709 = vmatmul.mubr.bf16.gmra.mxu1 %v6393_v43  ;;  %1525 = vmatprep.mubr.bf16.mxu0 %v6395_v48  ;;  %v284_v48 = vld [vmem:[%s6191_s30 + $0x1f8] sm:$0xff] }
  0xf2   : > { %1718 = vmatprep.mubr.bf16.mxu1 %v6397_v49  ;;  %v6427_v49 = vcombine.high %v277_v14, %v279_v27  ;;  %v5615_v14 = vld [vmem:[#allocation7 + $0xe0] ss:$16 sps:$4 sm:$0xff]  }
  0xf3   : > { %v5627_v27 = vld [vmem:[#allocation7 + $0x2e0] ss:$16 sps:$4 sm:$0xff]  }
  0xf4   : > { %7754 = vst [vmem:[#allocation18_spill] sm:$0xff] %v6427_v49 }
  0xf8   : > { %1526 = vmatmul.mubr.bf16.gmra.mxu0 %v6407_v2  ;;  %v6429_v2 = vcombine.high %v278_v34, %v280_v35  ;;  %v5620_v34 = vld [vmem:[#allocation7 + $0xc4] ss:$16 sps:$4 sm:$0xff]  }
  0xf9   : > { %1719 = vmatmul.mubr.bf16.gmra.mxu1 %v6409_v9  ;;  %1535 = vmatprep.mubr.bf16.mxu0 %v6411_v10  ;;  %v283_v10 = vld [vmem:[%s6191_s30 + $0x1f0] sm:$0xff]  ;;  %v282_v9 = vld [vmem:[%s6191_s30 + $0x1e8] sm:$0xff] }
  0xfa   : > { %1728 = vmatprep.mubr.bf16.mxu1 %v6413_v11  ;;  %7755 = vst [vmem:[#allocation19_spill] sm:$0xff] %v6429_v2  ;;  %v281_v11 = vld [vmem:[%s6191_s30 + $0x1e0] sm:$0xff]  ;;  %v6445_v59 = vcombine.high %v282_v9, %v284_v48 }
  0xfb   : > { %v6443_v58 = vcombine.high %v281_v11, %v283_v10  ;;  %v5638_v35 = vld [vmem:[#allocation7 + $0x2c4] ss:$16 sps:$4 sm:$0xff]  }
 0x100   : > { %1536 = vmatmul.mubr.bf16.gmra.mxu0 %v6423_v36 }
 0x101   : > { %1729 = vmatmul.mubr.bf16.gmra.mxu1 %v6425_v37  ;;  %1545 = vmatprep.mubr.bf16.mxu0 %v6427_v49  ;;  %v6453_v49 = vcombine.low %v282_v9, %v284_v48  ;;  %v5618_v48 = vld [vmem:[#allocation7 + $0xc0] ss:$16 sps:$4 sm:$0xff]  }
 0x102   : > { %1738 = vmatprep.mubr.bf16.mxu1 %v6429_v2  ;;  %v6451_v2 = vcombine.low %v281_v11, %v283_v10  ;;  %v5636_v9 = vld [vmem:[#allocation7 + $0x2c0] ss:$16 sps:$4 sm:$0xff]  }
 0x103   : > { %v5621_v10 = vld [vmem:[#allocation7 + $0xa0] ss:$16 sps:$4 sm:$0xff]  }
 0x104   : > { %v5645_v11 = vld [vmem:[#allocation7 + $0x2a0] ss:$16 sps:$4 sm:$0xff]  }
 0x108   : > { %1546 = vmatmul.mubr.bf16.gmra.mxu0 %v6439_v56 }
 0x109   : > { %1739 = vmatmul.mubr.bf16.gmra.mxu1 %v6441_v57  ;;  %1555 = vmatprep.mubr.bf16.mxu0 %v6443_v58 }
 0x10a   : > { %1748 = vmatprep.mubr.bf16.mxu1 %v6445_v59 }
 0x110   : > { %1556 = vmatmul.mubr.bf16.gmra.mxu0 %v6451_v2 }
 0x111   : > { %1749 = vmatmul.mubr.bf16.gmra.mxu1 %v6453_v49  ;;  %1791 = vmatprep.mubr.bf16.mxu0 %v6205_v53  ;;  %v5623_v53 = vld [vmem:[#allocation7 + $0xa4] ss:$16 sps:$4 sm:$0xff]  }
 0x112   : > { %1984 = vmatprep.mubr.bf16.mxu1 %v6207_v54  ;;  %v5647_v54 = vld [vmem:[#allocation7 + $0x2a4] ss:$16 sps:$4 sm:$0xff]  }
 0x118   : > { %1792 = vmatmul.mubr.bf16.vlgmr.msra.gmra.mxu0 %v6215_v12  ;;  %v5626_v12 = vld [vmem:[#allocation7 + $0x84] ss:$16 sps:$4 sm:$0xff]  }
 0x119   : > { %1985 = vmatmul.mubr.bf16.vlgmr.msra.gmra.mxu1 %v6217_v13  ;;  %1801 = vmatprep.mubr.bf16.mxu0 %v6219_v16  ;;  %v5656_v13 = vld [vmem:[#allocation7 + $0x284] ss:$16 sps:$4 sm:$0xff]   ;;  %v5624_v16 = vld [vmem:[#allocation7 + $0x80] ss:$16 sps:$4 sm:$0xff]  }
 0x11a   : > { %1994 = vmatprep.mubr.bf16.mxu1 %v6221_v17  ;;  %3106 = vmatpush1.bf16.msra.mxu0 %v5615_v14  ;;  %v5654_v17 = vld [vmem:[#allocation7 + $0x280] ss:$16 sps:$4 sm:$0xff]   ;;  %v5632_v14 = vld [vmem:[#allocation7 + $0x64] ss:$16 sps:$4 sm:$0xff]  }
 0x11b   : > { %3299 = vmatpush1.bf16.msra.mxu1 %v5627_v27  ;;  %3107 = vmatprep.subr.bf16.mxu0 %v5620_v34  ;;  %v5665_v27 = vld [vmem:[#allocation7 + $0x264] ss:$16 sps:$4 sm:$0xff]   ;;  %v5630_v34 = vld [vmem:[#allocation7 + $0x60] ss:$16 sps:$4 sm:$0xff]  }
 0x11c   : > { %3300 = vmatprep.subr.bf16.mxu1 %v5638_v35  ;;  %v5663_v35 = vld [vmem:[#allocation7 + $0x260] ss:$16 sps:$4 sm:$0xff]  }
 0x11e   : > { %3108 = vmatpush1.bf16.msra.mxu0 %v5618_v48  ;;  %v5641_v48 = vld [vmem:[#allocation7 + $0x24] ss:$16 sps:$4 sm:$0xff]  }
 0x11f   : > { %3301 = vmatpush1.bf16.msra.mxu1 %v5636_v9  ;;  %3109 = vmatprep.subr.bf16.mxu0 %v5623_v53  ;;  %v5683_v9 = vld [vmem:[#allocation7 + $0x224] ss:$16 sps:$4 sm:$0xff]   ;;  %v5639_v53 = vld [vmem:[#allocation7 + $0x20] ss:$16 sps:$4 sm:$0xff]  }
 0x120   : > { %3302 = vmatprep.subr.bf16.mxu1 %v5647_v54  ;;  %1802 = vmatmul.mubr.bf16.gmra.mxu0 %v6231_v28  ;;  %v5635_v28 = vld [vmem:[#allocation7 + $0x44] ss:$16 sps:$4 sm:$0xff]   ;;  %v5681_v54 = vld [vmem:[#allocation7 + $0x220] ss:$16 sps:$4 sm:$0xff]  }
 0x121   : > { %1995 = vmatmul.mubr.bf16.gmra.mxu1 %v6233_v29  ;;  %1811 = vmatprep.mubr.bf16.mxu0 %v6235_v30  ;;  %v5674_v29 = vld [vmem:[#allocation7 + $0x244] ss:$16 sps:$4 sm:$0xff]   ;;  %v5633_v30 = vld [vmem:[#allocation7 + $0x40] ss:$16 sps:$4 sm:$0xff]  }
 0x122   : > { %2004 = vmatprep.mubr.bf16.mxu1 %v6237_v31  ;;  %3110 = vmatpush1.bf16.msra.mxu0 %v5621_v10  ;;  %v5672_v31 = vld [vmem:[#allocation7 + $0x240] ss:$16 sps:$4 sm:$0xff]   ;;  %v5650_v10 = vld [vmem:[#allocation7 + $0x1e4] ss:$16 sps:$4 sm:$0xff]  }
 0x123   : > { %3303 = vmatpush1.bf16.msra.mxu1 %v5645_v11  ;;  %3111 = vmatprep.subr.bf16.mxu0 %v5626_v12  ;;  %v5689_v11 = vld [vmem:[#allocation7 + $0x3e4] ss:$16 sps:$4 sm:$0xff]   ;;  %v5648_v12 = vld [vmem:[#allocation7 + $0x1e0] ss:$16 sps:$4 sm:$0xff]  }
 0x124   : > { %3304 = vmatprep.subr.bf16.mxu1 %v5656_v13  ;;  %v5687_v13 = vld [vmem:[#allocation7 + $0x3e0] ss:$16 sps:$4 sm:$0xff]  }
 0x126   : > { %3112 = vmatpush1.bf16.msra.mxu0 %v5624_v16  ;;  %v5659_v16 = vld [vmem:[#allocation7 + $0x1a4] ss:$16 sps:$4 sm:$0xff]  }
 0x127   : > { %3305 = vmatpush1.bf16.msra.mxu1 %v5654_v17  ;;  %3113 = vmatprep.subr.bf16.mxu0 %v5632_v14  ;;  %v5695_v17 = vld [vmem:[#allocation7 + $0x3a4] ss:$16 sps:$4 sm:$0xff]   ;;  %v5657_v14 = vld [vmem:[#allocation7 + $0x1a0] ss:$16 sps:$4 sm:$0xff]  }
 0x128   : > { %3306 = vmatprep.subr.bf16.mxu1 %v5665_v27  ;;  %1812 = vmatmul.mubr.bf16.gmra.mxu0 %v6247_v44  ;;  %v5644_v44 = vld [vmem:[#allocation7 + $0x4] ss:$16 sps:$4 sm:$0xff]   ;;  %v5693_v27 = vld [vmem:[#allocation7 + $0x3a0] ss:$16 sps:$4 sm:$0xff]  }
 0x129   : > { %2005 = vmatmul.mubr.bf16.gmra.mxu1 %v6249_v45  ;;  %1821 = vmatprep.mubr.bf16.mxu0 %v6251_v46  ;;  %v5686_v45 = vld [vmem:[#allocation7 + $0x204] ss:$16 sps:$4 sm:$0xff]   ;;  %v5642_v46 = vld [vmem:[#allocation7] ss:$16 sps:$4 sm:$0xff]  }
 0x12a   : > { %2014 = vmatprep.mubr.bf16.mxu1 %v6253_v47  ;;  %3114 = vmatpush1.bf16.msra.mxu0 %v5630_v34  ;;  %v5684_v47 = vld [vmem:[#allocation7 + $0x200] ss:$16 sps:$4 sm:$0xff]   ;;  %v5668_v34 = vld [vmem:[#allocation7 + $0x164] ss:$16 sps:$4 sm:$0xff]  }
 0x12b   : > { %3307 = vmatpush1.bf16.msra.mxu1 %v5663_v35  ;;  %3115 = vmatprep.subr.bf16.mxu0 %v5635_v28  ;;  %v5666_v35 = vld [vmem:[#allocation7 + $0x160] ss:$16 sps:$4 sm:$0xff]   ;;  %v5671_v28 = vld [vmem:[#allocation7 + $0x144] ss:$16 sps:$4 sm:$0xff]  }
 0x12c   : > { %3308 = vmatprep.subr.bf16.mxu1 %v5674_v29  ;;  %v5675_v29 = vld [vmem:[#allocation7 + $0x120] ss:$16 sps:$4 sm:$0xff]  }
 0x12e   : > { %3116 = vmatpush1.bf16.msra.mxu0 %v5633_v30  ;;  %v5680_v30 = vld [vmem:[#allocation7 + $0x104] ss:$16 sps:$4 sm:$0xff]  }
 0x12f   : > { %3309 = vmatpush1.bf16.msra.mxu1 %v5672_v31  ;;  %3117 = vmatprep.subr.bf16.mxu0 %v5641_v48 }
 0x130   : > { %3310 = vmatprep.subr.bf16.mxu1 %v5683_v9  ;;  %1822 = vmatmul.mubr.bf16.gmra.mxu0 %v6263_v62  ;;  %v5653_v62 = vld [vmem:[#allocation7 + $0x1c4] ss:$16 sps:$4 sm:$0xff]  }
 0x131   : > { %2015 = vmatmul.mubr.bf16.gmra.mxu1 %v6265_v63  ;;  %1831 = vmatprep.mubr.bf16.mxu0 %v6267_v0  ;;  %v5692_v63 = vld [vmem:[#allocation7 + $0x3c4] ss:$16 sps:$4 sm:$0xff]   ;;  %v5651_v0 = vld [vmem:[#allocation7 + $0x1c0] ss:$16 sps:$4 sm:$0xff]  }
 0x132   : > { %2024 = vmatprep.mubr.bf16.mxu1 %v6269_v1  ;;  %3118 = vmatpush1.bf16.msra.mxu0 %v5639_v53  ;;  %v5690_v1 = vld [vmem:[#allocation7 + $0x3c0] ss:$16 sps:$4 sm:$0xff]  }
 0x133   : > { %3311 = vmatpush1.bf16.msra.mxu1 %v5681_v54  ;;  %3119 = vmatprep.subr.bf16.mxu0 %v5644_v44  ;;  %v5716_v54 = vld [vmem:[#allocation7 + $0x304] ss:$16 sps:$4 sm:$0xff]   ;;  %v5714_v44 = vld [vmem:[#allocation7 + $0x300] ss:$16 sps:$4 sm:$0xff]  }
 0x134   : > { %3312 = vmatprep.subr.bf16.mxu1 %v5686_v45 }
 0x136   : > { %3120 = vmatpush1.bf16.msra.mxu0 %v5642_v46 }
 0x137   : > { %3313 = vmatpush1.bf16.msra.mxu1 %v5684_v47  ;;  %3121 = vmatprep.subr.bf16.mxu0 %v5650_v10 }
 0x138   : > { %3314 = vmatprep.subr.bf16.mxu1 %v5689_v11  ;;  %1832 = vmatmul.mubr.bf16.gmra.mxu0 %v6279_v18  ;;  %v5662_v18 = vld [vmem:[#allocation7 + $0x184] ss:$16 sps:$4 sm:$0xff]  }
 0x139   : > { %2025 = vmatmul.mubr.bf16.gmra.mxu1 %v6281_v19  ;;  %1841 = vmatprep.mubr.bf16.mxu0 %v6283_v20  ;;  %v5698_v19 = vld [vmem:[#allocation7 + $0x384] ss:$16 sps:$4 sm:$0xff]   ;;  %v5660_v20 = vld [vmem:[#allocation7 + $0x180] ss:$16 sps:$4 sm:$0xff]  }
 0x13a   : > { %2034 = vmatprep.mubr.bf16.mxu1 %v6285_v21  ;;  %3122 = vmatpush2.bf16.msra.mxu0 %v5648_v12  ;;  %v5696_v21 = vld [vmem:[#allocation7 + $0x380] ss:$16 sps:$4 sm:$0xff]  }
 0x13b   : > { %3315 = vmatpush2.bf16.msra.mxu1 %v5687_v13  ;;  %3123 = vmatprep.subr.bf16.mxu0 %v5653_v62 }
 0x13c   : > { %3316 = vmatprep.subr.bf16.mxu1 %v5692_v63 }
 0x13e   : > { %3124 = vmatpush2.bf16.msra.mxu0 %v5651_v0 }
 0x13f   : > { %3317 = vmatpush2.bf16.msra.mxu1 %v5690_v1  ;;  %3125 = vmatprep.subr.bf16.mxu0 %v5659_v16 }
 0x140   : > { %3318 = vmatprep.subr.bf16.mxu1 %v5695_v17  ;;  %1842 = vmatmul.mubr.bf16.gmra.mxu0 %v6295_v38  ;;  %v5699_v38 = vld [vmem:[#allocation7 + $0x360] ss:$16 sps:$4 sm:$0xff]  }
 0x141   : > { %2035 = vmatmul.mubr.bf16.gmra.mxu1 %v6297_v39  ;;  %1851 = vmatprep.mubr.bf16.mxu0 %v6299_v40  ;;  %v5701_v39 = vld [vmem:[#allocation7 + $0x364] ss:$16 sps:$4 sm:$0xff]   ;;  %v5669_v40 = vld [vmem:[#allocation7 + $0x140] ss:$16 sps:$4 sm:$0xff]  }
 0x142   : > { %2044 = vmatprep.mubr.bf16.mxu1 %v6301_v41  ;;  %3126 = vmatpush2.bf16.msra.mxu0 %v5657_v14  ;;  %v5677_v41 = vld [vmem:[#allocation7 + $0x124] ss:$16 sps:$4 sm:$0xff]  }
 0x143   : > { %3319 = vmatpush2.bf16.msra.mxu1 %v5693_v27  ;;  %3127 = vmatprep.subr.bf16.mxu0 %v5662_v18 }
 0x144   : > { %3320 = vmatprep.subr.bf16.mxu1 %v5698_v19 }
 0x146   : > { %3128 = vmatpush2.bf16.msra.mxu0 %v5660_v20 }
 0x147   : > { %3321 = vmatpush2.bf16.msra.mxu1 %v5696_v21  ;;  %3129 = vmatprep.subr.bf16.mxu0 %v5668_v34  ;;  %v7759_v21 = vld [vmem:[#allocation15_spill] sm:$0xff]  ;;  %v7760_v34 = vld [vmem:[#allocation16_spill] sm:$0xff] }
 0x148   : > { %1852 = vmatmul.mubr.bf16.gmra.mxu0 %v6311_v60  ;;  %3322 = vmatprep.subr.bf16.mxu1 %v5701_v39  ;;  %v5702_v60 = vld [vmem:[#allocation7 + $0x340] ss:$16 sps:$4 sm:$0xff]  }
 0x149   : > { %2045 = vmatmul.mubr.bf16.gmra.mxu1 %v6313_v61  ;;  %1861 = vmatprep.mubr.bf16.mxu0 %v6315_v4  ;;  %v5704_v61 = vld [vmem:[#allocation7 + $0x344] ss:$16 sps:$4 sm:$0xff]   ;;  %v5678_v4 = vld [vmem:[#allocation7 + $0x100] ss:$16 sps:$4 sm:$0xff]  }
 0x14a   : > { %2054 = vmatprep.mubr.bf16.mxu1 %v6317_v5  ;;  %3130 = vmatpush2.bf16.msra.mxu0 %v5666_v35  ;;  %v5710_v5 = vld [vmem:[#allocation7 + $0xec] ss:$16 sps:$4 sm:$0xff]  }
 0x14b   : > { %3131 = vmatprep.subr.bf16.mxu0 %v5671_v28  ;;  %3323 = vmatpush2.bf16.msra.mxu1 %v5699_v38  ;;  %v7761_v35 = vld [vmem:[#allocation17_spill] sm:$0xff] }
 0x14c   : > { %3324 = vmatprep.subr.bf16.mxu1 %v5704_v61  ;;  %v7762_v61 = vld [vmem:[#allocation18_spill] sm:$0xff] }
 0x14e   : > { %3132 = vmatpush2.bf16.msra.mxu0 %v5669_v40 }
 0x14f   : > { %3133 = vmatprep.subr.bf16.mxu0 %v5677_v41  ;;  %3325 = vmatpush2.bf16.msra.mxu1 %v5702_v60 }
 0x150   : > { %1862 = vmatmul.mubr.bf16.gmra.mxu0 %v6327_v24  ;;  %v5705_v24 = vld [vmem:[#allocation7 + $0x320] ss:$16 sps:$4 sm:$0xff]  }
 0x151   : > { %2055 = vmatmul.mubr.bf16.gmra.mxu1 %v6329_v25  ;;  %1871 = vmatprep.mubr.bf16.mxu0 %v6331_v32  ;;  %v5707_v25 = vld [vmem:[#allocation7 + $0x324] ss:$16 sps:$4 sm:$0xff]  }
 0x152   : > { %2064 = vmatprep.mubr.bf16.mxu1 %v6333_v33  ;;  %3134 = vmatpush2.bf16.msra.mxu0 %v5675_v29 }
 0x153   : > { %3135 = vmatprep.subr.bf16.mxu0 %v5680_v30  ;;  %3326 = vmatprep.subr.bf16.mxu1 %v5707_v25 }
 0x154   : > { %3327 = vmatpush2.bf16.msra.mxu1 %v5705_v24 }
 0x155   : > { %3328 = vmatprep.subr.bf16.mxu1 %v5716_v54 }
 0x156   : > { %3136 = vmatpush2.bf16.msra.mxu0 %v5678_v4  ;;  %v7763_v4 = vld [vmem:[#allocation19_spill] sm:$0xff] }
 0x157   : > { %3491 = vmatprep.subr.bf16.mxu0 %v5710_v5 }
 0x158   : > { %v6491_v31 = vpop.f32.mrf.mxu0  ;;  %1872 = vmatmul.mubr.bf16.gmra.mxu0 %v6343_v50  ;;  %3329 = vmatpush2.bf16.msra.mxu1 %v5714_v44 }
 0x159   : > { %v6493_v48 = vpop.f32.mrf.mxu1  ;;  %2065 = vmatmul.mubr.bf16.gmra.mxu1 %v6345_v51  ;;  %1881 = vmatprep.mubr.bf16.mxu0 %v6347_v52 }
 0x15a   : > { %2074 = vmatprep.mubr.bf16.mxu1 %v6349_v55  ;;  %v6499_v32 = vpop.f32.mrf.mxu0 }
 0x15b   : > { %v6501_v33 = vpop.f32.mrf.mxu1 }
 0x15c   : > { %v6503_v9 = vpop.f32.mrf.mxu0 }
 0x15d   : > { %v6505_v53 = vpop.f32.mrf.mxu1 }
 0x15e   : > { %v6507_v50 = vpop.f32.mrf.mxu0 }
 0x15f   : > { %v6509_v51 = vpop.f32.mrf.mxu1 }
 0x160   : > { %v6511_v52 = vpop.f32.mrf.mxu0  ;;  %1882 = vmatmul.mubr.bf16.gmra.mxu0 %v6359_v3 }
 0x161   : > { %v6513_v55 = vpop.f32.mrf.mxu1  ;;  %2075 = vmatmul.mubr.bf16.gmra.mxu1 %v6361_v6  ;;  %1891 = vmatprep.mubr.bf16.mxu0 %v6363_v7 }
 0x162   : > { %2084 = vmatprep.mubr.bf16.mxu1 %v6365_v8  ;;  %v6519_v45 = vpop.f32.mrf.mxu0  ;;  %v5725_v8 = vld [vmem:[#allocation7 + $0x2ec] ss:$16 sps:$4 sm:$0xff]  }
 0x163   : > { %v6521_v46 = vpop.f32.mrf.mxu1  ;;  %3684 = vmatprep.subr.bf16.mxu1 %v5725_v8 }
 0x164   : > { %v6523_v47 = vpop.f32.mrf.mxu0 }
 0x165   : > { %v6525_v10 = vpop.f32.mrf.mxu1 }
 0x166   : > { %v6527_v11 = vpop.f32.mrf.mxu0 }
 0x167   : > { %v6529_v3 = vpop.f32.mrf.mxu1 }
 0x168   : > { %v6531_v6 = vpop.f32.mrf.mxu0  ;;  %1892 = vmatmul.mubr.bf16.gmra.mxu0 %v6375_v15 }
 0x169   : > { %v6533_v7 = vpop.f32.mrf.mxu1  ;;  %2085 = vmatmul.mubr.bf16.gmra.mxu1 %v6377_v22  ;;  %1901 = vmatprep.mubr.bf16.mxu0 %v6379_v23  ;;  %v7756_v23 = vld [vmem:[#allocation12_spill] sm:$0xff] }
 0x16a   : > { %2094 = vmatprep.mubr.bf16.mxu1 %v6381_v26  ;;  %v6539_v12 = vpop.f32.mrf.mxu0  ;;  %v7757_v26 = vld [vmem:[#allocation13_spill] sm:$0xff] }
 0x16b   : > { %v6541_v13 = vpop.f32.mrf.mxu1 }
 0x16c   : > { %v6543_v62 = vpop.f32.mrf.mxu0 }
 0x16d   : > { %v6545_v63 = vpop.f32.mrf.mxu1 }
 0x16e   : > { %v6547_v0 = vpop.f32.mrf.mxu0 }
 0x16f   : > { %v6549_v1 = vpop.f32.mrf.mxu1 }
 0x170   : > { %v6551_v15 = vpop.f32.mrf.mxu0  ;;  %1902 = vmatmul.mubr.bf16.gmra.mxu0 %v6391_v42 }
 0x171   : > { %v6553_v22 = vpop.f32.mrf.mxu1  ;;  %2095 = vmatmul.mubr.bf16.gmra.mxu1 %v6393_v43  ;;  %1911 = vmatprep.mubr.bf16.mxu0 %v7756_v23  ;;  %v7758_v43 = vld [vmem:[#allocation14_spill] sm:$0xff] }
 0x172   : > { %2104 = vmatprep.mubr.bf16.mxu1 %v7757_v26  ;;  %v6559_v16 = vpop.f32.mrf.mxu0  ;;  %v1603_v26 = vadd.f32 %v6501_v33, %v6499_v32  ;;  %v1601_v33 = vadd.f32 %v6493_v48, %v6491_v31 }
 0x173   : > { %v6561_v17 = vpop.f32.mrf.mxu1 }
 0x174   : > { %v6563_v14 = vpop.f32.mrf.mxu0  ;;  %v2145_v31 = vmax.f32 %v1601_v33, 0.0 }
 0x175   : > { %v6565_v27 = vpop.f32.mrf.mxu1 }
 0x176   : > { %v6567_v18 = vpop.f32.mrf.mxu0 }
 0x177   : > { %v6569_v19 = vpop.f32.mrf.mxu1 }
 0x178   : > { %v6571_v20 = vpop.f32.mrf.mxu0  ;;  %1912 = vmatmul.mubr.bf16.gmra.mxu0 %v7758_v43 }
 0x179   : > { %v6573_v42 = vpop.f32.mrf.mxu1  ;;  %2105 = vmatmul.mubr.bf16.gmra.mxu1 %v7759_v21  ;;  %1921 = vmatprep.mubr.bf16.mxu0 %v7760_v34 }
 0x17a   : > { %2114 = vmatprep.mubr.bf16.mxu1 %v7761_v35  ;;  %v6579_v28 = vpop.f32.mrf.mxu0  ;;  %v2146_v35 = vmax.f32 %v1603_v26, 0.0 }
 0x17b   : > { %v6581_v38 = vpop.f32.mrf.mxu1 }
 0x17c   : > { %v6583_v39 = vpop.f32.mrf.mxu0 }
 0x17d   : > { %v6585_v40 = vpop.f32.mrf.mxu1 }
 0x17e   : > { %v6587_v41 = vpop.f32.mrf.mxu0 }
 0x17f   : > { %v6589_v29 = vpop.f32.mrf.mxu1 }
 0x180   : > { %v6591_v30 = vpop.f32.mrf.mxu0  ;;  %1922 = vmatmul.mubr.bf16.gmra.mxu0 %v6423_v36  ;;  %v1607_v36 = vadd.f32 %v6509_v51, %v6507_v50 }
 0x181   : > { %v6593_v60 = vpop.f32.mrf.mxu1  ;;  %2115 = vmatmul.mubr.bf16.gmra.mxu1 %v6425_v37  ;;  %1931 = vmatprep.mubr.bf16.mxu0 %v7762_v61 }
 0x182   : > { %2124 = vmatprep.mubr.bf16.mxu1 %v7763_v4  ;;  %v6599_v5 = vpop.f32.mrf.mxu0  ;;  %v2150_v50 = vmax.f32 %v1607_v36, 0.0 }
 0x183   : > { %v6601_v24 = vpop.f32.mrf.mxu1 }
 0x184   : > { %v6603_v25 = vpop.f32.mrf.mxu0 }
 0x185   : > { %v6605_v54 = vpop.f32.mrf.mxu1 }
 0x186   : > { %v6607_v44 = vpop.f32.mrf.mxu0 }
 0x187   : > { %v6609_v8 = vpop.f32.mrf.mxu1 }
 0x188   : > { %v6613_v37 = vpop.f32.mrf.mxu0  ;;  %1932 = vmatmul.mubr.bf16.gmra.mxu0 %v6439_v56  ;;  %v1605_v56 = vadd.f32 %v6505_v53, %v6503_v9  ;;  %v1613_v9 = vadd.f32 %v6521_v46, %v6519_v45 }
 0x189   : > { %v6615_v23 = vpop.f32.mrf.mxu1  ;;  %2125 = vmatmul.mubr.bf16.gmra.mxu1 %v6441_v57  ;;  %1941 = vmatprep.mubr.bf16.mxu0 %v6443_v58  ;;  %v1617_v58 = vadd.f32 %v6529_v3, %v6527_v11 }
 0x18a   : > { %2134 = vmatprep.mubr.bf16.mxu1 %v6445_v59  ;;  %v6623_v43 = vpop.f32.mrf.mxu0  ;;  %v6639_v59 = vpack.c.bf16 %v2150_v50, %v2146_v35  ;;  %v2149_v53 = vmax.f32 %v1605_v56, 0.0  ;;  %v2154_v50 = vmax.f32 %v1613_v9, 0.0  ;;  %v5713_v56 = vld [vmem:[#allocation7 + $0xcc] ss:$16 sps:$4 sm:$0xff]  }
 0x18b   : > { %v6625_v21 = vpop.f32.mrf.mxu1  ;;  %v2158_v36 = vmax.f32 %v1617_v58, 0.0  ;;  %v1627_v58 = vadd.f32 %v6549_v1, %v6547_v0 }
 0x18c   : > { %v6627_v51 = vpop.f32.mrf.mxu0  ;;  %7764 = vst [vmem:[#allocation12_spill] sm:$0xff] %v6639_v59  ;;  %v6660_v35 = vpack.c.bf16 %v2149_v53, %v2145_v31 }
 0x18d   : > { %v6629_v34 = vpop.f32.mrf.mxu1  ;;  %v6670_v33 = vpack.c.bf16 %v2158_v36, %v2154_v50 }
 0x18e   : > { %v6633_v57 = vpop.f32.mrf.mxu0  ;;  %7765 = vst [vmem:[#allocation13_spill] sm:$0xff] %v6660_v35 }
 0x18f   : > { %v6635_v32 = vpop.f32.mrf.mxu1  ;;  %7766 = vst [vmem:[#allocation14_spill] sm:$0xff] %v6670_v33 }
 0x190   : > { %v6643_v61 = vpop.f32.mrf.mxu0  ;;  %1942 = vmatmul.mubr.bf16.gmra.mxu0 %v6451_v2  ;;  %v5708_v2 = vld [vmem:[#allocation7 + $0xe8] ss:$16 sps:$4 sm:$0xff]  }
 0x191   : > { %v6645_v4 = vpop.f32.mrf.mxu1  ;;  %2135 = vmatmul.mubr.bf16.gmra.mxu1 %v6453_v49  ;;  %3137 = vmatprep.mubr.bf16.mxu0 %v6639_v59  ;;  %v1615_v49 = vadd.f32 %v6525_v10, %v6523_v47  ;;  %v1611_v59 = vadd.f32 %v6513_v55, %v6511_v52  ;;  %v1623_v47 = vadd.f32 %v6541_v13, %v6539_v12  ;;  %v5711_v10 = vld [vmem:[#allocation7 + $0xc8] ss:$16 sps:$4 sm:$0xff]   ;;  %v5719_v52 = vld [vmem:[#allocation7 + $0xac] ss:$16 sps:$4 sm:$0xff]   ;;  %v2166_v55 = vmax.f32 %v1627_v58, 0.0 }
 0x192   : > { %v6652_v11 = vpop.f32.mrf.mxu0  ;;  %v5717_v12 = vld [vmem:[#allocation7 + $0xa8] ss:$16 sps:$4 sm:$0xff]  }
 0x193   : > { %v6654_v3 = vpop.f32.mrf.mxu1  ;;  %v2157_v31 = vmax.f32 %v1615_v49, 0.0  ;;  %v2153_v36 = vmax.f32 %v1611_v59, 0.0  ;;  %v1637_v59 = vadd.f32 %v6569_v19, %v6567_v18 }
 0x194   : > { %v6656_v48 = vpop.f32.mrf.mxu0 }
 0x195   : > { %v6658_v26 = vpop.f32.mrf.mxu1  ;;  %v6690_v13 = vpack.c.bf16 %v2157_v31, %v2153_v36 }
 0x196   : > { %v6664_v45 = vpop.f32.mrf.mxu0 }
 0x197   : > { %v6666_v46 = vpop.f32.mrf.mxu1  ;;  %7768 = vst [vmem:[#allocation16_spill] sm:$0xff] %v6690_v13 }
 0x198   : > { %v6674_v9 = vpop.f32.mrf.mxu0  ;;  %3138 = vmatmul.mubr.bf16.vlgmr.msra.gmra.mxu0 %v6660_v35  ;;  %v2162_v35 = vmax.f32 %v1623_v47, 0.0  ;;  %v1621_v47 = vadd.f32 %v6533_v7, %v6531_v6  ;;  %v5728_v6 = vld [vmem:[#allocation7 + $0x6c] ss:$16 sps:$4 sm:$0xff]   ;;  %v2174_v7 = vmax.f32 %v1637_v59, 0.0  ;;  %v1647_v59 = vadd.f32 %v6589_v29, %v6587_v41 }
 0x199   : > { %v6676_v53 = vpop.f32.mrf.mxu1  ;;  %3147 = vmatprep.mubr.bf16.mxu0 %v6670_v33  ;;  %3492 = vmatpush1.bf16.msra.mxu0 %v5708_v2  ;;  %v1625_v2 = vadd.f32 %v6545_v63, %v6543_v62  ;;  %v1633_v62 = vadd.f32 %v6561_v17, %v6559_v16  ;;  %v5720_v63 = vld [vmem:[#allocation7 + $0x88] ss:$16 sps:$4 sm:$0xff]  }
 0x19a   : > { %7767 = vst [vmem:[#allocation15_spill] sm:$0xff] %v6676_v53  ;;  %v6682_v0 = vpop.f32.mrf.mxu0  ;;  %3493 = vmatprep.subr.bf16.mxu0 %v5713_v56  ;;  %v5722_v56 = vld [vmem:[#allocation7 + $0x8c] ss:$16 sps:$4 sm:$0xff]   ;;  %v6700_v58 = vpack.c.bf16 %v2166_v55, %v2162_v35  ;;  %v2161_v35 = vmax.f32 %v1621_v47, 0.0  ;;  %v5726_v16 = vld [vmem:[#allocation7 + $0x68] ss:$16 sps:$4 sm:$0xff]  }
 0x19b   : > { %v6684_v1 = vpop.f32.mrf.mxu1 }
 0x19c   : > { %v6686_v50 = vpop.f32.mrf.mxu0  ;;  %7769 = vst [vmem:[#allocation17_spill] sm:$0xff] %v6700_v58 }
 0x19d   : > { %v6688_v53 = vpop.f32.mrf.mxu1  ;;  %3494 = vmatpush1.bf16.msra.mxu0 %v5711_v10 }
 0x19e   : > { %v6694_v49 = vpop.f32.mrf.mxu0  ;;  %3495 = vmatprep.subr.bf16.mxu0 %v5719_v52  ;;  %v2165_v52 = vmax.f32 %v1625_v2, 0.0 }
 0x19f   : > { %v6696_v33 = vpop.f32.mrf.mxu1 }
 0x1a0   : > { %v6704_v10 = vpop.f32.mrf.mxu0  ;;  %3148 = vmatmul.mubr.bf16.gmra.mxu0 %v6690_v13  ;;  %v2170_v13 = vmax.f32 %v1633_v62, 0.0  ;;  %v6720_v17 = vpack.c.bf16 %v2165_v52, %v2161_v35  ;;  %v1631_v62 = vadd.f32 %v6553_v22, %v6551_v15  ;;  %v5737_v15 = vld [vmem:[#allocation7 + $0x2c] ss:$16 sps:$4 sm:$0xff]   ;;  %v2182_v22 = vmax.f32 %v1647_v59, 0.0 }
 0x1a1   : > { %v6706_v31 = vpop.f32.mrf.mxu1  ;;  %3157 = vmatprep.mubr.bf16.mxu0 %v6700_v58  ;;  %3496 = vmatpush1.bf16.msra.mxu0 %v5717_v12  ;;  %v1635_v12 = vadd.f32 %v6565_v27, %v6563_v14  ;;  %v1643_v14 = vadd.f32 %v6581_v38, %v6579_v28  ;;  %v5729_v27 = vld [vmem:[#allocation7 + $0x48] ss:$16 sps:$4 sm:$0xff]   ;;  %v1657_v59 = vadd.f32 %v6609_v8, %v6607_v44 }
 0x1a2   : > { %v6712_v18 = vpop.f32.mrf.mxu0  ;;  %3497 = vmatprep.subr.bf16.mxu0 %v5722_v56  ;;  %7770 = vst [vmem:[#allocation18_spill] sm:$0xff] %v6720_v17  ;;  %v5731_v56 = vld [vmem:[#allocation7 + $0x4c] ss:$16 sps:$4 sm:$0xff]   ;;  %v6730_v47 = vpack.c.bf16 %v2174_v7, %v2170_v13  ;;  %v2169_v13 = vmax.f32 %v1631_v62, 0.0  ;;  %v5735_v28 = vld [vmem:[#allocation7 + $0x28] ss:$16 sps:$4 sm:$0xff]  }
 0x1a3   : > { %v6714_v19 = vpop.f32.mrf.mxu1 }
 0x1a4   : > { %v6716_v55 = vpop.f32.mrf.mxu0  ;;  %7771 = vst [vmem:[#allocation19_spill] sm:$0xff] %v6730_v47 }
 0x1a5   : > { %v6718_v36 = vpop.f32.mrf.mxu1  ;;  %3498 = vmatpush1.bf16.msra.mxu0 %v5720_v63 }
 0x1a6   : > { %v6724_v2 = vpop.f32.mrf.mxu0  ;;  %3499 = vmatprep.subr.bf16.mxu0 %v5728_v6  ;;  %v2173_v6 = vmax.f32 %v1635_v12, 0.0 }
 0x1a7   : > { %v6726_v58 = vpop.f32.mrf.mxu1 }
 0x1a8   : > { %v6734_v63 = vpop.f32.mrf.mxu0  ;;  %3158 = vmatmul.mubr.bf16.gmra.mxu0 %v6720_v17  ;;  %v2178_v17 = vmax.f32 %v1643_v14, 0.0  ;;  %v6750_v38 = vpack.c.bf16 %v2173_v6, %v2169_v13  ;;  %v1641_v14 = vadd.f32 %v6573_v42, %v6571_v20  ;;  %v5746_v20 = vld [vmem:[#allocation7 + $0x1ec] ss:$16 sps:$4 sm:$0xff]   ;;  %v2190_v42 = vmax.f32 %v1657_v59, 0.0 }
 0x1a9   : > { %v6736_v52 = vpop.f32.mrf.mxu1  ;;  %3167 = vmatprep.mubr.bf16.mxu0 %v6730_v47  ;;  %3500 = vmatpush1.bf16.msra.mxu0 %v5726_v16  ;;  %v1645_v16 = vadd.f32 %v6585_v40, %v6583_v39  ;;  %v1653_v39 = vadd.f32 %v6601_v24, %v6599_v5  ;;  %v5738_v40 = vld [vmem:[#allocation7 + $0x8] ss:$16 sps:$4 sm:$0xff]   ;;  %v1667_v59 = vadd.f32 %v6635_v32, %v6633_v57 }
 0x1aa   : > { %v6742_v41 = vpop.f32.mrf.mxu0  ;;  %3501 = vmatprep.subr.bf16.mxu0 %v5731_v56  ;;  %7772 = vst [vmem:[#allocation20_spill] sm:$0xff] %v6750_v38  ;;  %v5740_v56 = vld [vmem:[#allocation7 + $0xc] ss:$16 sps:$4 sm:$0xff]   ;;  %v6760_v62 = vpack.c.bf16 %v2182_v22, %v2178_v17  ;;  %v2177_v17 = vmax.f32 %v1641_v14, 0.0  ;;  %v5744_v5 = vld [vmem:[#allocation7 + $0x1e8] ss:$16 sps:$4 sm:$0xff]  }
 0x1ab   : > { %v6744_v29 = vpop.f32.mrf.mxu1 }
 0x1ac   : > { %v6746_v7 = vpop.f32.mrf.mxu0  ;;  %7773 = vst [vmem:[#allocation21_spill] sm:$0xff] %v6760_v62 }
 0x1ad   : > { %v6748_v35 = vpop.f32.mrf.mxu1  ;;  %3502 = vmatpush1.bf16.msra.mxu0 %v5729_v27 }
 0x1ae   : > { %v6754_v12 = vpop.f32.mrf.mxu0  ;;  %3503 = vmatprep.subr.bf16.mxu0 %v5737_v15  ;;  %v2181_v15 = vmax.f32 %v1645_v16, 0.0 }
 0x1af   : > { %v6756_v47 = vpop.f32.mrf.mxu1 }
 0x1b0   : > { %v6764_v27 = vpop.f32.mrf.mxu0  ;;  %3168 = vmatmul.mubr.bf16.gmra.mxu0 %v6750_v38  ;;  %v2186_v38 = vmax.f32 %v1653_v39, 0.0  ;;  %v6780_v24 = vpack.c.bf16 %v2181_v15, %v2177_v17  ;;  %v1651_v39 = vadd.f32 %v6593_v60, %v6591_v30  ;;  %v5755_v30 = vld [vmem:[#allocation7 + $0x1ac] ss:$16 sps:$4 sm:$0xff]   ;;  %v2198_v60 = vmax.f32 %v1667_v59, 0.0 }
 0x1b1   : > { %v6766_v6 = vpop.f32.mrf.mxu1  ;;  %3177 = vmatprep.mubr.bf16.mxu0 %v6760_v62  ;;  %3504 = vmatpush1.bf16.msra.mxu0 %v5735_v28  ;;  %v1655_v28 = vadd.f32 %v6605_v54, %v6603_v25  ;;  %v1663_v25 = vadd.f32 %v6625_v21, %v6623_v43  ;;  %v5747_v54 = vld [vmem:[#allocation7 + $0x1c8] ss:$16 sps:$4 sm:$0xff]   ;;  %v1677_v59 = vadd.f32 %v6666_v46, %v6664_v45 }
 0x1b2   : > { %v6772_v44 = vpop.f32.mrf.mxu0  ;;  %3505 = vmatprep.subr.bf16.mxu0 %v5740_v56  ;;  %7774 = vst [vmem:[#allocation22_spill] sm:$0xff] %v6780_v24  ;;  %v5749_v56 = vld [vmem:[#allocation7 + $0x1cc] ss:$16 sps:$4 sm:$0xff]   ;;  %v6790_v14 = vpack.c.bf16 %v2190_v42, %v2186_v38  ;;  %v2185_v38 = vmax.f32 %v1651_v39, 0.0  ;;  %v5753_v43 = vld [vmem:[#allocation7 + $0x1a8] ss:$16 sps:$4 sm:$0xff]  }
 0x1b3   : > { %v6774_v8 = vpop.f32.mrf.mxu1 }
 0x1b4   : > { %v6776_v22 = vpop.f32.mrf.mxu0  ;;  %7775 = vst [vmem:[#allocation23_spill] sm:$0xff] %v6790_v14 }
 0x1b5   : > { %v6778_v13 = vpop.f32.mrf.mxu1  ;;  %3506 = vmatpush1.bf16.msra.mxu0 %v5738_v40 }
 0x1b6   : > { %v6784_v16 = vpop.f32.mrf.mxu0  ;;  %3507 = vmatprep.subr.bf16.mxu0 %v5746_v20  ;;  %v2189_v20 = vmax.f32 %v1655_v28, 0.0 }
 0x1b7   : > { %v6786_v62 = vpop.f32.mrf.mxu1 }
 0x1b8   : > { %v6794_v40 = vpop.f32.mrf.mxu0  ;;  %3178 = vmatmul.mubr.bf16.gmra.mxu0 %v6780_v24  ;;  %v2194_v24 = vmax.f32 %v1663_v25, 0.0  ;;  %v6810_v21 = vpack.c.bf16 %v2189_v20, %v2185_v38  ;;  %v1661_v25 = vadd.f32 %v6615_v23, %v6613_v37  ;;  %v5764_v37 = vld [vmem:[#allocation7 + $0x16c] ss:$16 sps:$4 sm:$0xff]   ;;  %v2206_v23 = vmax.f32 %v1677_v59, 0.0 }
 0x1b9   : > { %v6796_v15 = vpop.f32.mrf.mxu1  ;;  %3187 = vmatprep.mubr.bf16.mxu0 %v6790_v14  ;;  %3508 = vmatpush2.bf16.msra.mxu0 %v5744_v5  ;;  %v1665_v5 = vadd.f32 %v6629_v34, %v6627_v51  ;;  %v1673_v51 = vadd.f32 %v6654_v3, %v6652_v11  ;;  %v5756_v34 = vld [vmem:[#allocation7 + $0x188] ss:$16 sps:$4 sm:$0xff]   ;;  %v1687_v59 = vadd.f32 %v6696_v33, %v6694_v49 }
 0x1ba   : > { %v6802_v57 = vpop.f32.mrf.mxu0  ;;  %3509 = vmatprep.subr.bf16.mxu0 %v5749_v56  ;;  %7776 = vst [vmem:[#allocation24_spill] sm:$0xff] %v6810_v21  ;;  %v5758_v56 = vld [vmem:[#allocation7 + $0x18c] ss:$16 sps:$4 sm:$0xff]   ;;  %v6820_v39 = vpack.c.bf16 %v2198_v60, %v2194_v24  ;;  %v2193_v24 = vmax.f32 %v1661_v25, 0.0  ;;  %v5762_v11 = vld [vmem:[#allocation7 + $0x168] ss:$16 sps:$4 sm:$0xff]  }
 0x1bb   : > { %v6804_v32 = vpop.f32.mrf.mxu1 }
 0x1bc   : > { %v6806_v42 = vpop.f32.mrf.mxu0  ;;  %7777 = vst [vmem:[#allocation25_spill] sm:$0xff] %v6820_v39 }
 0x1bd   : > { %v6808_v17 = vpop.f32.mrf.mxu1  ;;  %3510 = vmatpush2.bf16.msra.mxu0 %v5747_v54 }
 0x1be   : > { %v6814_v28 = vpop.f32.mrf.mxu0  ;;  %3511 = vmatprep.subr.bf16.mxu0 %v5755_v30  ;;  %v2197_v30 = vmax.f32 %v1665_v5, 0.0 }
 0x1bf   : > { %v6816_v14 = vpop.f32.mrf.mxu1 }
 0x1c0   : > { %v6824_v54 = vpop.f32.mrf.mxu0  ;;  %3188 = vmatmul.mubr.bf16.gmra.mxu0 %v6810_v21  ;;  %v2202_v21 = vmax.f32 %v1673_v51, 0.0  ;;  %v6840_v3 = vpack.c.bf16 %v2197_v30, %v2193_v24  ;;  %v1671_v51 = vadd.f32 %v6645_v4, %v6643_v61  ;;  %v5773_v61 = vld [vmem:[#allocation7 + $0x12c] ss:$16 sps:$4 sm:$0xff]   ;;  %v2214_v4 = vmax.f32 %v1687_v59, 0.0 }
 0x1c1   : > { %v6826_v20 = vpop.f32.mrf.mxu1  ;;  %3197 = vmatprep.mubr.bf16.mxu0 %v6820_v39  ;;  %3512 = vmatpush2.bf16.msra.mxu0 %v5753_v43  ;;  %v1675_v43 = vadd.f32 %v6658_v26, %v6656_v48  ;;  %v1683_v48 = vadd.f32 %v6684_v1, %v6682_v0  ;;  %v5765_v26 = vld [vmem:[#allocation7 + $0x148] ss:$16 sps:$4 sm:$0xff]   ;;  %v1697_v59 = vadd.f32 %v6726_v58, %v6724_v2 }
 0x1c2   : > { %v6832_v45 = vpop.f32.mrf.mxu0  ;;  %3513 = vmatprep.subr.bf16.mxu0 %v5758_v56  ;;  %7778 = vst [vmem:[#allocation26_spill] sm:$0xff] %v6840_v3  ;;  %v5767_v56 = vld [vmem:[#allocation7 + $0x14c] ss:$16 sps:$4 sm:$0xff]   ;;  %v6850_v25 = vpack.c.bf16 %v2206_v23, %v2202_v21  ;;  %v2201_v21 = vmax.f32 %v1671_v51, 0.0  ;;  %v5771_v0 = vld [vmem:[#allocation7 + $0x128] ss:$16 sps:$4 sm:$0xff]  }
 0x1c3   : > { %v6834_v46 = vpop.f32.mrf.mxu1 }
 0x1c4   : > { %v6836_v60 = vpop.f32.mrf.mxu0  ;;  %7779 = vst [vmem:[#allocation27_spill] sm:$0xff] %v6850_v25 }
 0x1c5   : > { %v6838_v38 = vpop.f32.mrf.mxu1  ;;  %3514 = vmatpush2.bf16.msra.mxu0 %v5756_v34 }
 0x1c6   : > { %v6844_v5 = vpop.f32.mrf.mxu0  ;;  %3515 = vmatprep.subr.bf16.mxu0 %v5764_v37  ;;  %v2205_v37 = vmax.f32 %v1675_v43, 0.0 }
 0x1c7   : > { %v6846_v39 = vpop.f32.mrf.mxu1 }
 0x1c8   : > { %v6854_v34 = vpop.f32.mrf.mxu0  ;;  %3198 = vmatmul.mubr.bf16.gmra.mxu0 %v6840_v3  ;;  %v2210_v3 = vmax.f32 %v1683_v48, 0.0  ;;  %v6870_v1 = vpack.c.bf16 %v2205_v37, %v2201_v21  ;;  %v7783_v48 = vld [vmem:[#allocation15_spill] sm:$0xff] }
 0x1c9   : > { %v6856_v30 = vpop.f32.mrf.mxu1  ;;  %3207 = vmatprep.mubr.bf16.mxu0 %v6850_v25  ;;  %3516 = vmatpush2.bf16.msra.mxu0 %v5762_v11  ;;  %v1685_v11 = vadd.f32 %v6688_v53, %v6686_v50  ;;  %v1693_v53 = vadd.f32 %v6714_v19, %v6712_v18  ;;  %v5774_v50 = vld [vmem:[#allocation7 + $0x108] ss:$16 sps:$4 sm:$0xff]   ;;  %v1695_v18 = vadd.f32 %v6718_v36, %v6716_v55 }
 0x1ca   : > { %7780 = vst [vmem:[#allocation28_spill] sm:$0xff] %v6856_v30  ;;  %v6862_v33 = vpop.f32.mrf.mxu0  ;;  %3517 = vmatprep.subr.bf16.mxu0 %v5767_v56  ;;  %7781 = vst [vmem:[#allocation29_spill] sm:$0xff] %v6870_v1  ;;  %v5776_v56 = vld [vmem:[#allocation7 + $0x10c] ss:$16 sps:$4 sm:$0xff]   ;;  %v6880_v51 = vpack.c.bf16 %v2214_v4, %v2210_v3 }
 0x1cb   : > { %v6864_v49 = vpop.f32.mrf.mxu1  ;;  %v2221_v55 = vmax.f32 %v1695_v18, 0.0 }
 0x1cc   : > { %v6866_v23 = vpop.f32.mrf.mxu0  ;;  %7782 = vst [vmem:[#allocation30_spill] sm:$0xff] %v6880_v51 }
 0x1cd   : > { %v6868_v24 = vpop.f32.mrf.mxu1  ;;  %3518 = vmatpush2.bf16.msra.mxu0 %v5765_v26  ;;  %v1681_v26 = vadd.f32 %v7783_v48, %v6674_v9  ;;  %v2222_v9 = vmax.f32 %v1697_v59, 0.0  ;;  %v2218_v48 = vmax.f32 %v1693_v53, 0.0  ;;  %v1691_v59 = vadd.f32 %v6706_v31, %v6704_v10 }
 0x1ce   : > { %v6874_v43 = vpop.f32.mrf.mxu0  ;;  %3519 = vmatprep.subr.bf16.mxu0 %v5773_v61  ;;  %v2213_v61 = vmax.f32 %v1685_v11, 0.0  ;;  %v1707_v11 = vadd.f32 %v6756_v47, %v6754_v12  ;;  %v1705_v31 = vadd.f32 %v6748_v35, %v6746_v7  ;;  %v1713_v7 = vadd.f32 %v6774_v8, %v6772_v44 }
 0x1cf   : > { %v6876_v25 = vpop.f32.mrf.mxu1  ;;  %v2209_v3 = vmax.f32 %v1681_v26, 0.0 }
 0x1d0   : > { %v6884_v30 = vpop.f32.mrf.mxu0  ;;  %3208 = vmatmul.mubr.bf16.gmra.mxu0 %v6870_v1 }
 0x1d1   : > { %7784 = vst [vmem:[#allocation15_spill] sm:$0xff] %v6884_v30  ;;  %v6886_v37 = vpop.f32.mrf.mxu1  ;;  %3217 = vmatprep.mubr.bf16.mxu0 %v6880_v51  ;;  %3520 = vmatpush2.bf16.msra.mxu0 %v5771_v0  ;;  %v6900_v1 = vpack.c.bf16 %v2213_v61, %v2209_v3  ;;  %v2230_v3 = vmax.f32 %v1707_v11, 0.0  ;;  %v2217_v51 = vmax.f32 %v1691_v59, 0.0  ;;  %v1701_v11 = vadd.f32 %v6736_v52, %v6734_v63  ;;  %v5723_v63 = vld [vmem:[#allocation7 + $0x2e8] ss:$16 sps:$4 sm:$0xff]  }
 0x1d2   : > { %7785 = vst [vmem:[#allocation31_spill] sm:$0xff] %v6886_v37  ;;  %v6892_v58 = vpop.f32.mrf.mxu0  ;;  %3521 = vmatprep.subr.bf16.mxu0 %v5776_v56  ;;  %v6910_v56 = vpack.c.bf16 %v2222_v9, %v2218_v48 }
 0x1d3   : > { %v6894_v2 = vpop.f32.mrf.mxu1  ;;  %7786 = vst [vmem:[#allocation32_spill] sm:$0xff] %v6900_v1  ;;  %v6918_v10 = vpack.c.bf16 %v2221_v55, %v2217_v51  ;;  %v2225_v52 = vmax.f32 %v1701_v11, 0.0 }
 0x1d4   : > { %v6896_v4 = vpop.f32.mrf.mxu0  ;;  %7787 = vst [vmem:[#allocation33_spill] sm:$0xff] %v6910_v56 }
 0x1d5   : > { %v6898_v21 = vpop.f32.mrf.mxu1  ;;  %3522 = vmatpush2.bf16.msra.mxu0 %v5774_v50  ;;  %v1703_v50 = vadd.f32 %v6744_v29, %v6742_v41  ;;  %v1717_v29 = vadd.f32 %v6786_v62, %v6784_v16 }
 0x1d6   : > { %v6904_v19 = vpop.f32.mrf.mxu0 }
 0x1d7   : > { %v6906_v0 = vpop.f32.mrf.mxu1  ;;  %v2226_v9 = vmax.f32 %v1703_v50, 0.0 }
 0x1d8   : > { %v1793_v26 = vpop.f32.mrf.mxu0  ;;  %3218 = vmatmul.mubr.bf16.gmra.mxu0 %v6900_v1 }
 0x1d9   : > { %v1986_v53 = vpop.f32.mrf.mxu1  ;;  %3227 = vmatprep.mubr.bf16.mxu0 %v6910_v56  ;;  %v6924_v56 = vpack.c.bf16 %v2230_v3, %v2226_v9 }
 0x1da   : > { %v1795_v36 = vpop.f32.mrf.mxu0  ;;  %v1987_v1 = vadd.f32 %v1986_v53, %v1793_v26  ;;  %v2229_v26 = vmax.f32 %v1705_v31, 0.0  ;;  %v2238_v53 = vmax.f32 %v1717_v29, 0.0  ;;  %v1727_v29 = vadd.f32 %v6816_v14, %v6814_v28 }
 0x1db   : > { %v1988_v61 = vpop.f32.mrf.mxu1 }
 0x1dc   : > { %v1797_v47 = vpop.f32.mrf.mxu0  ;;  %v1989_v48 = vadd.f32 %v1988_v61, %v1795_v36  ;;  %v2147_v62 = vmax.f32 %v1987_v1, 0.0  ;;  %v6937_v9 = vpack.c.bf16 %v2229_v26, %v2225_v52  ;;  %v1715_v1 = vadd.f32 %v6778_v13, %v6776_v22  ;;  %v5743_v22 = vld [vmem:[#allocation7 + $0x2ac] ss:$16 sps:$4 sm:$0xff]  }
 0x1dd   : > { %v1990_v12 = vpop.f32.mrf.mxu1  ;;  %v1723_v13 = vadd.f32 %v6804_v32, %v6802_v57  ;;  %v5752_v57 = vld [vmem:[#allocation7 + $0x28c] ss:$16 sps:$4 sm:$0xff]  }
 0x1de   : > { %v1991_v37 = vadd.f32 %v1990_v12, %v1797_v47  ;;  %v1799_v30 = vpop.f32.mrf.mxu0  ;;  %v2148_v35 = vmax.f32 %v1989_v48, 0.0  ;;  %v5734_v47 = vld [vmem:[#allocation7 + $0x2cc] ss:$16 sps:$4 sm:$0xff]   ;;  %v2234_v12 = vmax.f32 %v1713_v7, 0.0  ;;  %v1711_v7 = vadd.f32 %v6766_v6, %v6764_v27  ;;  %v5741_v6 = vld [vmem:[#allocation7 + $0x2a8] ss:$16 sps:$4 sm:$0xff]  }
 0x1df   : > { %v1992_v41 = vpop.f32.mrf.mxu1  ;;  %v2237_v28 = vmax.f32 %v1715_v1, 0.0  ;;  %v2242_v32 = vmax.f32 %v1723_v13, 0.0 }
 0x1e0   : > { %v1993_v18 = vadd.f32 %v1992_v41, %v1799_v30  ;;  %v2151_v59 = vmax.f32 %v1991_v37, 0.0  ;;  %v1803_v50 = vpop.f32.mrf.mxu0  ;;  %3228 = vmatmul.mubr.bf16.gmra.mxu0 %v6918_v10  ;;  %v6944_v11 = vpack.c.bf16 %v2238_v53, %v2234_v12  ;;  %v2233_v53 = vmax.f32 %v1711_v7, 0.0 }
 0x1e1   : > { %v1996_v36 = vpop.f32.mrf.mxu1  ;;  %3237 = vmatprep.mubr.bf16.mxu0 %v6924_v56 }
 0x1e2   : > { %v2152_v51 = vmax.f32 %v1993_v18, 0.0  ;;  %v1805_v16 = vpop.f32.mrf.mxu0  ;;  %v6934_v37 = vpack.c.bf16 %v2151_v59, %v2147_v62  ;;  %v1997_v48 = vadd.f32 %v1996_v36, %v1803_v50  ;;  %v5732_v59 = vld [vmem:[#allocation7 + $0x2c8] ss:$16 sps:$4 sm:$0xff]   ;;  %v6957_v12 = vpack.c.bf16 %v2237_v28, %v2233_v53 }
 0x1e3   : > { %v1998_v30 = vpop.f32.mrf.mxu1 }
 0x1e4   : > { %v6932_v55 = vpack.c.bf16 %v2152_v51, %v2148_v35  ;;  %v1807_v61 = vpop.f32.mrf.mxu0  ;;  %v1999_v44 = vadd.f32 %v1998_v30, %v1805_v16  ;;  %v2155_v36 = vmax.f32 %v1997_v48, 0.0  ;;  %v2246_v30 = vmax.f32 %v1727_v29, 0.0 }
 0x1e5   : > { %v2000_v3 = vpop.f32.mrf.mxu1 }
 0x1e6   : > { %v2001_v8 = vadd.f32 %v2000_v3, %v1807_v61  ;;  %3330 = vmatprep.mubr.bf16.mxu1 %v6932_v55  ;;  %v1809_v31 = vpop.f32.mrf.mxu0  ;;  %v2156_v50 = vmax.f32 %v1999_v44, 0.0  ;;  %v1725_v44 = vadd.f32 %v6808_v17, %v6806_v42  ;;  %v6964_v29 = vpack.c.bf16 %v2246_v30, %v2242_v32  ;;  %v5761_v42 = vld [vmem:[#allocation7 + $0x26c] ss:$16 sps:$4 sm:$0xff]  }
 0x1e7   : > { %v2002_v41 = vpop.f32.mrf.mxu1  ;;  %3331 = vmatmul.mubr.bf16.vlgmr.msra.gmra.mxu1 %v6934_v37  ;;  %v1733_v17 = vadd.f32 %v6834_v46, %v6832_v45  ;;  %v5770_v45 = vld [vmem:[#allocation7 + $0x24c] ss:$16 sps:$4 sm:$0xff]  }
 0x1e8   : > { %v2003_v18 = vadd.f32 %v2002_v41, %v1809_v31  ;;  %3685 = vmatpush1.bf16.msra.mxu1 %v5723_v63  ;;  %v2159_v35 = vmax.f32 %v2001_v8, 0.0  ;;  %v1813_v51 = vpop.f32.mrf.mxu0  ;;  %3238 = vmatmul.mubr.bf16.gmra.mxu0 %v6937_v9  ;;  %v1737_v31 = vadd.f32 %v6846_v39, %v6844_v5  ;;  %v2245_v5 = vmax.f32 %v1725_v44, 0.0 }
 0x1e9   : > { %v2006_v26 = vpop.f32.mrf.mxu1  ;;  %3686 = vmatprep.subr.bf16.mxu1 %v5734_v47  ;;  %3247 = vmatprep.mubr.bf16.mxu0 %v6944_v11  ;;  %v2250_v46 = vmax.f32 %v1733_v17, 0.0 }
 0x1ea   : > { %v2160_v14 = vmax.f32 %v2003_v18, 0.0  ;;  %v1815_v62 = vpop.f32.mrf.mxu0  ;;  %v6954_v63 = vpack.c.bf16 %v2159_v35, %v2155_v36  ;;  %v2007_v8 = vadd.f32 %v2006_v26, %v1813_v51  ;;  %v5750_v18 = vld [vmem:[#allocation7 + $0x288] ss:$16 sps:$4 sm:$0xff]  }
 0x1eb   : > { %v2008_v16 = vpop.f32.mrf.mxu1 }
 0x1ec   : > { %v6952_v27 = vpack.c.bf16 %v2160_v14, %v2156_v50  ;;  %3687 = vmatpush1.bf16.msra.mxu1 %v5732_v59  ;;  %v1817_v52 = vpop.f32.mrf.mxu0  ;;  %v2009_v3 = vadd.f32 %v2008_v16, %v1815_v62  ;;  %v1721_v59 = vadd.f32 %v6796_v15, %v6794_v40  ;;  %v2163_v26 = vmax.f32 %v2007_v8, 0.0  ;;  %v5759_v15 = vld [vmem:[#allocation7 + $0x268] ss:$16 sps:$4 sm:$0xff]  }
 0x1ed   : > { %v2010_v61 = vpop.f32.mrf.mxu1  ;;  %3688 = vmatprep.subr.bf16.mxu1 %v5743_v22  ;;  %v2254_v14 = vmax.f32 %v1737_v31, 0.0  ;;  %v5768_v8 = vld [vmem:[#allocation7 + $0x248] ss:$16 sps:$4 sm:$0xff]  }
 0x1ee   : > { %v2011_v47 = vadd.f32 %v2010_v61, %v1817_v52  ;;  %3340 = vmatprep.mubr.bf16.mxu1 %v6952_v27  ;;  %v1819_v1 = vpop.f32.mrf.mxu0  ;;  %v2164_v51 = vmax.f32 %v2009_v3, 0.0  ;;  %v2241_v28 = vmax.f32 %v1721_v59, 0.0  ;;  %v1735_v52 = vadd.f32 %v6838_v38, %v6836_v60  ;;  %v5779_v60 = vld [vmem:[#allocation7 + $0x22c] ss:$16 sps:$4 sm:$0xff]  }
 0x1ef   : > { %v2012_v48 = vpop.f32.mrf.mxu1  ;;  %3341 = vmatmul.mubr.bf16.gmra.mxu1 %v6954_v63  ;;  %v1747_v3 = vadd.f32 %v6876_v25, %v6874_v43  ;;  %v6984_v44 = vpack.c.bf16 %v2254_v14, %v2250_v46  ;;  %v1743_v38 = vadd.f32 %v6864_v49, %v6862_v33  ;;  %v5782_v33 = vld [vmem:[#allocation7 + $0x20c] ss:$16 sps:$4 sm:$0xff]   ;;  %v5780_v46 = vld [vmem:[#allocation7 + $0x208] ss:$16 sps:$4 sm:$0xff]  }
 0x1f0   : > { %v2013_v41 = vadd.f32 %v2012_v48, %v1819_v1  ;;  %3689 = vmatpush1.bf16.msra.mxu1 %v5741_v6  ;;  %v2167_v7 = vmax.f32 %v2011_v47, 0.0  ;;  %v1823_v35 = vpop.f32.mrf.mxu0  ;;  %3248 = vmatmul.mubr.bf16.gmra.mxu0 %v6957_v12  ;;  %v6977_v53 = vpack.c.bf16 %v2245_v5, %v2241_v28  ;;  %v1731_v1 = vadd.f32 %v6826_v20, %v6824_v54  ;;  %v5777_v20 = vld [vmem:[#allocation7 + $0x228] ss:$16 sps:$4 sm:$0xff]  }
 0x1f1   : > { %v2016_v22 = vpop.f32.mrf.mxu1  ;;  %3690 = vmatprep.subr.bf16.mxu1 %v5752_v57  ;;  %3257 = vmatprep.mubr.bf16.mxu0 %v6964_v29  ;;  %v2253_v43 = vmax.f32 %v1735_v52, 0.0  ;;  %v2258_v49 = vmax.f32 %v1743_v38, 0.0 }
 0x1f2   : > { %v2168_v39 = vmax.f32 %v2013_v41, 0.0  ;;  %v1825_v13 = vpop.f32.mrf.mxu0  ;;  %v6974_v36 = vpack.c.bf16 %v2167_v7, %v2163_v26  ;;  %v2017_v61 = vadd.f32 %v2016_v22, %v1823_v35  ;;  %v2262_v22 = vmax.f32 %v1747_v3, 0.0 }
 0x1f3   : > { %v2018_v50 = vpop.f32.mrf.mxu1 }
 0x1f4   : > { %v6972_v40 = vpack.c.bf16 %v2168_v39, %v2164_v51  ;;  %3691 = vmatpush1.bf16.msra.mxu1 %v5750_v18  ;;  %v1827_v62 = vpop.f32.mrf.mxu0  ;;  %v2019_v30 = vadd.f32 %v2018_v50, %v1825_v13  ;;  %v2171_v59 = vmax.f32 %v2017_v61, 0.0  ;;  %v1745_v50 = vadd.f32 %v6868_v24, %v6866_v23  ;;  %v5785_v23 = vld [vmem:[#allocation7 + $0x3ec] ss:$16 sps:$4 sm:$0xff]  }
 0x1f5   : > { %v2020_v16 = vpop.f32.mrf.mxu1  ;;  %3692 = vmatprep.subr.bf16.mxu1 %v5761_v42  ;;  %v2249_v42 = vmax.f32 %v1731_v1, 0.0  ;;  %v1753_v24 = vadd.f32 %v6894_v2, %v6892_v58  ;;  %v5788_v58 = vld [vmem:[#allocation7 + $0x3cc] ss:$16 sps:$4 sm:$0xff]  }
 0x1f6   : > { %v2021_v6 = vadd.f32 %v2020_v16, %v1827_v62  ;;  %3350 = vmatprep.mubr.bf16.mxu1 %v6972_v40  ;;  %v1829_v57 = vpop.f32.mrf.mxu0  ;;  %v2172_v18 = vmax.f32 %v2019_v30, 0.0  ;;  %v1757_v62 = vadd.f32 %v6906_v0, %v6904_v19  ;;  %v7788_v30 = vld [vmem:[#allocation28_spill] sm:$0xff]  ;;  %v2261_v0 = vmax.f32 %v1745_v50, 0.0 }
 0x1f7   : > { %v2022_v32 = vpop.f32.mrf.mxu1  ;;  %3351 = vmatmul.mubr.bf16.gmra.mxu1 %v6974_v36  ;;  %v6997_v13 = vpack.c.bf16 %v2253_v43, %v2249_v42  ;;  %v2266_v2 = vmax.f32 %v1753_v24, 0.0 }
 0x1f8   : > { %v2023_v47 = vadd.f32 %v2022_v32, %v1829_v57  ;;  %3693 = vmatpush1.bf16.msra.mxu1 %v5759_v15  ;;  %v2175_v48 = vmax.f32 %v2021_v6, 0.0  ;;  %v1833_v31 = vpop.f32.mrf.mxu0  ;;  %3258 = vmatmul.mubr.bf16.gmra.mxu0 %v6977_v53  ;;  %v1741_v6 = vadd.f32 %v7788_v30, %v6854_v34  ;;  %v2270_v1 = vmax.f32 %v1757_v62, 0.0  ;;  %v5789_v30 = vld [vmem:[#allocation7 + $0x3a8] ss:$16 sps:$4 sm:$0xff]  }
 0x1f9   : > { %v2026_v41 = vpop.f32.mrf.mxu1  ;;  %3694 = vmatprep.subr.bf16.mxu1 %v5770_v45  ;;  %3267 = vmatprep.mubr.bf16.mxu0 %v6984_v44  ;;  %v7004_v45 = vpack.c.bf16 %v2262_v22, %v2258_v49 }
 0x1fa   : > { %v2176_v25 = vmax.f32 %v2023_v47, 0.0  ;;  %v1835_v7 = vpop.f32.mrf.mxu0  ;;  %v6994_v17 = vpack.c.bf16 %v2175_v48, %v2171_v59  ;;  %v2027_v14 = vadd.f32 %v2026_v41, %v1833_v31  ;;  %v5783_v48 = vld [vmem:[#allocation7 + $0x3e8] ss:$16 sps:$4 sm:$0xff]   ;;  %v2257_v31 = vmax.f32 %v1741_v6, 0.0 }
 0x1fb   : > { %v2028_v35 = vpop.f32.mrf.mxu1  ;;  %v1755_v59 = vadd.f32 %v6898_v21, %v6896_v4  ;;  %v7022_v42 = vpack.c.bf16 %v2270_v1, %v2266_v2  ;;  %v5791_v4 = vld [vmem:[#allocation7 + $0x3ac] ss:$16 sps:$4 sm:$0xff]   ;;  %v5792_v1 = vld [vmem:[#allocation7 + $0x388] ss:$16 sps:$4 sm:$0xff]  }
 0x1fc   : > { %v6992_v54 = vpack.c.bf16 %v2176_v25, %v2172_v18  ;;  %3695 = vmatpush1.bf16.msra.mxu1 %v5768_v8  ;;  %v1837_v51 = vpop.f32.mrf.mxu0  ;;  %v2029_v5 = vadd.f32 %v2028_v35, %v1835_v7  ;;  %v2179_v3 = vmax.f32 %v2027_v14, 0.0  ;;  %v7017_v43 = vpack.c.bf16 %v2261_v0, %v2257_v31 }
 0x1fd   : > { %v2030_v39 = vpop.f32.mrf.mxu1  ;;  %3696 = vmatprep.subr.bf16.mxu1 %v5779_v60 }
 0x1fe   : > { %v2031_v26 = vadd.f32 %v2030_v39, %v1837_v51  ;;  %3360 = vmatprep.mubr.bf16.mxu1 %v6992_v54  ;;  %v1839_v15 = vpop.f32.mrf.mxu0  ;;  %v2180_v32 = vmax.f32 %v2029_v5, 0.0  ;;  %v5786_v51 = vld [vmem:[#allocation7 + $0x3c8] ss:$16 sps:$4 sm:$0xff]  }
 0x1ff   : > { %v2032_v28 = vpop.f32.mrf.mxu1  ;;  %3361 = vmatmul.mubr.bf16.gmra.mxu1 %v6994_v17  ;;  %v7789_v39 = vld [vmem:[#allocation15_spill] sm:$0xff] }
 0x200   : > { %v2033_v16 = vadd.f32 %v2032_v28, %v1839_v15  ;;  %3697 = vmatpush1.bf16.msra.mxu1 %v5777_v20  ;;  %v2183_v52 = vmax.f32 %v2031_v26, 0.0  ;;  %v1843_v61 = vpop.f32.mrf.mxu0  ;;  %3268 = vmatmul.mubr.bf16.gmra.mxu0 %v6997_v13  ;;  %v2269_v15 = vmax.f32 %v1755_v59, 0.0 }
 0x201   : > { %v2036_v57 = vpop.f32.mrf.mxu1  ;;  %3698 = vmatprep.subr.bf16.mxu1 %v5782_v33  ;;  %3277 = vmatprep.mubr.bf16.mxu0 %v7004_v45  ;;  %v7790_v33 = vld [vmem:[#allocation31_spill] sm:$0xff] }
 0x202   : > { %v2184_v19 = vmax.f32 %v2033_v16, 0.0  ;;  %v1845_v47 = vpop.f32.mrf.mxu0  ;;  %v7014_v41 = vpack.c.bf16 %v2183_v52, %v2179_v3  ;;  %v2037_v7 = vadd.f32 %v2036_v57, %v1843_v61  ;;  %v1751_v49 = vadd.f32 %v7790_v33, %v7789_v39  ;;  %v5800_v33 = vld [vmem:[#allocation7 + $0x34c] ss:$16 sps:$4 sm:$0xff]  }
 0x203   : > { %v2038_v8 = vpop.f32.mrf.mxu1 }
 0x204   : > { %v7012_v34 = vpack.c.bf16 %v2184_v19, %v2180_v32  ;;  %3699 = vmatpush1.bf16.msra.mxu1 %v5780_v46  ;;  %v1847_v60 = vpop.f32.mrf.mxu0  ;;  %v2039_v18 = vadd.f32 %v2038_v8, %v1845_v47  ;;  %v2187_v28 = vmax.f32 %v2037_v7, 0.0  ;;  %v2265_v6 = vmax.f32 %v1751_v49, 0.0 }
 0x205   : > { %v2040_v38 = vpop.f32.mrf.mxu1  ;;  %3700 = vmatprep.subr.bf16.mxu1 %v5785_v23  ;;  %v5794_v23 = vld [vmem:[#allocation7 + $0x38c] ss:$16 sps:$4 sm:$0xff]  }
 0x206   : > { %v2041_v25 = vadd.f32 %v2040_v38, %v1847_v60  ;;  %3370 = vmatprep.mubr.bf16.mxu1 %v7012_v34  ;;  %v1849_v35 = vpop.f32.mrf.mxu0  ;;  %v2188_v21 = vmax.f32 %v2039_v18, 0.0  ;;  %v7033_v19 = vpack.c.bf16 %v2269_v15, %v2265_v6  ;;  %v5797_v38 = vld [vmem:[#allocation7 + $0x36c] ss:$16 sps:$4 sm:$0xff]   ;;  %v7791_v18 = vld [vmem:[#allocation12_spill] sm:$0xff] }
 0x207   : > { %v2042_v22 = vpop.f32.mrf.mxu1  ;;  %3371 = vmatmul.mubr.bf16.gmra.mxu1 %v7014_v41 }
 0x208   : > { %v2043_v20 = vadd.f32 %v2042_v22, %v1849_v35  ;;  %3701 = vmatpush2.bf16.msra.mxu1 %v5783_v48  ;;  %v2191_v5 = vmax.f32 %v2041_v25, 0.0  ;;  %v1853_v26 = vpop.f32.mrf.mxu0  ;;  %3278 = vmatmul.mubr.bf16.gmra.mxu0 %v7017_v43  ;;  %v5795_v22 = vld [vmem:[#allocation7 + $0x368] ss:$16 sps:$4 sm:$0xff]  }
 0x209   : > { %v2046_v50 = vpop.f32.mrf.mxu1  ;;  %3702 = vmatprep.subr.bf16.mxu1 %v5788_v58  ;;  %3287 = vmatprep.mubr.bf16.mxu0 %v7022_v42 }
 0x20a   : > { %v2192_v14 = vmax.f32 %v2043_v20, 0.0  ;;  %v1855_v62 = vpop.f32.mrf.mxu0  ;;  %v7030_v52 = vpack.c.bf16 %v2191_v5, %v2187_v28  ;;  %v2047_v0 = vadd.f32 %v2046_v50, %v1853_v26 }
 0x20b   : > { %v2048_v16 = vpop.f32.mrf.mxu1 }
 0x20c   : > { %v7028_v46 = vpack.c.bf16 %v2192_v14, %v2188_v21  ;;  %3703 = vmatpush2.bf16.msra.mxu1 %v5786_v51  ;;  %v1857_v61 = vpop.f32.mrf.mxu0  ;;  %v2049_v24 = vadd.f32 %v2048_v16, %v1855_v62  ;;  %v2195_v25 = vmax.f32 %v2047_v0, 0.0  ;;  %v5798_v14 = vld [vmem:[#allocation7 + $0x348] ss:$16 sps:$4 sm:$0xff]  }
 0x20d   : > { %v2050_v57 = vpop.f32.mrf.mxu1  ;;  %3704 = vmatprep.subr.bf16.mxu1 %v5791_v4  ;;  %v7792_v16 = vld [vmem:[#allocation13_spill] sm:$0xff] }
 0x20e   : > { %v2051_v32 = vadd.f32 %v2050_v57, %v1857_v61  ;;  %3380 = vmatprep.mubr.bf16.mxu1 %v7028_v46  ;;  %v1859_v3 = vpop.f32.mrf.mxu0  ;;  %v2196_v58 = vmax.f32 %v2049_v24, 0.0  ;;  %v7793_v57 = vld [vmem:[#allocation14_spill] sm:$0xff] }
 0x20f   : > { %v2052_v47 = vpop.f32.mrf.mxu1  ;;  %3381 = vmatmul.mubr.bf16.gmra.mxu1 %v7030_v52 }
 0x210   : > { %v2053_v8 = vadd.f32 %v2052_v47, %v1859_v3  ;;  %3705 = vmatpush2.bf16.msra.mxu1 %v5789_v30  ;;  %v2199_v48 = vmax.f32 %v2051_v32, 0.0  ;;  %v1863_v31 = vpop.f32.mrf.mxu0  ;;  %3288 = vmatmul.mubr.bf16.gmra.mxu0 %v7033_v19  ;;  %v5803_v30 = vld [vmem:[#allocation7 + $0x32c] ss:$16 sps:$4 sm:$0xff]   ;;  %v5801_v3 = vld [vmem:[#allocation7 + $0x328] ss:$16 sps:$4 sm:$0xff]  }
 0x211   : > { %v2056_v60 = vpop.f32.mrf.mxu1  ;;  %3706 = vmatprep.subr.bf16.mxu1 %v5794_v23  ;;  %3523 = vmatprep.mubr.bf16.mxu0 %v7791_v18 }
 0x212   : > { %v2200_v2 = vmax.f32 %v2053_v8, 0.0  ;;  %v1865_v59 = vpop.f32.mrf.mxu0  ;;  %v7040_v20 = vpack.c.bf16 %v2199_v48, %v2195_v25  ;;  %v2057_v26 = vadd.f32 %v2056_v60, %v1863_v31  ;;  %v5806_v48 = vld [vmem:[#allocation7 + $0x30c] ss:$16 sps:$4 sm:$0xff]   ;;  %v5804_v25 = vld [vmem:[#allocation7 + $0x308] ss:$16 sps:$4 sm:$0xff]  }
 0x213   : > { %v2058_v7 = vpop.f32.mrf.mxu1 }
 0x214   : > { %v7038_v35 = vpack.c.bf16 %v2200_v2, %v2196_v58  ;;  %3707 = vmatpush2.bf16.msra.mxu1 %v5792_v1  ;;  %v1867_v51 = vpop.f32.mrf.mxu0  ;;  %v2059_v49 = vadd.f32 %v2058_v7, %v1865_v59  ;;  %v2203_v23 = vmax.f32 %v2057_v26, 0.0 }
 0x215   : > { %v2060_v39 = vpop.f32.mrf.mxu1  ;;  %3708 = vmatprep.subr.bf16.mxu1 %v5797_v38 }
 0x216   : > { %v2061_v5 = vadd.f32 %v2060_v39, %v1867_v51  ;;  %3390 = vmatprep.mubr.bf16.mxu1 %v7038_v35  ;;  %v1869_v50 = vpop.f32.mrf.mxu0  ;;  %v2204_v6 = vmax.f32 %v2059_v49, 0.0  ;;  %v7794_v51 = vld [vmem:[#allocation16_spill] sm:$0xff]  ;;  %v7795_v49 = vld [vmem:[#allocation17_spill] sm:$0xff] }
 0x217   : > { %v2062_v4 = vpop.f32.mrf.mxu1  ;;  %3391 = vmatmul.mubr.bf16.gmra.mxu1 %v7040_v20 }
 0x218   : > { %v2063_v21 = vadd.f32 %v2062_v4, %v1869_v50  ;;  %3709 = vmatpush2.bf16.msra.mxu1 %v5795_v22  ;;  %v2207_v15 = vmax.f32 %v2061_v5, 0.0  ;;  %v1873_v28 = vpop.f32.mrf.mxu0  ;;  %3524 = vmatmul.mubr.bf16.vlgmr.msra.gmra.mxu0 %v7792_v16 }
 0x219   : > { %v2066_v62 = vpop.f32.mrf.mxu1  ;;  %3710 = vmatprep.subr.bf16.mxu1 %v5800_v33  ;;  %3533 = vmatprep.mubr.bf16.mxu0 %v7793_v57 }
 0x21a   : > { %v2208_v61 = vmax.f32 %v2063_v21, 0.0  ;;  %v1875_v24 = vpop.f32.mrf.mxu0  ;;  %v7048_v47 = vpack.c.bf16 %v2207_v15, %v2203_v23  ;;  %v2067_v38 = vadd.f32 %v2066_v62, %v1873_v28 }
 0x21b   : > { %v2068_v32 = vpop.f32.mrf.mxu1 }
 0x21c   : > { %v7046_v0 = vpack.c.bf16 %v2208_v61, %v2204_v6  ;;  %3711 = vmatpush2.bf16.msra.mxu1 %v5798_v14  ;;  %v1877_v8 = vpop.f32.mrf.mxu0  ;;  %v2069_v31 = vadd.f32 %v2068_v32, %v1875_v24  ;;  %v2211_v5 = vmax.f32 %v2067_v38, 0.0  ;;  %v7796_v32 = vld [vmem:[#allocation18_spill] sm:$0xff] }
 0x21d   : > { %v2070_v1 = vpop.f32.mrf.mxu1  ;;  %3712 = vmatprep.subr.bf16.mxu1 %v5803_v30 }
 0x21e   : > { %v2071_v60 = vadd.f32 %v2070_v1, %v1877_v8  ;;  %3400 = vmatprep.mubr.bf16.mxu1 %v7046_v0  ;;  %v1879_v58 = vpop.f32.mrf.mxu0  ;;  %v2212_v39 = vmax.f32 %v2069_v31, 0.0  ;;  %v7797_v1 = vld [vmem:[#allocation19_spill] sm:$0xff] }
 0x21f   : > { %v2072_v2 = vpop.f32.mrf.mxu1  ;;  %3401 = vmatmul.mubr.bf16.gmra.mxu1 %v7048_v47 }
 0x220   : > { %v2073_v18 = vadd.f32 %v2072_v2, %v1879_v58  ;;  %3713 = vmatpush2.bf16.msra.mxu1 %v5801_v3  ;;  %v2215_v59 = vmax.f32 %v2071_v60, 0.0  ;;  %v1883_v7 = vpop.f32.mrf.mxu0  ;;  %3534 = vmatmul.mubr.bf16.gmra.mxu0 %v7794_v51 }
 0x221   : > { %v2076_v22 = vpop.f32.mrf.mxu1  ;;  %3714 = vmatprep.subr.bf16.mxu1 %v5806_v48  ;;  %3543 = vmatprep.mubr.bf16.mxu0 %v7795_v49 }
 0x222   : > { %v2216_v33 = vmax.f32 %v2073_v18, 0.0  ;;  %v1885_v26 = vpop.f32.mrf.mxu0  ;;  %v7056_v21 = vpack.c.bf16 %v2215_v59, %v2211_v5  ;;  %v2077_v16 = vadd.f32 %v2076_v22, %v1883_v7 }
 0x223   : > { %v2078_v50 = vpop.f32.mrf.mxu1 }
 0x224   : > { %v7054_v4 = vpack.c.bf16 %v2216_v33, %v2212_v39  ;;  %3715 = vmatpush2.bf16.msra.mxu1 %v5804_v25  ;;  %v1887_v14 = vpop.f32.mrf.mxu0  ;;  %v2079_v28 = vadd.f32 %v2078_v50, %v1885_v26  ;;  %v2219_v48 = vmax.f32 %v2077_v16, 0.0  ;;  %v7798_v26 = vld [vmem:[#allocation20_spill] sm:$0xff] }
 0x225   : > { %v2080_v15 = vpop.f32.mrf.mxu1 }
 0x226   : > { %v2081_v62 = vadd.f32 %v2080_v15, %v1887_v14  ;;  %3410 = vmatprep.mubr.bf16.mxu1 %v7054_v4  ;;  %v1889_v30 = vpop.f32.mrf.mxu0  ;;  %v2220_v3 = vmax.f32 %v2079_v28, 0.0  ;;  %v7799_v15 = vld [vmem:[#allocation21_spill] sm:$0xff] }
 0x227   : > { %v2082_v6 = vpop.f32.mrf.mxu1  ;;  %3411 = vmatmul.mubr.bf16.gmra.mxu1 %v7056_v21 }
 0x228   : > { %v2083_v61 = vadd.f32 %v2082_v6, %v1889_v30  ;;  %v2223_v57 = vmax.f32 %v2081_v62, 0.0  ;;  %v1893_v23 = vpop.f32.mrf.mxu0  ;;  %3544 = vmatmul.mubr.bf16.gmra.mxu0 %v7796_v32 }
 0x229   : > { %v2086_v24 = vpop.f32.mrf.mxu1  ;;  %3553 = vmatprep.mubr.bf16.mxu0 %v7797_v1 }
 0x22a   : > { %v2224_v8 = vmax.f32 %v2083_v61, 0.0  ;;  %v1895_v31 = vpop.f32.mrf.mxu0  ;;  %v7064_v58 = vpack.c.bf16 %v2223_v57, %v2219_v48  ;;  %v2087_v7 = vadd.f32 %v2086_v24, %v1893_v23 }
 0x22b   : > { %v2088_v60 = vpop.f32.mrf.mxu1 }
 0x22c   : > { %v7062_v38 = vpack.c.bf16 %v2224_v8, %v2220_v3  ;;  %v1897_v2 = vpop.f32.mrf.mxu0  ;;  %v2089_v25 = vadd.f32 %v2088_v60, %v1895_v31  ;;  %v2227_v28 = vmax.f32 %v2087_v7, 0.0 }
 0x22d   : > { %v2090_v18 = vpop.f32.mrf.mxu1 }
 0x22e   : > { %v2091_v59 = vadd.f32 %v2090_v18, %v1897_v2  ;;  %3420 = vmatprep.mubr.bf16.mxu1 %v7062_v38  ;;  %v1899_v22 = vpop.f32.mrf.mxu0  ;;  %v2228_v50 = vmax.f32 %v2089_v25, 0.0  ;;  %v7800_v2 = vld [vmem:[#allocation22_spill] sm:$0xff] }
 0x22f   : > { %v2092_v51 = vpop.f32.mrf.mxu1  ;;  %3421 = vmatmul.mubr.bf16.gmra.mxu1 %v7064_v58 }
 0x230   : > { %v2093_v39 = vadd.f32 %v2092_v51, %v1899_v22  ;;  %v2231_v33 = vmax.f32 %v2091_v59, 0.0  ;;  %v1903_v49 = vpop.f32.mrf.mxu0  ;;  %3554 = vmatmul.mubr.bf16.gmra.mxu0 %v7798_v26  ;;  %v7801_v59 = vld [vmem:[#allocation23_spill] sm:$0xff] }
 0x231   : > { %v2096_v5 = vpop.f32.mrf.mxu1  ;;  %3563 = vmatprep.mubr.bf16.mxu0 %v7799_v15 }
 0x232   : > { %v2232_v14 = vmax.f32 %v2093_v39, 0.0  ;;  %v1905_v62 = vpop.f32.mrf.mxu0  ;;  %v7072_v6 = vpack.c.bf16 %v2231_v33, %v2227_v28  ;;  %v2097_v32 = vadd.f32 %v2096_v5, %v1903_v49 }
 0x233   : > { %v2098_v16 = vpop.f32.mrf.mxu1 }
 0x234   : > { %v7070_v30 = vpack.c.bf16 %v2232_v14, %v2228_v50  ;;  %v1907_v61 = vpop.f32.mrf.mxu0  ;;  %v2099_v23 = vadd.f32 %v2098_v16, %v1905_v62  ;;  %v2235_v7 = vmax.f32 %v2097_v32, 0.0 }
 0x235   : > { %v2100_v57 = vpop.f32.mrf.mxu1 }
 0x236   : > { %v2101_v24 = vadd.f32 %v2100_v57, %v1907_v61  ;;  %3430 = vmatprep.mubr.bf16.mxu1 %v7070_v30  ;;  %v1909_v3 = vpop.f32.mrf.mxu0  ;;  %v2236_v18 = vmax.f32 %v2099_v23, 0.0  ;;  %v7802_v23 = vld [vmem:[#allocation24_spill] sm:$0xff] }
 0x237   : > { %v2102_v8 = vpop.f32.mrf.mxu1  ;;  %3431 = vmatmul.mubr.bf16.gmra.mxu1 %v7072_v6 }
 0x238   : > { %v2103_v1 = vadd.f32 %v2102_v8, %v1909_v3  ;;  %v2239_v48 = vmax.f32 %v2101_v24, 0.0  ;;  %v1913_v31 = vpop.f32.mrf.mxu0  ;;  %3564 = vmatmul.mubr.bf16.gmra.mxu0 %v7800_v2  ;;  %v7803_v3 = vld [vmem:[#allocation25_spill] sm:$0xff] }
 0x239   : > { %v2106_v60 = vpop.f32.mrf.mxu1  ;;  %3573 = vmatprep.mubr.bf16.mxu0 %v7801_v59 }
 0x23a   : > { %v2240_v25 = vmax.f32 %v2103_v1, 0.0  ;;  %v1915_v22 = vpop.f32.mrf.mxu0  ;;  %v7080_v33 = vpack.c.bf16 %v2239_v48, %v2235_v7  ;;  %v2107_v14 = vadd.f32 %v2106_v60, %v1913_v31 }
 0x23b   : > { %v2108_v51 = vpop.f32.mrf.mxu1 }
 0x23c   : > { %v7078_v39 = vpack.c.bf16 %v2240_v25, %v2236_v18  ;;  %v1917_v49 = vpop.f32.mrf.mxu0  ;;  %v2109_v26 = vadd.f32 %v2108_v51, %v1915_v22  ;;  %v2243_v8 = vmax.f32 %v2107_v14, 0.0  ;;  %v7804_v14 = vld [vmem:[#allocation26_spill] sm:$0xff] }
 0x23d   : > { %v2110_v5 = vpop.f32.mrf.mxu1 }
 0x23e   : > { %v2111_v50 = vadd.f32 %v2110_v5, %v1917_v49  ;;  %3440 = vmatprep.mubr.bf16.mxu1 %v7078_v39  ;;  %v1919_v15 = vpop.f32.mrf.mxu0  ;;  %v2244_v24 = vmax.f32 %v2109_v26, 0.0 }
 0x23f   : > { %v2112_v28 = vpop.f32.mrf.mxu1  ;;  %3441 = vmatmul.mubr.bf16.gmra.mxu1 %v7080_v33 }
 0x240   : > { %v2113_v62 = vadd.f32 %v2112_v28, %v1919_v15  ;;  %v2247_v16 = vmax.f32 %v2111_v50, 0.0  ;;  %v1923_v61 = vpop.f32.mrf.mxu0  ;;  %3574 = vmatmul.mubr.bf16.gmra.mxu0 %v7802_v23 }
 0x241   : > { %v2116_v57 = vpop.f32.mrf.mxu1  ;;  %3583 = vmatprep.mubr.bf16.mxu0 %v7803_v3 }
 0x242   : > { %v2248_v32 = vmax.f32 %v2113_v62, 0.0  ;;  %v1925_v1 = vpop.f32.mrf.mxu0  ;;  %v7088_v31 = vpack.c.bf16 %v2247_v16, %v2243_v8  ;;  %v2117_v7 = vadd.f32 %v2116_v57, %v1923_v61  ;;  %v7805_v62 = vld [vmem:[#allocation27_spill] sm:$0xff] }
 0x243   : > { %v2118_v48 = vpop.f32.mrf.mxu1 }
 0x244   : > { %v7086_v2 = vpack.c.bf16 %v2248_v32, %v2244_v24  ;;  %v1927_v60 = vpop.f32.mrf.mxu0  ;;  %v2119_v25 = vadd.f32 %v2118_v48, %v1925_v1  ;;  %v2251_v16 = vmax.f32 %v2117_v7, 0.0 }
 0x245   : > { %v2120_v18 = vpop.f32.mrf.mxu1 }
 0x246   : > { %v2121_v59 = vadd.f32 %v2120_v18, %v1927_v60  ;;  %3450 = vmatprep.mubr.bf16.mxu1 %v7086_v2  ;;  %v1929_v22 = vpop.f32.mrf.mxu0  ;;  %v2252_v15 = vmax.f32 %v2119_v25, 0.0 }
 0x247   : > { %v2122_v51 = vpop.f32.mrf.mxu1  ;;  %3451 = vmatmul.mubr.bf16.gmra.mxu1 %v7088_v31 }
 0x248   : > { %v2123_v49 = vadd.f32 %v2122_v51, %v1929_v22  ;;  %v2255_v5 = vmax.f32 %v2121_v59, 0.0  ;;  %v1933_v26 = vpop.f32.mrf.mxu0  ;;  %3584 = vmatmul.mubr.bf16.gmra.mxu0 %v7804_v14  ;;  %v7806_v51 = vld [vmem:[#allocation29_spill] sm:$0xff]  ;;  %v7807_v14 = vld [vmem:[#allocation30_spill] sm:$0xff] }
 0x249   : > { %v2126_v50 = vpop.f32.mrf.mxu1  ;;  %3593 = vmatprep.mubr.bf16.mxu0 %v7805_v62 }
 0x24a   : > { %v2256_v28 = vmax.f32 %v2123_v49, 0.0  ;;  %v1935_v23 = vpop.f32.mrf.mxu0  ;;  %v7096_v61 = vpack.c.bf16 %v2255_v5, %v2251_v16  ;;  %v2127_v48 = vadd.f32 %v2126_v50, %v1933_v26 }
 0x24b   : > { %v2128_v24 = vpop.f32.mrf.mxu1 }
 0x24c   : > { %v7094_v32 = vpack.c.bf16 %v2256_v28, %v2252_v15  ;;  %v1937_v57 = vpop.f32.mrf.mxu0  ;;  %v2129_v8 = vadd.f32 %v2128_v24, %v1935_v23  ;;  %v2259_v15 = vmax.f32 %v2127_v48, 0.0 }
 0x24d   : > { %v2130_v3 = vpop.f32.mrf.mxu1 }
 0x24e   : > { %v2131_v1 = vadd.f32 %v2130_v3, %v1937_v57  ;;  %3460 = vmatprep.mubr.bf16.mxu1 %v7094_v32  ;;  %v1939_v60 = vpop.f32.mrf.mxu0  ;;  %v2260_v49 = vmax.f32 %v2129_v8, 0.0 }
 0x24f   : > { %v2132_v18 = vpop.f32.mrf.mxu1  ;;  %3461 = vmatmul.mubr.bf16.gmra.mxu1 %v7096_v61 }
 0x250   : > { %v2133_v25 = vadd.f32 %v2132_v18, %v1939_v60  ;;  %v2263_v59 = vmax.f32 %v2131_v1, 0.0  ;;  %v1943_v7 = vpop.f32.mrf.mxu0  ;;  %3594 = vmatmul.mubr.bf16.gmra.mxu0 %v7806_v51 }
 0x251   : > { %v2136_v22 = vpop.f32.mrf.mxu1  ;;  %3603 = vmatprep.mubr.bf16.mxu0 %v7807_v14 }
 0x252   : > { %v2264_v5 = vmax.f32 %v2133_v25, 0.0  ;;  %v1945_v28 = vpop.f32.mrf.mxu0  ;;  %v7104_v26 = vpack.c.bf16 %v2263_v59, %v2259_v15  ;;  %v2137_v3 = vadd.f32 %v2136_v22, %v1943_v7  ;;  %v7808_v25 = vld [vmem:[#allocation32_spill] sm:$0xff] }
 0x253   : > { %v2138_v62 = vpop.f32.mrf.mxu1 }
 0x254   : > { %v7102_v16 = vpack.c.bf16 %v2264_v5, %v2260_v49  ;;  %v1947_v50 = vpop.f32.mrf.mxu0  ;;  %v2139_v24 = vadd.f32 %v2138_v62, %v1945_v28  ;;  %v7809_v49 = vld [vmem:[#allocation33_spill] sm:$0xff]  ;;  %v2267_v5 = vmax.f32 %v2137_v3, 0.0 }
 0x255   : > { %v2140_v23 = vpop.f32.mrf.mxu1 }
 0x256   : > { %v2141_v57 = vadd.f32 %v2140_v23, %v1947_v50  ;;  %3470 = vmatprep.mubr.bf16.mxu1 %v7102_v16  ;;  %v1949_v1 = vpop.f32.mrf.mxu0  ;;  %v2268_v51 = vmax.f32 %v2139_v24, 0.0 }
 0x257   : > { %v2142_v60 = vpop.f32.mrf.mxu1  ;;  %3471 = vmatmul.mubr.bf16.gmra.mxu1 %v7104_v26 }
 0x258   : > { %v2143_v8 = vadd.f32 %v2142_v60, %v1949_v1  ;;  %v2271_v18 = vmax.f32 %v2141_v57, 0.0  ;;  %v7108_v48 = vpop.f32.mrf.mxu0  ;;  %3604 = vmatmul.mubr.bf16.gmra.mxu0 %v7808_v25 }
 0x259   : > { %3613 = vmatprep.mubr.bf16.mxu0 %v7809_v49 }
 0x25a   : > { %v2272_v59 = vmax.f32 %v2143_v8, 0.0  ;;  %v7112_v14 = vpop.f32.mrf.mxu0  ;;  %v7116_v7 = vpack.c.bf16 %v2271_v18, %v2267_v5 }
 0x25c   : > { %v7114_v15 = vpack.c.bf16 %v2272_v59, %v2268_v51  ;;  %v7118_v22 = vpop.f32.mrf.mxu0  ;;  %v5807_v51 = vld [vmem:[%s6191_s30] sm:$0xff] }
 0x25d   : > { %v4005_v59 = vunpack.c.l.bf16 %v5807_v51  ;;  %v4006_v5 = vunpack.c.h.bf16 %v5807_v51 }
 0x25e   : > { %3480 = vmatprep.mubr.bf16.mxu1 %v7114_v15  ;;  %v7121_v28 = vpop.f32.mrf.mxu0 }
 0x25f   : > { %3481 = vmatmul.mubr.bf16.gmra.mxu1 %v7116_v7 }
 0x260   : > { %3716 = vmatprep.mubr.bf16.mxu1 %v6932_v55  ;;  %v7125_v62 = vpop.f32.mrf.mxu0  ;;  %3614 = vmatmul.mubr.bf16.gmra.mxu0 %v6918_v10 }
 0x261   : > { %3623 = vmatprep.mubr.bf16.mxu0 %v6924_v56 }
 0x262   : > { %v7129_v50 = vpop.f32.mrf.mxu0 }
 0x264   : > { %v7131_v23 = vpop.f32.mrf.mxu0 }
 0x266   : > { %v7133_v24 = vpop.f32.mrf.mxu0 }
 0x267   : > { %3717 = vmatmul.mubr.bf16.vlgmr.msra.gmra.mxu1 %v6934_v37 }
 0x268   : > { %3726 = vmatprep.mubr.bf16.mxu1 %v6952_v27  ;;  %v7137_v57 = vpop.f32.mrf.mxu0  ;;  %3624 = vmatmul.mubr.bf16.gmra.mxu0 %v6937_v9 }
 0x269   : > { %3633 = vmatprep.mubr.bf16.mxu0 %v6944_v11 }
 0x26a   : > { %v7141_v55 = vpop.f32.mrf.mxu0 }
 0x26c   : > { %v7143_v10 = vpop.f32.mrf.mxu0 }
 0x26e   : > { %v7145_v56 = vpop.f32.mrf.mxu0 }
 0x26f   : > { %3727 = vmatmul.mubr.bf16.gmra.mxu1 %v6954_v63 }
 0x270   : > { %3736 = vmatprep.mubr.bf16.mxu1 %v6972_v40  ;;  %v7149_v3 = vpop.f32.mrf.mxu0  ;;  %3634 = vmatmul.mubr.bf16.gmra.mxu0 %v6957_v12 }
 0x271   : > { %3643 = vmatprep.mubr.bf16.mxu0 %v6964_v29 }
 0x272   : > { %v7153_v37 = vpop.f32.mrf.mxu0 }
 0x274   : > { %v7155_v9 = vpop.f32.mrf.mxu0 }
 0x276   : > { %v7157_v11 = vpop.f32.mrf.mxu0 }
 0x277   : > { %3737 = vmatmul.mubr.bf16.gmra.mxu1 %v6974_v36 }
 0x278   : > { %3746 = vmatprep.mubr.bf16.mxu1 %v6992_v54  ;;  %v7161_v27 = vpop.f32.mrf.mxu0  ;;  %3644 = vmatmul.mubr.bf16.gmra.mxu0 %v6977_v53 }
 0x279   : > { %3653 = vmatprep.mubr.bf16.mxu0 %v6984_v44 }
 0x27a   : > { %v7165_v63 = vpop.f32.mrf.mxu0 }
 0x27c   : > { %v7167_v12 = vpop.f32.mrf.mxu0 }
 0x27e   : > { %v7169_v29 = vpop.f32.mrf.mxu0 }
 0x27f   : > { %3747 = vmatmul.mubr.bf16.gmra.mxu1 %v6994_v17 }
 0x280   : > { %3756 = vmatprep.mubr.bf16.mxu1 %v7012_v34  ;;  %v7173_v40 = vpop.f32.mrf.mxu0  ;;  %3654 = vmatmul.mubr.bf16.gmra.mxu0 %v6997_v13 }
 0x281   : > { %3663 = vmatprep.mubr.bf16.mxu0 %v7004_v45 }
 0x282   : > { %v7177_v36 = vpop.f32.mrf.mxu0 }
 0x284   : > { %v7179_v53 = vpop.f32.mrf.mxu0 }
 0x286   : > { %v7181_v44 = vpop.f32.mrf.mxu0 }
 0x287   : > { %3757 = vmatmul.mubr.bf16.gmra.mxu1 %v7014_v41 }
 0x288   : > { %3766 = vmatprep.mubr.bf16.mxu1 %v7028_v46  ;;  %v7185_v54 = vpop.f32.mrf.mxu0  ;;  %3664 = vmatmul.mubr.bf16.gmra.mxu0 %v7017_v43 }
 0x289   : > { %3673 = vmatprep.mubr.bf16.mxu0 %v7022_v42 }
 0x28a   : > { %v7189_v17 = vpop.f32.mrf.mxu0 }
 0x28c   : > { %v7191_v13 = vpop.f32.mrf.mxu0 }
 0x28e   : > { %v7193_v45 = vpop.f32.mrf.mxu0 }
 0x28f   : > { %3767 = vmatmul.mubr.bf16.gmra.mxu1 %v7030_v52 }
 0x290   : > { %3776 = vmatprep.mubr.bf16.mxu1 %v7038_v35  ;;  %v7197_v34 = vpop.f32.mrf.mxu0  ;;  %3674 = vmatmul.mubr.bf16.gmra.mxu0 %v7033_v19 }
 0x292   : > { %v7200_v41 = vpop.f32.mrf.mxu0 }
 0x294   : > { %v7202_v46 = vpop.f32.mrf.mxu0 }
 0x296   : > { %v7204_v43 = vpop.f32.mrf.mxu0 }
 0x297   : > { %3777 = vmatmul.mubr.bf16.gmra.mxu1 %v7040_v20 }
 0x298   : > { %3786 = vmatprep.mubr.bf16.mxu1 %v7046_v0  ;;  %v7208_v42 = vpop.f32.mrf.mxu0 }
 0x29a   : > { %v7210_v1 = vpop.f32.mrf.mxu0 }
 0x29c   : > { %v7212_v52 = vpop.f32.mrf.mxu0 }
 0x29d   : > { %7810 = vst [vmem:[#allocation28_spill] sm:$0xff] %v7212_v52 }
 0x29e   : > { %v7214_v35 = vpop.f32.mrf.mxu0 }
 0x29f   : > { %7811 = vst [vmem:[#allocation15_spill] sm:$0xff] %v7214_v35  ;;  %3787 = vmatmul.mubr.bf16.gmra.mxu1 %v7048_v47 }
 0x2a0   : > { %3796 = vmatprep.mubr.bf16.mxu1 %v7054_v4  ;;  %v7218_v19 = vpop.f32.mrf.mxu0 }
 0x2a1   : > { %7812 = vst [vmem:[#allocation31_spill] sm:$0xff] %v7218_v19 }
 0x2a2   : > { %v7220_v60 = vpop.f32.mrf.mxu0 }
 0x2a3   : > { %7813 = vst [vmem:[#allocation12_spill] sm:$0xff] %v7220_v60 }
 0x2a4   : > { %v7222_v20 = vpop.f32.mrf.mxu0 }
 0x2a5   : > { %7814 = vst [vmem:[#allocation13_spill] sm:$0xff] %v7222_v20 }
 0x2a6   : > { %v7224_v0 = vpop.f32.mrf.mxu0 }
 0x2a7   : > { %7815 = vst [vmem:[#allocation14_spill] sm:$0xff] %v7224_v0  ;;  %v3332_v8 = vpop.f32.mrf.mxu1  ;;  %3797 = vmatmul.mubr.bf16.gmra.mxu1 %v7056_v21  ;;  %v5808_v21 = vld [vmem:[%s6191_s30 + $0x10] sm:$0xff] }
 0x2a8   : > { %v3333_v18 = vadd.f32 %v3332_v8, %v7108_v48  ;;  %3806 = vmatprep.mubr.bf16.mxu1 %v7062_v38  ;;  %v7229_v25 = vpop.f32.mrf.mxu0  ;;  %v4009_v48 = vunpack.c.l.bf16 %v5808_v21 }
 0x2a9   : > { %7816 = vst [vmem:[#allocation16_spill] sm:$0xff] %v7229_v25  ;;  %v3334_v47 = vpop.f32.mrf.mxu1  ;;  %v4010_v25 = vunpack.c.h.bf16 %v5808_v21 }
 0x2aa   : > { %v3877_v4 = vmax.f32 %v3333_v18, 0.0  ;;  %v3335_v49 = vadd.f32 %v3334_v47, %v7112_v14  ;;  %v7233_v20 = vpop.f32.mrf.mxu0 }
 0x2ab   : > { %v3336_v0 = vpop.f32.mrf.mxu1 }
 0x2ac   : > { %v3878_v60 = vmax.f32 %v3335_v49, 0.0  ;;  %v3337_v19 = vadd.f32 %v3336_v0, %v7118_v22  ;;  %v7237_v8 = vpop.f32.mrf.mxu0  ;;  %v4133_v35 = vadd.f32 %v4005_v59, %v3877_v4 }
 0x2ad   : > { %7817 = vst [vmem:[#allocation17_spill] sm:$0xff] %v7237_v8  ;;  %v3338_v38 = vpop.f32.mrf.mxu1  ;;  %v5809_v8 = vld [vmem:[%s6191_s30 + $0x20] sm:$0xff] }
 0x2ae   : > { %v4134_v18 = vadd.f32 %v4006_v5, %v3878_v60  ;;  %v3881_v52 = vmax.f32 %v3337_v19, 0.0  ;;  %v3339_v14 = vadd.f32 %v3338_v38, %v7121_v28  ;;  %v7240_v47 = vpop.f32.mrf.mxu0  ;;  %v4013_v21 = vunpack.c.l.bf16 %v5809_v8 }
 0x2af   : > { %7818 = vst [vmem:[#allocation18_spill] sm:$0xff] %v7240_v47  ;;  %v3342_v51 = vpop.f32.mrf.mxu1  ;;  %3807 = vmatmul.mubr.bf16.gmra.mxu1 %v7064_v58  ;;  %v4014_v19 = vunpack.c.h.bf16 %v5809_v8 }
 0x2b0   : > { %v5222_v49 = vpack.c.bf16 %v4134_v18, %v4133_v35  ;;  %v3882_v22 = vmax.f32 %v3339_v14, 0.0  ;;  %v3343_v0 = vadd.f32 %v3342_v51, %v7125_v62  ;;  %3816 = vmatprep.mubr.bf16.mxu1 %v7070_v30  ;;  %v7246_v4 = vpop.f32.mrf.mxu0  ;;  %v4137_v58 = vadd.f32 %v4009_v48, %v3881_v52  ;;  %v5810_v14 = vld [vmem:[%s6191_s30 + $0x30] sm:$0xff] }
 0x2b1   : > { %7819 = vst [vmem:[#allocation19_spill] sm:$0xff] %v7246_v4  ;;  %v3344_v60 = vpop.f32.mrf.mxu1  ;;  %v4017_v8 = vunpack.c.l.bf16 %v5810_v14  ;;  %v4018_v47 = vunpack.c.h.bf16 %v5810_v14 }
 0x2b2   : > { %4645 = vst [vmem:[%s7250_s18] sm:$0xff] %v5222_v49  ;;  %v4138_v28 = vadd.f32 %v4010_v25, %v3882_v22  ;;  %v3885_v35 = vmax.f32 %v3343_v0, 0.0  ;;  %v3345_v62 = vadd.f32 %v3344_v60, %v7129_v50  ;;  %v7254_v59 = vpop.f32.mrf.mxu0 }
 0x2b3   : > { %v3346_v30 = vpop.f32.mrf.mxu1 }
 0x2b4   : > { %v5224_v5 = vpack.c.bf16 %v4138_v28, %v4137_v58  ;;  %v3886_v38 = vmax.f32 %v3345_v62, 0.0  ;;  %v3347_v18 = vadd.f32 %v3346_v30, %v7131_v23  ;;  %v7258_v51 = vpop.f32.mrf.mxu0  ;;  %v4141_v52 = vadd.f32 %v4013_v21, %v3885_v35  ;;  %v5811_v58 = vld [vmem:[%s6191_s30 + $0x40] sm:$0xff] }
 0x2b5   : > { %v3348_v4 = vpop.f32.mrf.mxu1  ;;  %v4021_v28 = vunpack.c.l.bf16 %v5811_v58  ;;  %v4022_v35 = vunpack.c.h.bf16 %v5811_v58  ;;  %v5813_v58 = vld [vmem:[%s6191_s30 + $0x60] sm:$0xff] }
 0x2b6   : > { %4647 = vst [vmem:[%s7250_s18 + $0x10] sm:$0xff] %v5224_v5  ;;  %v4142_v25 = vadd.f32 %v4014_v19, %v3886_v38  ;;  %v3889_v48 = vmax.f32 %v3347_v18, 0.0  ;;  %v3349_v50 = vadd.f32 %v3348_v4, %v7133_v24  ;;  %v7262_v49 = vpop.f32.mrf.mxu0  ;;  %v5812_v18 = vld [vmem:[%s6191_s30 + $0x50] sm:$0xff] }
 0x2b7   : > { %v3352_v22 = vpop.f32.mrf.mxu1  ;;  %3817 = vmatmul.mubr.bf16.gmra.mxu1 %v7072_v6  ;;  %v4025_v14 = vunpack.c.l.bf16 %v5812_v18 }
 0x2b8   : > { %v5226_v23 = vpack.c.bf16 %v4142_v25, %v4141_v52  ;;  %v3890_v0 = vmax.f32 %v3349_v50, 0.0  ;;  %v3353_v60 = vadd.f32 %v3352_v22, %v7137_v57  ;;  %3826 = vmatprep.mubr.bf16.mxu1 %v7078_v39  ;;  %v7268_v21 = vpop.f32.mrf.mxu0  ;;  %v4145_v24 = vadd.f32 %v4017_v8, %v3889_v48 }
 0x2b9   : > { %v3354_v19 = vpop.f32.mrf.mxu1  ;;  %v4026_v50 = vunpack.c.h.bf16 %v5812_v18 }
 0x2ba   : > { %4649 = vst [vmem:[%s7250_s18 + $0x20] sm:$0xff] %v5226_v23  ;;  %v4146_v4 = vadd.f32 %v4018_v47, %v3890_v0  ;;  %v3893_v62 = vmax.f32 %v3353_v60, 0.0  ;;  %v3355_v6 = vadd.f32 %v3354_v19, %v7141_v55  ;;  %v7272_v30 = vpop.f32.mrf.mxu0  ;;  %v4029_v19 = vunpack.c.l.bf16 %v5813_v58 }
 0x2bb   : > { %v3356_v5 = vpop.f32.mrf.mxu1 }
 0x2bc   : > { %v5228_v57 = vpack.c.bf16 %v4146_v4, %v4145_v24  ;;  %v3894_v38 = vmax.f32 %v3355_v6, 0.0  ;;  %v3357_v39 = vadd.f32 %v3356_v5, %v7143_v10  ;;  %v7276_v52 = vpop.f32.mrf.mxu0  ;;  %v4149_v8 = vadd.f32 %v4021_v28, %v3893_v62 }
 0x2bd   : > { %v3358_v25 = vpop.f32.mrf.mxu1  ;;  %v4030_v24 = vunpack.c.h.bf16 %v5813_v58 }
 0x2be   : > { %4651 = vst [vmem:[%s7250_s18 + $0x30] sm:$0xff] %v5228_v57  ;;  %v4150_v47 = vadd.f32 %v4022_v35, %v3894_v38  ;;  %v3897_v48 = vmax.f32 %v3357_v39, 0.0  ;;  %v3359_v55 = vadd.f32 %v3358_v25, %v7145_v56  ;;  %v7280_v22 = vpop.f32.mrf.mxu0  ;;  %v5814_v38 = vld [vmem:[%s6191_s30 + $0x70] sm:$0xff] }
 0x2bf   : > { %v3362_v23 = vpop.f32.mrf.mxu1  ;;  %3827 = vmatmul.mubr.bf16.gmra.mxu1 %v7080_v33  ;;  %v4033_v39 = vunpack.c.l.bf16 %v5814_v38 }
 0x2c0   : > { %v5230_v10 = vpack.c.bf16 %v4150_v47, %v4149_v8  ;;  %v3898_v0 = vmax.f32 %v3359_v55, 0.0  ;;  %v3363_v60 = vadd.f32 %v3362_v23, %v7149_v3  ;;  %3836 = vmatprep.mubr.bf16.mxu1 %v7086_v2  ;;  %v7286_v28 = vpop.f32.mrf.mxu0  ;;  %v4153_v56 = vadd.f32 %v4025_v14, %v3897_v48 }
 0x2c1   : > { %v3364_v35 = vpop.f32.mrf.mxu1  ;;  %v4034_v8 = vunpack.c.h.bf16 %v5814_v38 }
 0x2c2   : > { %4653 = vst [vmem:[%s7250_s18 + $0x40] sm:$0xff] %v5230_v10  ;;  %v4154_v4 = vadd.f32 %v4026_v50, %v3898_v0  ;;  %v3901_v62 = vmax.f32 %v3363_v60, 0.0  ;;  %v3365_v33 = vadd.f32 %v3364_v35, %v7153_v37  ;;  %v7290_v6 = vpop.f32.mrf.mxu0  ;;  %v5815_v0 = vld [vmem:[%s6191_s30 + $0x80] sm:$0xff] }
 0x2c3   : > { %v3366_v5 = vpop.f32.mrf.mxu1  ;;  %v4037_v60 = vunpack.c.l.bf16 %v5815_v0  ;;  %v4038_v35 = vunpack.c.h.bf16 %v5815_v0 }
 0x2c4   : > { %v5232_v3 = vpack.c.bf16 %v4154_v4, %v4153_v56  ;;  %v3902_v57 = vmax.f32 %v3365_v33, 0.0  ;;  %v3367_v2 = vadd.f32 %v3366_v5, %v7155_v9  ;;  %v7294_v18 = vpop.f32.mrf.mxu0  ;;  %v4157_v14 = vadd.f32 %v4029_v19, %v3901_v62  ;;  %v5816_v5 = vld [vmem:[%s6191_s30 + $0x90] sm:$0xff] }
 0x2c5   : > { %v3368_v25 = vpop.f32.mrf.mxu1  ;;  %v4042_v38 = vunpack.c.h.bf16 %v5816_v5 }
 0x2c6   : > { %4655 = vst [vmem:[%s7250_s18 + $0x50] sm:$0xff] %v5232_v3  ;;  %v4158_v50 = vadd.f32 %v4030_v24, %v3902_v57  ;;  %v3905_v47 = vmax.f32 %v3367_v2, 0.0  ;;  %v3369_v37 = vadd.f32 %v3368_v25, %v7157_v11  ;;  %v7298_v48 = vpop.f32.mrf.mxu0  ;;  %v4041_v3 = vunpack.c.l.bf16 %v5816_v5 }
 0x2c7   : > { %v3372_v55 = vpop.f32.mrf.mxu1  ;;  %3837 = vmatmul.mubr.bf16.gmra.mxu1 %v7088_v31 }
 0x2c8   : > { %v5234_v9 = vpack.c.bf16 %v4158_v50, %v4157_v14  ;;  %v3906_v23 = vmax.f32 %v3369_v37, 0.0  ;;  %v3373_v10 = vadd.f32 %v3372_v55, %v7161_v27  ;;  %3846 = vmatprep.mubr.bf16.mxu1 %v7094_v32  ;;  %v7304_v58 = vpop.f32.mrf.mxu0  ;;  %v4161_v11 = vadd.f32 %v4033_v39, %v3905_v47  ;;  %v5817_v55 = vld [vmem:[%s6191_s30 + $0xa0] sm:$0xff] }
 0x2c9   : > { %v3374_v19 = vpop.f32.mrf.mxu1  ;;  %v4046_v0 = vunpack.c.h.bf16 %v5817_v55 }
 0x2ca   : > { %4657 = vst [vmem:[%s7250_s18 + $0x60] sm:$0xff] %v5234_v9  ;;  %v4162_v24 = vadd.f32 %v4034_v8, %v3906_v23  ;;  %v3909_v56 = vmax.f32 %v3373_v10, 0.0  ;;  %v3375_v31 = vadd.f32 %v3374_v19, %v7165_v63  ;;  %v7308_v4 = vpop.f32.mrf.mxu0  ;;  %v4045_v9 = vunpack.c.l.bf16 %v5817_v55 }
 0x2cb   : > { %v3376_v62 = vpop.f32.mrf.mxu1 }
 0x2cc   : > { %v5236_v27 = vpack.c.bf16 %v4162_v24, %v4161_v11  ;;  %v3910_v33 = vmax.f32 %v3375_v31, 0.0  ;;  %v3377_v32 = vadd.f32 %v3376_v62, %v7167_v12  ;;  %v7312_v57 = vpop.f32.mrf.mxu0  ;;  %v4165_v39 = vadd.f32 %v4037_v60, %v3909_v56  ;;  %v5818_v56 = vld [vmem:[%s6191_s30 + $0xb0] sm:$0xff] }
 0x2cd   : > { %v3378_v2 = vpop.f32.mrf.mxu1  ;;  %v4049_v31 = vunpack.c.l.bf16 %v5818_v56 }
 0x2ce   : > { %4659 = vst [vmem:[%s7250_s18 + $0x70] sm:$0xff] %v5236_v27  ;;  %v4166_v25 = vadd.f32 %v4038_v35, %v3910_v33  ;;  %v3913_v8 = vmax.f32 %v3377_v32, 0.0  ;;  %v3379_v63 = vadd.f32 %v3378_v2, %v7169_v29  ;;  %v7316_v14 = vpop.f32.mrf.mxu0  ;;  %v4050_v33 = vunpack.c.h.bf16 %v5818_v56 }
 0x2cf   : > { %v3382_v50 = vpop.f32.mrf.mxu1  ;;  %3847 = vmatmul.mubr.bf16.gmra.mxu1 %v7096_v61 }
 0x2d0   : > { %v5238_v12 = vpack.c.bf16 %v4166_v25, %v4165_v39  ;;  %v3914_v47 = vmax.f32 %v3379_v63, 0.0  ;;  %v3383_v37 = vadd.f32 %v3382_v50, %v7173_v40  ;;  %3856 = vmatprep.mubr.bf16.mxu1 %v7102_v16  ;;  %v7322_v23 = vpop.f32.mrf.mxu0  ;;  %v4169_v29 = vadd.f32 %v4041_v3, %v3913_v8  ;;  %v5819_v8 = vld [vmem:[%s6191_s30 + $0xc0] sm:$0xff] }
 0x2d1   : > { %v3384_v10 = vpop.f32.mrf.mxu1  ;;  %v4053_v63 = vunpack.c.l.bf16 %v5819_v8 }
 0x2d2   : > { %4661 = vst [vmem:[%s7250_s18 + $0x80] sm:$0xff] %v5238_v12  ;;  %v4170_v60 = vadd.f32 %v4042_v38, %v3914_v47  ;;  %v3917_v19 = vmax.f32 %v3383_v37, 0.0  ;;  %v3385_v61 = vadd.f32 %v3384_v10, %v7177_v36  ;;  %v7326_v35 = vpop.f32.mrf.mxu0  ;;  %v4054_v12 = vunpack.c.h.bf16 %v5819_v8 }
 0x2d3   : > { %v3386_v11 = vpop.f32.mrf.mxu1 }
 0x2d4   : > { %v5240_v40 = vpack.c.bf16 %v4170_v60, %v4169_v29  ;;  %v3918_v24 = vmax.f32 %v3385_v61, 0.0  ;;  %v3387_v16 = vadd.f32 %v3386_v11, %v7179_v53  ;;  %v7330_v62 = vpop.f32.mrf.mxu0  ;;  %v4173_v32 = vadd.f32 %v4045_v9, %v3917_v19  ;;  %v5820_v29 = vld [vmem:[%s6191_s30 + $0xd0] sm:$0xff] }
 0x2d5   : > { %v3388_v27 = vpop.f32.mrf.mxu1  ;;  %v4057_v60 = vunpack.c.l.bf16 %v5820_v29  ;;  %v4058_v61 = vunpack.c.h.bf16 %v5820_v29 }
 0x2d6   : > { %4663 = vst [vmem:[%s7250_s18 + $0x90] sm:$0xff] %v5240_v40  ;;  %v4174_v5 = vadd.f32 %v4046_v0, %v3918_v24  ;;  %v3921_v3 = vmax.f32 %v3387_v16, 0.0  ;;  %v3389_v36 = vadd.f32 %v3388_v27, %v7181_v44  ;;  %v7334_v2 = vpop.f32.mrf.mxu0 }
 0x2d7   : > { %v3392_v38 = vpop.f32.mrf.mxu1  ;;  %3857 = vmatmul.mubr.bf16.gmra.mxu1 %v7104_v26 }
 0x2d8   : > { %v5242_v53 = vpack.c.bf16 %v4174_v5, %v4173_v32  ;;  %v3922_v39 = vmax.f32 %v3389_v36, 0.0  ;;  %v3393_v25 = vadd.f32 %v3392_v38, %v7185_v54  ;;  %3866 = vmatprep.mubr.bf16.mxu1 %v7114_v15  ;;  %v7340_v47 = vpop.f32.mrf.mxu0  ;;  %v4177_v44 = vadd.f32 %v4049_v31, %v3921_v3  ;;  %v5821_v32 = vld [vmem:[%s6191_s30 + $0xe0] sm:$0xff] }
 0x2d9   : > { %v3394_v50 = vpop.f32.mrf.mxu1  ;;  %v4061_v5 = vunpack.c.l.bf16 %v5821_v32  ;;  %v4062_v36 = vunpack.c.h.bf16 %v5821_v32 }
 0x2da   : > { %4665 = vst [vmem:[%s7250_s18 + $0xa0] sm:$0xff] %v5242_v53  ;;  %v4178_v37 = vadd.f32 %v4050_v33, %v3922_v39  ;;  %v3925_v55 = vmax.f32 %v3393_v25, 0.0  ;;  %v3395_v26 = vadd.f32 %v3394_v50, %v7189_v17  ;;  %v7344_v10 = vpop.f32.mrf.mxu0 }
 0x2db   : > { %v3396_v9 = vpop.f32.mrf.mxu1 }
 0x2dc   : > { %v5244_v54 = vpack.c.bf16 %v4178_v37, %v4177_v44  ;;  %v3926_v0 = vmax.f32 %v3395_v26, 0.0  ;;  %v3397_v15 = vadd.f32 %v3396_v9, %v7191_v13  ;;  %v7348_v11 = vpop.f32.mrf.mxu0  ;;  %v4181_v40 = vadd.f32 %v4053_v63, %v3925_v55 }
 0x2dd   : > { %v3398_v19 = vpop.f32.mrf.mxu1 }
 0x2de   : > { %4667 = vst [vmem:[%s7250_s18 + $0xb0] sm:$0xff] %v5244_v54  ;;  %v4182_v24 = vadd.f32 %v4054_v12, %v3926_v0  ;;  %v3929_v16 = vmax.f32 %v3397_v15, 0.0  ;;  %v3399_v17 = vadd.f32 %v3398_v19, %v7193_v45  ;;  %v7352_v31 = vpop.f32.mrf.mxu0  ;;  %v5822_v12 = vld [vmem:[%s6191_s30 + $0xf0] sm:$0xff] }
 0x2df   : > { %v3402_v56 = vpop.f32.mrf.mxu1  ;;  %3867 = vmatmul.mubr.bf16.gmra.mxu1 %v7116_v7  ;;  %v4065_v44 = vunpack.c.l.bf16 %v5822_v12  ;;  %v4066_v55 = vunpack.c.h.bf16 %v5822_v12 }
 0x2e0   : > { %v5246_v13 = vpack.c.bf16 %v4182_v24, %v4181_v40  ;;  %v3930_v27 = vmax.f32 %v3399_v17, 0.0  ;;  %v3403_v33 = vadd.f32 %v3402_v56, %v7197_v34  ;;  %v7357_v38 = vpop.f32.mrf.mxu0  ;;  %v4185_v53 = vadd.f32 %v4057_v60, %v3929_v16 }
 0x2e1   : > { %v3404_v3 = vpop.f32.mrf.mxu1 }
 0x2e2   : > { %4669 = vst [vmem:[%s7250_s18 + $0xc0] sm:$0xff] %v5246_v13  ;;  %v4186_v45 = vadd.f32 %v4058_v61, %v3930_v27  ;;  %v3933_v39 = vmax.f32 %v3403_v33, 0.0  ;;  %v3405_v25 = vadd.f32 %v3404_v3, %v7200_v41  ;;  %v7361_v7 = vpop.f32.mrf.mxu0  ;;  %v5823_v61 = vld [vmem:[%s6191_s30 + $0x100] sm:$0xff] }
 0x2e3   : > { %v3406_v8 = vpop.f32.mrf.mxu1  ;;  %v4069_v40 = vunpack.c.l.bf16 %v5823_v61  ;;  %v4070_v16 = vunpack.c.h.bf16 %v5823_v61 }
 0x2e4   : > { %v5248_v63 = vpack.c.bf16 %v4186_v45, %v4185_v53  ;;  %v3934_v50 = vmax.f32 %v3405_v25, 0.0  ;;  %v3407_v34 = vadd.f32 %v3406_v8, %v7202_v46  ;;  %v7365_v26 = vpop.f32.mrf.mxu0  ;;  %v4189_v9 = vadd.f32 %v4061_v5, %v3933_v39  ;;  %v5824_v53 = vld [vmem:[%s6191_s30 + $0x110] sm:$0xff] }
 0x2e5   : > { %v3408_v37 = vpop.f32.mrf.mxu1  ;;  %v4073_v45 = vunpack.c.l.bf16 %v5824_v53  ;;  %v4074_v25 = vunpack.c.h.bf16 %v5824_v53 }
 0x2e6   : > { %4671 = vst [vmem:[%s7250_s18 + $0xd0] sm:$0xff] %v5248_v63  ;;  %v4190_v54 = vadd.f32 %v4062_v36, %v3934_v50  ;;  %v3937_v0 = vmax.f32 %v3407_v34, 0.0  ;;  %v3409_v41 = vadd.f32 %v3408_v37, %v7204_v43  ;;  %v7369_v29 = vpop.f32.mrf.mxu0 }
 0x2e7   : > { %v3412_v15 = vpop.f32.mrf.mxu1 }
 0x2e8   : > { %v5250_v60 = vpack.c.bf16 %v4190_v54, %v4189_v9  ;;  %v3938_v19 = vmax.f32 %v3409_v41, 0.0  ;;  %v3413_v46 = vadd.f32 %v3412_v15, %v7208_v42  ;;  %v7373_v17 = vpop.f32.mrf.mxu0  ;;  %v4193_v56 = vadd.f32 %v4065_v44, %v3937_v0  ;;  %v7820_v42 = vld [vmem:[#allocation28_spill] sm:$0xff]  ;;  %v7822_v54 = vld [vmem:[#allocation31_spill] sm:$0xff] }
 0x2e9   : > { %v3414_v24 = vpop.f32.mrf.mxu1  ;;  %v5825_v41 = vld [vmem:[%s6191_s30 + $0x120] sm:$0xff] }
 0x2ea   : > { %4673 = vst [vmem:[%s7250_s18 + $0xe0] sm:$0xff] %v5250_v60  ;;  %v4194_v13 = vadd.f32 %v4066_v55, %v3938_v19  ;;  %v3941_v27 = vmax.f32 %v3413_v46, 0.0  ;;  %v3415_v43 = vadd.f32 %v3414_v24, %v7210_v1  ;;  %v7377_v32 = vpop.f32.mrf.mxu0  ;;  %v7821_v1 = vld [vmem:[#allocation15_spill] sm:$0xff]  ;;  %v4077_v15 = vunpack.c.l.bf16 %v5825_v41 }
 0x2eb   : > { %v3416_v33 = vpop.f32.mrf.mxu1  ;;  %v4078_v19 = vunpack.c.h.bf16 %v5825_v41  ;;  %v5827_v41 = vld [vmem:[%s6191_s30 + $0x140] sm:$0xff] }
 0x2ec   : > { %v5252_v5 = vpack.c.bf16 %v4194_v13, %v4193_v56  ;;  %v3942_v3 = vmax.f32 %v3415_v43, 0.0  ;;  %v3417_v36 = vadd.f32 %v3416_v33, %v7820_v42  ;;  %v7381_v8 = vpop.f32.mrf.mxu0  ;;  %v4197_v63 = vadd.f32 %v4069_v40, %v3941_v27  ;;  %v5826_v42 = vld [vmem:[%s6191_s30 + $0x130] sm:$0xff] }
 0x2ed   : > { %v3418_v39 = vpop.f32.mrf.mxu1 }
 0x2ee   : > { %4675 = vst [vmem:[%s7250_s18 + $0xf0] sm:$0xff] %v5252_v5  ;;  %v4198_v50 = vadd.f32 %v4070_v16, %v3942_v3  ;;  %v3945_v34 = vmax.f32 %v3417_v36, 0.0  ;;  %v3419_v12 = vadd.f32 %v3418_v39, %v7821_v1  ;;  %v7385_v37 = vpop.f32.mrf.mxu0  ;;  %v7823_v16 = vld [vmem:[#allocation12_spill] sm:$0xff]  ;;  %v7824_v5 = vld [vmem:[#allocation13_spill] sm:$0xff]  ;;  %v4081_v36 = vunpack.c.l.bf16 %v5826_v42 }
 0x2ef   : > { %v3422_v44 = vpop.f32.mrf.mxu1  ;;  %v4082_v39 = vunpack.c.h.bf16 %v5826_v42 }
 0x2f0   : > { %v5254_v55 = vpack.c.bf16 %v4198_v50, %v4197_v63  ;;  %v3946_v9 = vmax.f32 %v3419_v12, 0.0  ;;  %v3423_v0 = vadd.f32 %v3422_v44, %v7822_v54  ;;  %v7389_v46 = vpop.f32.mrf.mxu0  ;;  %v4201_v61 = vadd.f32 %v4073_v45, %v3945_v34  ;;  %v7825_v34 = vld [vmem:[#allocation14_spill] sm:$0xff]  ;;  %v7826_v54 = vld [vmem:[#allocation16_spill] sm:$0xff] }
 0x2f1   : > { %v3424_v60 = vpop.f32.mrf.mxu1 }
 0x2f2   : > { %4677 = vst [vmem:[%s7250_s18 + $0x100] sm:$0xff] %v5254_v55  ;;  %v4202_v40 = vadd.f32 %v4074_v25, %v3946_v9  ;;  %v3949_v24 = vmax.f32 %v3423_v0, 0.0  ;;  %v3425_v56 = vadd.f32 %v3424_v60, %v7823_v16  ;;  %v7393_v27 = vpop.f32.mrf.mxu0  ;;  %v4085_v60 = vunpack.c.l.bf16 %v5827_v41 }
 0x2f3   : > { %v3426_v13 = vpop.f32.mrf.mxu1 }
 0x2f4   : > { %v5256_v43 = vpack.c.bf16 %v4202_v40, %v4201_v61  ;;  %v3950_v33 = vmax.f32 %v3425_v56, 0.0  ;;  %v3427_v3 = vadd.f32 %v3426_v13, %v7824_v5  ;;  %v7397_v63 = vpop.f32.mrf.mxu0  ;;  %v4205_v45 = vadd.f32 %v4077_v15, %v3949_v24 }
 0x2f5   : > { %v3428_v53 = vpop.f32.mrf.mxu1  ;;  %v4086_v40 = vunpack.c.h.bf16 %v5827_v41  ;;  %v7829_v41 = vld [vmem:[#allocation19_spill] sm:$0xff] }
 0x2f6   : > { %4679 = vst [vmem:[%s7250_s18 + $0x110] sm:$0xff] %v5256_v43  ;;  %v4206_v25 = vadd.f32 %v4078_v19, %v3950_v33  ;;  %v3953_v50 = vmax.f32 %v3427_v3, 0.0  ;;  %v3429_v1 = vadd.f32 %v3428_v53, %v7825_v34  ;;  %v7401_v44 = vpop.f32.mrf.mxu0  ;;  %v7827_v3 = vld [vmem:[#allocation17_spill] sm:$0xff]  ;;  %v5828_v53 = vld [vmem:[%s6191_s30 + $0x150] sm:$0xff] }
 0x2f7   : > { %v3432_v12 = vpop.f32.mrf.mxu1  ;;  %v4090_v34 = vunpack.c.h.bf16 %v5828_v53 }
 0x2f8   : > { %v5258_v55 = vpack.c.bf16 %v4206_v25, %v4205_v45  ;;  %v3954_v9 = vmax.f32 %v3429_v1, 0.0  ;;  %v3433_v0 = vadd.f32 %v3432_v12, %v7826_v54  ;;  %v7405_v16 = vpop.f32.mrf.mxu0  ;;  %v4209_v15 = vadd.f32 %v4081_v36, %v3953_v50 }
 0x2f9   : > { %v3434_v61 = vpop.f32.mrf.mxu1  ;;  %v4089_v45 = vunpack.c.l.bf16 %v5828_v53 }
 0x2fa   : > { %4681 = vst [vmem:[%s7250_s18 + $0x120] sm:$0xff] %v5258_v55  ;;  %v4210_v19 = vadd.f32 %v4082_v39, %v3954_v9  ;;  %v3957_v24 = vmax.f32 %v3433_v0, 0.0  ;;  %v3435_v56 = vadd.f32 %v3434_v61, %v7233_v20  ;;  %v7409_v43 = vpop.f32.mrf.mxu0  ;;  %v7828_v20 = vld [vmem:[#allocation18_spill] sm:$0xff] }
 0x2fb   : > { %v3436_v13 = vpop.f32.mrf.mxu1 }
 0x2fc   : > { %v5260_v33 = vpack.c.bf16 %v4210_v19, %v4209_v15  ;;  %v3958_v5 = vmax.f32 %v3435_v56, 0.0  ;;  %v3437_v42 = vadd.f32 %v3436_v13, %v7827_v3  ;;  %v7413_v1 = vpop.f32.mrf.mxu0  ;;  %v4213_v36 = vadd.f32 %v4085_v60, %v3957_v24  ;;  %v5829_v15 = vld [vmem:[%s6191_s30 + $0x160] sm:$0xff] }
 0x2fd   : > { %v3438_v25 = vpop.f32.mrf.mxu1  ;;  %v4093_v19 = vunpack.c.l.bf16 %v5829_v15  ;;  %v4094_v13 = vunpack.c.h.bf16 %v5829_v15 }
 0x2fe   : > { %4683 = vst [vmem:[%s7250_s18 + $0x130] sm:$0xff] %v5260_v33  ;;  %v4214_v39 = vadd.f32 %v4086_v40, %v3958_v5  ;;  %v3961_v50 = vmax.f32 %v3437_v42, 0.0  ;;  %v3439_v12 = vadd.f32 %v3438_v25, %v7828_v20  ;;  %v7417_v9 = vpop.f32.mrf.mxu0 }
 0x2ff   : > { %v3442_v55 = vpop.f32.mrf.mxu1 }
 0x300   : > { %v5262_v54 = vpack.c.bf16 %v4214_v39, %v4213_v36  ;;  %v3962_v0 = vmax.f32 %v3439_v12, 0.0  ;;  %v3443_v61 = vadd.f32 %v3442_v55, %v7829_v41  ;;  %v7421_v3 = vpop.f32.mrf.mxu0  ;;  %v4217_v60 = vadd.f32 %v4089_v45, %v3961_v50  ;;  %v5830_v39 = vld [vmem:[%s6191_s30 + $0x170] sm:$0xff] }
 0x301   : > { %v3444_v56 = vpop.f32.mrf.mxu1  ;;  %v4097_v20 = vunpack.c.l.bf16 %v5830_v39  ;;  %v4098_v55 = vunpack.c.h.bf16 %v5830_v39 }
 0x302   : > { %4685 = vst [vmem:[%s7250_s18 + $0x140] sm:$0xff] %v5262_v54  ;;  %v4218_v40 = vadd.f32 %v4090_v34, %v3962_v0  ;;  %v3965_v24 = vmax.f32 %v3443_v61, 0.0  ;;  %v3445_v33 = vadd.f32 %v3444_v56, %v7254_v59  ;;  %v7425_v42 = vpop.f32.mrf.mxu0  ;;  %v5831_v56 = vld [vmem:[%s6191_s30 + $0x180] sm:$0xff] }
 0x303   : > { %v3446_v5 = vpop.f32.mrf.mxu1 }
 0x304   : > { %v5264_v53 = vpack.c.bf16 %v4218_v40, %v4217_v60  ;;  %v3966_v25 = vmax.f32 %v3445_v33, 0.0  ;;  %v3447_v36 = vadd.f32 %v3446_v5, %v7258_v51  ;;  %v7429_v41 = vpop.f32.mrf.mxu0  ;;  %v4221_v45 = vadd.f32 %v4093_v19, %v3965_v24 }
 0x305   : > { %v3448_v12 = vpop.f32.mrf.mxu1  ;;  %v4101_v60 = vunpack.c.l.bf16 %v5831_v56  ;;  %v4102_v33 = vunpack.c.h.bf16 %v5831_v56  ;;  %v5833_v56 = vld [vmem:[%s6191_s30 + $0x1a0] sm:$0xff] }
 0x306   : > { %4687 = vst [vmem:[%s7250_s18 + $0x150] sm:$0xff] %v5264_v53  ;;  %v4222_v34 = vadd.f32 %v4094_v13, %v3966_v25  ;;  %v3969_v50 = vmax.f32 %v3447_v36, 0.0  ;;  %v3449_v59 = vadd.f32 %v3448_v12, %v7262_v49  ;;  %v7433_v0 = vpop.f32.mrf.mxu0 }
 0x307   : > { %v3452_v54 = vpop.f32.mrf.mxu1 }
 0x308   : > { %v5266_v61 = vpack.c.bf16 %v4222_v34, %v4221_v45  ;;  %v3970_v15 = vmax.f32 %v3449_v59, 0.0  ;;  %v3453_v51 = vadd.f32 %v3452_v54, %v7268_v21  ;;  %v7437_v5 = vpop.f32.mrf.mxu0  ;;  %v4225_v19 = vadd.f32 %v4097_v20, %v3969_v50  ;;  %v5832_v21 = vld [vmem:[%s6191_s30 + $0x190] sm:$0xff] }
 0x309   : > { %v3454_v40 = vpop.f32.mrf.mxu1  ;;  %v4105_v12 = vunpack.c.l.bf16 %v5832_v21  ;;  %v4106_v59 = vunpack.c.h.bf16 %v5832_v21 }
 0x30a   : > { %4689 = vst [vmem:[%s7250_s18 + $0x160] sm:$0xff] %v5266_v61  ;;  %v4226_v13 = vadd.f32 %v4098_v55, %v3970_v15  ;;  %v3973_v24 = vmax.f32 %v3453_v51, 0.0  ;;  %v3455_v49 = vadd.f32 %v3454_v40, %v7272_v30  ;;  %v7443_v45 = vpop.f32.mrf.mxu0  ;;  %v4109_v40 = vunpack.c.l.bf16 %v5833_v56 }
 0x30b   : > { %v3456_v53 = vpop.f32.mrf.mxu1 }
 0x30c   : > { %v5268_v25 = vpack.c.bf16 %v4226_v13, %v4225_v19  ;;  %v3974_v36 = vmax.f32 %v3455_v49, 0.0  ;;  %v3457_v39 = vadd.f32 %v3456_v53, %v7276_v52  ;;  %v4229_v54 = vadd.f32 %v4101_v60, %v3973_v24  ;;  %v7448_v52 = vpop.f32.mrf.mxu0 }
 0x30d   : > { %v3458_v34 = vpop.f32.mrf.mxu1  ;;  %v4110_v13 = vunpack.c.h.bf16 %v5833_v56 }
 0x30e   : > { %4691 = vst [vmem:[%s7250_s18 + $0x170] sm:$0xff] %v5268_v25  ;;  %v4230_v20 = vadd.f32 %v4102_v33, %v3974_v36  ;;  %v3977_v55 = vmax.f32 %v3457_v39, 0.0  ;;  %v3459_v50 = vadd.f32 %v3458_v34, %v7280_v22  ;;  %v5834_v39 = vld [vmem:[%s6191_s30 + $0x1b0] sm:$0xff] }
 0x30f   : > { %v3462_v30 = vpop.f32.mrf.mxu1  ;;  %v4113_v21 = vunpack.c.l.bf16 %v5834_v39 }
 0x310   : > { %v5270_v61 = vpack.c.bf16 %v4230_v20, %v4229_v54  ;;  %v3978_v15 = vmax.f32 %v3459_v50, 0.0  ;;  %v3463_v51 = vadd.f32 %v3462_v30, %v7286_v28  ;;  %v4233_v49 = vadd.f32 %v4105_v12, %v3977_v55  ;;  %v7454_v28 = vpop.f32.mrf.mxu0 }
 0x311   : > { %v3464_v19 = vpop.f32.mrf.mxu1  ;;  %v4114_v54 = vunpack.c.h.bf16 %v5834_v39 }
 0x312   : > { %4693 = vst [vmem:[%s7250_s18 + $0x180] sm:$0xff] %v5270_v61  ;;  %v4234_v60 = vadd.f32 %v4106_v59, %v3978_v15  ;;  %v3981_v33 = vmax.f32 %v3463_v51, 0.0  ;;  %v3465_v24 = vadd.f32 %v3464_v19, %v7290_v6  ;;  %v5835_v15 = vld [vmem:[%s6191_s30 + $0x1c0] sm:$0xff] }
 0x313   : > { %v3466_v22 = vpop.f32.mrf.mxu1  ;;  %v4117_v51 = vunpack.c.l.bf16 %v5835_v15  ;;  %v4118_v19 = vunpack.c.h.bf16 %v5835_v15 }
 0x314   : > { %v5272_v53 = vpack.c.bf16 %v4234_v60, %v4233_v49  ;;  %v3982_v25 = vmax.f32 %v3465_v24, 0.0  ;;  %v3467_v36 = vadd.f32 %v3466_v22, %v7294_v18  ;;  %v4237_v20 = vadd.f32 %v4109_v40, %v3981_v33  ;;  %v7460_v18 = vpop.f32.mrf.mxu0 }
 0x315   : > { %v3468_v34 = vpop.f32.mrf.mxu1 }
 0x316   : > { %4695 = vst [vmem:[%s7250_s18 + $0x190] sm:$0xff] %v5272_v53  ;;  %v4238_v12 = vadd.f32 %v4110_v13, %v3982_v25  ;;  %v3985_v59 = vmax.f32 %v3467_v36, 0.0  ;;  %v3469_v55 = vadd.f32 %v3468_v34, %v7298_v48  ;;  %v5836_v53 = vld [vmem:[%s6191_s30 + $0x1d0] sm:$0xff] }
 0x317   : > { %v3472_v6 = vpop.f32.mrf.mxu1  ;;  %v4121_v25 = vunpack.c.l.bf16 %v5836_v53  ;;  %v4122_v39 = vunpack.c.h.bf16 %v5836_v53 }
 0x318   : > { %v5274_v50 = vpack.c.bf16 %v4238_v12, %v4237_v20  ;;  %v3986_v30 = vmax.f32 %v3469_v55, 0.0  ;;  %v3473_v61 = vadd.f32 %v3472_v6, %v7304_v58  ;;  %v4241_v49 = vadd.f32 %v4113_v21, %v3985_v59  ;;  %v7466_v58 = vpop.f32.mrf.mxu0  ;;  %v5837_v6 = vld [vmem:[%s6191_s30 + $0x1e0] sm:$0xff] }
 0x319   : > { %v3474_v56 = vpop.f32.mrf.mxu1 }
 0x31a   : > { %4697 = vst [vmem:[%s7250_s18 + $0x1a0] sm:$0xff] %v5274_v50  ;;  %v4242_v40 = vadd.f32 %v4114_v54, %v3986_v30  ;;  %v3989_v13 = vmax.f32 %v3473_v61, 0.0  ;;  %v3475_v60 = vadd.f32 %v3474_v56, %v7308_v4  ;;  %v4125_v50 = vunpack.c.l.bf16 %v5837_v6 }
 0x31b   : > { %v3476_v48 = vpop.f32.mrf.mxu1  ;;  %v4126_v61 = vunpack.c.h.bf16 %v5837_v6 }
 0x31c   : > { %v5276_v33 = vpack.c.bf16 %v4242_v40, %v4241_v49  ;;  %v3990_v24 = vmax.f32 %v3475_v60, 0.0  ;;  %v3477_v22 = vadd.f32 %v3476_v48, %v7312_v57  ;;  %v4245_v34 = vadd.f32 %v4117_v51, %v3989_v13  ;;  %v7472_v57 = vpop.f32.mrf.mxu0  ;;  %v5838_v60 = vld [vmem:[%s6191_s30 + $0x1f0] sm:$0xff] }
 0x31d   : > { %v3478_v36 = vpop.f32.mrf.mxu1  ;;  %v4129_v48 = vunpack.c.l.bf16 %v5838_v60 }
 0x31e   : > { %4699 = vst [vmem:[%s7250_s18 + $0x1b0] sm:$0xff] %v5276_v33  ;;  %v4246_v21 = vadd.f32 %v4118_v19, %v3990_v24  ;;  %v3993_v54 = vmax.f32 %v3477_v22, 0.0  ;;  %v3479_v20 = vadd.f32 %v3478_v36, %v7316_v14  ;;  %v4130_v24 = vunpack.c.h.bf16 %v5838_v60 }
 0x31f   : > { %v3482_v4 = vpop.f32.mrf.mxu1 }
 0x320   : > { %v5278_v12 = vpack.c.bf16 %v4246_v21, %v4245_v34  ;;  %v3994_v59 = vmax.f32 %v3479_v20, 0.0  ;;  %v3483_v55 = vadd.f32 %v3482_v4, %v7322_v23  ;;  %v4249_v15 = vadd.f32 %v4121_v25, %v3993_v54  ;;  %v7478_v23 = vpop.f32.mrf.mxu0  ;;  %v5839_v54 = vld [vmem:[%s6191_s30 + $0x8] sm:$0xff] }
 0x321   : > { %v3484_v30 = vpop.f32.mrf.mxu1  ;;  %v4007_v20 = vunpack.c.l.bf16 %v5839_v54 }
 0x322   : > { %4701 = vst [vmem:[%s7250_s18 + $0x1c0] sm:$0xff] %v5278_v12  ;;  %v4250_v51 = vadd.f32 %v4122_v39, %v3994_v59  ;;  %v3997_v56 = vmax.f32 %v3483_v55, 0.0  ;;  %v3485_v19 = vadd.f32 %v3484_v30, %v7326_v35  ;;  %v4008_v12 = vunpack.c.h.bf16 %v5839_v54 }
 0x323   : > { %v3486_v14 = vpop.f32.mrf.mxu1 }
 0x324   : > { %v5280_v49 = vpack.c.bf16 %v4250_v51, %v4249_v15  ;;  %v3998_v40 = vmax.f32 %v3485_v19, 0.0  ;;  %v3487_v13 = vadd.f32 %v3486_v14, %v7330_v62  ;;  %v4253_v22 = vadd.f32 %v4125_v50, %v3997_v56  ;;  %v7484_v62 = vpop.f32.mrf.mxu0  ;;  %v5840_v51 = vld [vmem:[%s6191_s30 + $0x18] sm:$0xff] }
 0x325   : > { %v3488_v33 = vpop.f32.mrf.mxu1  ;;  %v4011_v56 = vunpack.c.l.bf16 %v5840_v51  ;;  %v4012_v14 = vunpack.c.h.bf16 %v5840_v51 }
 0x326   : > { %4703 = vst [vmem:[%s7250_s18 + $0x1d0] sm:$0xff] %v5280_v49  ;;  %v4254_v53 = vadd.f32 %v4126_v61, %v3998_v40  ;;  %v4001_v25 = vmax.f32 %v3487_v13, 0.0  ;;  %v3489_v36 = vadd.f32 %v3488_v33, %v7334_v2 }
 0x327   : > { %v3718_v35 = vpop.f32.mrf.mxu1 }
 0x328   : > { %v5282_v39 = vpack.c.bf16 %v4254_v53, %v4253_v22  ;;  %v4002_v34 = vmax.f32 %v3489_v36, 0.0  ;;  %v3719_v21 = vadd.f32 %v3718_v35, %v7340_v47  ;;  %v4257_v59 = vadd.f32 %v4129_v48, %v4001_v25  ;;  %v7490_v47 = vpop.f32.mrf.mxu0  ;;  %v5841_v22 = vld [vmem:[%s6191_s30 + $0x28] sm:$0xff] }
 0x329   : > { %v3720_v4 = vpop.f32.mrf.mxu1  ;;  %v4015_v53 = vunpack.c.l.bf16 %v5841_v22  ;;  %v4016_v36 = vunpack.c.h.bf16 %v5841_v22 }
 0x32a   : > { %4705 = vst [vmem:[%s7250_s18 + $0x1e0] sm:$0xff] %v5282_v39  ;;  %v4258_v55 = vadd.f32 %v4130_v24, %v4002_v34  ;;  %v3879_v6 = vmax.f32 %v3719_v21, 0.0  ;;  %v3721_v50 = vadd.f32 %v3720_v4, %v7344_v10 }
 0x32b   : > { %v3722_v2 = vpop.f32.mrf.mxu1 }
 0x32c   : > { %v5284_v30 = vpack.c.bf16 %v4258_v55, %v4257_v59  ;;  %v3880_v61 = vmax.f32 %v3721_v50, 0.0  ;;  %v3723_v15 = vadd.f32 %v3722_v2, %v7348_v11  ;;  %v4135_v49 = vadd.f32 %v4007_v20, %v3879_v6  ;;  %v7496_v11 = vpop.f32.mrf.mxu0 }
 0x32d   : > { %v3724_v19 = vpop.f32.mrf.mxu1 }
 0x32e   : > { %4707 = vst [vmem:[%s7250_s18 + $0x1f0] sm:$0xff] %v5284_v30  ;;  %v4136_v40 = vadd.f32 %v4008_v12, %v3880_v61  ;;  %v3883_v13 = vmax.f32 %v3723_v15, 0.0  ;;  %v3725_v60 = vadd.f32 %v3724_v19, %v7352_v31  ;;  %v5842_v12 = vld [vmem:[%s6191_s30 + $0x38] sm:$0xff]  ;;  %v5843_v19 = vld [vmem:[%s6191_s30 + $0x48] sm:$0xff] }
 0x32f   : > { %v3728_v10 = vpop.f32.mrf.mxu1  ;;  %v4019_v59 = vunpack.c.l.bf16 %v5842_v12  ;;  %v4020_v6 = vunpack.c.h.bf16 %v5842_v12  ;;  %v5845_v12 = vld [vmem:[%s6191_s30 + $0x68] sm:$0xff] }
 0x330   : > { %v5223_v48 = vpack.c.bf16 %v4136_v40, %v4135_v49  ;;  %v3884_v33 = vmax.f32 %v3725_v60, 0.0  ;;  %v3729_v24 = vadd.f32 %v3728_v10, %v7357_v38  ;;  %v4139_v35 = vadd.f32 %v4011_v56, %v3883_v13  ;;  %v7502_v38 = vpop.f32.mrf.mxu0 }
 0x331   : > { %v3730_v25 = vpop.f32.mrf.mxu1  ;;  %v4024_v40 = vunpack.c.h.bf16 %v5843_v19 }
 0x332   : > { %4646 = vst [vmem:[%s7250_s18 + $0x8] sm:$0xff] %v5223_v48  ;;  %v4140_v39 = vadd.f32 %v4012_v14, %v3884_v33  ;;  %v3887_v34 = vmax.f32 %v3729_v24, 0.0  ;;  %v3731_v21 = vadd.f32 %v3730_v25, %v7361_v7  ;;  %v4023_v14 = vunpack.c.l.bf16 %v5843_v19 }
 0x333   : > { %v3732_v31 = vpop.f32.mrf.mxu1 }
 0x334   : > { %v5225_v54 = vpack.c.bf16 %v4140_v39, %v4139_v35  ;;  %v3888_v20 = vmax.f32 %v3731_v21, 0.0  ;;  %v3733_v4 = vadd.f32 %v3732_v31, %v7365_v26  ;;  %v4143_v50 = vadd.f32 %v4015_v53, %v3887_v34  ;;  %v7508_v26 = vpop.f32.mrf.mxu0  ;;  %v5844_v53 = vld [vmem:[%s6191_s30 + $0x58] sm:$0xff] }
 0x335   : > { %v3734_v55 = vpop.f32.mrf.mxu1  ;;  %v4027_v25 = vunpack.c.l.bf16 %v5844_v53  ;;  %v4028_v35 = vunpack.c.h.bf16 %v5844_v53 }
 0x336   : > { %4648 = vst [vmem:[%s7250_s18 + $0x18] sm:$0xff] %v5225_v54  ;;  %v4144_v2 = vadd.f32 %v4016_v36, %v3888_v20  ;;  %v3891_v30 = vmax.f32 %v3733_v4, 0.0  ;;  %v3735_v61 = vadd.f32 %v3734_v55, %v7369_v29 }
 0x337   : > { %v3738_v7 = vpop.f32.mrf.mxu1 }
 0x338   : > { %v5227_v15 = vpack.c.bf16 %v4144_v2, %v4143_v50  ;;  %v3892_v51 = vmax.f32 %v3735_v61, 0.0  ;;  %v3739_v56 = vadd.f32 %v3738_v7, %v7373_v17  ;;  %v4147_v13 = vadd.f32 %v4019_v59, %v3891_v30  ;;  %v7514_v17 = vpop.f32.mrf.mxu0 }
 0x339   : > { %v3740_v49 = vpop.f32.mrf.mxu1  ;;  %v4031_v59 = vunpack.c.l.bf16 %v5845_v12 }
 0x33a   : > { %4650 = vst [vmem:[%s7250_s18 + $0x28] sm:$0xff] %v5227_v15  ;;  %v4148_v60 = vadd.f32 %v4020_v6, %v3892_v51  ;;  %v3895_v10 = vmax.f32 %v3739_v56, 0.0  ;;  %v3741_v48 = vadd.f32 %v3740_v49, %v7377_v32  ;;  %v4032_v6 = vunpack.c.h.bf16 %v5845_v12  ;;  %v5846_v56 = vld [vmem:[%s6191_s30 + $0x78] sm:$0xff] }
 0x33b   : > { %v3742_v29 = vpop.f32.mrf.mxu1  ;;  %v4035_v19 = vunpack.c.l.bf16 %v5846_v56  ;;  %v4036_v49 = vunpack.c.h.bf16 %v5846_v56 }
 0x33c   : > { %v5229_v33 = vpack.c.bf16 %v4148_v60, %v4147_v13  ;;  %v3896_v24 = vmax.f32 %v3741_v48, 0.0  ;;  %v3743_v22 = vadd.f32 %v3742_v29, %v7381_v8  ;;  %v4151_v39 = vadd.f32 %v4023_v14, %v3895_v10  ;;  %v7520_v8 = vpop.f32.mrf.mxu0 }
 0x33d   : > { %v3744_v36 = vpop.f32.mrf.mxu1 }
 0x33e   : > { %4652 = vst [vmem:[%s7250_s18 + $0x38] sm:$0xff] %v5229_v33  ;;  %v4152_v34 = vadd.f32 %v4024_v40, %v3896_v24  ;;  %v3899_v21 = vmax.f32 %v3743_v22, 0.0  ;;  %v3745_v31 = vadd.f32 %v3744_v36, %v7385_v37  ;;  %v5847_v24 = vld [vmem:[%s6191_s30 + $0x88] sm:$0xff] }
 0x33f   : > { %v3748_v32 = vpop.f32.mrf.mxu1  ;;  %v4039_v22 = vunpack.c.l.bf16 %v5847_v24 }
 0x340   : > { %v5231_v54 = vpack.c.bf16 %v4152_v34, %v4151_v39  ;;  %v3900_v20 = vmax.f32 %v3745_v31, 0.0  ;;  %v3749_v4 = vadd.f32 %v3748_v32, %v7389_v46  ;;  %v4155_v50 = vadd.f32 %v4027_v25, %v3899_v21  ;;  %v7526_v46 = vpop.f32.mrf.mxu0 }
 0x341   : > { %v3750_v55 = vpop.f32.mrf.mxu1  ;;  %v4040_v25 = vunpack.c.h.bf16 %v5847_v24 }
 0x342   : > { %4654 = vst [vmem:[%s7250_s18 + $0x48] sm:$0xff] %v5231_v54  ;;  %v4156_v2 = vadd.f32 %v4028_v35, %v3900_v20  ;;  %v3903_v30 = vmax.f32 %v3749_v4, 0.0  ;;  %v3751_v61 = vadd.f32 %v3750_v55, %v7393_v27  ;;  %v5848_v54 = vld [vmem:[%s6191_s30 + $0x98] sm:$0xff] }
 0x343   : > { %v3752_v37 = vpop.f32.mrf.mxu1  ;;  %v4043_v20 = vunpack.c.l.bf16 %v5848_v54  ;;  %v4044_v12 = vunpack.c.h.bf16 %v5848_v54 }
 0x344   : > { %v5233_v7 = vpack.c.bf16 %v4156_v2, %v4155_v50  ;;  %v3904_v15 = vmax.f32 %v3751_v61, 0.0  ;;  %v3753_v51 = vadd.f32 %v3752_v37, %v7397_v63  ;;  %v4159_v40 = vadd.f32 %v4031_v59, %v3903_v30  ;;  %v7532_v63 = vpop.f32.mrf.mxu0  ;;  %v5849_v37 = vld [vmem:[%s6191_s30 + $0xa8] sm:$0xff] }
 0x345   : > { %v3754_v14 = vpop.f32.mrf.mxu1 }
 0x346   : > { %4656 = vst [vmem:[%s7250_s18 + $0x58] sm:$0xff] %v5233_v7  ;;  %v4160_v13 = vadd.f32 %v4032_v6, %v3904_v15  ;;  %v3907_v60 = vmax.f32 %v3753_v51, 0.0  ;;  %v3755_v10 = vadd.f32 %v3754_v14, %v7401_v44  ;;  %v4047_v7 = vunpack.c.l.bf16 %v5849_v37 }
 0x347   : > { %v3758_v27 = vpop.f32.mrf.mxu1  ;;  %v4048_v51 = vunpack.c.h.bf16 %v5849_v37 }
 0x348   : > { %v5235_v48 = vpack.c.bf16 %v4160_v13, %v4159_v40  ;;  %v3908_v29 = vmax.f32 %v3755_v10, 0.0  ;;  %v3759_v33 = vadd.f32 %v3758_v27, %v7405_v16  ;;  %v4163_v36 = vadd.f32 %v4035_v19, %v3907_v60  ;;  %v7538_v16 = vpop.f32.mrf.mxu0  ;;  %v5850_v10 = vld [vmem:[%s6191_s30 + $0xb8] sm:$0xff] }
 0x349   : > { %v3760_v53 = vpop.f32.mrf.mxu1  ;;  %v4051_v27 = vunpack.c.l.bf16 %v5850_v10 }
 0x34a   : > { %4658 = vst [vmem:[%s7250_s18 + $0x68] sm:$0xff] %v5235_v48  ;;  %v4164_v35 = vadd.f32 %v4036_v49, %v3908_v29  ;;  %v3911_v39 = vmax.f32 %v3759_v33, 0.0  ;;  %v3761_v34 = vadd.f32 %v3760_v53, %v7409_v43  ;;  %v4052_v29 = vunpack.c.h.bf16 %v5850_v10 }
 0x34b   : > { %v3762_v44 = vpop.f32.mrf.mxu1 }
 0x34c   : > { %v5237_v21 = vpack.c.bf16 %v4164_v35, %v4163_v36  ;;  %v3912_v31 = vmax.f32 %v3761_v34, 0.0  ;;  %v3763_v32 = vadd.f32 %v3762_v44, %v7413_v1  ;;  %v4167_v59 = vadd.f32 %v4039_v22, %v3911_v39  ;;  %v7544_v1 = vpop.f32.mrf.mxu0  ;;  %v5851_v39 = vld [vmem:[%s6191_s30 + $0xc8] sm:$0xff] }
 0x34d   : > { %v3764_v4 = vpop.f32.mrf.mxu1  ;;  %v4055_v34 = vunpack.c.l.bf16 %v5851_v39 }
 0x34e   : > { %4660 = vst [vmem:[%s7250_s18 + $0x78] sm:$0xff] %v5237_v21  ;;  %v4168_v55 = vadd.f32 %v4040_v25, %v3912_v31  ;;  %v3915_v6 = vmax.f32 %v3763_v32, 0.0  ;;  %v3765_v50 = vadd.f32 %v3764_v4, %v7417_v9  ;;  %v4056_v21 = vunpack.c.h.bf16 %v5851_v39 }
 0x34f   : > { %v3768_v43 = vpop.f32.mrf.mxu1 }
 0x350   : > { %v5239_v2 = vpack.c.bf16 %v4168_v55, %v4167_v59  ;;  %v3916_v30 = vmax.f32 %v3765_v50, 0.0  ;;  %v3769_v61 = vadd.f32 %v3768_v43, %v7421_v3  ;;  %v4171_v56 = vadd.f32 %v4043_v20, %v3915_v6  ;;  %v7550_v3 = vpop.f32.mrf.mxu0  ;;  %v5852_v55 = vld [vmem:[%s6191_s30 + $0xd8] sm:$0xff] }
 0x351   : > { %v3770_v15 = vpop.f32.mrf.mxu1  ;;  %v4059_v6 = vunpack.c.l.bf16 %v5852_v55  ;;  %v4060_v43 = vunpack.c.h.bf16 %v5852_v55 }
 0x352   : > { %4662 = vst [vmem:[%s7250_s18 + $0x88] sm:$0xff] %v5239_v2  ;;  %v4172_v19 = vadd.f32 %v4044_v12, %v3916_v30  ;;  %v3919_v14 = vmax.f32 %v3769_v61, 0.0  ;;  %v3771_v49 = vadd.f32 %v3770_v15, %v7425_v42 }
 0x353   : > { %v3772_v9 = vpop.f32.mrf.mxu1 }
 0x354   : > { %v5241_v40 = vpack.c.bf16 %v4172_v19, %v4171_v56  ;;  %v3920_v13 = vmax.f32 %v3771_v49, 0.0  ;;  %v3773_v60 = vadd.f32 %v3772_v9, %v7429_v41  ;;  %v4175_v33 = vadd.f32 %v4047_v7, %v3919_v14  ;;  %v7556_v41 = vpop.f32.mrf.mxu0  ;;  %v5853_v56 = vld [vmem:[%s6191_s30 + $0xe8] sm:$0xff] }
 0x355   : > { %v3774_v48 = vpop.f32.mrf.mxu1  ;;  %v4063_v19 = vunpack.c.l.bf16 %v5853_v56  ;;  %v4064_v49 = vunpack.c.h.bf16 %v5853_v56  ;;  %v5857_v56 = vld [vmem:[%s6191_s30 + $0x128] sm:$0xff] }
 0x356   : > { %4664 = vst [vmem:[%s7250_s18 + $0x98] sm:$0xff] %v5241_v40  ;;  %v4176_v24 = vadd.f32 %v4048_v51, %v3920_v13  ;;  %v3923_v22 = vmax.f32 %v3773_v60, 0.0  ;;  %v3775_v53 = vadd.f32 %v3774_v48, %v7433_v0 }
 0x357   : > { %v3778_v42 = vpop.f32.mrf.mxu1 }
 0x358   : > { %v5243_v25 = vpack.c.bf16 %v4176_v24, %v4175_v33  ;;  %v3924_v36 = vmax.f32 %v3775_v53, 0.0  ;;  %v3779_v35 = vadd.f32 %v3778_v42, %v7437_v5  ;;  %v4179_v31 = vadd.f32 %v4051_v27, %v3923_v22  ;;  %v7562_v5 = vpop.f32.mrf.mxu0 }
 0x359   : > { %v3780_v44 = vpop.f32.mrf.mxu1 }
 0x35a   : > { %4666 = vst [vmem:[%s7250_s18 + $0xa8] sm:$0xff] %v5243_v25  ;;  %v4180_v32 = vadd.f32 %v4052_v29, %v3924_v36  ;;  %v3927_v54 = vmax.f32 %v3779_v35, 0.0  ;;  %v3781_v20 = vadd.f32 %v3780_v44, %v7443_v45  ;;  %v5854_v29 = vld [vmem:[%s6191_s30 + $0xf8] sm:$0xff]  ;;  %v5855_v44 = vld [vmem:[%s6191_s30 + $0x108] sm:$0xff] }
 0x35b   : > { %v3782_v0 = vpop.f32.mrf.mxu1  ;;  %v4067_v33 = vunpack.c.l.bf16 %v5854_v29  ;;  %v4068_v22 = vunpack.c.h.bf16 %v5854_v29 }
 0x35c   : > { %v5245_v4 = vpack.c.bf16 %v4180_v32, %v4179_v31  ;;  %v3928_v12 = vmax.f32 %v3781_v20, 0.0  ;;  %v3783_v59 = vadd.f32 %v3782_v0, %v7448_v52  ;;  %v4183_v2 = vadd.f32 %v4055_v34, %v3927_v54  ;;  %v7568_v52 = vpop.f32.mrf.mxu0 }
 0x35d   : > { %v3784_v50 = vpop.f32.mrf.mxu1  ;;  %v4072_v32 = vunpack.c.h.bf16 %v5855_v44 }
 0x35e   : > { %4668 = vst [vmem:[%s7250_s18 + $0xb8] sm:$0xff] %v5245_v4  ;;  %v4184_v30 = vadd.f32 %v4056_v21, %v3928_v12  ;;  %v3931_v61 = vmax.f32 %v3783_v59, 0.0  ;;  %v3785_v37 = vadd.f32 %v3784_v50, %v7454_v28  ;;  %v4071_v21 = vunpack.c.l.bf16 %v5855_v44 }
 0x35f   : > { %v3788_v45 = vpop.f32.mrf.mxu1 }
 0x360   : > { %v5247_v7 = vpack.c.bf16 %v4184_v30, %v4183_v2  ;;  %v3932_v15 = vmax.f32 %v3785_v37, 0.0  ;;  %v3789_v51 = vadd.f32 %v3788_v45, %v7460_v18  ;;  %v4187_v9 = vadd.f32 %v4059_v6, %v3931_v61  ;;  %v7574_v18 = vpop.f32.mrf.mxu0  ;;  %v5856_v6 = vld [vmem:[%s6191_s30 + $0x118] sm:$0xff] }
 0x361   : > { %v3790_v14 = vpop.f32.mrf.mxu1  ;;  %v4075_v50 = vunpack.c.l.bf16 %v5856_v6  ;;  %v4076_v2 = vunpack.c.h.bf16 %v5856_v6 }
 0x362   : > { %4670 = vst [vmem:[%s7250_s18 + $0xc8] sm:$0xff] %v5247_v7  ;;  %v4188_v40 = vadd.f32 %v4060_v43, %v3932_v15  ;;  %v3935_v13 = vmax.f32 %v3789_v51, 0.0  ;;  %v3791_v60 = vadd.f32 %v3790_v14, %v7466_v58 }
 0x363   : > { %v3792_v28 = vpop.f32.mrf.mxu1 }
 0x364   : > { %v5249_v10 = vpack.c.bf16 %v4188_v40, %v4187_v9  ;;  %v3936_v27 = vmax.f32 %v3791_v60, 0.0  ;;  %v3793_v48 = vadd.f32 %v3792_v28, %v7472_v57  ;;  %v4191_v53 = vadd.f32 %v4063_v19, %v3935_v13  ;;  %v7580_v57 = vpop.f32.mrf.mxu0 }
 0x365   : > { %v3794_v24 = vpop.f32.mrf.mxu1  ;;  %v4079_v19 = vunpack.c.l.bf16 %v5857_v56 }
 0x366   : > { %4672 = vst [vmem:[%s7250_s18 + $0xd8] sm:$0xff] %v5249_v10  ;;  %v4192_v42 = vadd.f32 %v4064_v49, %v3936_v27  ;;  %v3939_v25 = vmax.f32 %v3793_v48, 0.0  ;;  %v3795_v36 = vadd.f32 %v3794_v24, %v7478_v23  ;;  %v4080_v49 = vunpack.c.h.bf16 %v5857_v56  ;;  %v5858_v48 = vld [vmem:[%s6191_s30 + $0x138] sm:$0xff] }
 0x367   : > { %v3798_v58 = vpop.f32.mrf.mxu1  ;;  %v4083_v29 = vunpack.c.l.bf16 %v5858_v48  ;;  %v4084_v24 = vunpack.c.h.bf16 %v5858_v48 }
 0x368   : > { %v5251_v35 = vpack.c.bf16 %v4192_v42, %v4191_v53  ;;  %v3940_v39 = vmax.f32 %v3795_v36, 0.0  ;;  %v3799_v34 = vadd.f32 %v3798_v58, %v7484_v62  ;;  %v4195_v54 = vadd.f32 %v4067_v33, %v3939_v25  ;;  %v7586_v62 = vpop.f32.mrf.mxu0 }
 0x369   : > { %v3800_v31 = vpop.f32.mrf.mxu1 }
 0x36a   : > { %4674 = vst [vmem:[%s7250_s18 + $0xe8] sm:$0xff] %v5251_v35  ;;  %v4196_v20 = vadd.f32 %v4068_v22, %v3940_v39  ;;  %v3943_v0 = vmax.f32 %v3799_v34, 0.0  ;;  %v3801_v4 = vadd.f32 %v3800_v31, %v7490_v47  ;;  %v5859_v39 = vld [vmem:[%s6191_s30 + $0x148] sm:$0xff] }
 0x36b   : > { %v3802_v23 = vpop.f32.mrf.mxu1  ;;  %v4087_v34 = vunpack.c.l.bf16 %v5859_v39 }
 0x36c   : > { %v5253_v12 = vpack.c.bf16 %v4196_v20, %v4195_v54  ;;  %v3944_v59 = vmax.f32 %v3801_v4, 0.0  ;;  %v3803_v55 = vadd.f32 %v3802_v23, %v7496_v11  ;;  %v4199_v30 = vadd.f32 %v4071_v21, %v3943_v0  ;;  %v7592_v11 = vpop.f32.mrf.mxu0 }
 0x36d   : > { %v3804_v43 = vpop.f32.mrf.mxu1  ;;  %v4088_v21 = vunpack.c.h.bf16 %v5859_v39 }
 0x36e   : > { %4676 = vst [vmem:[%s7250_s18 + $0xf8] sm:$0xff] %v5253_v12  ;;  %v4200_v61 = vadd.f32 %v4072_v32, %v3944_v59  ;;  %v3947_v37 = vmax.f32 %v3803_v55, 0.0  ;;  %v3805_v45 = vadd.f32 %v3804_v43, %v7502_v38  ;;  %v5860_v12 = vld [vmem:[%s6191_s30 + $0x158] sm:$0xff] }
 0x36f   : > { %v3808_v47 = vpop.f32.mrf.mxu1  ;;  %v4091_v59 = vunpack.c.l.bf16 %v5860_v12  ;;  %v4092_v6 = vunpack.c.h.bf16 %v5860_v12 }
 0x370   : > { %v5255_v7 = vpack.c.bf16 %v4200_v61, %v4199_v30  ;;  %v3948_v15 = vmax.f32 %v3805_v45, 0.0  ;;  %v3809_v51 = vadd.f32 %v3808_v47, %v7508_v26  ;;  %v4203_v9 = vadd.f32 %v4075_v50, %v3947_v37  ;;  %v7598_v26 = vpop.f32.mrf.mxu0  ;;  %v5861_v47 = vld [vmem:[%s6191_s30 + $0x168] sm:$0xff] }
 0x371   : > { %v3810_v14 = vpop.f32.mrf.mxu1 }
 0x372   : > { %4678 = vst [vmem:[%s7250_s18 + $0x108] sm:$0xff] %v5255_v7  ;;  %v4204_v40 = vadd.f32 %v4076_v2, %v3948_v15  ;;  %v3951_v13 = vmax.f32 %v3809_v51, 0.0  ;;  %v3811_v60 = vadd.f32 %v3810_v14, %v7514_v17  ;;  %v4095_v7 = vunpack.c.l.bf16 %v5861_v47 }
 0x373   : > { %v3812_v38 = vpop.f32.mrf.mxu1  ;;  %v4096_v51 = vunpack.c.h.bf16 %v5861_v47 }
 0x374   : > { %v5257_v28 = vpack.c.bf16 %v4204_v40, %v4203_v9  ;;  %v3952_v10 = vmax.f32 %v3811_v60, 0.0  ;;  %v3813_v27 = vadd.f32 %v3812_v38, %v7520_v8  ;;  %v4207_v22 = vadd.f32 %v4079_v19, %v3951_v13  ;;  %v7604_v8 = vpop.f32.mrf.mxu0  ;;  %v5862_v60 = vld [vmem:[%s6191_s30 + $0x178] sm:$0xff] }
 0x375   : > { %v3814_v33 = vpop.f32.mrf.mxu1  ;;  %v4099_v38 = vunpack.c.l.bf16 %v5862_v60 }
 0x376   : > { %4680 = vst [vmem:[%s7250_s18 + $0x118] sm:$0xff] %v5257_v28  ;;  %v4208_v53 = vadd.f32 %v4080_v49, %v3952_v10  ;;  %v3955_v42 = vmax.f32 %v3813_v27, 0.0  ;;  %v3815_v25 = vadd.f32 %v3814_v33, %v7526_v46  ;;  %v4100_v10 = vunpack.c.h.bf16 %v5862_v60 }
 0x377   : > { %v3818_v17 = vpop.f32.mrf.mxu1 }
 0x378   : > { %v5259_v36 = vpack.c.bf16 %v4208_v53, %v4207_v22  ;;  %v3956_v58 = vmax.f32 %v3815_v25, 0.0  ;;  %v3819_v35 = vadd.f32 %v3818_v17, %v7532_v63  ;;  %v4211_v31 = vadd.f32 %v4083_v29, %v3955_v42  ;;  %v7610_v63 = vpop.f32.mrf.mxu0  ;;  %v5863_v42 = vld [vmem:[%s6191_s30 + $0x188] sm:$0xff] }
 0x379   : > { %v3820_v44 = vpop.f32.mrf.mxu1  ;;  %v4103_v25 = vunpack.c.l.bf16 %v5863_v42 }
 0x37a   : > { %4682 = vst [vmem:[%s7250_s18 + $0x128] sm:$0xff] %v5259_v36  ;;  %v4212_v32 = vadd.f32 %v4084_v24, %v3956_v58  ;;  %v3959_v54 = vmax.f32 %v3819_v35, 0.0  ;;  %v3821_v20 = vadd.f32 %v3820_v44, %v7538_v16  ;;  %v4104_v36 = vunpack.c.h.bf16 %v5863_v42 }
 0x37b   : > { %v3822_v46 = vpop.f32.mrf.mxu1 }
 0x37c   : > { %v5261_v0 = vpack.c.bf16 %v4212_v32, %v4211_v31  ;;  %v3960_v4 = vmax.f32 %v3821_v20, 0.0  ;;  %v3823_v23 = vadd.f32 %v3822_v46, %v7544_v1  ;;  %v4215_v50 = vadd.f32 %v4087_v34, %v3959_v54  ;;  %v7616_v1 = vpop.f32.mrf.mxu0  ;;  %v5864_v32 = vld [vmem:[%s6191_s30 + $0x198] sm:$0xff] }
 0x37d   : > { %v3824_v55 = vpop.f32.mrf.mxu1  ;;  %v4107_v54 = vunpack.c.l.bf16 %v5864_v32  ;;  %v4108_v46 = vunpack.c.h.bf16 %v5864_v32 }
 0x37e   : > { %4684 = vst [vmem:[%s7250_s18 + $0x138] sm:$0xff] %v5261_v0  ;;  %v4216_v43 = vadd.f32 %v4088_v21, %v3960_v4  ;;  %v3963_v2 = vmax.f32 %v3823_v23, 0.0  ;;  %v3825_v30 = vadd.f32 %v3824_v55, %v7550_v3 }
 0x37f   : > { %v3828_v16 = vpop.f32.mrf.mxu1 }
 0x380   : > { %v5263_v61 = vpack.c.bf16 %v4216_v43, %v4215_v50  ;;  %v3964_v37 = vmax.f32 %v3825_v30, 0.0  ;;  %v3829_v45 = vadd.f32 %v3828_v16, %v7556_v41  ;;  %v4219_v56 = vadd.f32 %v4091_v59, %v3963_v2  ;;  %v7622_v41 = vpop.f32.mrf.mxu0  ;;  %v5865_v50 = vld [vmem:[%s6191_s30 + $0x1a8] sm:$0xff] }
 0x381   : > { %v3830_v15 = vpop.f32.mrf.mxu1  ;;  %v4111_v43 = vunpack.c.l.bf16 %v5865_v50  ;;  %v4112_v30 = vunpack.c.h.bf16 %v5865_v50 }
 0x382   : > { %4686 = vst [vmem:[%s7250_s18 + $0x148] sm:$0xff] %v5263_v61  ;;  %v4220_v19 = vadd.f32 %v4092_v6, %v3964_v37  ;;  %v3967_v14 = vmax.f32 %v3829_v45, 0.0  ;;  %v3831_v49 = vadd.f32 %v3830_v15, %v7562_v5 }
 0x383   : > { %v3832_v3 = vpop.f32.mrf.mxu1 }
 0x384   : > { %v5265_v9 = vpack.c.bf16 %v4220_v19, %v4219_v56  ;;  %v3968_v40 = vmax.f32 %v3831_v49, 0.0  ;;  %v3833_v13 = vadd.f32 %v3832_v3, %v7568_v52  ;;  %v4223_v27 = vadd.f32 %v4095_v7, %v3967_v14  ;;  %v3665_v52 = vpop.f32.mrf.mxu0 }
 0x385   : > { %v3834_v28 = vpop.f32.mrf.mxu1 }
 0x386   : > { %4688 = vst [vmem:[%s7250_s18 + $0x158] sm:$0xff] %v5265_v9  ;;  %v4224_v48 = vadd.f32 %v4096_v51, %v3968_v40  ;;  %v3971_v29 = vmax.f32 %v3833_v13, 0.0  ;;  %v3835_v33 = vadd.f32 %v3834_v28, %v7574_v18  ;;  %v5866_v51 = vld [vmem:[%s6191_s30 + $0x1b8] sm:$0xff] }
 0x387   : > { %v3838_v5 = vpop.f32.mrf.mxu1  ;;  %v4115_v56 = vunpack.c.l.bf16 %v5866_v51  ;;  %v4116_v14 = vunpack.c.h.bf16 %v5866_v51 }
 0x388   : > { %v5267_v24 = vpack.c.bf16 %v4224_v48, %v4223_v27  ;;  %v3972_v22 = vmax.f32 %v3835_v33, 0.0  ;;  %v3839_v53 = vadd.f32 %v3838_v5, %v7580_v57  ;;  %v4227_v58 = vadd.f32 %v4099_v38, %v3971_v29  ;;  %v3667_v57 = vpop.f32.mrf.mxu0 }
 0x389   : > { %v3840_v17 = vpop.f32.mrf.mxu1 }
 0x38a   : > { %4690 = vst [vmem:[%s7250_s18 + $0x168] sm:$0xff] %v5267_v24  ;;  %v4228_v35 = vadd.f32 %v4100_v10, %v3972_v22  ;;  %v3975_v39 = vmax.f32 %v3839_v53, 0.0  ;;  %v3841_v34 = vadd.f32 %v3840_v17, %v7586_v62  ;;  %v5868_v17 = vld [vmem:[%s6191_s30 + $0x1d8] sm:$0xff] }
 0x38b   : > { %v3842_v44 = vpop.f32.mrf.mxu1 }
 0x38c   : > { %v5269_v18 = vpack.c.bf16 %v4228_v35, %v4227_v58  ;;  %v3976_v21 = vmax.f32 %v3841_v34, 0.0  ;;  %v3843_v31 = vadd.f32 %v3842_v44, %v7592_v11  ;;  %v4231_v0 = vadd.f32 %v4103_v25, %v3975_v39  ;;  %v3669_v11 = vpop.f32.mrf.mxu0 }
 0x38d   : > { %v3844_v20 = vpop.f32.mrf.mxu1  ;;  %v4124_v58 = vunpack.c.h.bf16 %v5868_v17 }
 0x38e   : > { %4692 = vst [vmem:[%s7250_s18 + $0x178] sm:$0xff] %v5269_v18  ;;  %v4232_v4 = vadd.f32 %v4104_v36, %v3976_v21  ;;  %v3979_v23 = vmax.f32 %v3843_v31, 0.0  ;;  %v3845_v12 = vadd.f32 %v3844_v20, %v7598_v26 }
 0x38f   : > { %v3848_v59 = vpop.f32.mrf.mxu1 }
 0x390   : > { %v5271_v62 = vpack.c.bf16 %v4232_v4, %v4231_v0  ;;  %v3980_v55 = vmax.f32 %v3845_v12, 0.0  ;;  %v3849_v6 = vadd.f32 %v3848_v59, %v7604_v8  ;;  %v4235_v16 = vadd.f32 %v4107_v54, %v3979_v23  ;;  %v3671_v8 = vpop.f32.mrf.mxu0  ;;  %v5869_v54 = vld [vmem:[%s6191_s30 + $0x1e8] sm:$0xff] }
 0x391   : > { %v3850_v2 = vpop.f32.mrf.mxu1  ;;  %v4127_v20 = vunpack.c.l.bf16 %v5869_v54  ;;  %v4128_v0 = vunpack.c.h.bf16 %v5869_v54 }
 0x392   : > { %4694 = vst [vmem:[%s7250_s18 + $0x188] sm:$0xff] %v5271_v62  ;;  %v4236_v61 = vadd.f32 %v4108_v46, %v3980_v55  ;;  %v3983_v37 = vmax.f32 %v3849_v6, 0.0  ;;  %v3851_v45 = vadd.f32 %v3850_v2, %v7610_v63  ;;  %v3675_v28 = vpop.f32.mrf.mxu0 }
 0x393   : > { %v3852_v47 = vpop.f32.mrf.mxu1 }
 0x394   : > { %v5273_v26 = vpack.c.bf16 %v4236_v61, %v4235_v16  ;;  %v3984_v7 = vmax.f32 %v3851_v45, 0.0  ;;  %v3853_v15 = vadd.f32 %v3852_v47, %v7616_v1  ;;  %v4239_v49 = vadd.f32 %v4111_v43, %v3983_v37  ;;  %v5867_v1 = vld [vmem:[%s6191_s30 + $0x1c8] sm:$0xff]  ;;  %v3677_v25 = vpop.f32.mrf.mxu0  ;;  %v5870_v43 = vld [vmem:[%s6191_s30 + $0x1f8] sm:$0xff] }
 0x395   : > { %v3854_v19 = vpop.f32.mrf.mxu1  ;;  %v4119_v10 = vunpack.c.l.bf16 %v5867_v1  ;;  %v4120_v48 = vunpack.c.h.bf16 %v5867_v1  ;;  %v4131_v2 = vunpack.c.l.bf16 %v5870_v43  ;;  %v4132_v16 = vunpack.c.h.bf16 %v5870_v43 }
 0x396   : > { %4696 = vst [vmem:[%s7250_s18 + $0x198] sm:$0xff] %v5273_v26  ;;  %v4240_v3 = vadd.f32 %v4112_v30, %v3984_v7  ;;  %v3987_v9 = vmax.f32 %v3853_v15, 0.0  ;;  %v3855_v40 = vadd.f32 %v3854_v19, %v7622_v41  ;;  %v3679_v32 = vpop.f32.mrf.mxu0 }
 0x397   : > { %v3858_v13 = vpop.f32.mrf.mxu1 }
 0x398   : > { %v5275_v63 = vpack.c.bf16 %v4240_v3, %v4239_v49  ;;  %v3988_v60 = vmax.f32 %v3855_v40, 0.0  ;;  %v3859_v38 = vadd.f32 %v3858_v13, %v3665_v52  ;;  %v4243_v29 = vadd.f32 %v4115_v56, %v3987_v9  ;;  %v3681_v50 = vpop.f32.mrf.mxu0 }
 0x399   : > { %v3860_v27 = vpop.f32.mrf.mxu1  ;;  %v4123_v52 = vunpack.c.l.bf16 %v5868_v17 }
 0x39a   : > { %4698 = vst [vmem:[%s7250_s18 + $0x1a8] sm:$0xff] %v5275_v63  ;;  %v4244_v33 = vadd.f32 %v4116_v14, %v3988_v60  ;;  %v3991_v5 = vmax.f32 %v3859_v38, 0.0  ;;  %v3861_v24 = vadd.f32 %v3860_v27, %v3667_v57 }
 0x39b   : > { %v3862_v22 = vpop.f32.mrf.mxu1 }
 0x39c   : > { %v5277_v53 = vpack.c.bf16 %v4244_v33, %v4243_v29  ;;  %v3992_v42 = vmax.f32 %v3861_v24, 0.0  ;;  %v3863_v41 = vadd.f32 %v3862_v22, %v3669_v11  ;;  %v4247_v35 = vadd.f32 %v4119_v10, %v3991_v5 }
 0x39d   : > { %v3864_v36 = vpop.f32.mrf.mxu1 }
 0x39e   : > { %4700 = vst [vmem:[%s7250_s18 + $0x1b8] sm:$0xff] %v5277_v53  ;;  %v4248_v39 = vadd.f32 %v4120_v48, %v3992_v42  ;;  %v3995_v34 = vmax.f32 %v3863_v41, 0.0  ;;  %v3865_v44 = vadd.f32 %v3864_v36, %v3671_v8 }
 0x39f   : > { %v3868_v18 = vpop.f32.mrf.mxu1 }
 0x3a0   : > { %v5279_v21 = vpack.c.bf16 %v4248_v39, %v4247_v35  ;;  %v3996_v31 = vmax.f32 %v3865_v44, 0.0  ;;  %v3869_v57 = vadd.f32 %v3868_v18, %v3675_v28  ;;  %v4251_v4 = vadd.f32 %v4123_v52, %v3995_v34 }
 0x3a1   : > { %v3870_v46 = vpop.f32.mrf.mxu1 }
 0x3a2   : > { %4702 = vst [vmem:[%s7250_s18 + $0x1c8] sm:$0xff] %v5279_v21  ;;  %v4252_v23 = vadd.f32 %v4124_v58, %v3996_v31  ;;  %v3999_v12 = vmax.f32 %v3869_v57, 0.0  ;;  %v3871_v59 = vadd.f32 %v3870_v46, %v3677_v25 }
 0x3a3   : > { %v3872_v62 = vpop.f32.mrf.mxu1 }
 0x3a4   : > { %v5281_v55 = vpack.c.bf16 %v4252_v23, %v4251_v4  ;;  %v4000_v6 = vmax.f32 %v3871_v59, 0.0  ;;  %v3873_v11 = vadd.f32 %v3872_v62, %v3679_v32  ;;  %v4255_v61 = vadd.f32 %v4127_v20, %v3999_v12 }
 0x3a5   : > { %v3874_v30 = vpop.f32.mrf.mxu1 }
 0x3a6   : > { %4704 = vst [vmem:[%s7250_s18 + $0x1d8] sm:$0xff] %v5281_v55  ;;  %v4256_v37 = vadd.f32 %v4128_v0, %v4000_v6  ;;  %v4003_v45 = vmax.f32 %v3873_v11, 0.0  ;;  %v3875_v47 = vadd.f32 %v3874_v30, %v3681_v50 }
 0x3a8   : > { %v5283_v26 = vpack.c.bf16 %v4256_v37, %v4255_v61  ;;  %v4004_v7 = vmax.f32 %v3875_v47, 0.0  ;;  %v4259_v15 = vadd.f32 %v4131_v2, %v4003_v45 }
 0x3aa   : > { %4706 = vst [vmem:[%s7250_s18 + $0x1e8] sm:$0xff] %v5283_v26  ;;  %v4260_v8 = vadd.f32 %v4132_v16, %v4004_v7 }
 0x3ac   : > { %v5285_v51 = vpack.c.bf16 %v4260_v8, %v4259_v15 }
 0x3ae   : > { %4708 = vst [vmem:[%s7250_s18 + $0x1f8] sm:$0xff] %v5285_v51 }
 0x3af   : > { %5964 = shalt.err (!%p5961_p3)
}
 0x3b0   : > { %s5965_s17 = scalar_lea.hbm %s7657_s29, 8192  ;;  %s5969_s26 = scalar_lea.hbm %s7706_s3, 16384 }
 0x3b1   : > { %p5966_p11 = scmp.ne.s32.totalorder %s7657_s29, %s5965_s17  ;;  %p5970_p4 = scmp.lt.s32.totalorder %s7657_s29, %s7706_s3 }
 0x3b2   : > { %p5971_p6 = scmp.lt.s32.totalorder %s5969_s26, %s5965_s17 }
 0x3b3   : > { %p5967_p9 = pnand %p5966_p11, %p7830_p2 }
 0x3b4   : > { %p5972_p8 = por %p5971_p6, %p5970_p4 }
 0x3b5   : > { %p5968_p1 = pneg %p5967_p9 }
 0x3b7   : > { %p5973_p5 = pnand %p5972_p8, %p5968_p1 }
 0x3b9   : > { %5976 = shalt.err (!%p5973_p5)
}
 0x3ba   : > { %s6027_s30 = smov 256   ;;  %s6028_s18 = smov 16  }
 0x3bb   : > { %5298 = dma.vmem_to_hbm [thread:$0]  (%p7830_p2), %s7659_s27, 8192, %s7657_s29, %s4710_s4, %s6027_s30, %s6027_s30, %s6028_s18  }
 0x3bc PF: > { %s4739_s20 = sand.u32 1, %s6007_s12   ;;  %p7831_p7 = scmp.ne.s32.totalorder %s7739_s19, 0 }
 0x3bd   : > { %p7832_p12 = scmp.ge.s32.totalorder %s6019_s15, 2  ;;  %s4740_s28 = scalar_lea.sflag [#allocation4], %s4739_s20 }
 0x3bf   : > { %p5312_p13 = pnand %p7832_p12, %p7831_p7 }
 0x3c1   : > { %p5313_p0 = pneg %p5312_p13 }
 0x3c3   : > { %6002 = dma.done.wait (%p5313_p0), %s4740_s28, 8192  }
 0x3c4   : > { %6004 = vsyncadd (%p5313_p0), %s4740_s28, 4294959104  ;;  %p17_p10 = scmp.ge.s32.totalorder %s6127_s7, 4   ;;  %s7833_s12 = smov %s6011_s13 }
 0x3c5   : > { %s7834_s13 = smov %s6015_s14  ;;  %s7835_s14 = smov %s6143_s11 }
 0x3c6   : > { %s7836_s15 = smov %s6127_s7  ;;  %19 = sbr.rel (!%p17_p10) target bundleno = 6 (0x6), region = 85 }
 0x3cb   :  { %4745 = vsyncpa [#allocation3], 1 }
 0x3cc   :  { %4747 = vsyncpa [#allocation3 + $0x1], 1 }
 0x3cd   :  { %4748 = vsyncpa [#allocation6], 1 }
 0x3ce   :  { %4749 = vsyncpa [#allocation4], 1 }
 0x3cf   :  { %4751 = vsyncpa [#allocation4 + $0x1], 1 }

// kernel: tpu_custom_call.1
= control target key start
LH: loop header
LB: loop body
LE: loop exit
PB: predicated region body
PF: predicated region fallthrough
CT: control target
= control target key end

     0   :  { %8 = vsyncpa [#allocation3], 0  ;;  %s7703_s0 = inlined_call_operand.hbm [shape: bf16[512,512], index: 0, kind: input, shape index: {}]   ;;  %s7704_s1 = inlined_call_operand.hbm [shape: bf16[512,512], index: 1, kind: input, shape index: {}]   ;;  %s7705_s2 = inlined_call_operand.hbm [shape: bf16[512,512], index: 2, kind: input, shape index: {}]   ;;  %s7706_s3 = inlined_call_operand.hbm [shape: bf16[512,512], index: 3, kind: output, shape index: {}]  }
   0x1   :  { %10 = vsyncpa [#allocation3 + $0x1], 0 }
   0x2   :  { %11 = vsyncpa [#allocation6], 0 }
   0x3   :  { %12 = vsyncpa [#allocation4], 0 }
   0x4   :  { %14 = vsyncpa [#allocation4 + $0x1], 0  ;;  %s6049_s12 = smov 0   ;;  %s6051_s13 = smov 0  }
   0x5   :  { %s6053_s14 = smov 0   ;;  %s6055_s15 = smov 0  }
   0x6 LB: > { %s6070_s16 = sadd.s32 4294967295, %s6019_s15   ;;  %s4816_s17 = sadd.s32 4294967294, %s6019_s15   ;;  %s6019_s15 = sphi %s6055_s15, %s7836_s15   ;;  %s6015_s14 = sphi %s6053_s14, %s7835_s14   ;;  %s6011_s13 = sphi %s6051_s13, %s7834_s13   ;;  %s6007_s12 = sphi %s6049_s12, %s7833_s12  }
   0x7   : > { %p40_p0 = scmp.ne.s32.totalorder %s6011_s13, %s6007_s12  ;;  %p7707_p1 = scmp.eq.s32.totalorder %s6070_s16, 0 }
   0x8   : > { %p106_p2 = scmp.eq.s32.totalorder %s6070_s16, 1  ;;  %p112_p3 = scmp.eq.s32.totalorder %s4816_s17, 1 }
   0x9   : > { %p6079_p4 = por %p7707_p1, %p40_p0  ;;  %p4817_p5 = scmp.ge.s32.totalorder %s6019_s15, 1 }
   0xa   : > { %p6084_p6 = por %p112_p3, %p40_p0  ;;  %p119_p7 = scmp.lt.s32.totalorder %s6019_s15, 3 }
   0xb   : > { %s7738_s18 = scalar_select %p6079_p4, 1, 0 }
   0xc   : > { %s7739_s19 = scalar_select %p6084_p6, 1, 0 }
   0xd   : > { %p6089_p8 = pnand %p4817_p5, %p119_p7  ;;  %s6021_s21 = smov [#allocation5]  }
   0xe   : > { %s131_s22 = sshll.u32 %s6021_s21, 4  ;;  %s6022_s24 = smov [#allocation7]   ;;  %s132_s22 = int_to_ptr.vmem [resolvable:$true] %s131_s22 }
   0xf   : > { %s7740_s20 = scalar_select %p6089_p8, 1, 0 }
  0x10   : > { %p5300_p9 = pneg %p6089_p8  ;;  %s144_s25 = sshll.u32 %s6022_s24, 4  ;;  %s145_s25 = int_to_ptr.vmem [resolvable:$true] %s144_s25 }
  0x11   : > { %s5882_s26 = scalar_lea.vmem %s132_s22, 16384  ;;  %p5890_p5 = scmp.lt.s32.totalorder %s132_s22, %s132_s22 }
  0x12   : > { %p6098_p11 = pnand %p5300_p9, %p7707_p1  ;;  %p5883_p13 = scmp.ne.s32.totalorder %s132_s22, %s5882_s26 }
  0x13   : > { %p5891_p7 = scmp.lt.s32.totalorder %s5882_s26, %s5882_s26 }
  0x14   : > { %p5873_p12 = pneg %p6098_p11 }
  0x15   : > { %p5892_p10 = por %p5891_p7, %p5890_p5 }
  0x16   : > { %p5885_p0 = pnand %p5883_p13, %p5873_p12 }
  0x18   : > { %p5886_p3 = pneg %p5885_p0 }
  0x1a   : > { %p5893_p9 = pnand %p5892_p10, %p5886_p3 }
  0x1c   : > { %5896 = shalt.err (!%p5893_p9)
}
  0x1d   : > { %s6023_s27 = smov 256   ;;  %s6024_s28 = smov 16  }
  0x1e   : > { %5303 = dma.hbm_to_vmem [thread:$0]  (!%p6098_p11), %s7704_s1, 16384, %s132_s22, [#allocation6], %s6023_s27, %s6023_s27, %s6024_s28  }
  0x1f   : > { %s5908_s4 = scalar_lea.vmem %s145_s25, 16384  ;;  %p5916_p10 = scmp.lt.s32.totalorder %s145_s25, %s145_s25 }
  0x20   : > { %p5909_p13 = scmp.ne.s32.totalorder %s145_s25, %s5908_s4  ;;  %p5917_p3 = scmp.lt.s32.totalorder %s5908_s4, %s5908_s4 }
  0x22   : > { %p5911_p0 = pnand %p5909_p13, %p5873_p12  ;;  %p5918_p7 = por %p5917_p3, %p5916_p10 }
  0x24   : > { %p5912_p5 = pneg %p5911_p0 }
  0x26   : > { %p5919_p9 = pnand %p5918_p7, %p5912_p5 }
  0x28   : > { %5922 = shalt.err (!%p5919_p9)
}
  0x29   : > { %5306 = dma.hbm_to_vmem [thread:$0]  (!%p6098_p11), %s7705_s2, 16384, %s145_s25, [#allocation6], %s6023_s27, %s6023_s27, %s6024_s28  }
  0x2a   : > { %s6127_s7 = sadd.s32 1, %s6019_s15   ;;  %s27_s8 = sadd.s32 1, %s6015_s14 }
  0x2b   : > { %s24_s9 = ssub.s32 %s6019_s15, %s6127_s7  ;;  %p34_p12 = scmp.ne.s32.totalorder %s6015_s14, %s6011_s13 }
  0x2c   : > { %p25_p13 = scmp.eq.s32.totalorder %s24_s9, 0  ;;  %p35_p0 = scmp.eq.s32.totalorder %s6019_s15, 0 }
  0x2d   : > { %p6137_p5 = por %p106_p2, %p34_p12  ;;  %p5317_p10 = scmp.lt.s32.totalorder %s6019_s15, 2 }
  0x2e   : > { %s6143_s11 = scalar_select %p25_p13, %s6015_s14, %s27_s8  }
  0x2f   : > { %s7742_s10 = scalar_select %p6137_p5, 1, 0 }
  0x30   : > { %p36_p3 = por %p35_p0, %p34_p12  ;;  %s158_s17 = sand.u32 1, %s6015_s14  }
  0x31   : > { %s4821_s21 = sshll.u32 %s158_s17, 9  ;;  %s5221_s22 = sshll.u32 %s6019_s15, 13 }
  0x32   : > { %s6150_s25 = scalar_lea.hbm %s7703_s0, %s5221_s22  ;;  %s162_s26 = scalar_lea.vmem [#allocation2], %s4821_s21 }
  0x33   : > { %s170_s29 = sshll.u32 %s162_s26, 4  ;;  %p6154_p2 = pnand %p5317_p10, %p36_p3  ;;  %s6152_s29 = int_to_ptr.vmem [resolvable:$true] %s170_s29 }
  0x34   : > { %s6158_s4 = scalar_lea.sflag [#allocation3], %s158_s17  ;;  %s5923_s5 = scalar_lea.hbm %s6150_s25, 8192 }
  0x35   : > { %p5924_p11 = scmp.ne.s32.totalorder %s6150_s25, %s5923_s5  ;;  %p5925_p7 = pneg %p6154_p2 }
  0x36   : > { %s5928_s9 = scalar_lea.hbm %s7703_s0, 16384  ;;  %p5929_p13 = scmp.lt.s32.totalorder %s6150_s25, %s7703_s0 }
  0x37   : > { %p5926_p9 = pnand %p5925_p7, %p5924_p11  ;;  %p5930_p0 = scmp.lt.s32.totalorder %s5928_s9, %s5923_s5 }
  0x39   : > { %p5927_p12 = pneg %p5926_p9  ;;  %p5931_p10 = por %p5930_p0, %p5929_p13 }
  0x3b   : > { %p5932_p3 = pnand %p5931_p10, %p5927_p12 }
  0x3d   : > { %5935 = shalt.err (!%p5932_p3)
}
  0x3e   : > { %s5936_s17 = scalar_lea.vmem %s6152_s29, 8192  ;;  %s6025_s23 = smov [#allocation2]  }
  0x3f   : > { %p5937_p1 = scmp.ne.s32.totalorder %s6152_s29, %s5936_s17  ;;  %s5941_s24 = sshll.u32 %s6025_s23, 4  ;;  %s5942_s24 = int_to_ptr.vmem [resolvable:$false] %s5941_s24 }
  0x40   : > { %s5943_s26 = scalar_lea.vmem %s5942_s24, 16384  ;;  %p5944_p9 = scmp.lt.s32.totalorder %s6152_s29, %s5942_s24 }
  0x41   : > { %p5939_p6 = pnand %p5937_p1, %p5925_p7  ;;  %p5945_p5 = scmp.lt.s32.totalorder %s5943_s26, %s5936_s17 }
  0x43   : > { %p5940_p11 = pneg %p5939_p6  ;;  %p5946_p4 = por %p5945_p5, %p5944_p9 }
  0x45   : > { %p5947_p8 = pnand %p5946_p4, %p5940_p11 }
  0x47   : > { %5950 = shalt.err (!%p5947_p8)
}
  0x48   : > { %5310 = dma.hbm_to_vmem [thread:$0]  (!%p6154_p2), %s6150_s25, 8192, %s6152_s29, %s6158_s4, %s6023_s27, %s6023_s27, %s6024_s28  }
  0x49   : > { %p7744_p1 = scmp.ne.s32.totalorder %s7740_s20, 0 }
  0x4b   : > { %182 = sbr.rel (%p7744_p1) target bundleno = 956 (0x3bc), region = 32 }
  0x50   : > { %s6185_s5 = sand.u32 1, %s6011_s13   ;;  %p7745_p4 = scmp.ne.s32.totalorder %s7738_s18, 0 }
  0x51   : > { %s4826_s6 = sshll.u32 %s6185_s5, 9  ;;  %s185_s8 = scalar_lea.sflag [#allocation3], %s6185_s5 }
  0x52   : > { %s6191_s30 = scalar_lea.vmem [#allocation2], %s4826_s6 }
  0x53   : > { %5994 = dma.done.wait (%p7745_p4), %s185_s8, 8192  }
  0x54   : > { %5996 = vsyncadd (%p7745_p4), %s185_s8, 4294959104  ;;  %p7746_p6 = scmp.eq.s32.totalorder %s6070_s16, 0 }
  0x56   : > { %5998 = dma.done.wait (%p7746_p6), [#allocation6], 32768   ;;  %p7747_p8 = pmov %p7746_p6 }
  0x57   : > { %v5359_v0 = vld [vmem:[#allocation5 + $0xe4] ss:$16 sps:$4 sm:$0xff]   ;;  %v5363_v2 = vld [vmem:[#allocation5 + $0xe0] ss:$16 sps:$4 sm:$0xff]   ;;  %v222_v50 = vld [vmem:[%s6191_s30 + $0x8] sm:$0xff]  ;;  %s7250_s18 = scalar_lea.vmem [#allocation8], %s4826_s6 }
  0x58   : > { %6000 = vsyncadd (%p7747_p8), [#allocation6], 4294934528  ;;  %v5361_v1 = vld [vmem:[#allocation5 + $0x2e4] ss:$16 sps:$4 sm:$0xff]   ;;  %1373 = vmatprep.subr.bf16.mxu0 %v5359_v0  ;;  %v5364_v3 = vld [vmem:[#allocation5 + $0x2e0] ss:$16 sps:$4 sm:$0xff]  }
  0x59   : > { %1566 = vmatprep.subr.bf16.mxu1 %v5361_v1  ;;  %v5365_v4 = vld [vmem:[#allocation5 + $0xc4] ss:$16 sps:$4 sm:$0xff]   ;;  %1374 = vmatpush1.bf16.msra.mxu0 %v5363_v2  ;;  %v5369_v6 = vld [vmem:[#allocation5 + $0xc0] ss:$16 sps:$4 sm:$0xff]   ;;  %v224_v51 = vld [vmem:[%s6191_s30 + $0x18] sm:$0xff]  ;;  %s5287_s20 = sshll.u32 %s6070_s16, 13 }
  0x5a   : > { %1567 = vmatpush1.bf16.msra.mxu1 %v5364_v3  ;;  %v5367_v5 = vld [vmem:[#allocation5 + $0x2c4] ss:$16 sps:$4 sm:$0xff]   ;;  %1375 = vmatprep.subr.bf16.mxu0 %v5365_v4  ;;  %v5370_v7 = vld [vmem:[#allocation5 + $0x2c0] ss:$16 sps:$4 sm:$0xff]   ;;  %v6207_v54 = vcombine.high %v222_v50, %v224_v51  ;;  %s4724_s27 = sshll.u32 %s7250_s18, 4  ;;  %s7657_s29 = scalar_lea.hbm %s7706_s3, %s5287_s20  ;;  %s7659_s27 = int_to_ptr.vmem [resolvable:$true] %s4724_s27 }
  0x5b   : > { %1568 = vmatprep.subr.bf16.mxu1 %v5367_v5  ;;  %v5371_v8 = vld [vmem:[#allocation5 + $0xa4] ss:$16 sps:$4 sm:$0xff]   ;;  %v5375_v10 = vld [vmem:[#allocation5 + $0xa0] ss:$16 sps:$4 sm:$0xff]   ;;  %s4710_s4 = scalar_lea.sflag [#allocation4], %s6185_s5  ;;  %s5951_s9 = scalar_lea.vmem %s7659_s27, 8192 }
  0x5c   : > { %v5373_v9 = vld [vmem:[#allocation5 + $0x2a4] ss:$16 sps:$4 sm:$0xff]   ;;  %v5376_v11 = vld [vmem:[#allocation5 + $0x2a0] ss:$16 sps:$4 sm:$0xff]   ;;  %1598 = vmatprep.mubr.bf16.mxu1 %v6207_v54  ;;  %p5952_p5 = scmp.ne.s32.totalorder %s7659_s27, %s5951_s9  ;;  %p7830_p2 = scmp.ne.s32.totalorder %s7742_s10, 0 }
  0x5d   : > { %1376 = vmatpush1.bf16.msra.mxu0 %v5369_v6  ;;  %v5377_v12 = vld [vmem:[#allocation5 + $0x84] ss:$16 sps:$4 sm:$0xff]   ;;  %v5381_v14 = vld [vmem:[#allocation5 + $0x80] ss:$16 sps:$4 sm:$0xff]   ;;  %v5461_v6 = vld [vmem:[#allocation5 + $0xec] ss:$16 sps:$4 sm:$0xff]  }
  0x5e   : > { %1569 = vmatpush1.bf16.msra.mxu1 %v5370_v7  ;;  %1377 = vmatprep.subr.bf16.mxu0 %v5371_v8  ;;  %v5379_v13 = vld [vmem:[#allocation5 + $0x284] ss:$16 sps:$4 sm:$0xff]   ;;  %v5382_v15 = vld [vmem:[#allocation5 + $0x280] ss:$16 sps:$4 sm:$0xff]   ;;  %v5464_v7 = vld [vmem:[#allocation5 + $0x2ec] ss:$16 sps:$4 sm:$0xff]   ;;  %p5953_p7 = pnand %p5952_p5, %p7830_p2 }
  0x5f   : > { %1570 = vmatprep.subr.bf16.mxu1 %v5373_v9  ;;  %v5383_v16 = vld [vmem:[#allocation5 + $0x64] ss:$16 sps:$4 sm:$0xff]   ;;  %v5387_v18 = vld [vmem:[#allocation5 + $0x60] ss:$16 sps:$4 sm:$0xff]   ;;  %s6026_s16 = smov [#allocation8]  }
  0x60   : > { %v5385_v17 = vld [vmem:[#allocation5 + $0x264] ss:$16 sps:$4 sm:$0xff]   ;;  %v5388_v19 = vld [vmem:[#allocation5 + $0x260] ss:$16 sps:$4 sm:$0xff]   ;;  %p5954_p12 = pneg %p5953_p7  ;;  %s5955_s21 = sshll.u32 %s6026_s16, 4  ;;  %s5956_s21 = int_to_ptr.vmem [resolvable:$false] %s5955_s21 }
  0x61   : > { %1378 = vmatpush1.bf16.msra.mxu0 %v5375_v10  ;;  %v5389_v20 = vld [vmem:[#allocation5 + $0x44] ss:$16 sps:$4 sm:$0xff]   ;;  %v5393_v22 = vld [vmem:[#allocation5 + $0x40] ss:$16 sps:$4 sm:$0xff]   ;;  %v226_v10 = vld [vmem:[%s6191_s30 + $0x28] sm:$0xff]  ;;  %s5957_s22 = scalar_lea.vmem %s5956_s21, 16384  ;;  %p5958_p13 = scmp.lt.s32.totalorder %s7659_s27, %s5956_s21 }
  0x62   : > { %1571 = vmatpush1.bf16.msra.mxu1 %v5376_v11  ;;  %1379 = vmatprep.subr.bf16.mxu0 %v5377_v12  ;;  %v5391_v21 = vld [vmem:[#allocation5 + $0x244] ss:$16 sps:$4 sm:$0xff]   ;;  %v5394_v23 = vld [vmem:[#allocation5 + $0x240] ss:$16 sps:$4 sm:$0xff]   ;;  %v228_v11 = vld [vmem:[%s6191_s30 + $0x38] sm:$0xff]  ;;  %p5959_p0 = scmp.lt.s32.totalorder %s5957_s22, %s5951_s9 }
  0x63   : > { %1572 = vmatprep.subr.bf16.mxu1 %v5379_v13  ;;  %v5395_v24 = vld [vmem:[#allocation5 + $0x24] ss:$16 sps:$4 sm:$0xff]   ;;  %v5399_v26 = vld [vmem:[#allocation5 + $0x20] ss:$16 sps:$4 sm:$0xff]   ;;  %v6217_v13 = vcombine.low %v222_v50, %v224_v51  ;;  %v5511_v50 = vld [vmem:[#allocation5 + $0x4c] ss:$16 sps:$4 sm:$0xff]  }
  0x64   : > { %v5397_v25 = vld [vmem:[#allocation5 + $0x224] ss:$16 sps:$4 sm:$0xff]   ;;  %v5400_v27 = vld [vmem:[#allocation5 + $0x220] ss:$16 sps:$4 sm:$0xff]   ;;  %v5514_v51 = vld [vmem:[#allocation5 + $0x24c] ss:$16 sps:$4 sm:$0xff]   ;;  %p5960_p10 = por %p5959_p0, %p5958_p13 }
  0x65   : > { %1380 = vmatpush1.bf16.msra.mxu0 %v5381_v14  ;;  %v5401_v28 = vld [vmem:[#allocation5 + $0x4] ss:$16 sps:$4 sm:$0xff]   ;;  %v5405_v30 = vld [vmem:[#allocation5] ss:$16 sps:$4 sm:$0xff]   ;;  %v5459_v14 = vld [vmem:[#allocation5 + $0xe8] ss:$16 sps:$4 sm:$0xff]  }
  0x66   : > { %1573 = vmatpush1.bf16.msra.mxu1 %v5382_v15  ;;  %1381 = vmatprep.subr.bf16.mxu0 %v5383_v16  ;;  %v5403_v29 = vld [vmem:[#allocation5 + $0x204] ss:$16 sps:$4 sm:$0xff]   ;;  %v5406_v31 = vld [vmem:[#allocation5 + $0x200] ss:$16 sps:$4 sm:$0xff]   ;;  %v5462_v15 = vld [vmem:[#allocation5 + $0x2e8] ss:$16 sps:$4 sm:$0xff]   ;;  %p5961_p3 = pnand %p5960_p10, %p5954_p12 }
  0x67   : > { %1574 = vmatprep.subr.bf16.mxu1 %v5385_v17  ;;  %v5407_v32 = vld [vmem:[#allocation5 + $0x1e4] ss:$16 sps:$4 sm:$0xff]   ;;  %v5411_v34 = vld [vmem:[#allocation5 + $0x1e0] ss:$16 sps:$4 sm:$0xff]   ;;  %v6221_v17 = vcombine.high %v226_v10, %v228_v11 }
  0x68   : > { %v5409_v33 = vld [vmem:[#allocation5 + $0x3e4] ss:$16 sps:$4 sm:$0xff]   ;;  %v5412_v35 = vld [vmem:[#allocation5 + $0x3e0] ss:$16 sps:$4 sm:$0xff]  }
  0x69   : > { %1382 = vmatpush1.bf16.msra.mxu0 %v5387_v18  ;;  %v5413_v36 = vld [vmem:[#allocation5 + $0x1c4] ss:$16 sps:$4 sm:$0xff]   ;;  %v5417_v38 = vld [vmem:[#allocation5 + $0x1c0] ss:$16 sps:$4 sm:$0xff]   ;;  %v5469_v18 = vld [vmem:[#allocation5 + $0xc8] ss:$16 sps:$4 sm:$0xff]  }
  0x6a   : > { %1575 = vmatpush1.bf16.msra.mxu1 %v5388_v19  ;;  %1383 = vmatprep.subr.bf16.mxu0 %v5389_v20  ;;  %v5415_v37 = vld [vmem:[#allocation5 + $0x3c4] ss:$16 sps:$4 sm:$0xff]   ;;  %v5418_v39 = vld [vmem:[#allocation5 + $0x3c0] ss:$16 sps:$4 sm:$0xff]   ;;  %v5471_v19 = vld [vmem:[#allocation5 + $0xcc] ss:$16 sps:$4 sm:$0xff]  }
  0x6b   : > { %1576 = vmatprep.subr.bf16.mxu1 %v5391_v21  ;;  %v5419_v40 = vld [vmem:[#allocation5 + $0x1a4] ss:$16 sps:$4 sm:$0xff]   ;;  %v5423_v42 = vld [vmem:[#allocation5 + $0x1a0] ss:$16 sps:$4 sm:$0xff]   ;;  %v5472_v20 = vld [vmem:[#allocation5 + $0x2c8] ss:$16 sps:$4 sm:$0xff]  }
  0x6c   : > { %v5421_v41 = vld [vmem:[#allocation5 + $0x3a4] ss:$16 sps:$4 sm:$0xff]   ;;  %v5424_v43 = vld [vmem:[#allocation5 + $0x3a0] ss:$16 sps:$4 sm:$0xff]   ;;  %v5474_v21 = vld [vmem:[#allocation5 + $0x2cc] ss:$16 sps:$4 sm:$0xff]  }
  0x6d   : > { %1384 = vmatpush1.bf16.msra.mxu0 %v5393_v22  ;;  %v5425_v44 = vld [vmem:[#allocation5 + $0x184] ss:$16 sps:$4 sm:$0xff]   ;;  %v5429_v46 = vld [vmem:[#allocation5 + $0x180] ss:$16 sps:$4 sm:$0xff]  }
  0x6e   : > { %1577 = vmatpush1.bf16.msra.mxu1 %v5394_v23  ;;  %1385 = vmatprep.subr.bf16.mxu0 %v5395_v24  ;;  %v5427_v45 = vld [vmem:[#allocation5 + $0x384] ss:$16 sps:$4 sm:$0xff]   ;;  %v5430_v47 = vld [vmem:[#allocation5 + $0x380] ss:$16 sps:$4 sm:$0xff]   ;;  %v230_v24 = vld [vmem:[%s6191_s30 + $0x48] sm:$0xff] }
  0x6f   : > { %1578 = vmatprep.subr.bf16.mxu1 %v5397_v25  ;;  %v221_v48 = vld [vmem:[%s6191_s30] sm:$0xff]  ;;  %v223_v49 = vld [vmem:[%s6191_s30 + $0x10] sm:$0xff]  ;;  %v232_v25 = vld [vmem:[%s6191_s30 + $0x58] sm:$0xff] }
  0x70   : > { %v5431_v52 = vld [vmem:[#allocation5 + $0x164] ss:$16 sps:$4 sm:$0xff]   ;;  %v6205_v53 = vcombine.high %v221_v48, %v223_v49  ;;  %v5435_v56 = vld [vmem:[#allocation5 + $0x160] ss:$16 sps:$4 sm:$0xff]   ;;  %v6215_v12 = vcombine.low %v221_v48, %v223_v49  ;;  %v5499_v48 = vld [vmem:[#allocation5 + $0x68] ss:$16 sps:$4 sm:$0xff]  }
  0x71   : > { %1386 = vmatpush1.bf16.msra.mxu0 %v5399_v26  ;;  %v5433_v55 = vld [vmem:[#allocation5 + $0x364] ss:$16 sps:$4 sm:$0xff]   ;;  %v5436_v57 = vld [vmem:[#allocation5 + $0x360] ss:$16 sps:$4 sm:$0xff]   ;;  %v5481_v26 = vld [vmem:[#allocation5 + $0xac] ss:$16 sps:$4 sm:$0xff]  }
  0x72   : > { %1579 = vmatpush1.bf16.msra.mxu1 %v5400_v27  ;;  %1387 = vmatprep.subr.bf16.mxu0 %v5401_v28  ;;  %v5437_v58 = vld [vmem:[#allocation5 + $0x144] ss:$16 sps:$4 sm:$0xff]   ;;  %v5441_v60 = vld [vmem:[#allocation5 + $0x140] ss:$16 sps:$4 sm:$0xff]   ;;  %v5484_v27 = vld [vmem:[#allocation5 + $0x2ac] ss:$16 sps:$4 sm:$0xff]  }
  0x73   : > { %1580 = vmatprep.subr.bf16.mxu1 %v5403_v29  ;;  %1405 = vmatprep.mubr.bf16.mxu0 %v6205_v53  ;;  %v5439_v59 = vld [vmem:[#allocation5 + $0x344] ss:$16 sps:$4 sm:$0xff]   ;;  %v5442_v61 = vld [vmem:[#allocation5 + $0x340] ss:$16 sps:$4 sm:$0xff]   ;;  %v6233_v29 = vcombine.low %v226_v10, %v228_v11  ;;  %v5502_v49 = vld [vmem:[#allocation5 + $0x268] ss:$16 sps:$4 sm:$0xff]  }
  0x74   : > { %v5443_v62 = vld [vmem:[#allocation5 + $0x124] ss:$16 sps:$4 sm:$0xff]   ;;  %v5447_v0 = vld [vmem:[#allocation5 + $0x120] ss:$16 sps:$4 sm:$0xff]   ;;  %v5529_v10 = vld [vmem:[#allocation5 + $0x8] ss:$16 sps:$4 sm:$0xff]  }
  0x75   : > { %1388 = vmatpush1.bf16.msra.mxu0 %v5405_v30  ;;  %v5445_v63 = vld [vmem:[#allocation5 + $0x324] ss:$16 sps:$4 sm:$0xff]   ;;  %v5448_v1 = vld [vmem:[#allocation5 + $0x320] ss:$16 sps:$4 sm:$0xff]   ;;  %v5532_v11 = vld [vmem:[#allocation5 + $0x208] ss:$16 sps:$4 sm:$0xff]  }
  0x76   : > { %1581 = vmatpush1.bf16.msra.mxu1 %v5406_v31  ;;  %1389 = vmatprep.subr.bf16.mxu0 %v5407_v32  ;;  %v5449_v2 = vld [vmem:[#allocation5 + $0x104] ss:$16 sps:$4 sm:$0xff]   ;;  %v5453_v4 = vld [vmem:[#allocation5 + $0x100] ss:$16 sps:$4 sm:$0xff]   ;;  %v6237_v31 = vcombine.high %v230_v24, %v232_v25  ;;  %v5479_v32 = vld [vmem:[#allocation5 + $0xa8] ss:$16 sps:$4 sm:$0xff]  }
  0x77   : > { %1582 = vmatprep.subr.bf16.mxu1 %v5409_v33  ;;  %v5451_v3 = vld [vmem:[#allocation5 + $0x304] ss:$16 sps:$4 sm:$0xff]   ;;  %v5454_v5 = vld [vmem:[#allocation5 + $0x300] ss:$16 sps:$4 sm:$0xff]   ;;  %v5482_v33 = vld [vmem:[#allocation5 + $0x2a8] ss:$16 sps:$4 sm:$0xff]  }
  0x78   : > { %v225_v8 = vld [vmem:[%s6191_s30 + $0x20] sm:$0xff]  ;;  %v227_v9 = vld [vmem:[%s6191_s30 + $0x30] sm:$0xff] }
  0x79   : > { %1390 = vmatpush2.bf16.msra.mxu0 %v5411_v34  ;;  %v6219_v16 = vcombine.high %v225_v8, %v227_v9  ;;  %v229_v22 = vld [vmem:[%s6191_s30 + $0x40] sm:$0xff]  ;;  %v231_v23 = vld [vmem:[%s6191_s30 + $0x50] sm:$0xff]  ;;  %v6231_v28 = vcombine.low %v225_v8, %v227_v9  ;;  %v5491_v34 = vld [vmem:[#allocation5 + $0x8c] ss:$16 sps:$4 sm:$0xff]  }
  0x7a   : > { %1583 = vmatpush2.bf16.msra.mxu1 %v5412_v35  ;;  %1391 = vmatprep.subr.bf16.mxu0 %v5413_v36  ;;  %v6235_v30 = vcombine.high %v229_v22, %v231_v23  ;;  %v5494_v35 = vld [vmem:[#allocation5 + $0x28c] ss:$16 sps:$4 sm:$0xff]   ;;  %v233_v36 = vld [vmem:[%s6191_s30 + $0x60] sm:$0xff] }
  0x7b   : > { %1584 = vmatprep.subr.bf16.mxu1 %v5415_v37  ;;  %v235_v37 = vld [vmem:[%s6191_s30 + $0x70] sm:$0xff]  ;;  %v242_v8 = vld [vmem:[%s6191_s30 + $0xa8] sm:$0xff]  ;;  %v244_v9 = vld [vmem:[%s6191_s30 + $0xb8] sm:$0xff] }
  0x7d   : > { %1392 = vmatpush2.bf16.msra.mxu0 %v5417_v38  ;;  %v234_v38 = vld [vmem:[%s6191_s30 + $0x68] sm:$0xff] }
  0x7e   : > { %1585 = vmatpush2.bf16.msra.mxu1 %v5418_v39  ;;  %1393 = vmatprep.subr.bf16.mxu0 %v5419_v40  ;;  %v236_v39 = vld [vmem:[%s6191_s30 + $0x78] sm:$0xff] }
  0x7f   : > { %1586 = vmatprep.subr.bf16.mxu1 %v5421_v41  ;;  %v5489_v40 = vld [vmem:[#allocation5 + $0x88] ss:$16 sps:$4 sm:$0xff]  }
  0x80   : > { %v5492_v41 = vld [vmem:[#allocation5 + $0x288] ss:$16 sps:$4 sm:$0xff]  }
  0x81   : > { %1394 = vmatpush2.bf16.msra.mxu0 %v5423_v42  ;;  %v5501_v42 = vld [vmem:[#allocation5 + $0x6c] ss:$16 sps:$4 sm:$0xff]  }
  0x82   : > { %1587 = vmatpush2.bf16.msra.mxu1 %v5424_v43  ;;  %1395 = vmatprep.subr.bf16.mxu0 %v5425_v44  ;;  %v5504_v43 = vld [vmem:[#allocation5 + $0x26c] ss:$16 sps:$4 sm:$0xff]   ;;  %v6247_v44 = vcombine.low %v229_v22, %v231_v23  ;;  %v5539_v22 = vld [vmem:[#allocation5 + $0x1e8] ss:$16 sps:$4 sm:$0xff]  }
  0x83   : > { %1588 = vmatprep.subr.bf16.mxu1 %v5427_v45  ;;  %v6249_v45 = vcombine.low %v230_v24, %v232_v25  ;;  %v5542_v23 = vld [vmem:[#allocation5 + $0x3e8] ss:$16 sps:$4 sm:$0xff]   ;;  %v5551_v24 = vld [vmem:[#allocation5 + $0x1cc] ss:$16 sps:$4 sm:$0xff]  }
  0x84   : > { %v5554_v25 = vld [vmem:[#allocation5 + $0x3cc] ss:$16 sps:$4 sm:$0xff]  }
  0x85   : > { %1396 = vmatpush2.bf16.msra.mxu0 %v5429_v46  ;;  %v6251_v46 = vcombine.high %v233_v36, %v235_v37 }
  0x86   : > { %1589 = vmatpush2.bf16.msra.mxu1 %v5430_v47  ;;  %1397 = vmatprep.subr.bf16.mxu0 %v5431_v52  ;;  %v6253_v47 = vcombine.high %v234_v38, %v236_v39  ;;  %v237_v52 = vld [vmem:[%s6191_s30 + $0x80] sm:$0xff] }
  0x87   : > { %1590 = vmatprep.subr.bf16.mxu1 %v5433_v55  ;;  %v239_v55 = vld [vmem:[%s6191_s30 + $0x90] sm:$0xff] }
  0x89   : > { %1398 = vmatpush2.bf16.msra.mxu0 %v5435_v56  ;;  %v238_v56 = vld [vmem:[%s6191_s30 + $0x88] sm:$0xff] }
  0x8a   : > { %1591 = vmatpush2.bf16.msra.mxu1 %v5436_v57  ;;  %1399 = vmatprep.subr.bf16.mxu0 %v5437_v58  ;;  %v240_v57 = vld [vmem:[%s6191_s30 + $0x98] sm:$0xff] }
  0x8b   : > { %1592 = vmatprep.subr.bf16.mxu1 %v5439_v59  ;;  %v5509_v58 = vld [vmem:[#allocation5 + $0x48] ss:$16 sps:$4 sm:$0xff]  }
  0x8c   : > { %v5512_v59 = vld [vmem:[#allocation5 + $0x248] ss:$16 sps:$4 sm:$0xff]  }
  0x8d   : > { %1400 = vmatpush2.bf16.msra.mxu0 %v5441_v60  ;;  %v5521_v60 = vld [vmem:[#allocation5 + $0x2c] ss:$16 sps:$4 sm:$0xff]  }
  0x8e   : > { %1593 = vmatpush2.bf16.msra.mxu1 %v5442_v61  ;;  %1401 = vmatprep.subr.bf16.mxu0 %v5443_v62  ;;  %v5524_v61 = vld [vmem:[#allocation5 + $0x22c] ss:$16 sps:$4 sm:$0xff]   ;;  %v6263_v62 = vcombine.low %v233_v36, %v235_v37 }
  0x8f   : > { %1594 = vmatprep.subr.bf16.mxu1 %v5445_v63  ;;  %v6265_v63 = vcombine.low %v234_v38, %v236_v39  ;;  %v5561_v36 = vld [vmem:[#allocation5 + $0x1ac] ss:$16 sps:$4 sm:$0xff]   ;;  %v6297_v39 = vcombine.low %v242_v8, %v244_v9 }
  0x90   : > { %v5564_v37 = vld [vmem:[#allocation5 + $0x3ac] ss:$16 sps:$4 sm:$0xff]  }
  0x91   : > { %1402 = vmatpush2.bf16.msra.mxu0 %v5447_v0  ;;  %v6267_v0 = vcombine.high %v237_v52, %v239_v55 }
  0x92   : > { %1595 = vmatpush2.bf16.msra.mxu1 %v5448_v1  ;;  %1403 = vmatprep.subr.bf16.mxu0 %v5449_v2  ;;  %v6269_v1 = vcombine.high %v238_v56, %v240_v57  ;;  %v5519_v2 = vld [vmem:[#allocation5 + $0x28] ss:$16 sps:$4 sm:$0xff]  }
  0x93   : > { %1596 = vmatprep.subr.bf16.mxu1 %v5451_v3  ;;  %v5522_v3 = vld [vmem:[#allocation5 + $0x228] ss:$16 sps:$4 sm:$0xff]  }
  0x95   : > { %1404 = vmatpush2.bf16.msra.mxu0 %v5453_v4  ;;  %v5531_v4 = vld [vmem:[#allocation5 + $0xc] ss:$16 sps:$4 sm:$0xff]  }
  0x96   : > { %1597 = vmatpush2.bf16.msra.mxu1 %v5454_v5  ;;  %1759 = vmatprep.subr.bf16.mxu0 %v5461_v6  ;;  %v5534_v5 = vld [vmem:[#allocation5 + $0x20c] ss:$16 sps:$4 sm:$0xff]   ;;  %v241_v6 = vld [vmem:[%s6191_s30 + $0xa0] sm:$0xff] }
  0x97   : > { %1952 = vmatprep.subr.bf16.mxu1 %v5464_v7  ;;  %v243_v7 = vld [vmem:[%s6191_s30 + $0xb0] sm:$0xff] }
  0x98   : > { %1406 = vmatmul.mubr.bf16.vlgmr.msra.gmra.mxu0 %v6215_v12  ;;  %v6295_v38 = vcombine.low %v241_v6, %v243_v7 }
  0x99   : > { %1599 = vmatmul.mubr.bf16.vlgmr.msra.gmra.mxu1 %v6217_v13  ;;  %1760 = vmatpush1.bf16.msra.mxu0 %v5459_v14  ;;  %v5541_v14 = vld [vmem:[#allocation5 + $0x1ec] ss:$16 sps:$4 sm:$0xff]  }
  0x9a   : > { %1953 = vmatpush1.bf16.msra.mxu1 %v5462_v15  ;;  %1415 = vmatprep.mubr.bf16.mxu0 %v6219_v16  ;;  %v5544_v15 = vld [vmem:[#allocation5 + $0x3ec] ss:$16 sps:$4 sm:$0xff]  }
  0x9b   : > { %1608 = vmatprep.mubr.bf16.mxu1 %v6221_v17  ;;  %1761 = vmatprep.subr.bf16.mxu0 %v5471_v19  ;;  %v6281_v19 = vcombine.low %v238_v56, %v240_v57  ;;  %v5569_v56 = vld [vmem:[#allocation5 + $0x188] ss:$16 sps:$4 sm:$0xff]  }
  0x9c   : > { %1954 = vmatprep.subr.bf16.mxu1 %v5474_v21  ;;  %v6285_v21 = vcombine.high %v242_v8, %v244_v9  ;;  %v5572_v57 = vld [vmem:[#allocation5 + $0x388] ss:$16 sps:$4 sm:$0xff]   ;;  %v253_v8 = vld [vmem:[%s6191_s30 + $0x100] sm:$0xff]  ;;  %v255_v9 = vld [vmem:[%s6191_s30 + $0x110] sm:$0xff] }
  0x9d   : > { %1762 = vmatpush1.bf16.msra.mxu0 %v5469_v18  ;;  %v6279_v18 = vcombine.low %v237_v52, %v239_v55  ;;  %v250_v52 = vld [vmem:[%s6191_s30 + $0xe8] sm:$0xff]  ;;  %v252_v55 = vld [vmem:[%s6191_s30 + $0xf8] sm:$0xff] }
  0x9e   : > { %1955 = vmatpush1.bf16.msra.mxu1 %v5472_v20  ;;  %1763 = vmatprep.subr.bf16.mxu0 %v5481_v26  ;;  %v6283_v20 = vcombine.high %v241_v6, %v243_v7  ;;  %v245_v26 = vld [vmem:[%s6191_s30 + $0xc0] sm:$0xff]  ;;  %v5591_v6 = vld [vmem:[#allocation5 + $0x14c] ss:$16 sps:$4 sm:$0xff]  }
  0x9f   : > { %1956 = vmatprep.subr.bf16.mxu1 %v5484_v27  ;;  %v247_v27 = vld [vmem:[%s6191_s30 + $0xd0] sm:$0xff]  ;;  %v5594_v7 = vld [vmem:[#allocation5 + $0x34c] ss:$16 sps:$4 sm:$0xff]  }
  0xa0   : > { %1416 = vmatmul.mubr.bf16.gmra.mxu0 %v6231_v28 }
  0xa1   : > { %1609 = vmatmul.mubr.bf16.gmra.mxu1 %v6233_v29  ;;  %1425 = vmatprep.mubr.bf16.mxu0 %v6235_v30 }
  0xa2   : > { %1618 = vmatprep.mubr.bf16.mxu1 %v6237_v31  ;;  %1764 = vmatpush1.bf16.msra.mxu0 %v5479_v32  ;;  %v246_v32 = vld [vmem:[%s6191_s30 + $0xc8] sm:$0xff] }
  0xa3   : > { %1957 = vmatpush1.bf16.msra.mxu1 %v5482_v33  ;;  %1765 = vmatprep.subr.bf16.mxu0 %v5491_v34  ;;  %v248_v33 = vld [vmem:[%s6191_s30 + $0xd8] sm:$0xff] }
  0xa4   : > { %1958 = vmatprep.subr.bf16.mxu1 %v5494_v35  ;;  %v5549_v34 = vld [vmem:[#allocation5 + $0x1c8] ss:$16 sps:$4 sm:$0xff]  }
  0xa5   : > { %v5552_v35 = vld [vmem:[#allocation5 + $0x3c8] ss:$16 sps:$4 sm:$0xff]  }
  0xa6   : > { %1766 = vmatpush1.bf16.msra.mxu0 %v5489_v40  ;;  %v6299_v40 = vcombine.high %v245_v26, %v247_v27 }
  0xa7   : > { %1959 = vmatpush1.bf16.msra.mxu1 %v5492_v41  ;;  %1767 = vmatprep.subr.bf16.mxu0 %v5501_v42  ;;  %v6301_v41 = vcombine.high %v246_v32, %v248_v33  ;;  %v5559_v42 = vld [vmem:[#allocation5 + $0x1a8] ss:$16 sps:$4 sm:$0xff]  }
  0xa8   : > { %1960 = vmatprep.subr.bf16.mxu1 %v5504_v43  ;;  %1426 = vmatmul.mubr.bf16.gmra.mxu0 %v6247_v44  ;;  %v5562_v43 = vld [vmem:[#allocation5 + $0x3a8] ss:$16 sps:$4 sm:$0xff]  }
  0xa9   : > { %1619 = vmatmul.mubr.bf16.gmra.mxu1 %v6249_v45  ;;  %1435 = vmatprep.mubr.bf16.mxu0 %v6251_v46 }
  0xaa   : > { %1628 = vmatprep.mubr.bf16.mxu1 %v6253_v47  ;;  %1768 = vmatpush1.bf16.msra.mxu0 %v5499_v48  ;;  %v5571_v48 = vld [vmem:[#allocation5 + $0x18c] ss:$16 sps:$4 sm:$0xff]  }
  0xab   : > { %1961 = vmatpush1.bf16.msra.mxu1 %v5502_v49  ;;  %1769 = vmatprep.subr.bf16.mxu0 %v5511_v50  ;;  %v5574_v49 = vld [vmem:[#allocation5 + $0x38c] ss:$16 sps:$4 sm:$0xff]   ;;  %v249_v50 = vld [vmem:[%s6191_s30 + $0xe0] sm:$0xff] }
  0xac   : > { %1962 = vmatprep.subr.bf16.mxu1 %v5514_v51  ;;  %v251_v51 = vld [vmem:[%s6191_s30 + $0xf0] sm:$0xff] }
  0xae   : > { %1770 = vmatpush1.bf16.msra.mxu0 %v5509_v58  ;;  %v5581_v58 = vld [vmem:[#allocation5 + $0x16c] ss:$16 sps:$4 sm:$0xff]  }
  0xaf   : > { %1963 = vmatpush1.bf16.msra.mxu1 %v5512_v59  ;;  %1771 = vmatprep.subr.bf16.mxu0 %v5521_v60  ;;  %v5584_v59 = vld [vmem:[#allocation5 + $0x36c] ss:$16 sps:$4 sm:$0xff]   ;;  %v6311_v60 = vcombine.low %v245_v26, %v247_v27  ;;  %v5599_v26 = vld [vmem:[#allocation5 + $0x128] ss:$16 sps:$4 sm:$0xff]  }
  0xb0   : > { %1964 = vmatprep.subr.bf16.mxu1 %v5524_v61  ;;  %1436 = vmatmul.mubr.bf16.gmra.mxu0 %v6263_v62  ;;  %v6313_v61 = vcombine.low %v246_v32, %v248_v33  ;;  %v5602_v27 = vld [vmem:[#allocation5 + $0x328] ss:$16 sps:$4 sm:$0xff]   ;;  %v6331_v32 = vcombine.high %v253_v8, %v255_v9 }
  0xb1   : > { %1629 = vmatmul.mubr.bf16.gmra.mxu1 %v6265_v63  ;;  %1445 = vmatprep.mubr.bf16.mxu0 %v6267_v0 }
  0xb2   : > { %1638 = vmatprep.mubr.bf16.mxu1 %v6269_v1  ;;  %1772 = vmatpush1.bf16.msra.mxu0 %v5519_v2  ;;  %v5579_v2 = vld [vmem:[#allocation5 + $0x168] ss:$16 sps:$4 sm:$0xff]  }
  0xb3   : > { %1965 = vmatpush1.bf16.msra.mxu1 %v5522_v3  ;;  %1773 = vmatprep.subr.bf16.mxu0 %v5531_v4  ;;  %v5582_v3 = vld [vmem:[#allocation5 + $0x368] ss:$16 sps:$4 sm:$0xff]   ;;  %v6315_v4 = vcombine.high %v249_v50, %v251_v51 }
  0xb4   : > { %1966 = vmatprep.subr.bf16.mxu1 %v5534_v5  ;;  %v6317_v5 = vcombine.high %v250_v52, %v252_v55 }
  0xb6   : > { %1774 = vmatpush1.bf16.msra.mxu0 %v5529_v10  ;;  %v254_v10 = vld [vmem:[%s6191_s30 + $0x108] sm:$0xff] }
  0xb7   : > { %1967 = vmatpush1.bf16.msra.mxu1 %v5532_v11  ;;  %1775 = vmatprep.subr.bf16.mxu0 %v5541_v14  ;;  %v256_v11 = vld [vmem:[%s6191_s30 + $0x118] sm:$0xff] }
  0xb8   : > { %1968 = vmatprep.subr.bf16.mxu1 %v5544_v15  ;;  %1446 = vmatmul.mubr.bf16.gmra.mxu0 %v6279_v18  ;;  %v5589_v14 = vld [vmem:[#allocation5 + $0x148] ss:$16 sps:$4 sm:$0xff]   ;;  %v6333_v33 = vcombine.high %v254_v10, %v256_v11 }
  0xb9   : > { %1639 = vmatmul.mubr.bf16.gmra.mxu1 %v6281_v19  ;;  %1455 = vmatprep.mubr.bf16.mxu0 %v6283_v20  ;;  %v5592_v15 = vld [vmem:[#allocation5 + $0x348] ss:$16 sps:$4 sm:$0xff]  }
  0xba   : > { %1648 = vmatprep.mubr.bf16.mxu1 %v6285_v21  ;;  %1776 = vmatpush2.bf16.msra.mxu0 %v5539_v22  ;;  %v5601_v22 = vld [vmem:[#allocation5 + $0x12c] ss:$16 sps:$4 sm:$0xff]  }
  0xbb   : > { %1969 = vmatpush2.bf16.msra.mxu1 %v5542_v23  ;;  %1777 = vmatprep.subr.bf16.mxu0 %v5551_v24  ;;  %v5604_v23 = vld [vmem:[#allocation5 + $0x32c] ss:$16 sps:$4 sm:$0xff]   ;;  %v6327_v24 = vcombine.low %v249_v50, %v251_v51  ;;  %v6343_v50 = vcombine.low %v253_v8, %v255_v9  ;;  %v6345_v51 = vcombine.low %v254_v10, %v256_v11  ;;  %v265_v9 = vld [vmem:[%s6191_s30 + $0x160] sm:$0xff]  ;;  %v267_v10 = vld [vmem:[%s6191_s30 + $0x170] sm:$0xff] }
  0xbc   : > { %1970 = vmatprep.subr.bf16.mxu1 %v5554_v25  ;;  %v6329_v25 = vcombine.low %v250_v52, %v252_v55  ;;  %v266_v11 = vld [vmem:[%s6191_s30 + $0x168] sm:$0xff] }
  0xbe   : > { %1778 = vmatpush2.bf16.msra.mxu0 %v5549_v34  ;;  %v5611_v34 = vld [vmem:[#allocation5 + $0x10c] ss:$16 sps:$4 sm:$0xff]  }
  0xbf   : > { %1971 = vmatpush2.bf16.msra.mxu1 %v5552_v35  ;;  %1779 = vmatprep.subr.bf16.mxu0 %v5561_v36  ;;  %v5614_v35 = vld [vmem:[#allocation5 + $0x30c] ss:$16 sps:$4 sm:$0xff]   ;;  %v257_v36 = vld [vmem:[%s6191_s30 + $0x120] sm:$0xff] }
  0xc0   : > { %1972 = vmatprep.subr.bf16.mxu1 %v5564_v37  ;;  %1456 = vmatmul.mubr.bf16.gmra.mxu0 %v6295_v38  ;;  %v259_v37 = vld [vmem:[%s6191_s30 + $0x130] sm:$0xff] }
  0xc1   : > { %1649 = vmatmul.mubr.bf16.gmra.mxu1 %v6297_v39  ;;  %1465 = vmatprep.mubr.bf16.mxu0 %v6299_v40  ;;  %v6347_v52 = vcombine.high %v257_v36, %v259_v37 }
  0xc2   : > { %1658 = vmatprep.mubr.bf16.mxu1 %v6301_v41  ;;  %1780 = vmatpush2.bf16.msra.mxu0 %v5559_v42  ;;  %v258_v42 = vld [vmem:[%s6191_s30 + $0x128] sm:$0xff] }
  0xc3   : > { %1973 = vmatpush2.bf16.msra.mxu1 %v5562_v43  ;;  %1781 = vmatprep.subr.bf16.mxu0 %v5571_v48  ;;  %v260_v43 = vld [vmem:[%s6191_s30 + $0x138] sm:$0xff] }
  0xc4   : > { %1974 = vmatprep.subr.bf16.mxu1 %v5574_v49  ;;  %v5609_v48 = vld [vmem:[#allocation5 + $0x108] ss:$16 sps:$4 sm:$0xff]   ;;  %v6349_v55 = vcombine.high %v258_v42, %v260_v43 }
  0xc5   : > { %v5612_v49 = vld [vmem:[#allocation5 + $0x308] ss:$16 sps:$4 sm:$0xff]  }
  0xc6   : > { %1782 = vmatpush2.bf16.msra.mxu0 %v5569_v56  ;;  %v5617_v56 = vld [vmem:[#allocation7 + $0xe4] ss:$16 sps:$4 sm:$0xff]  }
  0xc7   : > { %1975 = vmatpush2.bf16.msra.mxu1 %v5572_v57  ;;  %1783 = vmatprep.subr.bf16.mxu0 %v5581_v58  ;;  %v261_v57 = vld [vmem:[%s6191_s30 + $0x140] sm:$0xff]  ;;  %v263_v58 = vld [vmem:[%s6191_s30 + $0x150] sm:$0xff] }
  0xc8   : > { %1976 = vmatprep.subr.bf16.mxu1 %v5584_v59  ;;  %1466 = vmatmul.mubr.bf16.gmra.mxu0 %v6311_v60  ;;  %v262_v59 = vld [vmem:[%s6191_s30 + $0x148] sm:$0xff] }
  0xc9   : > { %1659 = vmatmul.mubr.bf16.gmra.mxu1 %v6313_v61  ;;  %1475 = vmatprep.mubr.bf16.mxu0 %v6315_v4 }
  0xca   : > { %1668 = vmatprep.mubr.bf16.mxu1 %v6317_v5  ;;  %1784 = vmatpush2.bf16.msra.mxu0 %v5579_v2  ;;  %v264_v2 = vld [vmem:[%s6191_s30 + $0x158] sm:$0xff] }
  0xcb   : > { %1977 = vmatpush2.bf16.msra.mxu1 %v5582_v3  ;;  %1785 = vmatprep.subr.bf16.mxu0 %v5591_v6  ;;  %v6359_v3 = vcombine.low %v257_v36, %v259_v37  ;;  %v6361_v6 = vcombine.low %v258_v42, %v260_v43  ;;  %v6365_v8 = vcombine.high %v262_v59, %v264_v2  ;;  %v5629_v36 = vld [vmem:[#allocation7 + $0x2e4] ss:$16 sps:$4 sm:$0xff]   ;;  %v272_v37 = vld [vmem:[%s6191_s30 + $0x198] sm:$0xff] }
  0xcc   : > { %1978 = vmatprep.subr.bf16.mxu1 %v5594_v7  ;;  %v6363_v7 = vcombine.high %v261_v57, %v263_v58  ;;  %v6391_v42 = vcombine.low %v265_v9, %v267_v10 }
  0xce   : > { %1786 = vmatpush2.bf16.msra.mxu0 %v5589_v14  ;;  %v268_v14 = vld [vmem:[%s6191_s30 + $0x178] sm:$0xff] }
  0xcf   : > { %1979 = vmatpush2.bf16.msra.mxu1 %v5592_v15  ;;  %1787 = vmatprep.subr.bf16.mxu0 %v5601_v22  ;;  %v6375_v15 = vcombine.low %v261_v57, %v263_v58  ;;  %v6377_v22 = vcombine.low %v262_v59, %v264_v2  ;;  %v6393_v43 = vcombine.low %v266_v11, %v268_v14  ;;  %v275_v57 = vld [vmem:[%s6191_s30 + $0x1b0] sm:$0xff]  ;;  %v274_v58 = vld [vmem:[%s6191_s30 + $0x1a8] sm:$0xff]  ;;  %v276_v59 = vld [vmem:[%s6191_s30 + $0x1b8] sm:$0xff] }
  0xd0   : > { %1980 = vmatprep.subr.bf16.mxu1 %v5604_v23  ;;  %1476 = vmatmul.mubr.bf16.gmra.mxu0 %v6327_v24  ;;  %v6379_v23 = vcombine.high %v265_v9, %v267_v10 }
  0xd1   : > { %1669 = vmatmul.mubr.bf16.gmra.mxu1 %v6329_v25  ;;  %1485 = vmatprep.mubr.bf16.mxu0 %v6331_v32 }
  0xd2   : > { %1678 = vmatprep.mubr.bf16.mxu1 %v6333_v33  ;;  %1788 = vmatpush2.bf16.msra.mxu0 %v5599_v26  ;;  %v6381_v26 = vcombine.high %v266_v11, %v268_v14  ;;  %v6413_v11 = vcombine.high %v274_v58, %v276_v59  ;;  %v277_v14 = vld [vmem:[%s6191_s30 + $0x1c0] sm:$0xff] }
  0xd3   : > { %1981 = vmatpush2.bf16.msra.mxu1 %v5602_v27  ;;  %1789 = vmatprep.subr.bf16.mxu0 %v5611_v34  ;;  %v269_v27 = vld [vmem:[%s6191_s30 + $0x180] sm:$0xff]  ;;  %v271_v34 = vld [vmem:[%s6191_s30 + $0x190] sm:$0xff] }
  0xd4   : > { %1982 = vmatprep.subr.bf16.mxu1 %v5614_v35  ;;  %v270_v35 = vld [vmem:[%s6191_s30 + $0x188] sm:$0xff]  ;;  %v6407_v2 = vcombine.low %v269_v27, %v271_v34  ;;  %7753 = vst [vmem:[#allocation17_spill] sm:$0xff] %v6413_v11 }
  0xd5   : > { %v6409_v9 = vcombine.low %v270_v35, %v272_v37 }
  0xd6   : > { %1790 = vmatpush2.bf16.msra.mxu0 %v5609_v48  ;;  %v6395_v48 = vcombine.high %v269_v27, %v271_v34  ;;  %7750 = vst [vmem:[#allocation14_spill] sm:$0xff] %v6407_v2  ;;  %v279_v27 = vld [vmem:[%s6191_s30 + $0x1d0] sm:$0xff]  ;;  %v278_v34 = vld [vmem:[%s6191_s30 + $0x1c8] sm:$0xff] }
  0xd7   : > { %1983 = vmatpush2.bf16.msra.mxu1 %v5612_v49  ;;  %3105 = vmatprep.subr.bf16.mxu0 %v5617_v56  ;;  %v6397_v49 = vcombine.high %v270_v35, %v272_v37  ;;  %v273_v56 = vld [vmem:[%s6191_s30 + $0x1a0] sm:$0xff]  ;;  %7751 = vst [vmem:[#allocation15_spill] sm:$0xff] %v6409_v9  ;;  %v280_v35 = vld [vmem:[%s6191_s30 + $0x1d8] sm:$0xff]  ;;  %v6425_v37 = vcombine.low %v274_v58, %v276_v59 }
  0xd8   : > { %1486 = vmatmul.mubr.bf16.gmra.mxu0 %v6343_v50  ;;  %3298 = vmatprep.subr.bf16.mxu1 %v5629_v36  ;;  %7748 = vst [vmem:[#allocation12_spill] sm:$0xff] %v6395_v48  ;;  %v6411_v10 = vcombine.high %v273_v56, %v275_v57  ;;  %v6423_v36 = vcombine.low %v273_v56, %v275_v57 }
  0xd9   : > { %1679 = vmatmul.mubr.bf16.gmra.mxu1 %v6345_v51  ;;  %1495 = vmatprep.mubr.bf16.mxu0 %v6347_v52  ;;  %7749 = vst [vmem:[#allocation13_spill] sm:$0xff] %v6397_v49  ;;  %v6439_v56 = vcombine.low %v277_v14, %v279_v27  ;;  %v6441_v57 = vcombine.low %v278_v34, %v280_v35 }
  0xda   : > { %1688 = vmatprep.mubr.bf16.mxu1 %v6349_v55  ;;  %7752 = vst [vmem:[#allocation16_spill] sm:$0xff] %v6411_v10 }
  0xe0   : > { %1496 = vmatmul.mubr.bf16.gmra.mxu0 %v6359_v3 }
  0xe1   : > { %1689 = vmatmul.mubr.bf16.gmra.mxu1 %v6361_v6  ;;  %1505 = vmatprep.mubr.bf16.mxu0 %v6363_v7 }
  0xe2   : > { %1698 = vmatprep.mubr.bf16.mxu1 %v6365_v8 }
  0xe8   : > { %1506 = vmatmul.mubr.bf16.gmra.mxu0 %v6375_v15 }
  0xe9   : > { %1699 = vmatmul.mubr.bf16.gmra.mxu1 %v6377_v22  ;;  %1515 = vmatprep.mubr.bf16.mxu0 %v6379_v23 }
  0xea   : > { %1708 = vmatprep.mubr.bf16.mxu1 %v6381_v26 }
  0xf0   : > { %1516 = vmatmul.mubr.bf16.gmra.mxu0 %v6391_v42 }
  0xf1   : > { %1709 = vmatmul.mubr.bf16.gmra.mxu1 %v6393_v43  ;;  %1525 = vmatprep.mubr.bf16.mxu0 %v6395_v48  ;;  %v284_v48 = vld [vmem:[%s6191_s30 + $0x1f8] sm:$0xff] }
  0xf2   : > { %1718 = vmatprep.mubr.bf16.mxu1 %v6397_v49  ;;  %v6427_v49 = vcombine.high %v277_v14, %v279_v27  ;;  %v5615_v14 = vld [vmem:[#allocation7 + $0xe0] ss:$16 sps:$4 sm:$0xff]  }
  0xf3   : > { %v5627_v27 = vld [vmem:[#allocation7 + $0x2e0] ss:$16 sps:$4 sm:$0xff]  }
  0xf4   : > { %7754 = vst [vmem:[#allocation18_spill] sm:$0xff] %v6427_v49 }
  0xf8   : > { %1526 = vmatmul.mubr.bf16.gmra.mxu0 %v6407_v2  ;;  %v6429_v2 = vcombine.high %v278_v34, %v280_v35  ;;  %v5620_v34 = vld [vmem:[#allocation7 + $0xc4] ss:$16 sps:$4 sm:$0xff]  }
  0xf9   : > { %1719 = vmatmul.mubr.bf16.gmra.mxu1 %v6409_v9  ;;  %1535 = vmatprep.mubr.bf16.mxu0 %v6411_v10  ;;  %v283_v10 = vld [vmem:[%s6191_s30 + $0x1f0] sm:$0xff]  ;;  %v282_v9 = vld [vmem:[%s6191_s30 + $0x1e8] sm:$0xff] }
  0xfa   : > { %1728 = vmatprep.mubr.bf16.mxu1 %v6413_v11  ;;  %7755 = vst [vmem:[#allocation19_spill] sm:$0xff] %v6429_v2  ;;  %v281_v11 = vld [vmem:[%s6191_s30 + $0x1e0] sm:$0xff]  ;;  %v6445_v59 = vcombine.high %v282_v9, %v284_v48 }
  0xfb   : > { %v6443_v58 = vcombine.high %v281_v11, %v283_v10  ;;  %v5638_v35 = vld [vmem:[#allocation7 + $0x2c4] ss:$16 sps:$4 sm:$0xff]  }
 0x100   : > { %1536 = vmatmul.mubr.bf16.gmra.mxu0 %v6423_v36 }
 0x101   : > { %1729 = vmatmul.mubr.bf16.gmra.mxu1 %v6425_v37  ;;  %1545 = vmatprep.mubr.bf16.mxu0 %v6427_v49  ;;  %v6453_v49 = vcombine.low %v282_v9, %v284_v48  ;;  %v5618_v48 = vld [vmem:[#allocation7 + $0xc0] ss:$16 sps:$4 sm:$0xff]  }
 0x102   : > { %1738 = vmatprep.mubr.bf16.mxu1 %v6429_v2  ;;  %v6451_v2 = vcombine.low %v281_v11, %v283_v10  ;;  %v5636_v9 = vld [vmem:[#allocation7 + $0x2c0] ss:$16 sps:$4 sm:$0xff]  }
 0x103   : > { %v5621_v10 = vld [vmem:[#allocation7 + $0xa0] ss:$16 sps:$4 sm:$0xff]  }
 0x104   : > { %v5645_v11 = vld [vmem:[#allocation7 + $0x2a0] ss:$16 sps:$4 sm:$0xff]  }
 0x108   : > { %1546 = vmatmul.mubr.bf16.gmra.mxu0 %v6439_v56 }
 0x109   : > { %1739 = vmatmul.mubr.bf16.gmra.mxu1 %v6441_v57  ;;  %1555 = vmatprep.mubr.bf16.mxu0 %v6443_v58 }
 0x10a   : > { %1748 = vmatprep.mubr.bf16.mxu1 %v6445_v59 }
 0x110   : > { %1556 = vmatmul.mubr.bf16.gmra.mxu0 %v6451_v2 }
 0x111   : > { %1749 = vmatmul.mubr.bf16.gmra.mxu1 %v6453_v49  ;;  %1791 = vmatprep.mubr.bf16.mxu0 %v6205_v53  ;;  %v5623_v53 = vld [vmem:[#allocation7 + $0xa4] ss:$16 sps:$4 sm:$0xff]  }
 0x112   : > { %1984 = vmatprep.mubr.bf16.mxu1 %v6207_v54  ;;  %v5647_v54 = vld [vmem:[#allocation7 + $0x2a4] ss:$16 sps:$4 sm:$0xff]  }
 0x118   : > { %1792 = vmatmul.mubr.bf16.vlgmr.msra.gmra.mxu0 %v6215_v12  ;;  %v5626_v12 = vld [vmem:[#allocation7 + $0x84] ss:$16 sps:$4 sm:$0xff]  }
 0x119   : > { %1985 = vmatmul.mubr.bf16.vlgmr.msra.gmra.mxu1 %v6217_v13  ;;  %1801 = vmatprep.mubr.bf16.mxu0 %v6219_v16  ;;  %v5656_v13 = vld [vmem:[#allocation7 + $0x284] ss:$16 sps:$4 sm:$0xff]   ;;  %v5624_v16 = vld [vmem:[#allocation7 + $0x80] ss:$16 sps:$4 sm:$0xff]  }
 0x11a   : > { %1994 = vmatprep.mubr.bf16.mxu1 %v6221_v17  ;;  %3106 = vmatpush1.bf16.msra.mxu0 %v5615_v14  ;;  %v5654_v17 = vld [vmem:[#allocation7 + $0x280] ss:$16 sps:$4 sm:$0xff]   ;;  %v5632_v14 = vld [vmem:[#allocation7 + $0x64] ss:$16 sps:$4 sm:$0xff]  }
 0x11b   : > { %3299 = vmatpush1.bf16.msra.mxu1 %v5627_v27  ;;  %3107 = vmatprep.subr.bf16.mxu0 %v5620_v34  ;;  %v5665_v27 = vld [vmem:[#allocation7 + $0x264] ss:$16 sps:$4 sm:$0xff]   ;;  %v5630_v34 = vld [vmem:[#allocation7 + $0x60] ss:$16 sps:$4 sm:$0xff]  }
 0x11c   : > { %3300 = vmatprep.subr.bf16.mxu1 %v5638_v35  ;;  %v5663_v35 = vld [vmem:[#allocation7 + $0x260] ss:$16 sps:$4 sm:$0xff]  }
 0x11e   : > { %3108 = vmatpush1.bf16.msra.mxu0 %v5618_v48  ;;  %v5641_v48 = vld [vmem:[#allocation7 + $0x24] ss:$16 sps:$4 sm:$0xff]  }
 0x11f   : > { %3301 = vmatpush1.bf16.msra.mxu1 %v5636_v9  ;;  %3109 = vmatprep.subr.bf16.mxu0 %v5623_v53  ;;  %v5683_v9 = vld [vmem:[#allocation7 + $0x224] ss:$16 sps:$4 sm:$0xff]   ;;  %v5639_v53 = vld [vmem:[#allocation7 + $0x20] ss:$16 sps:$4 sm:$0xff]  }
 0x120   : > { %3302 = vmatprep.subr.bf16.mxu1 %v5647_v54  ;;  %1802 = vmatmul.mubr.bf16.gmra.mxu0 %v6231_v28  ;;  %v5635_v28 = vld [vmem:[#allocation7 + $0x44] ss:$16 sps:$4 sm:$0xff]   ;;  %v5681_v54 = vld [vmem:[#allocation7 + $0x220] ss:$16 sps:$4 sm:$0xff]  }
 0x121   : > { %1995 = vmatmul.mubr.bf16.gmra.mxu1 %v6233_v29  ;;  %1811 = vmatprep.mubr.bf16.mxu0 %v6235_v30  ;;  %v5674_v29 = vld [vmem:[#allocation7 + $0x244] ss:$16 sps:$4 sm:$0xff]   ;;  %v5633_v30 = vld [vmem:[#allocation7 + $0x40] ss:$16 sps:$4 sm:$0xff]  }
 0x122   : > { %2004 = vmatprep.mubr.bf16.mxu1 %v6237_v31  ;;  %3110 = vmatpush1.bf16.msra.mxu0 %v5621_v10  ;;  %v5672_v31 = vld [vmem:[#allocation7 + $0x240] ss:$16 sps:$4 sm:$0xff]   ;;  %v5650_v10 = vld [vmem:[#allocation7 + $0x1e4] ss:$16 sps:$4 sm:$0xff]  }
 0x123   : > { %3303 = vmatpush1.bf16.msra.mxu1 %v5645_v11  ;;  %3111 = vmatprep.subr.bf16.mxu0 %v5626_v12  ;;  %v5689_v11 = vld [vmem:[#allocation7 + $0x3e4] ss:$16 sps:$4 sm:$0xff]   ;;  %v5648_v12 = vld [vmem:[#allocation7 + $0x1e0] ss:$16 sps:$4 sm:$0xff]  }
 0x124   : > { %3304 = vmatprep.subr.bf16.mxu1 %v5656_v13  ;;  %v5687_v13 = vld [vmem:[#allocation7 + $0x3e0] ss:$16 sps:$4 sm:$0xff]  }
 0x126   : > { %3112 = vmatpush1.bf16.msra.mxu0 %v5624_v16  ;;  %v5659_v16 = vld [vmem:[#allocation7 + $0x1a4] ss:$16 sps:$4 sm:$0xff]  }
 0x127   : > { %3305 = vmatpush1.bf16.msra.mxu1 %v5654_v17  ;;  %3113 = vmatprep.subr.bf16.mxu0 %v5632_v14  ;;  %v5695_v17 = vld [vmem:[#allocation7 + $0x3a4] ss:$16 sps:$4 sm:$0xff]   ;;  %v5657_v14 = vld [vmem:[#allocation7 + $0x1a0] ss:$16 sps:$4 sm:$0xff]  }
 0x128   : > { %3306 = vmatprep.subr.bf16.mxu1 %v5665_v27  ;;  %1812 = vmatmul.mubr.bf16.gmra.mxu0 %v6247_v44  ;;  %v5644_v44 = vld [vmem:[#allocation7 + $0x4] ss:$16 sps:$4 sm:$0xff]   ;;  %v5693_v27 = vld [vmem:[#allocation7 + $0x3a0] ss:$16 sps:$4 sm:$0xff]  }
 0x129   : > { %2005 = vmatmul.mubr.bf16.gmra.mxu1 %v6249_v45  ;;  %1821 = vmatprep.mubr.bf16.mxu0 %v6251_v46  ;;  %v5686_v45 = vld [vmem:[#allocation7 + $0x204] ss:$16 sps:$4 sm:$0xff]   ;;  %v5642_v46 = vld [vmem:[#allocation7] ss:$16 sps:$4 sm:$0xff]  }
 0x12a   : > { %2014 = vmatprep.mubr.bf16.mxu1 %v6253_v47  ;;  %3114 = vmatpush1.bf16.msra.mxu0 %v5630_v34  ;;  %v5684_v47 = vld [vmem:[#allocation7 + $0x200] ss:$16 sps:$4 sm:$0xff]   ;;  %v5668_v34 = vld [vmem:[#allocation7 + $0x164] ss:$16 sps:$4 sm:$0xff]  }
 0x12b   : > { %3307 = vmatpush1.bf16.msra.mxu1 %v5663_v35  ;;  %3115 = vmatprep.subr.bf16.mxu0 %v5635_v28  ;;  %v5666_v35 = vld [vmem:[#allocation7 + $0x160] ss:$16 sps:$4 sm:$0xff]   ;;  %v5671_v28 = vld [vmem:[#allocation7 + $0x144] ss:$16 sps:$4 sm:$0xff]  }
 0x12c   : > { %3308 = vmatprep.subr.bf16.mxu1 %v5674_v29  ;;  %v5675_v29 = vld [vmem:[#allocation7 + $0x120] ss:$16 sps:$4 sm:$0xff]  }
 0x12e   : > { %3116 = vmatpush1.bf16.msra.mxu0 %v5633_v30  ;;  %v5680_v30 = vld [vmem:[#allocation7 + $0x104] ss:$16 sps:$4 sm:$0xff]  }
 0x12f   : > { %3309 = vmatpush1.bf16.msra.mxu1 %v5672_v31  ;;  %3117 = vmatprep.subr.bf16.mxu0 %v5641_v48 }
 0x130   : > { %3310 = vmatprep.subr.bf16.mxu1 %v5683_v9  ;;  %1822 = vmatmul.mubr.bf16.gmra.mxu0 %v6263_v62  ;;  %v5653_v62 = vld [vmem:[#allocation7 + $0x1c4] ss:$16 sps:$4 sm:$0xff]  }
 0x131   : > { %2015 = vmatmul.mubr.bf16.gmra.mxu1 %v6265_v63  ;;  %1831 = vmatprep.mubr.bf16.mxu0 %v6267_v0  ;;  %v5692_v63 = vld [vmem:[#allocation7 + $0x3c4] ss:$16 sps:$4 sm:$0xff]   ;;  %v5651_v0 = vld [vmem:[#allocation7 + $0x1c0] ss:$16 sps:$4 sm:$0xff]  }
 0x132   : > { %2024 = vmatprep.mubr.bf16.mxu1 %v6269_v1  ;;  %3118 = vmatpush1.bf16.msra.mxu0 %v5639_v53  ;;  %v5690_v1 = vld [vmem:[#allocation7 + $0x3c0] ss:$16 sps:$4 sm:$0xff]  }
 0x133   : > { %3311 = vmatpush1.bf16.msra.mxu1 %v5681_v54  ;;  %3119 = vmatprep.subr.bf16.mxu0 %v5644_v44  ;;  %v5716_v54 = vld [vmem:[#allocation7 + $0x304] ss:$16 sps:$4 sm:$0xff]   ;;  %v5714_v44 = vld [vmem:[#allocation7 + $0x300] ss:$16 sps:$4 sm:$0xff]  }
 0x134   : > { %3312 = vmatprep.subr.bf16.mxu1 %v5686_v45 }
 0x136   : > { %3120 = vmatpush1.bf16.msra.mxu0 %v5642_v46 }
 0x137   : > { %3313 = vmatpush1.bf16.msra.mxu1 %v5684_v47  ;;  %3121 = vmatprep.subr.bf16.mxu0 %v5650_v10 }
 0x138   : > { %3314 = vmatprep.subr.bf16.mxu1 %v5689_v11  ;;  %1832 = vmatmul.mubr.bf16.gmra.mxu0 %v6279_v18  ;;  %v5662_v18 = vld [vmem:[#allocation7 + $0x184] ss:$16 sps:$4 sm:$0xff]  }
 0x139   : > { %2025 = vmatmul.mubr.bf16.gmra.mxu1 %v6281_v19  ;;  %1841 = vmatprep.mubr.bf16.mxu0 %v6283_v20  ;;  %v5698_v19 = vld [vmem:[#allocation7 + $0x384] ss:$16 sps:$4 sm:$0xff]   ;;  %v5660_v20 = vld [vmem:[#allocation7 + $0x180] ss:$16 sps:$4 sm:$0xff]  }
 0x13a   : > { %2034 = vmatprep.mubr.bf16.mxu1 %v6285_v21  ;;  %3122 = vmatpush2.bf16.msra.mxu0 %v5648_v12  ;;  %v5696_v21 = vld [vmem:[#allocation7 + $0x380] ss:$16 sps:$4 sm:$0xff]  }
 0x13b   : > { %3315 = vmatpush2.bf16.msra.mxu1 %v5687_v13  ;;  %3123 = vmatprep.subr.bf16.mxu0 %v5653_v62 }
 0x13c   : > { %3316 = vmatprep.subr.bf16.mxu1 %v5692_v63 }
 0x13e   : > { %3124 = vmatpush2.bf16.msra.mxu0 %v5651_v0 }
 0x13f   : > { %3317 = vmatpush2.bf16.msra.mxu1 %v5690_v1  ;;  %3125 = vmatprep.subr.bf16.mxu0 %v5659_v16 }
 0x140   : > { %3318 = vmatprep.subr.bf16.mxu1 %v5695_v17  ;;  %1842 = vmatmul.mubr.bf16.gmra.mxu0 %v6295_v38  ;;  %v5699_v38 = vld [vmem:[#allocation7 + $0x360] ss:$16 sps:$4 sm:$0xff]  }
 0x141   : > { %2035 = vmatmul.mubr.bf16.gmra.mxu1 %v6297_v39  ;;  %1851 = vmatprep.mubr.bf16.mxu0 %v6299_v40  ;;  %v5701_v39 = vld [vmem:[#allocation7 + $0x364] ss:$16 sps:$4 sm:$0xff]   ;;  %v5669_v40 = vld [vmem:[#allocation7 + $0x140] ss:$16 sps:$4 sm:$0xff]  }
 0x142   : > { %2044 = vmatprep.mubr.bf16.mxu1 %v6301_v41  ;;  %3126 = vmatpush2.bf16.msra.mxu0 %v5657_v14  ;;  %v5677_v41 = vld [vmem:[#allocation7 + $0x124] ss:$16 sps:$4 sm:$0xff]  }
 0x143   : > { %3319 = vmatpush2.bf16.msra.mxu1 %v5693_v27  ;;  %3127 = vmatprep.subr.bf16.mxu0 %v5662_v18 }
 0x144   : > { %3320 = vmatprep.subr.bf16.mxu1 %v5698_v19 }
 0x146   : > { %3128 = vmatpush2.bf16.msra.mxu0 %v5660_v20 }
 0x147   : > { %3321 = vmatpush2.bf16.msra.mxu1 %v5696_v21  ;;  %3129 = vmatprep.subr.bf16.mxu0 %v5668_v34  ;;  %v7759_v21 = vld [vmem:[#allocation15_spill] sm:$0xff]  ;;  %v7760_v34 = vld [vmem:[#allocation16_spill] sm:$0xff] }
 0x148   : > { %1852 = vmatmul.mubr.bf16.gmra.mxu0 %v6311_v60  ;;  %3322 = vmatprep.subr.bf16.mxu1 %v5701_v39  ;;  %v5702_v60 = vld [vmem:[#allocation7 + $0x340] ss:$16 sps:$4 sm:$0xff]  }
 0x149   : > { %2045 = vmatmul.mubr.bf16.gmra.mxu1 %v6313_v61  ;;  %1861 = vmatprep.mubr.bf16.mxu0 %v6315_v4  ;;  %v5704_v61 = vld [vmem:[#allocation7 + $0x344] ss:$16 sps:$4 sm:$0xff]   ;;  %v5678_v4 = vld [vmem:[#allocation7 + $0x100] ss:$16 sps:$4 sm:$0xff]  }
 0x14a   : > { %2054 = vmatprep.mubr.bf16.mxu1 %v6317_v5  ;;  %3130 = vmatpush2.bf16.msra.mxu0 %v5666_v35  ;;  %v5710_v5 = vld [vmem:[#allocation7 + $0xec] ss:$16 sps:$4 sm:$0xff]  }
 0x14b   : > { %3131 = vmatprep.subr.bf16.mxu0 %v5671_v28  ;;  %3323 = vmatpush2.bf16.msra.mxu1 %v5699_v38  ;;  %v7761_v35 = vld [vmem:[#allocation17_spill] sm:$0xff] }
 0x14c   : > { %3324 = vmatprep.subr.bf16.mxu1 %v5704_v61  ;;  %v7762_v61 = vld [vmem:[#allocation18_spill] sm:$0xff] }
 0x14e   : > { %3132 = vmatpush2.bf16.msra.mxu0 %v5669_v40 }
 0x14f   : > { %3133 = vmatprep.subr.bf16.mxu0 %v5677_v41  ;;  %3325 = vmatpush2.bf16.msra.mxu1 %v5702_v60 }
 0x150   : > { %1862 = vmatmul.mubr.bf16.gmra.mxu0 %v6327_v24  ;;  %v5705_v24 = vld [vmem:[#allocation7 + $0x320] ss:$16 sps:$4 sm:$0xff]  }
 0x151   : > { %2055 = vmatmul.mubr.bf16.gmra.mxu1 %v6329_v25  ;;  %1871 = vmatprep.mubr.bf16.mxu0 %v6331_v32  ;;  %v5707_v25 = vld [vmem:[#allocation7 + $0x324] ss:$16 sps:$4 sm:$0xff]  }
 0x152   : > { %2064 = vmatprep.mubr.bf16.mxu1 %v6333_v33  ;;  %3134 = vmatpush2.bf16.msra.mxu0 %v5675_v29 }
 0x153   : > { %3135 = vmatprep.subr.bf16.mxu0 %v5680_v30  ;;  %3326 = vmatprep.subr.bf16.mxu1 %v5707_v25 }
 0x154   : > { %3327 = vmatpush2.bf16.msra.mxu1 %v5705_v24 }
 0x155   : > { %3328 = vmatprep.subr.bf16.mxu1 %v5716_v54 }
 0x156   : > { %3136 = vmatpush2.bf16.msra.mxu0 %v5678_v4  ;;  %v7763_v4 = vld [vmem:[#allocation19_spill] sm:$0xff] }
 0x157   : > { %3491 = vmatprep.subr.bf16.mxu0 %v5710_v5 }
 0x158   : > { %v6491_v31 = vpop.f32.mrf.mxu0  ;;  %1872 = vmatmul.mubr.bf16.gmra.mxu0 %v6343_v50  ;;  %3329 = vmatpush2.bf16.msra.mxu1 %v5714_v44 }
 0x159   : > { %v6493_v48 = vpop.f32.mrf.mxu1  ;;  %2065 = vmatmul.mubr.bf16.gmra.mxu1 %v6345_v51  ;;  %1881 = vmatprep.mubr.bf16.mxu0 %v6347_v52 }
 0x15a   : > { %2074 = vmatprep.mubr.bf16.mxu1 %v6349_v55  ;;  %v6499_v32 = vpop.f32.mrf.mxu0 }
 0x15b   : > { %v6501_v33 = vpop.f32.mrf.mxu1 }
 0x15c   : > { %v6503_v9 = vpop.f32.mrf.mxu0 }
 0x15d   : > { %v6505_v53 = vpop.f32.mrf.mxu1 }
 0x15e   : > { %v6507_v50 = vpop.f32.mrf.mxu0 }
 0x15f   : > { %v6509_v51 = vpop.f32.mrf.mxu1 }
 0x160   : > { %v6511_v52 = vpop.f32.mrf.mxu0  ;;  %1882 = vmatmul.mubr.bf16.gmra.mxu0 %v6359_v3 }
 0x161   : > { %v6513_v55 = vpop.f32.mrf.mxu1  ;;  %2075 = vmatmul.mubr.bf16.gmra.mxu1 %v6361_v6  ;;  %1891 = vmatprep.mubr.bf16.mxu0 %v6363_v7 }
 0x162   : > { %2084 = vmatprep.mubr.bf16.mxu1 %v6365_v8  ;;  %v6519_v45 = vpop.f32.mrf.mxu0  ;;  %v5725_v8 = vld [vmem:[#allocation7 + $0x2ec] ss:$16 sps:$4 sm:$0xff]  }
 0x163   : > { %v6521_v46 = vpop.f32.mrf.mxu1  ;;  %3684 = vmatprep.subr.bf16.mxu1 %v5725_v8 }
 0x164   : > { %v6523_v47 = vpop.f32.mrf.mxu0 }
 0x165   : > { %v6525_v10 = vpop.f32.mrf.mxu1 }
 0x166   : > { %v6527_v11 = vpop.f32.mrf.mxu0 }
 0x167   : > { %v6529_v3 = vpop.f32.mrf.mxu1 }
 0x168   : > { %v6531_v6 = vpop.f32.mrf.mxu0  ;;  %1892 = vmatmul.mubr.bf16.gmra.mxu0 %v6375_v15 }
 0x169   : > { %v6533_v7 = vpop.f32.mrf.mxu1  ;;  %2085 = vmatmul.mubr.bf16.gmra.mxu1 %v6377_v22  ;;  %1901 = vmatprep.mubr.bf16.mxu0 %v6379_v23  ;;  %v7756_v23 = vld [vmem:[#allocation12_spill] sm:$0xff] }
 0x16a   : > { %2094 = vmatprep.mubr.bf16.mxu1 %v6381_v26  ;;  %v6539_v12 = vpop.f32.mrf.mxu0  ;;  %v7757_v26 = vld [vmem:[#allocation13_spill] sm:$0xff] }
 0x16b   : > { %v6541_v13 = vpop.f32.mrf.mxu1 }
 0x16c   : > { %v6543_v62 = vpop.f32.mrf.mxu0 }
 0x16d   : > { %v6545_v63 = vpop.f32.mrf.mxu1 }
 0x16e   : > { %v6547_v0 = vpop.f32.mrf.mxu0 }
 0x16f   : > { %v6549_v1 = vpop.f32.mrf.mxu1 }
 0x170   : > { %v6551_v15 = vpop.f32.mrf.mxu0  ;;  %1902 = vmatmul.mubr.bf16.gmra.mxu0 %v6391_v42 }
 0x171   : > { %v6553_v22 = vpop.f32.mrf.mxu1  ;;  %2095 = vmatmul.mubr.bf16.gmra.mxu1 %v6393_v43  ;;  %1911 = vmatprep.mubr.bf16.mxu0 %v7756_v23  ;;  %v7758_v43 = vld [vmem:[#allocation14_spill] sm:$0xff] }
 0x172   : > { %2104 = vmatprep.mubr.bf16.mxu1 %v7757_v26  ;;  %v6559_v16 = vpop.f32.mrf.mxu0  ;;  %v1603_v26 = vadd.f32 %v6501_v33, %v6499_v32  ;;  %v1601_v33 = vadd.f32 %v6493_v48, %v6491_v31 }
 0x173   : > { %v6561_v17 = vpop.f32.mrf.mxu1 }
 0x174   : > { %v6563_v14 = vpop.f32.mrf.mxu0  ;;  %v2145_v31 = vmax.f32 %v1601_v33, 0.0 }
 0x175   : > { %v6565_v27 = vpop.f32.mrf.mxu1 }
 0x176   : > { %v6567_v18 = vpop.f32.mrf.mxu0 }
 0x177   : > { %v6569_v19 = vpop.f32.mrf.mxu1 }
 0x178   : > { %v6571_v20 = vpop.f32.mrf.mxu0  ;;  %1912 = vmatmul.mubr.bf16.gmra.mxu0 %v7758_v43 }
 0x179   : > { %v6573_v42 = vpop.f32.mrf.mxu1  ;;  %2105 = vmatmul.mubr.bf16.gmra.mxu1 %v7759_v21  ;;  %1921 = vmatprep.mubr.bf16.mxu0 %v7760_v34 }
 0x17a   : > { %2114 = vmatprep.mubr.bf16.mxu1 %v7761_v35  ;;  %v6579_v28 = vpop.f32.mrf.mxu0  ;;  %v2146_v35 = vmax.f32 %v1603_v26, 0.0 }
 0x17b   : > { %v6581_v38 = vpop.f32.mrf.mxu1 }
 0x17c   : > { %v6583_v39 = vpop.f32.mrf.mxu0 }
 0x17d   : > { %v6585_v40 = vpop.f32.mrf.mxu1 }
 0x17e   : > { %v6587_v41 = vpop.f32.mrf.mxu0 }
 0x17f   : > { %v6589_v29 = vpop.f32.mrf.mxu1 }
 0x180   : > { %v6591_v30 = vpop.f32.mrf.mxu0  ;;  %1922 = vmatmul.mubr.bf16.gmra.mxu0 %v6423_v36  ;;  %v1607_v36 = vadd.f32 %v6509_v51, %v6507_v50 }
 0x181   : > { %v6593_v60 = vpop.f32.mrf.mxu1  ;;  %2115 = vmatmul.mubr.bf16.gmra.mxu1 %v6425_v37  ;;  %1931 = vmatprep.mubr.bf16.mxu0 %v7762_v61 }
 0x182   : > { %2124 = vmatprep.mubr.bf16.mxu1 %v7763_v4  ;;  %v6599_v5 = vpop.f32.mrf.mxu0  ;;  %v2150_v50 = vmax.f32 %v1607_v36, 0.0 }
 0x183   : > { %v6601_v24 = vpop.f32.mrf.mxu1 }
 0x184   : > { %v6603_v25 = vpop.f32.mrf.mxu0 }
 0x185   : > { %v6605_v54 = vpop.f32.mrf.mxu1 }
 0x186   : > { %v6607_v44 = vpop.f32.mrf.mxu0 }
 0x187   : > { %v6609_v8 = vpop.f32.mrf.mxu1 }
 0x188   : > { %v6613_v37 = vpop.f32.mrf.mxu0  ;;  %1932 = vmatmul.mubr.bf16.gmra.mxu0 %v6439_v56  ;;  %v1605_v56 = vadd.f32 %v6505_v53, %v6503_v9  ;;  %v1613_v9 = vadd.f32 %v6521_v46, %v6519_v45 }
 0x189   : > { %v6615_v23 = vpop.f32.mrf.mxu1  ;;  %2125 = vmatmul.mubr.bf16.gmra.mxu1 %v6441_v57  ;;  %1941 = vmatprep.mubr.bf16.mxu0 %v6443_v58  ;;  %v1617_v58 = vadd.f32 %v6529_v3, %v6527_v11 }
 0x18a   : > { %2134 = vmatprep.mubr.bf16.mxu1 %v6445_v59  ;;  %v6623_v43 = vpop.f32.mrf.mxu0  ;;  %v6639_v59 = vpack.c.bf16 %v2150_v50, %v2146_v35  ;;  %v2149_v53 = vmax.f32 %v1605_v56, 0.0  ;;  %v2154_v50 = vmax.f32 %v1613_v9, 0.0  ;;  %v5713_v56 = vld [vmem:[#allocation7 + $0xcc] ss:$16 sps:$4 sm:$0xff]  }
 0x18b   : > { %v6625_v21 = vpop.f32.mrf.mxu1  ;;  %v2158_v36 = vmax.f32 %v1617_v58, 0.0  ;;  %v1627_v58 = vadd.f32 %v6549_v1, %v6547_v0 }
 0x18c   : > { %v6627_v51 = vpop.f32.mrf.mxu0  ;;  %7764 = vst [vmem:[#allocation12_spill] sm:$0xff] %v6639_v59  ;;  %v6660_v35 = vpack.c.bf16 %v2149_v53, %v2145_v31 }
 0x18d   : > { %v6629_v34 = vpop.f32.mrf.mxu1  ;;  %v6670_v33 = vpack.c.bf16 %v2158_v36, %v2154_v50 }
 0x18e   : > { %v6633_v57 = vpop.f32.mrf.mxu0  ;;  %7765 = vst [vmem:[#allocation13_spill] sm:$0xff] %v6660_v35 }
 0x18f   : > { %v6635_v32 = vpop.f32.mrf.mxu1  ;;  %7766 = vst [vmem:[#allocation14_spill] sm:$0xff] %v6670_v33 }
 0x190   : > { %v6643_v61 = vpop.f32.mrf.mxu0  ;;  %1942 = vmatmul.mubr.bf16.gmra.mxu0 %v6451_v2  ;;  %v5708_v2 = vld [vmem:[#allocation7 + $0xe8] ss:$16 sps:$4 sm:$0xff]  }
 0x191   : > { %v6645_v4 = vpop.f32.mrf.mxu1  ;;  %2135 = vmatmul.mubr.bf16.gmra.mxu1 %v6453_v49  ;;  %3137 = vmatprep.mubr.bf16.mxu0 %v6639_v59  ;;  %v1615_v49 = vadd.f32 %v6525_v10, %v6523_v47  ;;  %v1611_v59 = vadd.f32 %v6513_v55, %v6511_v52  ;;  %v1623_v47 = vadd.f32 %v6541_v13, %v6539_v12  ;;  %v5711_v10 = vld [vmem:[#allocation7 + $0xc8] ss:$16 sps:$4 sm:$0xff]   ;;  %v5719_v52 = vld [vmem:[#allocation7 + $0xac] ss:$16 sps:$4 sm:$0xff]   ;;  %v2166_v55 = vmax.f32 %v1627_v58, 0.0 }
 0x192   : > { %v6652_v11 = vpop.f32.mrf.mxu0  ;;  %v5717_v12 = vld [vmem:[#allocation7 + $0xa8] ss:$16 sps:$4 sm:$0xff]  }
 0x193   : > { %v6654_v3 = vpop.f32.mrf.mxu1  ;;  %v2157_v31 = vmax.f32 %v1615_v49, 0.0  ;;  %v2153_v36 = vmax.f32 %v1611_v59, 0.0  ;;  %v1637_v59 = vadd.f32 %v6569_v19, %v6567_v18 }
 0x194   : > { %v6656_v48 = vpop.f32.mrf.mxu0 }
 0x195   : > { %v6658_v26 = vpop.f32.mrf.mxu1  ;;  %v6690_v13 = vpack.c.bf16 %v2157_v31, %v2153_v36 }
 0x196   : > { %v6664_v45 = vpop.f32.mrf.mxu0 }
 0x197   : > { %v6666_v46 = vpop.f32.mrf.mxu1  ;;  %7768 = vst [vmem:[#allocation16_spill] sm:$0xff] %v6690_v13 }
 0x198   : > { %v6674_v9 = vpop.f32.mrf.mxu0  ;;  %3138 = vmatmul.mubr.bf16.vlgmr.msra.gmra.mxu0 %v6660_v35  ;;  %v2162_v35 = vmax.f32 %v1623_v47, 0.0  ;;  %v1621_v47 = vadd.f32 %v6533_v7, %v6531_v6  ;;  %v5728_v6 = vld [vmem:[#allocation7 + $0x6c] ss:$16 sps:$4 sm:$0xff]   ;;  %v2174_v7 = vmax.f32 %v1637_v59, 0.0  ;;  %v1647_v59 = vadd.f32 %v6589_v29, %v6587_v41 }
 0x199   : > { %v6676_v53 = vpop.f32.mrf.mxu1  ;;  %3147 = vmatprep.mubr.bf16.mxu0 %v6670_v33  ;;  %3492 = vmatpush1.bf16.msra.mxu0 %v5708_v2  ;;  %v1625_v2 = vadd.f32 %v6545_v63, %v6543_v62  ;;  %v1633_v62 = vadd.f32 %v6561_v17, %v6559_v16  ;;  %v5720_v63 = vld [vmem:[#allocation7 + $0x88] ss:$16 sps:$4 sm:$0xff]  }
 0x19a   : > { %7767 = vst [vmem:[#allocation15_spill] sm:$0xff] %v6676_v53  ;;  %v6682_v0 = vpop.f32.mrf.mxu0  ;;  %3493 = vmatprep.subr.bf16.mxu0 %v5713_v56  ;;  %v5722_v56 = vld [vmem:[#allocation7 + $0x8c] ss:$16 sps:$4 sm:$0xff]   ;;  %v6700_v58 = vpack.c.bf16 %v2166_v55, %v2162_v35  ;;  %v2161_v35 = vmax.f32 %v1621_v47, 0.0  ;;  %v5726_v16 = vld [vmem:[#allocation7 + $0x68] ss:$16 sps:$4 sm:$0xff]  }
 0x19b   : > { %v6684_v1 = vpop.f32.mrf.mxu1 }
 0x19c   : > { %v6686_v50 = vpop.f32.mrf.mxu0  ;;  %7769 = vst [vmem:[#allocation17_spill] sm:$0xff] %v6700_v58 }
 0x19d   : > { %v6688_v53 = vpop.f32.mrf.mxu1  ;;  %3494 = vmatpush1.bf16.msra.mxu0 %v5711_v10 }
 0x19e   : > { %v6694_v49 = vpop.f32.mrf.mxu0  ;;  %3495 = vmatprep.subr.bf16.mxu0 %v5719_v52  ;;  %v2165_v52 = vmax.f32 %v1625_v2, 0.0 }
 0x19f   : > { %v6696_v33 = vpop.f32.mrf.mxu1 }
 0x1a0   : > { %v6704_v10 = vpop.f32.mrf.mxu0  ;;  %3148 = vmatmul.mubr.bf16.gmra.mxu0 %v6690_v13  ;;  %v2170_v13 = vmax.f32 %v1633_v62, 0.0  ;;  %v6720_v17 = vpack.c.bf16 %v2165_v52, %v2161_v35  ;;  %v1631_v62 = vadd.f32 %v6553_v22, %v6551_v15  ;;  %v5737_v15 = vld [vmem:[#allocation7 + $0x2c] ss:$16 sps:$4 sm:$0xff]   ;;  %v2182_v22 = vmax.f32 %v1647_v59, 0.0 }
 0x1a1   : > { %v6706_v31 = vpop.f32.mrf.mxu1  ;;  %3157 = vmatprep.mubr.bf16.mxu0 %v6700_v58  ;;  %3496 = vmatpush1.bf16.msra.mxu0 %v5717_v12  ;;  %v1635_v12 = vadd.f32 %v6565_v27, %v6563_v14  ;;  %v1643_v14 = vadd.f32 %v6581_v38, %v6579_v28  ;;  %v5729_v27 = vld [vmem:[#allocation7 + $0x48] ss:$16 sps:$4 sm:$0xff]   ;;  %v1657_v59 = vadd.f32 %v6609_v8, %v6607_v44 }
 0x1a2   : > { %v6712_v18 = vpop.f32.mrf.mxu0  ;;  %3497 = vmatprep.subr.bf16.mxu0 %v5722_v56  ;;  %7770 = vst [vmem:[#allocation18_spill] sm:$0xff] %v6720_v17  ;;  %v5731_v56 = vld [vmem:[#allocation7 + $0x4c] ss:$16 sps:$4 sm:$0xff]   ;;  %v6730_v47 = vpack.c.bf16 %v2174_v7, %v2170_v13  ;;  %v2169_v13 = vmax.f32 %v1631_v62, 0.0  ;;  %v5735_v28 = vld [vmem:[#allocation7 + $0x28] ss:$16 sps:$4 sm:$0xff]  }
 0x1a3   : > { %v6714_v19 = vpop.f32.mrf.mxu1 }
 0x1a4   : > { %v6716_v55 = vpop.f32.mrf.mxu0  ;;  %7771 = vst [vmem:[#allocation19_spill] sm:$0xff] %v6730_v47 }
 0x1a5   : > { %v6718_v36 = vpop.f32.mrf.mxu1  ;;  %3498 = vmatpush1.bf16.msra.mxu0 %v5720_v63 }
 0x1a6   : > { %v6724_v2 = vpop.f32.mrf.mxu0  ;;  %3499 = vmatprep.subr.bf16.mxu0 %v5728_v6  ;;  %v2173_v6 = vmax.f32 %v1635_v12, 0.0 }
 0x1a7   : > { %v6726_v58 = vpop.f32.mrf.mxu1 }
 0x1a8   : > { %v6734_v63 = vpop.f32.mrf.mxu0  ;;  %3158 = vmatmul.mubr.bf16.gmra.mxu0 %v6720_v17  ;;  %v2178_v17 = vmax.f32 %v1643_v14, 0.0  ;;  %v6750_v38 = vpack.c.bf16 %v2173_v6, %v2169_v13  ;;  %v1641_v14 = vadd.f32 %v6573_v42, %v6571_v20  ;;  %v5746_v20 = vld [vmem:[#allocation7 + $0x1ec] ss:$16 sps:$4 sm:$0xff]   ;;  %v2190_v42 = vmax.f32 %v1657_v59, 0.0 }
 0x1a9   : > { %v6736_v52 = vpop.f32.mrf.mxu1  ;;  %3167 = vmatprep.mubr.bf16.mxu0 %v6730_v47  ;;  %3500 = vmatpush1.bf16.msra.mxu0 %v5726_v16  ;;  %v1645_v16 = vadd.f32 %v6585_v40, %v6583_v39  ;;  %v1653_v39 = vadd.f32 %v6601_v24, %v6599_v5  ;;  %v5738_v40 = vld [vmem:[#allocation7 + $0x8] ss:$16 sps:$4 sm:$0xff]   ;;  %v1667_v59 = vadd.f32 %v6635_v32, %v6633_v57 }
 0x1aa   : > { %v6742_v41 = vpop.f32.mrf.mxu0  ;;  %3501 = vmatprep.subr.bf16.mxu0 %v5731_v56  ;;  %7772 = vst [vmem:[#allocation20_spill] sm:$0xff] %v6750_v38  ;;  %v5740_v56 = vld [vmem:[#allocation7 + $0xc] ss:$16 sps:$4 sm:$0xff]   ;;  %v6760_v62 = vpack.c.bf16 %v2182_v22, %v2178_v17  ;;  %v2177_v17 = vmax.f32 %v1641_v14, 0.0  ;;  %v5744_v5 = vld [vmem:[#allocation7 + $0x1e8] ss:$16 sps:$4 sm:$0xff]  }
 0x1ab   : > { %v6744_v29 = vpop.f32.mrf.mxu1 }
 0x1ac   : > { %v6746_v7 = vpop.f32.mrf.mxu0  ;;  %7773 = vst [vmem:[#allocation21_spill] sm:$0xff] %v6760_v62 }
 0x1ad   : > { %v6748_v35 = vpop.f32.mrf.mxu1  ;;  %3502 = vmatpush1.bf16.msra.mxu0 %v5729_v27 }
 0x1ae   : > { %v6754_v12 = vpop.f32.mrf.mxu0  ;;  %3503 = vmatprep.subr.bf16.mxu0 %v5737_v15  ;;  %v2181_v15 = vmax.f32 %v1645_v16, 0.0 }
 0x1af   : > { %v6756_v47 = vpop.f32.mrf.mxu1 }
 0x1b0   : > { %v6764_v27 = vpop.f32.mrf.mxu0  ;;  %3168 = vmatmul.mubr.bf16.gmra.mxu0 %v6750_v38  ;;  %v2186_v38 = vmax.f32 %v1653_v39, 0.0  ;;  %v6780_v24 = vpack.c.bf16 %v2181_v15, %v2177_v17  ;;  %v1651_v39 = vadd.f32 %v6593_v60, %v6591_v30  ;;  %v5755_v30 = vld [vmem:[#allocation7 + $0x1ac] ss:$16 sps:$4 sm:$0xff]   ;;  %v2198_v60 = vmax.f32 %v1667_v59, 0.0 }
 0x1b1   : > { %v6766_v6 = vpop.f32.mrf.mxu1  ;;  %3177 = vmatprep.mubr.bf16.mxu0 %v6760_v62  ;;  %3504 = vmatpush1.bf16.msra.mxu0 %v5735_v28  ;;  %v1655_v28 = vadd.f32 %v6605_v54, %v6603_v25  ;;  %v1663_v25 = vadd.f32 %v6625_v21, %v6623_v43  ;;  %v5747_v54 = vld [vmem:[#allocation7 + $0x1c8] ss:$16 sps:$4 sm:$0xff]   ;;  %v1677_v59 = vadd.f32 %v6666_v46, %v6664_v45 }
 0x1b2   : > { %v6772_v44 = vpop.f32.mrf.mxu0  ;;  %3505 = vmatprep.subr.bf16.mxu0 %v5740_v56  ;;  %7774 = vst [vmem:[#allocation22_spill] sm:$0xff] %v6780_v24  ;;  %v5749_v56 = vld [vmem:[#allocation7 + $0x1cc] ss:$16 sps:$4 sm:$0xff]   ;;  %v6790_v14 = vpack.c.bf16 %v2190_v42, %v2186_v38  ;;  %v2185_v38 = vmax.f32 %v1651_v39, 0.0  ;;  %v5753_v43 = vld [vmem:[#allocation7 + $0x1a8] ss:$16 sps:$4 sm:$0xff]  }
 0x1b3   : > { %v6774_v8 = vpop.f32.mrf.mxu1 }
 0x1b4   : > { %v6776_v22 = vpop.f32.mrf.mxu0  ;;  %7775 = vst [vmem:[#allocation23_spill] sm:$0xff] %v6790_v14 }
 0x1b5   : > { %v6778_v13 = vpop.f32.mrf.mxu1  ;;  %3506 = vmatpush1.bf16.msra.mxu0 %v5738_v40 }
 0x1b6   : > { %v6784_v16 = vpop.f32.mrf.mxu0  ;;  %3507 = vmatprep.subr.bf16.mxu0 %v5746_v20  ;;  %v2189_v20 = vmax.f32 %v1655_v28, 0.0 }
 0x1b7   : > { %v6786_v62 = vpop.f32.mrf.mxu1 }
 0x1b8   : > { %v6794_v40 = vpop.f32.mrf.mxu0  ;;  %3178 = vmatmul.mubr.bf16.gmra.mxu0 %v6780_v24  ;;  %v2194_v24 = vmax.f32 %v1663_v25, 0.0  ;;  %v6810_v21 = vpack.c.bf16 %v2189_v20, %v2185_v38  ;;  %v1661_v25 = vadd.f32 %v6615_v23, %v6613_v37  ;;  %v5764_v37 = vld [vmem:[#allocation7 + $0x16c] ss:$16 sps:$4 sm:$0xff]   ;;  %v2206_v23 = vmax.f32 %v1677_v59, 0.0 }
 0x1b9   : > { %v6796_v15 = vpop.f32.mrf.mxu1  ;;  %3187 = vmatprep.mubr.bf16.mxu0 %v6790_v14  ;;  %3508 = vmatpush2.bf16.msra.mxu0 %v5744_v5  ;;  %v1665_v5 = vadd.f32 %v6629_v34, %v6627_v51  ;;  %v1673_v51 = vadd.f32 %v6654_v3, %v6652_v11  ;;  %v5756_v34 = vld [vmem:[#allocation7 + $0x188] ss:$16 sps:$4 sm:$0xff]   ;;  %v1687_v59 = vadd.f32 %v6696_v33, %v6694_v49 }
 0x1ba   : > { %v6802_v57 = vpop.f32.mrf.mxu0  ;;  %3509 = vmatprep.subr.bf16.mxu0 %v5749_v56  ;;  %7776 = vst [vmem:[#allocation24_spill] sm:$0xff] %v6810_v21  ;;  %v5758_v56 = vld [vmem:[#allocation7 + $0x18c] ss:$16 sps:$4 sm:$0xff]   ;;  %v6820_v39 = vpack.c.bf16 %v2198_v60, %v2194_v24  ;;  %v2193_v24 = vmax.f32 %v1661_v25, 0.0  ;;  %v5762_v11 = vld [vmem:[#allocation7 + $0x168] ss:$16 sps:$4 sm:$0xff]  }
 0x1bb   : > { %v6804_v32 = vpop.f32.mrf.mxu1 }
 0x1bc   : > { %v6806_v42 = vpop.f32.mrf.mxu0  ;;  %7777 = vst [vmem:[#allocation25_spill] sm:$0xff] %v6820_v39 }
 0x1bd   : > { %v6808_v17 = vpop.f32.mrf.mxu1  ;;  %3510 = vmatpush2.bf16.msra.mxu0 %v5747_v54 }
 0x1be   : > { %v6814_v28 = vpop.f32.mrf.mxu0  ;;  %3511 = vmatprep.subr.bf16.mxu0 %v5755_v30  ;;  %v2197_v30 = vmax.f32 %v1665_v5, 0.0 }
 0x1bf   : > { %v6816_v14 = vpop.f32.mrf.mxu1 }
 0x1c0   : > { %v6824_v54 = vpop.f32.mrf.mxu0  ;;  %3188 = vmatmul.mubr.bf16.gmra.mxu0 %v6810_v21  ;;  %v2202_v21 = vmax.f32 %v1673_v51, 0.0  ;;  %v6840_v3 = vpack.c.bf16 %v2197_v30, %v2193_v24  ;;  %v1671_v51 = vadd.f32 %v6645_v4, %v6643_v61  ;;  %v5773_v61 = vld [vmem:[#allocation7 + $0x12c] ss:$16 sps:$4 sm:$0xff]   ;;  %v2214_v4 = vmax.f32 %v1687_v59, 0.0 }
 0x1c1   : > { %v6826_v20 = vpop.f32.mrf.mxu1  ;;  %3197 = vmatprep.mubr.bf16.mxu0 %v6820_v39  ;;  %3512 = vmatpush2.bf16.msra.mxu0 %v5753_v43  ;;  %v1675_v43 = vadd.f32 %v6658_v26, %v6656_v48  ;;  %v1683_v48 = vadd.f32 %v6684_v1, %v6682_v0  ;;  %v5765_v26 = vld [vmem:[#allocation7 + $0x148] ss:$16 sps:$4 sm:$0xff]   ;;  %v1697_v59 = vadd.f32 %v6726_v58, %v6724_v2 }
 0x1c2   : > { %v6832_v45 = vpop.f32.mrf.mxu0  ;;  %3513 = vmatprep.subr.bf16.mxu0 %v5758_v56  ;;  %7778 = vst [vmem:[#allocation26_spill] sm:$0xff] %v6840_v3  ;;  %v5767_v56 = vld [vmem:[#allocation7 + $0x14c] ss:$16 sps:$4 sm:$0xff]   ;;  %v6850_v25 = vpack.c.bf16 %v2206_v23, %v2202_v21  ;;  %v2201_v21 = vmax.f32 %v1671_v51, 0.0  ;;  %v5771_v0 = vld [vmem:[#allocation7 + $0x128] ss:$16 sps:$4 sm:$0xff]  }
 0x1c3   : > { %v6834_v46 = vpop.f32.mrf.mxu1 }
 0x1c4   : > { %v6836_v60 = vpop.f32.mrf.mxu0  ;;  %7779 = vst [vmem:[#allocation27_spill] sm:$0xff] %v6850_v25 }
 0x1c5   : > { %v6838_v38 = vpop.f32.mrf.mxu1  ;;  %3514 = vmatpush2.bf16.msra.mxu0 %v5756_v34 }
 0x1c6   : > { %v6844_v5 = vpop.f32.mrf.mxu0  ;;  %3515 = vmatprep.subr.bf16.mxu0 %v5764_v37  ;;  %v2205_v37 = vmax.f32 %v1675_v43, 0.0 }
 0x1c7   : > { %v6846_v39 = vpop.f32.mrf.mxu1 }
 0x1c8   : > { %v6854_v34 = vpop.f32.mrf.mxu0  ;;  %3198 = vmatmul.mubr.bf16.gmra.mxu0 %v6840_v3  ;;  %v2210_v3 = vmax.f32 %v1683_v48, 0.0  ;;  %v6870_v1 = vpack.c.bf16 %v2205_v37, %v2201_v21  ;;  %v7783_v48 = vld [vmem:[#allocation15_spill] sm:$0xff] }
 0x1c9   : > { %v6856_v30 = vpop.f32.mrf.mxu1  ;;  %3207 = vmatprep.mubr.bf16.mxu0 %v6850_v25  ;;  %3516 = vmatpush2.bf16.msra.mxu0 %v5762_v11  ;;  %v1685_v11 = vadd.f32 %v6688_v53, %v6686_v50  ;;  %v1693_v53 = vadd.f32 %v6714_v19, %v6712_v18  ;;  %v5774_v50 = vld [vmem:[#allocation7 + $0x108] ss:$16 sps:$4 sm:$0xff]   ;;  %v1695_v18 = vadd.f32 %v6718_v36, %v6716_v55 }
 0x1ca   : > { %7780 = vst [vmem:[#allocation28_spill] sm:$0xff] %v6856_v30  ;;  %v6862_v33 = vpop.f32.mrf.mxu0  ;;  %3517 = vmatprep.subr.bf16.mxu0 %v5767_v56  ;;  %7781 = vst [vmem:[#allocation29_spill] sm:$0xff] %v6870_v1  ;;  %v5776_v56 = vld [vmem:[#allocation7 + $0x10c] ss:$16 sps:$4 sm:$0xff]   ;;  %v6880_v51 = vpack.c.bf16 %v2214_v4, %v2210_v3 }
 0x1cb   : > { %v6864_v49 = vpop.f32.mrf.mxu1  ;;  %v2221_v55 = vmax.f32 %v1695_v18, 0.0 }
 0x1cc   : > { %v6866_v23 = vpop.f32.mrf.mxu0  ;;  %7782 = vst [vmem:[#allocation30_spill] sm:$0xff] %v6880_v51 }
 0x1cd   : > { %v6868_v24 = vpop.f32.mrf.mxu1  ;;  %3518 = vmatpush2.bf16.msra.mxu0 %v5765_v26  ;;  %v1681_v26 = vadd.f32 %v7783_v48, %v6674_v9  ;;  %v2222_v9 = vmax.f32 %v1697_v59, 0.0  ;;  %v2218_v48 = vmax.f32 %v1693_v53, 0.0  ;;  %v1691_v59 = vadd.f32 %v6706_v31, %v6704_v10 }
 0x1ce   : > { %v6874_v43 = vpop.f32.mrf.mxu0  ;;  %3519 = vmatprep.subr.bf16.mxu0 %v5773_v61  ;;  %v2213_v61 = vmax.f32 %v1685_v11, 0.0  ;;  %v1707_v11 = vadd.f32 %v6756_v47, %v6754_v12  ;;  %v1705_v31 = vadd.f32 %v6748_v35, %v6746_v7  ;;  %v1713_v7 = vadd.f32 %v6774_v8, %v6772_v44 }
 0x1cf   : > { %v6876_v25 = vpop.f32.mrf.mxu1  ;;  %v2209_v3 = vmax.f32 %v1681_v26, 0.0 }
 0x1d0   : > { %v6884_v30 = vpop.f32.mrf.mxu0  ;;  %3208 = vmatmul.mubr.bf16.gmra.mxu0 %v6870_v1 }
 0x1d1   : > { %7784 = vst [vmem:[#allocation15_spill] sm:$0xff] %v6884_v30  ;;  %v6886_v37 = vpop.f32.mrf.mxu1  ;;  %3217 = vmatprep.mubr.bf16.mxu0 %v6880_v51  ;;  %3520 = vmatpush2.bf16.msra.mxu0 %v5771_v0  ;;  %v6900_v1 = vpack.c.bf16 %v2213_v61, %v2209_v3  ;;  %v2230_v3 = vmax.f32 %v1707_v11, 0.0  ;;  %v2217_v51 = vmax.f32 %v1691_v59, 0.0  ;;  %v1701_v11 = vadd.f32 %v6736_v52, %v6734_v63  ;;  %v5723_v63 = vld [vmem:[#allocation7 + $0x2e8] ss:$16 sps:$4 sm:$0xff]  }
 0x1d2   : > { %7785 = vst [vmem:[#allocation31_spill] sm:$0xff] %v6886_v37  ;;  %v6892_v58 = vpop.f32.mrf.mxu0  ;;  %3521 = vmatprep.subr.bf16.mxu0 %v5776_v56  ;;  %v6910_v56 = vpack.c.bf16 %v2222_v9, %v2218_v48 }
 0x1d3   : > { %v6894_v2 = vpop.f32.mrf.mxu1  ;;  %7786 = vst [vmem:[#allocation32_spill] sm:$0xff] %v6900_v1  ;;  %v6918_v10 = vpack.c.bf16 %v2221_v55, %v2217_v51  ;;  %v2225_v52 = vmax.f32 %v1701_v11, 0.0 }
 0x1d4   : > { %v6896_v4 = vpop.f32.mrf.mxu0  ;;  %7787 = vst [vmem:[#allocation33_spill] sm:$0xff] %v6910_v56 }
 0x1d5   : > { %v6898_v21 = vpop.f32.mrf.mxu1  ;;  %3522 = vmatpush2.bf16.msra.mxu0 %v5774_v50  ;;  %v1703_v50 = vadd.f32 %v6744_v29, %v6742_v41  ;;  %v1717_v29 = vadd.f32 %v6786_v62, %v6784_v16 }
 0x1d6   : > { %v6904_v19 = vpop.f32.mrf.mxu0 }
 0x1d7   : > { %v6906_v0 = vpop.f32.mrf.mxu1  ;;  %v2226_v9 = vmax.f32 %v1703_v50, 0.0 }
 0x1d8   : > { %v1793_v26 = vpop.f32.mrf.mxu0  ;;  %3218 = vmatmul.mubr.bf16.gmra.mxu0 %v6900_v1 }
 0x1d9   : > { %v1986_v53 = vpop.f32.mrf.mxu1  ;;  %3227 = vmatprep.mubr.bf16.mxu0 %v6910_v56  ;;  %v6924_v56 = vpack.c.bf16 %v2230_v3, %v2226_v9 }
 0x1da   : > { %v1795_v36 = vpop.f32.mrf.mxu0  ;;  %v1987_v1 = vadd.f32 %v1986_v53, %v1793_v26  ;;  %v2229_v26 = vmax.f32 %v1705_v31, 0.0  ;;  %v2238_v53 = vmax.f32 %v1717_v29, 0.0  ;;  %v1727_v29 = vadd.f32 %v6816_v14, %v6814_v28 }
 0x1db   : > { %v1988_v61 = vpop.f32.mrf.mxu1 }
 0x1dc   : > { %v1797_v47 = vpop.f32.mrf.mxu0  ;;  %v1989_v48 = vadd.f32 %v1988_v61, %v1795_v36  ;;  %v2147_v62 = vmax.f32 %v1987_v1, 0.0  ;;  %v6937_v9 = vpack.c.bf16 %v2229_v26, %v2225_v52  ;;  %v1715_v1 = vadd.f32 %v6778_v13, %v6776_v22  ;;  %v5743_v22 = vld [vmem:[#allocation7 + $0x2ac] ss:$16 sps:$4 sm:$0xff]  }
 0x1dd   : > { %v1990_v12 = vpop.f32.mrf.mxu1  ;;  %v1723_v13 = vadd.f32 %v6804_v32, %v6802_v57  ;;  %v5752_v57 = vld [vmem:[#allocation7 + $0x28c] ss:$16 sps:$4 sm:$0xff]  }
 0x1de   : > { %v1991_v37 = vadd.f32 %v1990_v12, %v1797_v47  ;;  %v1799_v30 = vpop.f32.mrf.mxu0  ;;  %v2148_v35 = vmax.f32 %v1989_v48, 0.0  ;;  %v5734_v47 = vld [vmem:[#allocation7 + $0x2cc] ss:$16 sps:$4 sm:$0xff]   ;;  %v2234_v12 = vmax.f32 %v1713_v7, 0.0  ;;  %v1711_v7 = vadd.f32 %v6766_v6, %v6764_v27  ;;  %v5741_v6 = vld [vmem:[#allocation7 + $0x2a8] ss:$16 sps:$4 sm:$0xff]  }
 0x1df   : > { %v1992_v41 = vpop.f32.mrf.mxu1  ;;  %v2237_v28 = vmax.f32 %v1715_v1, 0.0  ;;  %v2242_v32 = vmax.f32 %v1723_v13, 0.0 }
 0x1e0   : > { %v1993_v18 = vadd.f32 %v1992_v41, %v1799_v30  ;;  %v2151_v59 = vmax.f32 %v1991_v37, 0.0  ;;  %v1803_v50 = vpop.f32.mrf.mxu0  ;;  %3228 = vmatmul.mubr.bf16.gmra.mxu0 %v6918_v10  ;;  %v6944_v11 = vpack.c.bf16 %v2238_v53, %v2234_v12  ;;  %v2233_v53 = vmax.f32 %v1711_v7, 0.0 }
 0x1e1   : > { %v1996_v36 = vpop.f32.mrf.mxu1  ;;  %3237 = vmatprep.mubr.bf16.mxu0 %v6924_v56 }
 0x1e2   : > { %v2152_v51 = vmax.f32 %v1993_v18, 0.0  ;;  %v1805_v16 = vpop.f32.mrf.mxu0  ;;  %v6934_v37 = vpack.c.bf16 %v2151_v59, %v2147_v62  ;;  %v1997_v48 = vadd.f32 %v1996_v36, %v1803_v50  ;;  %v5732_v59 = vld [vmem:[#allocation7 + $0x2c8] ss:$16 sps:$4 sm:$0xff]   ;;  %v6957_v12 = vpack.c.bf16 %v2237_v28, %v2233_v53 }
 0x1e3   : > { %v1998_v30 = vpop.f32.mrf.mxu1 }
 0x1e4   : > { %v6932_v55 = vpack.c.bf16 %v2152_v51, %v2148_v35  ;;  %v1807_v61 = vpop.f32.mrf.mxu0  ;;  %v1999_v44 = vadd.f32 %v1998_v30, %v1805_v16  ;;  %v2155_v36 = vmax.f32 %v1997_v48, 0.0  ;;  %v2246_v30 = vmax.f32 %v1727_v29, 0.0 }
 0x1e5   : > { %v2000_v3 = vpop.f32.mrf.mxu1 }
 0x1e6   : > { %v2001_v8 = vadd.f32 %v2000_v3, %v1807_v61  ;;  %3330 = vmatprep.mubr.bf16.mxu1 %v6932_v55  ;;  %v1809_v31 = vpop.f32.mrf.mxu0  ;;  %v2156_v50 = vmax.f32 %v1999_v44, 0.0  ;;  %v1725_v44 = vadd.f32 %v6808_v17, %v6806_v42  ;;  %v6964_v29 = vpack.c.bf16 %v2246_v30, %v2242_v32  ;;  %v5761_v42 = vld [vmem:[#allocation7 + $0x26c] ss:$16 sps:$4 sm:$0xff]  }
 0x1e7   : > { %v2002_v41 = vpop.f32.mrf.mxu1  ;;  %3331 = vmatmul.mubr.bf16.vlgmr.msra.gmra.mxu1 %v6934_v37  ;;  %v1733_v17 = vadd.f32 %v6834_v46, %v6832_v45  ;;  %v5770_v45 = vld [vmem:[#allocation7 + $0x24c] ss:$16 sps:$4 sm:$0xff]  }
 0x1e8   : > { %v2003_v18 = vadd.f32 %v2002_v41, %v1809_v31  ;;  %3685 = vmatpush1.bf16.msra.mxu1 %v5723_v63  ;;  %v2159_v35 = vmax.f32 %v2001_v8, 0.0  ;;  %v1813_v51 = vpop.f32.mrf.mxu0  ;;  %3238 = vmatmul.mubr.bf16.gmra.mxu0 %v6937_v9  ;;  %v1737_v31 = vadd.f32 %v6846_v39, %v6844_v5  ;;  %v2245_v5 = vmax.f32 %v1725_v44, 0.0 }
 0x1e9   : > { %v2006_v26 = vpop.f32.mrf.mxu1  ;;  %3686 = vmatprep.subr.bf16.mxu1 %v5734_v47  ;;  %3247 = vmatprep.mubr.bf16.mxu0 %v6944_v11  ;;  %v2250_v46 = vmax.f32 %v1733_v17, 0.0 }
 0x1ea   : > { %v2160_v14 = vmax.f32 %v2003_v18, 0.0  ;;  %v1815_v62 = vpop.f32.mrf.mxu0  ;;  %v6954_v63 = vpack.c.bf16 %v2159_v35, %v2155_v36  ;;  %v2007_v8 = vadd.f32 %v2006_v26, %v1813_v51  ;;  %v5750_v18 = vld [vmem:[#allocation7 + $0x288] ss:$16 sps:$4 sm:$0xff]  }
 0x1eb   : > { %v2008_v16 = vpop.f32.mrf.mxu1 }
 0x1ec   : > { %v6952_v27 = vpack.c.bf16 %v2160_v14, %v2156_v50  ;;  %3687 = vmatpush1.bf16.msra.mxu1 %v5732_v59  ;;  %v1817_v52 = vpop.f32.mrf.mxu0  ;;  %v2009_v3 = vadd.f32 %v2008_v16, %v1815_v62  ;;  %v1721_v59 = vadd.f32 %v6796_v15, %v6794_v40  ;;  %v2163_v26 = vmax.f32 %v2007_v8, 0.0  ;;  %v5759_v15 = vld [vmem:[#allocation7 + $0x268] ss:$16 sps:$4 sm:$0xff]  }
 0x1ed   : > { %v2010_v61 = vpop.f32.mrf.mxu1  ;;  %3688 = vmatprep.subr.bf16.mxu1 %v5743_v22  ;;  %v2254_v14 = vmax.f32 %v1737_v31, 0.0  ;;  %v5768_v8 = vld [vmem:[#allocation7 + $0x248] ss:$16 sps:$4 sm:$0xff]  }
 0x1ee   : > { %v2011_v47 = vadd.f32 %v2010_v61, %v1817_v52  ;;  %3340 = vmatprep.mubr.bf16.mxu1 %v6952_v27  ;;  %v1819_v1 = vpop.f32.mrf.mxu0  ;;  %v2164_v51 = vmax.f32 %v2009_v3, 0.0  ;;  %v2241_v28 = vmax.f32 %v1721_v59, 0.0  ;;  %v1735_v52 = vadd.f32 %v6838_v38, %v6836_v60  ;;  %v5779_v60 = vld [vmem:[#allocation7 + $0x22c] ss:$16 sps:$4 sm:$0xff]  }
 0x1ef   : > { %v2012_v48 = vpop.f32.mrf.mxu1  ;;  %3341 = vmatmul.mubr.bf16.gmra.mxu1 %v6954_v63  ;;  %v1747_v3 = vadd.f32 %v6876_v25, %v6874_v43  ;;  %v6984_v44 = vpack.c.bf16 %v2254_v14, %v2250_v46  ;;  %v1743_v38 = vadd.f32 %v6864_v49, %v6862_v33  ;;  %v5782_v33 = vld [vmem:[#allocation7 + $0x20c] ss:$16 sps:$4 sm:$0xff]   ;;  %v5780_v46 = vld [vmem:[#allocation7 + $0x208] ss:$16 sps:$4 sm:$0xff]  }
 0x1f0   : > { %v2013_v41 = vadd.f32 %v2012_v48, %v1819_v1  ;;  %3689 = vmatpush1.bf16.msra.mxu1 %v5741_v6  ;;  %v2167_v7 = vmax.f32 %v2011_v47, 0.0  ;;  %v1823_v35 = vpop.f32.mrf.mxu0  ;;  %3248 = vmatmul.mubr.bf16.gmra.mxu0 %v6957_v12  ;;  %v6977_v53 = vpack.c.bf16 %v2245_v5, %v2241_v28  ;;  %v1731_v1 = vadd.f32 %v6826_v20, %v6824_v54  ;;  %v5777_v20 = vld [vmem:[#allocation7 + $0x228] ss:$16 sps:$4 sm:$0xff]  }
 0x1f1   : > { %v2016_v22 = vpop.f32.mrf.mxu1  ;;  %3690 = vmatprep.subr.bf16.mxu1 %v5752_v57  ;;  %3257 = vmatprep.mubr.bf16.mxu0 %v6964_v29  ;;  %v2253_v43 = vmax.f32 %v1735_v52, 0.0  ;;  %v2258_v49 = vmax.f32 %v1743_v38, 0.0 }
 0x1f2   : > { %v2168_v39 = vmax.f32 %v2013_v41, 0.0  ;;  %v1825_v13 = vpop.f32.mrf.mxu0  ;;  %v6974_v36 = vpack.c.bf16 %v2167_v7, %v2163_v26  ;;  %v2017_v61 = vadd.f32 %v2016_v22, %v1823_v35  ;;  %v2262_v22 = vmax.f32 %v1747_v3, 0.0 }
 0x1f3   : > { %v2018_v50 = vpop.f32.mrf.mxu1 }
 0x1f4   : > { %v6972_v40 = vpack.c.bf16 %v2168_v39, %v2164_v51  ;;  %3691 = vmatpush1.bf16.msra.mxu1 %v5750_v18  ;;  %v1827_v62 = vpop.f32.mrf.mxu0  ;;  %v2019_v30 = vadd.f32 %v2018_v50, %v1825_v13  ;;  %v2171_v59 = vmax.f32 %v2017_v61, 0.0  ;;  %v1745_v50 = vadd.f32 %v6868_v24, %v6866_v23  ;;  %v5785_v23 = vld [vmem:[#allocation7 + $0x3ec] ss:$16 sps:$4 sm:$0xff]  }
 0x1f5   : > { %v2020_v16 = vpop.f32.mrf.mxu1  ;;  %3692 = vmatprep.subr.bf16.mxu1 %v5761_v42  ;;  %v2249_v42 = vmax.f32 %v1731_v1, 0.0  ;;  %v1753_v24 = vadd.f32 %v6894_v2, %v6892_v58  ;;  %v5788_v58 = vld [vmem:[#allocation7 + $0x3cc] ss:$16 sps:$4 sm:$0xff]  }
 0x1f6   : > { %v2021_v6 = vadd.f32 %v2020_v16, %v1827_v62  ;;  %3350 = vmatprep.mubr.bf16.mxu1 %v6972_v40  ;;  %v1829_v57 = vpop.f32.mrf.mxu0  ;;  %v2172_v18 = vmax.f32 %v2019_v30, 0.0  ;;  %v1757_v62 = vadd.f32 %v6906_v0, %v6904_v19  ;;  %v7788_v30 = vld [vmem:[#allocation28_spill] sm:$0xff]  ;;  %v2261_v0 = vmax.f32 %v1745_v50, 0.0 }
 0x1f7   : > { %v2022_v32 = vpop.f32.mrf.mxu1  ;;  %3351 = vmatmul.mubr.bf16.gmra.mxu1 %v6974_v36  ;;  %v6997_v13 = vpack.c.bf16 %v2253_v43, %v2249_v42  ;;  %v2266_v2 = vmax.f32 %v1753_v24, 0.0 }
 0x1f8   : > { %v2023_v47 = vadd.f32 %v2022_v32, %v1829_v57  ;;  %3693 = vmatpush1.bf16.msra.mxu1 %v5759_v15  ;;  %v2175_v48 = vmax.f32 %v2021_v6, 0.0  ;;  %v1833_v31 = vpop.f32.mrf.mxu0  ;;  %3258 = vmatmul.mubr.bf16.gmra.mxu0 %v6977_v53  ;;  %v1741_v6 = vadd.f32 %v7788_v30, %v6854_v34  ;;  %v2270_v1 = vmax.f32 %v1757_v62, 0.0  ;;  %v5789_v30 = vld [vmem:[#allocation7 + $0x3a8] ss:$16 sps:$4 sm:$0xff]  }
 0x1f9   : > { %v2026_v41 = vpop.f32.mrf.mxu1  ;;  %3694 = vmatprep.subr.bf16.mxu1 %v5770_v45  ;;  %3267 = vmatprep.mubr.bf16.mxu0 %v6984_v44  ;;  %v7004_v45 = vpack.c.bf16 %v2262_v22, %v2258_v49 }
 0x1fa   : > { %v2176_v25 = vmax.f32 %v2023_v47, 0.0  ;;  %v1835_v7 = vpop.f32.mrf.mxu0  ;;  %v6994_v17 = vpack.c.bf16 %v2175_v48, %v2171_v59  ;;  %v2027_v14 = vadd.f32 %v2026_v41, %v1833_v31  ;;  %v5783_v48 = vld [vmem:[#allocation7 + $0x3e8] ss:$16 sps:$4 sm:$0xff]   ;;  %v2257_v31 = vmax.f32 %v1741_v6, 0.0 }
 0x1fb   : > { %v2028_v35 = vpop.f32.mrf.mxu1  ;;  %v1755_v59 = vadd.f32 %v6898_v21, %v6896_v4  ;;  %v7022_v42 = vpack.c.bf16 %v2270_v1, %v2266_v2  ;;  %v5791_v4 = vld [vmem:[#allocation7 + $0x3ac] ss:$16 sps:$4 sm:$0xff]   ;;  %v5792_v1 = vld [vmem:[#allocation7 + $0x388] ss:$16 sps:$4 sm:$0xff]  }
 0x1fc   : > { %v6992_v54 = vpack.c.bf16 %v2176_v25, %v2172_v18  ;;  %3695 = vmatpush1.bf16.msra.mxu1 %v5768_v8  ;;  %v1837_v51 = vpop.f32.mrf.mxu0  ;;  %v2029_v5 = vadd.f32 %v2028_v35, %v1835_v7  ;;  %v2179_v3 = vmax.f32 %v2027_v14, 0.0  ;;  %v7017_v43 = vpack.c.bf16 %v2261_v0, %v2257_v31 }
 0x1fd   : > { %v2030_v39 = vpop.f32.mrf.mxu1  ;;  %3696 = vmatprep.subr.bf16.mxu1 %v5779_v60 }
 0x1fe   : > { %v2031_v26 = vadd.f32 %v2030_v39, %v1837_v51  ;;  %3360 = vmatprep.mubr.bf16.mxu1 %v6992_v54  ;;  %v1839_v15 = vpop.f32.mrf.mxu0  ;;  %v2180_v32 = vmax.f32 %v2029_v5, 0.0  ;;  %v5786_v51 = vld [vmem:[#allocation7 + $0x3c8] ss:$16 sps:$4 sm:$0xff]  }
 0x1ff   : > { %v2032_v28 = vpop.f32.mrf.mxu1  ;;  %3361 = vmatmul.mubr.bf16.gmra.mxu1 %v6994_v17  ;;  %v7789_v39 = vld [vmem:[#allocation15_spill] sm:$0xff] }
 0x200   : > { %v2033_v16 = vadd.f32 %v2032_v28, %v1839_v15  ;;  %3697 = vmatpush1.bf16.msra.mxu1 %v5777_v20  ;;  %v2183_v52 = vmax.f32 %v2031_v26, 0.0  ;;  %v1843_v61 = vpop.f32.mrf.mxu0  ;;  %3268 = vmatmul.mubr.bf16.gmra.mxu0 %v6997_v13  ;;  %v2269_v15 = vmax.f32 %v1755_v59, 0.0 }
 0x201   : > { %v2036_v57 = vpop.f32.mrf.mxu1  ;;  %3698 = vmatprep.subr.bf16.mxu1 %v5782_v33  ;;  %3277 = vmatprep.mubr.bf16.mxu0 %v7004_v45  ;;  %v7790_v33 = vld [vmem:[#allocation31_spill] sm:$0xff] }
 0x202   : > { %v2184_v19 = vmax.f32 %v2033_v16, 0.0  ;;  %v1845_v47 = vpop.f32.mrf.mxu0  ;;  %v7014_v41 = vpack.c.bf16 %v2183_v52, %v2179_v3  ;;  %v2037_v7 = vadd.f32 %v2036_v57, %v1843_v61  ;;  %v1751_v49 = vadd.f32 %v7790_v33, %v7789_v39  ;;  %v5800_v33 = vld [vmem:[#allocation7 + $0x34c] ss:$16 sps:$4 sm:$0xff]  }
 0x203   : > { %v2038_v8 = vpop.f32.mrf.mxu1 }
 0x204   : > { %v7012_v34 = vpack.c.bf16 %v2184_v19, %v2180_v32  ;;  %3699 = vmatpush1.bf16.msra.mxu1 %v5780_v46  ;;  %v1847_v60 = vpop.f32.mrf.mxu0  ;;  %v2039_v18 = vadd.f32 %v2038_v8, %v1845_v47  ;;  %v2187_v28 = vmax.f32 %v2037_v7, 0.0  ;;  %v2265_v6 = vmax.f32 %v1751_v49, 0.0 }
 0x205   : > { %v2040_v38 = vpop.f32.mrf.mxu1  ;;  %3700 = vmatprep.subr.bf16.mxu1 %v5785_v23  ;;  %v5794_v23 = vld [vmem:[#allocation7 + $0x38c] ss:$16 sps:$4 sm:$0xff]  }
 0x206   : > { %v2041_v25 = vadd.f32 %v2040_v38, %v1847_v60  ;;  %3370 = vmatprep.mubr.bf16.mxu1 %v7012_v34  ;;  %v1849_v35 = vpop.f32.mrf.mxu0  ;;  %v2188_v21 = vmax.f32 %v2039_v18, 0.0  ;;  %v7033_v19 = vpack.c.bf16 %v2269_v15, %v2265_v6  ;;  %v5797_v38 = vld [vmem:[#allocation7 + $0x36c] ss:$16 sps:$4 sm:$0xff]   ;;  %v7791_v18 = vld [vmem:[#allocation12_spill] sm:$0xff] }
 0x207   : > { %v2042_v22 = vpop.f32.mrf.mxu1  ;;  %3371 = vmatmul.mubr.bf16.gmra.mxu1 %v7014_v41 }
 0x208   : > { %v2043_v20 = vadd.f32 %v2042_v22, %v1849_v35  ;;  %3701 = vmatpush2.bf16.msra.mxu1 %v5783_v48  ;;  %v2191_v5 = vmax.f32 %v2041_v25, 0.0  ;;  %v1853_v26 = vpop.f32.mrf.mxu0  ;;  %3278 = vmatmul.mubr.bf16.gmra.mxu0 %v7017_v43  ;;  %v5795_v22 = vld [vmem:[#allocation7 + $0x368] ss:$16 sps:$4 sm:$0xff]  }
 0x209   : > { %v2046_v50 = vpop.f32.mrf.mxu1  ;;  %3702 = vmatprep.subr.bf16.mxu1 %v5788_v58  ;;  %3287 = vmatprep.mubr.bf16.mxu0 %v7022_v42 }
 0x20a   : > { %v2192_v14 = vmax.f32 %v2043_v20, 0.0  ;;  %v1855_v62 = vpop.f32.mrf.mxu0  ;;  %v7030_v52 = vpack.c.bf16 %v2191_v5, %v2187_v28  ;;  %v2047_v0 = vadd.f32 %v2046_v50, %v1853_v26 }
 0x20b   : > { %v2048_v16 = vpop.f32.mrf.mxu1 }
 0x20c   : > { %v7028_v46 = vpack.c.bf16 %v2192_v14, %v2188_v21  ;;  %3703 = vmatpush2.bf16.msra.mxu1 %v5786_v51  ;;  %v1857_v61 = vpop.f32.mrf.mxu0  ;;  %v2049_v24 = vadd.f32 %v2048_v16, %v1855_v62  ;;  %v2195_v25 = vmax.f32 %v2047_v0, 0.0  ;;  %v5798_v14 = vld [vmem:[#allocation7 + $0x348] ss:$16 sps:$4 sm:$0xff]  }
 0x20d   : > { %v2050_v57 = vpop.f32.mrf.mxu1  ;;  %3704 = vmatprep.subr.bf16.mxu1 %v5791_v4  ;;  %v7792_v16 = vld [vmem:[#allocation13_spill] sm:$0xff] }
 0x20e   : > { %v2051_v32 = vadd.f32 %v2050_v57, %v1857_v61  ;;  %3380 = vmatprep.mubr.bf16.mxu1 %v7028_v46  ;;  %v1859_v3 = vpop.f32.mrf.mxu0  ;;  %v2196_v58 = vmax.f32 %v2049_v24, 0.0  ;;  %v7793_v57 = vld [vmem:[#allocation14_spill] sm:$0xff] }
 0x20f   : > { %v2052_v47 = vpop.f32.mrf.mxu1  ;;  %3381 = vmatmul.mubr.bf16.gmra.mxu1 %v7030_v52 }
 0x210   : > { %v2053_v8 = vadd.f32 %v2052_v47, %v1859_v3  ;;  %3705 = vmatpush2.bf16.msra.mxu1 %v5789_v30  ;;  %v2199_v48 = vmax.f32 %v2051_v32, 0.0  ;;  %v1863_v31 = vpop.f32.mrf.mxu0  ;;  %3288 = vmatmul.mubr.bf16.gmra.mxu0 %v7033_v19  ;;  %v5803_v30 = vld [vmem:[#allocation7 + $0x32c] ss:$16 sps:$4 sm:$0xff]   ;;  %v5801_v3 = vld [vmem:[#allocation7 + $0x328] ss:$16 sps:$4 sm:$0xff]  }
 0x211   : > { %v2056_v60 = vpop.f32.mrf.mxu1  ;;  %3706 = vmatprep.subr.bf16.mxu1 %v5794_v23  ;;  %3523 = vmatprep.mubr.bf16.mxu0 %v7791_v18 }
 0x212   : > { %v2200_v2 = vmax.f32 %v2053_v8, 0.0  ;;  %v1865_v59 = vpop.f32.mrf.mxu0  ;;  %v7040_v20 = vpack.c.bf16 %v2199_v48, %v2195_v25  ;;  %v2057_v26 = vadd.f32 %v2056_v60, %v1863_v31  ;;  %v5806_v48 = vld [vmem:[#allocation7 + $0x30c] ss:$16 sps:$4 sm:$0xff]   ;;  %v5804_v25 = vld [vmem:[#allocation7 + $0x308] ss:$16 sps:$4 sm:$0xff]  }
 0x213   : > { %v2058_v7 = vpop.f32.mrf.mxu1 }
 0x214   : > { %v7038_v35 = vpack.c.bf16 %v2200_v2, %v2196_v58  ;;  %3707 = vmatpush2.bf16.msra.mxu1 %v5792_v1  ;;  %v1867_v51 = vpop.f32.mrf.mxu0  ;;  %v2059_v49 = vadd.f32 %v2058_v7, %v1865_v59  ;;  %v2203_v23 = vmax.f32 %v2057_v26, 0.0 }
 0x215   : > { %v2060_v39 = vpop.f32.mrf.mxu1  ;;  %3708 = vmatprep.subr.bf16.mxu1 %v5797_v38 }
 0x216   : > { %v2061_v5 = vadd.f32 %v2060_v39, %v1867_v51  ;;  %3390 = vmatprep.mubr.bf16.mxu1 %v7038_v35  ;;  %v1869_v50 = vpop.f32.mrf.mxu0  ;;  %v2204_v6 = vmax.f32 %v2059_v49, 0.0  ;;  %v7794_v51 = vld [vmem:[#allocation16_spill] sm:$0xff]  ;;  %v7795_v49 = vld [vmem:[#allocation17_spill] sm:$0xff] }
 0x217   : > { %v2062_v4 = vpop.f32.mrf.mxu1  ;;  %3391 = vmatmul.mubr.bf16.gmra.mxu1 %v7040_v20 }
 0x218   : > { %v2063_v21 = vadd.f32 %v2062_v4, %v1869_v50  ;;  %3709 = vmatpush2.bf16.msra.mxu1 %v5795_v22  ;;  %v2207_v15 = vmax.f32 %v2061_v5, 0.0  ;;  %v1873_v28 = vpop.f32.mrf.mxu0  ;;  %3524 = vmatmul.mubr.bf16.vlgmr.msra.gmra.mxu0 %v7792_v16 }
 0x219   : > { %v2066_v62 = vpop.f32.mrf.mxu1  ;;  %3710 = vmatprep.subr.bf16.mxu1 %v5800_v33  ;;  %3533 = vmatprep.mubr.bf16.mxu0 %v7793_v57 }
 0x21a   : > { %v2208_v61 = vmax.f32 %v2063_v21, 0.0  ;;  %v1875_v24 = vpop.f32.mrf.mxu0  ;;  %v7048_v47 = vpack.c.bf16 %v2207_v15, %v2203_v23  ;;  %v2067_v38 = vadd.f32 %v2066_v62, %v1873_v28 }
 0x21b   : > { %v2068_v32 = vpop.f32.mrf.mxu1 }
 0x21c   : > { %v7046_v0 = vpack.c.bf16 %v2208_v61, %v2204_v6  ;;  %3711 = vmatpush2.bf16.msra.mxu1 %v5798_v14  ;;  %v1877_v8 = vpop.f32.mrf.mxu0  ;;  %v2069_v31 = vadd.f32 %v2068_v32, %v1875_v24  ;;  %v2211_v5 = vmax.f32 %v2067_v38, 0.0  ;;  %v7796_v32 = vld [vmem:[#allocation18_spill] sm:$0xff] }
 0x21d   : > { %v2070_v1 = vpop.f32.mrf.mxu1  ;;  %3712 = vmatprep.subr.bf16.mxu1 %v5803_v30 }
 0x21e   : > { %v2071_v60 = vadd.f32 %v2070_v1, %v1877_v8  ;;  %3400 = vmatprep.mubr.bf16.mxu1 %v7046_v0  ;;  %v1879_v58 = vpop.f32.mrf.mxu0  ;;  %v2212_v39 = vmax.f32 %v2069_v31, 0.0  ;;  %v7797_v1 = vld [vmem:[#allocation19_spill] sm:$0xff] }
 0x21f   : > { %v2072_v2 = vpop.f32.mrf.mxu1  ;;  %3401 = vmatmul.mubr.bf16.gmra.mxu1 %v7048_v47 }
 0x220   : > { %v2073_v18 = vadd.f32 %v2072_v2, %v1879_v58  ;;  %3713 = vmatpush2.bf16.msra.mxu1 %v5801_v3  ;;  %v2215_v59 = vmax.f32 %v2071_v60, 0.0  ;;  %v1883_v7 = vpop.f32.mrf.mxu0  ;;  %3534 = vmatmul.mubr.bf16.gmra.mxu0 %v7794_v51 }
 0x221   : > { %v2076_v22 = vpop.f32.mrf.mxu1  ;;  %3714 = vmatprep.subr.bf16.mxu1 %v5806_v48  ;;  %3543 = vmatprep.mubr.bf16.mxu0 %v7795_v49 }
 0x222   : > { %v2216_v33 = vmax.f32 %v2073_v18, 0.0  ;;  %v1885_v26 = vpop.f32.mrf.mxu0  ;;  %v7056_v21 = vpack.c.bf16 %v2215_v59, %v2211_v5  ;;  %v2077_v16 = vadd.f32 %v2076_v22, %v1883_v7 }
 0x223   : > { %v2078_v50 = vpop.f32.mrf.mxu1 }
 0x224   : > { %v7054_v4 = vpack.c.bf16 %v2216_v33, %v2212_v39  ;;  %3715 = vmatpush2.bf16.msra.mxu1 %v5804_v25  ;;  %v1887_v14 = vpop.f32.mrf.mxu0  ;;  %v2079_v28 = vadd.f32 %v2078_v50, %v1885_v26  ;;  %v2219_v48 = vmax.f32 %v2077_v16, 0.0  ;;  %v7798_v26 = vld [vmem:[#allocation20_spill] sm:$0xff] }
 0x225   : > { %v2080_v15 = vpop.f32.mrf.mxu1 }
 0x226   : > { %v2081_v62 = vadd.f32 %v2080_v15, %v1887_v14  ;;  %3410 = vmatprep.mubr.bf16.mxu1 %v7054_v4  ;;  %v1889_v30 = vpop.f32.mrf.mxu0  ;;  %v2220_v3 = vmax.f32 %v2079_v28, 0.0  ;;  %v7799_v15 = vld [vmem:[#allocation21_spill] sm:$0xff] }
 0x227   : > { %v2082_v6 = vpop.f32.mrf.mxu1  ;;  %3411 = vmatmul.mubr.bf16.gmra.mxu1 %v7056_v21 }
 0x228   : > { %v2083_v61 = vadd.f32 %v2082_v6, %v1889_v30  ;;  %v2223_v57 = vmax.f32 %v2081_v62, 0.0  ;;  %v1893_v23 = vpop.f32.mrf.mxu0  ;;  %3544 = vmatmul.mubr.bf16.gmra.mxu0 %v7796_v32 }
 0x229   : > { %v2086_v24 = vpop.f32.mrf.mxu1  ;;  %3553 = vmatprep.mubr.bf16.mxu0 %v7797_v1 }
 0x22a   : > { %v2224_v8 = vmax.f32 %v2083_v61, 0.0  ;;  %v1895_v31 = vpop.f32.mrf.mxu0  ;;  %v7064_v58 = vpack.c.bf16 %v2223_v57, %v2219_v48  ;;  %v2087_v7 = vadd.f32 %v2086_v24, %v1893_v23 }
 0x22b   : > { %v2088_v60 = vpop.f32.mrf.mxu1 }
 0x22c   : > { %v7062_v38 = vpack.c.bf16 %v2224_v8, %v2220_v3  ;;  %v1897_v2 = vpop.f32.mrf.mxu0  ;;  %v2089_v25 = vadd.f32 %v2088_v60, %v1895_v31  ;;  %v2227_v28 = vmax.f32 %v2087_v7, 0.0 }
 0x22d   : > { %v2090_v18 = vpop.f32.mrf.mxu1 }
 0x22e   : > { %v2091_v59 = vadd.f32 %v2090_v18, %v1897_v2  ;;  %3420 = vmatprep.mubr.bf16.mxu1 %v7062_v38  ;;  %v1899_v22 = vpop.f32.mrf.mxu0  ;;  %v2228_v50 = vmax.f32 %v2089_v25, 0.0  ;;  %v7800_v2 = vld [vmem:[#allocation22_spill] sm:$0xff] }
 0x22f   : > { %v2092_v51 = vpop.f32.mrf.mxu1  ;;  %3421 = vmatmul.mubr.bf16.gmra.mxu1 %v7064_v58 }
 0x230   : > { %v2093_v39 = vadd.f32 %v2092_v51, %v1899_v22  ;;  %v2231_v33 = vmax.f32 %v2091_v59, 0.0  ;;  %v1903_v49 = vpop.f32.mrf.mxu0  ;;  %3554 = vmatmul.mubr.bf16.gmra.mxu0 %v7798_v26  ;;  %v7801_v59 = vld [vmem:[#allocation23_spill] sm:$0xff] }
 0x231   : > { %v2096_v5 = vpop.f32.mrf.mxu1  ;;  %3563 = vmatprep.mubr.bf16.mxu0 %v7799_v15 }
 0x232   : > { %v2232_v14 = vmax.f32 %v2093_v39, 0.0  ;;  %v1905_v62 = vpop.f32.mrf.mxu0  ;;  %v7072_v6 = vpack.c.bf16 %v2231_v33, %v2227_v28  ;;  %v2097_v32 = vadd.f32 %v2096_v5, %v1903_v49 }
 0x233   : > { %v2098_v16 = vpop.f32.mrf.mxu1 }
 0x234   : > { %v7070_v30 = vpack.c.bf16 %v2232_v14, %v2228_v50  ;;  %v1907_v61 = vpop.f32.mrf.mxu0  ;;  %v2099_v23 = vadd.f32 %v2098_v16, %v1905_v62  ;;  %v2235_v7 = vmax.f32 %v2097_v32, 0.0 }
 0x235   : > { %v2100_v57 = vpop.f32.mrf.mxu1 }
 0x236   : > { %v2101_v24 = vadd.f32 %v2100_v57, %v1907_v61  ;;  %3430 = vmatprep.mubr.bf16.mxu1 %v7070_v30  ;;  %v1909_v3 = vpop.f32.mrf.mxu0  ;;  %v2236_v18 = vmax.f32 %v2099_v23, 0.0  ;;  %v7802_v23 = vld [vmem:[#allocation24_spill] sm:$0xff] }
 0x237   : > { %v2102_v8 = vpop.f32.mrf.mxu1  ;;  %3431 = vmatmul.mubr.bf16.gmra.mxu1 %v7072_v6 }
 0x238   : > { %v2103_v1 = vadd.f32 %v2102_v8, %v1909_v3  ;;  %v2239_v48 = vmax.f32 %v2101_v24, 0.0  ;;  %v1913_v31 = vpop.f32.mrf.mxu0  ;;  %3564 = vmatmul.mubr.bf16.gmra.mxu0 %v7800_v2  ;;  %v7803_v3 = vld [vmem:[#allocation25_spill] sm:$0xff] }
 0x239   : > { %v2106_v60 = vpop.f32.mrf.mxu1  ;;  %3573 = vmatprep.mubr.bf16.mxu0 %v7801_v59 }
 0x23a   : > { %v2240_v25 = vmax.f32 %v2103_v1, 0.0  ;;  %v1915_v22 = vpop.f32.mrf.mxu0  ;;  %v7080_v33 = vpack.c.bf16 %v2239_v48, %v2235_v7  ;;  %v2107_v14 = vadd.f32 %v2106_v60, %v1913_v31 }
 0x23b   : > { %v2108_v51 = vpop.f32.mrf.mxu1 }
 0x23c   : > { %v7078_v39 = vpack.c.bf16 %v2240_v25, %v2236_v18  ;;  %v1917_v49 = vpop.f32.mrf.mxu0  ;;  %v2109_v26 = vadd.f32 %v2108_v51, %v1915_v22  ;;  %v2243_v8 = vmax.f32 %v2107_v14, 0.0  ;;  %v7804_v14 = vld [vmem:[#allocation26_spill] sm:$0xff] }
 0x23d   : > { %v2110_v5 = vpop.f32.mrf.mxu1 }
 0x23e   : > { %v2111_v50 = vadd.f32 %v2110_v5, %v1917_v49  ;;  %3440 = vmatprep.mubr.bf16.mxu1 %v7078_v39  ;;  %v1919_v15 = vpop.f32.mrf.mxu0  ;;  %v2244_v24 = vmax.f32 %v2109_v26, 0.0 }
 0x23f   : > { %v2112_v28 = vpop.f32.mrf.mxu1  ;;  %3441 = vmatmul.mubr.bf16.gmra.mxu1 %v7080_v33 }
 0x240   : > { %v2113_v62 = vadd.f32 %v2112_v28, %v1919_v15  ;;  %v2247_v16 = vmax.f32 %v2111_v50, 0.0  ;;  %v1923_v61 = vpop.f32.mrf.mxu0  ;;  %3574 = vmatmul.mubr.bf16.gmra.mxu0 %v7802_v23 }
 0x241   : > { %v2116_v57 = vpop.f32.mrf.mxu1  ;;  %3583 = vmatprep.mubr.bf16.mxu0 %v7803_v3 }
 0x242   : > { %v2248_v32 = vmax.f32 %v2113_v62, 0.0  ;;  %v1925_v1 = vpop.f32.mrf.mxu0  ;;  %v7088_v31 = vpack.c.bf16 %v2247_v16, %v2243_v8  ;;  %v2117_v7 = vadd.f32 %v2116_v57, %v1923_v61  ;;  %v7805_v62 = vld [vmem:[#allocation27_spill] sm:$0xff] }
 0x243   : > { %v2118_v48 = vpop.f32.mrf.mxu1 }
 0x244   : > { %v7086_v2 = vpack.c.bf16 %v2248_v32, %v2244_v24  ;;  %v1927_v60 = vpop.f32.mrf.mxu0  ;;  %v2119_v25 = vadd.f32 %v2118_v48, %v1925_v1  ;;  %v2251_v16 = vmax.f32 %v2117_v7, 0.0 }
 0x245   : > { %v2120_v18 = vpop.f32.mrf.mxu1 }
 0x246   : > { %v2121_v59 = vadd.f32 %v2120_v18, %v1927_v60  ;;  %3450 = vmatprep.mubr.bf16.mxu1 %v7086_v2  ;;  %v1929_v22 = vpop.f32.mrf.mxu0  ;;  %v2252_v15 = vmax.f32 %v2119_v25, 0.0 }
 0x247   : > { %v2122_v51 = vpop.f32.mrf.mxu1  ;;  %3451 = vmatmul.mubr.bf16.gmra.mxu1 %v7088_v31 }
 0x248   : > { %v2123_v49 = vadd.f32 %v2122_v51, %v1929_v22  ;;  %v2255_v5 = vmax.f32 %v2121_v59, 0.0  ;;  %v1933_v26 = vpop.f32.mrf.mxu0  ;;  %3584 = vmatmul.mubr.bf16.gmra.mxu0 %v7804_v14  ;;  %v7806_v51 = vld [vmem:[#allocation29_spill] sm:$0xff]  ;;  %v7807_v14 = vld [vmem:[#allocation30_spill] sm:$0xff] }
 0x249   : > { %v2126_v50 = vpop.f32.mrf.mxu1  ;;  %3593 = vmatprep.mubr.bf16.mxu0 %v7805_v62 }
 0x24a   : > { %v2256_v28 = vmax.f32 %v2123_v49, 0.0  ;;  %v1935_v23 = vpop.f32.mrf.mxu0  ;;  %v7096_v61 = vpack.c.bf16 %v2255_v5, %v2251_v16  ;;  %v2127_v48 = vadd.f32 %v2126_v50, %v1933_v26 }
 0x24b   : > { %v2128_v24 = vpop.f32.mrf.mxu1 }
 0x24c   : > { %v7094_v32 = vpack.c.bf16 %v2256_v28, %v2252_v15  ;;  %v1937_v57 = vpop.f32.mrf.mxu0  ;;  %v2129_v8 = vadd.f32 %v2128_v24, %v1935_v23  ;;  %v2259_v15 = vmax.f32 %v2127_v48, 0.0 }
 0x24d   : > { %v2130_v3 = vpop.f32.mrf.mxu1 }
 0x24e   : > { %v2131_v1 = vadd.f32 %v2130_v3, %v1937_v57  ;;  %3460 = vmatprep.mubr.bf16.mxu1 %v7094_v32  ;;  %v1939_v60 = vpop.f32.mrf.mxu0  ;;  %v2260_v49 = vmax.f32 %v2129_v8, 0.0 }
 0x24f   : > { %v2132_v18 = vpop.f32.mrf.mxu1  ;;  %3461 = vmatmul.mubr.bf16.gmra.mxu1 %v7096_v61 }
 0x250   : > { %v2133_v25 = vadd.f32 %v2132_v18, %v1939_v60  ;;  %v2263_v59 = vmax.f32 %v2131_v1, 0.0  ;;  %v1943_v7 = vpop.f32.mrf.mxu0  ;;  %3594 = vmatmul.mubr.bf16.gmra.mxu0 %v7806_v51 }
 0x251   : > { %v2136_v22 = vpop.f32.mrf.mxu1  ;;  %3603 = vmatprep.mubr.bf16.mxu0 %v7807_v14 }
 0x252   : > { %v2264_v5 = vmax.f32 %v2133_v25, 0.0  ;;  %v1945_v28 = vpop.f32.mrf.mxu0  ;;  %v7104_v26 = vpack.c.bf16 %v2263_v59, %v2259_v15  ;;  %v2137_v3 = vadd.f32 %v2136_v22, %v1943_v7  ;;  %v7808_v25 = vld [vmem:[#allocation32_spill] sm:$0xff] }
 0x253   : > { %v2138_v62 = vpop.f32.mrf.mxu1 }
 0x254   : > { %v7102_v16 = vpack.c.bf16 %v2264_v5, %v2260_v49  ;;  %v1947_v50 = vpop.f32.mrf.mxu0  ;;  %v2139_v24 = vadd.f32 %v2138_v62, %v1945_v28  ;;  %v7809_v49 = vld [vmem:[#allocation33_spill] sm:$0xff]  ;;  %v2267_v5 = vmax.f32 %v2137_v3, 0.0 }
 0x255   : > { %v2140_v23 = vpop.f32.mrf.mxu1 }
 0x256   : > { %v2141_v57 = vadd.f32 %v2140_v23, %v1947_v50  ;;  %3470 = vmatprep.mubr.bf16.mxu1 %v7102_v16  ;;  %v1949_v1 = vpop.f32.mrf.mxu0  ;;  %v2268_v51 = vmax.f32 %v2139_v24, 0.0 }
 0x257   : > { %v2142_v60 = vpop.f32.mrf.mxu1  ;;  %3471 = vmatmul.mubr.bf16.gmra.mxu1 %v7104_v26 }
 0x258   : > { %v2143_v8 = vadd.f32 %v2142_v60, %v1949_v1  ;;  %v2271_v18 = vmax.f32 %v2141_v57, 0.0  ;;  %v7108_v48 = vpop.f32.mrf.mxu0  ;;  %3604 = vmatmul.mubr.bf16.gmra.mxu0 %v7808_v25 }
 0x259   : > { %3613 = vmatprep.mubr.bf16.mxu0 %v7809_v49 }
 0x25a   : > { %v2272_v59 = vmax.f32 %v2143_v8, 0.0  ;;  %v7112_v14 = vpop.f32.mrf.mxu0  ;;  %v7116_v7 = vpack.c.bf16 %v2271_v18, %v2267_v5 }
 0x25c   : > { %v7114_v15 = vpack.c.bf16 %v2272_v59, %v2268_v51  ;;  %v7118_v22 = vpop.f32.mrf.mxu0  ;;  %v5807_v51 = vld [vmem:[%s6191_s30] sm:$0xff] }
 0x25d   : > { %v4005_v59 = vunpack.c.l.bf16 %v5807_v51  ;;  %v4006_v5 = vunpack.c.h.bf16 %v5807_v51 }
 0x25e   : > { %3480 = vmatprep.mubr.bf16.mxu1 %v7114_v15  ;;  %v7121_v28 = vpop.f32.mrf.mxu0 }
 0x25f   : > { %3481 = vmatmul.mubr.bf16.gmra.mxu1 %v7116_v7 }
 0x260   : > { %3716 = vmatprep.mubr.bf16.mxu1 %v6932_v55  ;;  %v7125_v62 = vpop.f32.mrf.mxu0  ;;  %3614 = vmatmul.mubr.bf16.gmra.mxu0 %v6918_v10 }
 0x261   : > { %3623 = vmatprep.mubr.bf16.mxu0 %v6924_v56 }
 0x262   : > { %v7129_v50 = vpop.f32.mrf.mxu0 }
 0x264   : > { %v7131_v23 = vpop.f32.mrf.mxu0 }
 0x266   : > { %v7133_v24 = vpop.f32.mrf.mxu0 }
 0x267   : > { %3717 = vmatmul.mubr.bf16.vlgmr.msra.gmra.mxu1 %v6934_v37 }
 0x268   : > { %3726 = vmatprep.mubr.bf16.mxu1 %v6952_v27  ;;  %v7137_v57 = vpop.f32.mrf.mxu0  ;;  %3624 = vmatmul.mubr.bf16.gmra.mxu0 %v6937_v9 }
 0x269   : > { %3633 = vmatprep.mubr.bf16.mxu0 %v6944_v11 }
 0x26a   : > { %v7141_v55 = vpop.f32.mrf.mxu0 }
 0x26c   : > { %v7143_v10 = vpop.f32.mrf.mxu0 }
 0x26e   : > { %v7145_v56 = vpop.f32.mrf.mxu0 }
 0x26f   : > { %3727 = vmatmul.mubr.bf16.gmra.mxu1 %v6954_v63 }
 0x270   : > { %3736 = vmatprep.mubr.bf16.mxu1 %v6972_v40  ;;  %v7149_v3 = vpop.f32.mrf.mxu0  ;;  %3634 = vmatmul.mubr.bf16.gmra.mxu0 %v6957_v12 }
 0x271   : > { %3643 = vmatprep.mubr.bf16.mxu0 %v6964_v29 }
 0x272   : > { %v7153_v37 = vpop.f32.mrf.mxu0 }
 0x274   : > { %v7155_v9 = vpop.f32.mrf.mxu0 }
 0x276   : > { %v7157_v11 = vpop.f32.mrf.mxu0 }
 0x277   : > { %3737 = vmatmul.mubr.bf16.gmra.mxu1 %v6974_v36 }
 0x278   : > { %3746 = vmatprep.mubr.bf16.mxu1 %v6992_v54  ;;  %v7161_v27 = vpop.f32.mrf.mxu0  ;;  %3644 = vmatmul.mubr.bf16.gmra.mxu0 %v6977_v53 }
 0x279   : > { %3653 = vmatprep.mubr.bf16.mxu0 %v6984_v44 }
 0x27a   : > { %v7165_v63 = vpop.f32.mrf.mxu0 }
 0x27c   : > { %v7167_v12 = vpop.f32.mrf.mxu0 }
 0x27e   : > { %v7169_v29 = vpop.f32.mrf.mxu0 }
 0x27f   : > { %3747 = vmatmul.mubr.bf16.gmra.mxu1 %v6994_v17 }
 0x280   : > { %3756 = vmatprep.mubr.bf16.mxu1 %v7012_v34  ;;  %v7173_v40 = vpop.f32.mrf.mxu0  ;;  %3654 = vmatmul.mubr.bf16.gmra.mxu0 %v6997_v13 }
 0x281   : > { %3663 = vmatprep.mubr.bf16.mxu0 %v7004_v45 }
 0x282   : > { %v7177_v36 = vpop.f32.mrf.mxu0 }
 0x284   : > { %v7179_v53 = vpop.f32.mrf.mxu0 }
 0x286   : > { %v7181_v44 = vpop.f32.mrf.mxu0 }
 0x287   : > { %3757 = vmatmul.mubr.bf16.gmra.mxu1 %v7014_v41 }
 0x288   : > { %3766 = vmatprep.mubr.bf16.mxu1 %v7028_v46  ;;  %v7185_v54 = vpop.f32.mrf.mxu0  ;;  %3664 = vmatmul.mubr.bf16.gmra.mxu0 %v7017_v43 }
 0x289   : > { %3673 = vmatprep.mubr.bf16.mxu0 %v7022_v42 }
 0x28a   : > { %v7189_v17 = vpop.f32.mrf.mxu0 }
 0x28c   : > { %v7191_v13 = vpop.f32.mrf.mxu0 }
 0x28e   : > { %v7193_v45 = vpop.f32.mrf.mxu0 }
 0x28f   : > { %3767 = vmatmul.mubr.bf16.gmra.mxu1 %v7030_v52 }
 0x290   : > { %3776 = vmatprep.mubr.bf16.mxu1 %v7038_v35  ;;  %v7197_v34 = vpop.f32.mrf.mxu0  ;;  %3674 = vmatmul.mubr.bf16.gmra.mxu0 %v7033_v19 }
 0x292   : > { %v7200_v41 = vpop.f32.mrf.mxu0 }
 0x294   : > { %v7202_v46 = vpop.f32.mrf.mxu0 }
 0x296   : > { %v7204_v43 = vpop.f32.mrf.mxu0 }
 0x297   : > { %3777 = vmatmul.mubr.bf16.gmra.mxu1 %v7040_v20 }
 0x298   : > { %3786 = vmatprep.mubr.bf16.mxu1 %v7046_v0  ;;  %v7208_v42 = vpop.f32.mrf.mxu0 }
 0x29a   : > { %v7210_v1 = vpop.f32.mrf.mxu0 }
 0x29c   : > { %v7212_v52 = vpop.f32.mrf.mxu0 }
 0x29d   : > { %7810 = vst [vmem:[#allocation28_spill] sm:$0xff] %v7212_v52 }
 0x29e   : > { %v7214_v35 = vpop.f32.mrf.mxu0 }
 0x29f   : > { %7811 = vst [vmem:[#allocation15_spill] sm:$0xff] %v7214_v35  ;;  %3787 = vmatmul.mubr.bf16.gmra.mxu1 %v7048_v47 }
 0x2a0   : > { %3796 = vmatprep.mubr.bf16.mxu1 %v7054_v4  ;;  %v7218_v19 = vpop.f32.mrf.mxu0 }
 0x2a1   : > { %7812 = vst [vmem:[#allocation31_spill] sm:$0xff] %v7218_v19 }
 0x2a2   : > { %v7220_v60 = vpop.f32.mrf.mxu0 }
 0x2a3   : > { %7813 = vst [vmem:[#allocation12_spill] sm:$0xff] %v7220_v60 }
 0x2a4   : > { %v7222_v20 = vpop.f32.mrf.mxu0 }
 0x2a5   : > { %7814 = vst [vmem:[#allocation13_spill] sm:$0xff] %v7222_v20 }
 0x2a6   : > { %v7224_v0 = vpop.f32.mrf.mxu0 }
 0x2a7   : > { %7815 = vst [vmem:[#allocation14_spill] sm:$0xff] %v7224_v0  ;;  %v3332_v8 = vpop.f32.mrf.mxu1  ;;  %3797 = vmatmul.mubr.bf16.gmra.mxu1 %v7056_v21  ;;  %v5808_v21 = vld [vmem:[%s6191_s30 + $0x10] sm:$0xff] }
 0x2a8   : > { %v3333_v18 = vadd.f32 %v3332_v8, %v7108_v48  ;;  %3806 = vmatprep.mubr.bf16.mxu1 %v7062_v38  ;;  %v7229_v25 = vpop.f32.mrf.mxu0  ;;  %v4009_v48 = vunpack.c.l.bf16 %v5808_v21 }
 0x2a9   : > { %7816 = vst [vmem:[#allocation16_spill] sm:$0xff] %v7229_v25  ;;  %v3334_v47 = vpop.f32.mrf.mxu1  ;;  %v4010_v25 = vunpack.c.h.bf16 %v5808_v21 }
 0x2aa   : > { %v3877_v4 = vmax.f32 %v3333_v18, 0.0  ;;  %v3335_v49 = vadd.f32 %v3334_v47, %v7112_v14  ;;  %v7233_v20 = vpop.f32.mrf.mxu0 }
 0x2ab   : > { %v3336_v0 = vpop.f32.mrf.mxu1 }
 0x2ac   : > { %v3878_v60 = vmax.f32 %v3335_v49, 0.0  ;;  %v3337_v19 = vadd.f32 %v3336_v0, %v7118_v22  ;;  %v7237_v8 = vpop.f32.mrf.mxu0  ;;  %v4133_v35 = vadd.f32 %v4005_v59, %v3877_v4 }
 0x2ad   : > { %7817 = vst [vmem:[#allocation17_spill] sm:$0xff] %v7237_v8  ;;  %v3338_v38 = vpop.f32.mrf.mxu1  ;;  %v5809_v8 = vld [vmem:[%s6191_s30 + $0x20] sm:$0xff] }
 0x2ae   : > { %v4134_v18 = vadd.f32 %v4006_v5, %v3878_v60  ;;  %v3881_v52 = vmax.f32 %v3337_v19, 0.0  ;;  %v3339_v14 = vadd.f32 %v3338_v38, %v7121_v28  ;;  %v7240_v47 = vpop.f32.mrf.mxu0  ;;  %v4013_v21 = vunpack.c.l.bf16 %v5809_v8 }
 0x2af   : > { %7818 = vst [vmem:[#allocation18_spill] sm:$0xff] %v7240_v47  ;;  %v3342_v51 = vpop.f32.mrf.mxu1  ;;  %3807 = vmatmul.mubr.bf16.gmra.mxu1 %v7064_v58  ;;  %v4014_v19 = vunpack.c.h.bf16 %v5809_v8 }
 0x2b0   : > { %v5222_v49 = vpack.c.bf16 %v4134_v18, %v4133_v35  ;;  %v3882_v22 = vmax.f32 %v3339_v14, 0.0  ;;  %v3343_v0 = vadd.f32 %v3342_v51, %v7125_v62  ;;  %3816 = vmatprep.mubr.bf16.mxu1 %v7070_v30  ;;  %v7246_v4 = vpop.f32.mrf.mxu0  ;;  %v4137_v58 = vadd.f32 %v4009_v48, %v3881_v52  ;;  %v5810_v14 = vld [vmem:[%s6191_s30 + $0x30] sm:$0xff] }
 0x2b1   : > { %7819 = vst [vmem:[#allocation19_spill] sm:$0xff] %v7246_v4  ;;  %v3344_v60 = vpop.f32.mrf.mxu1  ;;  %v4017_v8 = vunpack.c.l.bf16 %v5810_v14  ;;  %v4018_v47 = vunpack.c.h.bf16 %v5810_v14 }
 0x2b2   : > { %4645 = vst [vmem:[%s7250_s18] sm:$0xff] %v5222_v49  ;;  %v4138_v28 = vadd.f32 %v4010_v25, %v3882_v22  ;;  %v3885_v35 = vmax.f32 %v3343_v0, 0.0  ;;  %v3345_v62 = vadd.f32 %v3344_v60, %v7129_v50  ;;  %v7254_v59 = vpop.f32.mrf.mxu0 }
 0x2b3   : > { %v3346_v30 = vpop.f32.mrf.mxu1 }
 0x2b4   : > { %v5224_v5 = vpack.c.bf16 %v4138_v28, %v4137_v58  ;;  %v3886_v38 = vmax.f32 %v3345_v62, 0.0  ;;  %v3347_v18 = vadd.f32 %v3346_v30, %v7131_v23  ;;  %v7258_v51 = vpop.f32.mrf.mxu0  ;;  %v4141_v52 = vadd.f32 %v4013_v21, %v3885_v35  ;;  %v5811_v58 = vld [vmem:[%s6191_s30 + $0x40] sm:$0xff] }
 0x2b5   : > { %v3348_v4 = vpop.f32.mrf.mxu1  ;;  %v4021_v28 = vunpack.c.l.bf16 %v5811_v58  ;;  %v4022_v35 = vunpack.c.h.bf16 %v5811_v58  ;;  %v5813_v58 = vld [vmem:[%s6191_s30 + $0x60] sm:$0xff] }
 0x2b6   : > { %4647 = vst [vmem:[%s7250_s18 + $0x10] sm:$0xff] %v5224_v5  ;;  %v4142_v25 = vadd.f32 %v4014_v19, %v3886_v38  ;;  %v3889_v48 = vmax.f32 %v3347_v18, 0.0  ;;  %v3349_v50 = vadd.f32 %v3348_v4, %v7133_v24  ;;  %v7262_v49 = vpop.f32.mrf.mxu0  ;;  %v5812_v18 = vld [vmem:[%s6191_s30 + $0x50] sm:$0xff] }
 0x2b7   : > { %v3352_v22 = vpop.f32.mrf.mxu1  ;;  %3817 = vmatmul.mubr.bf16.gmra.mxu1 %v7072_v6  ;;  %v4025_v14 = vunpack.c.l.bf16 %v5812_v18 }
 0x2b8   : > { %v5226_v23 = vpack.c.bf16 %v4142_v25, %v4141_v52  ;;  %v3890_v0 = vmax.f32 %v3349_v50, 0.0  ;;  %v3353_v60 = vadd.f32 %v3352_v22, %v7137_v57  ;;  %3826 = vmatprep.mubr.bf16.mxu1 %v7078_v39  ;;  %v7268_v21 = vpop.f32.mrf.mxu0  ;;  %v4145_v24 = vadd.f32 %v4017_v8, %v3889_v48 }
 0x2b9   : > { %v3354_v19 = vpop.f32.mrf.mxu1  ;;  %v4026_v50 = vunpack.c.h.bf16 %v5812_v18 }
 0x2ba   : > { %4649 = vst [vmem:[%s7250_s18 + $0x20] sm:$0xff] %v5226_v23  ;;  %v4146_v4 = vadd.f32 %v4018_v47, %v3890_v0  ;;  %v3893_v62 = vmax.f32 %v3353_v60, 0.0  ;;  %v3355_v6 = vadd.f32 %v3354_v19, %v7141_v55  ;;  %v7272_v30 = vpop.f32.mrf.mxu0  ;;  %v4029_v19 = vunpack.c.l.bf16 %v5813_v58 }
 0x2bb   : > { %v3356_v5 = vpop.f32.mrf.mxu1 }
 0x2bc   : > { %v5228_v57 = vpack.c.bf16 %v4146_v4, %v4145_v24  ;;  %v3894_v38 = vmax.f32 %v3355_v6, 0.0  ;;  %v3357_v39 = vadd.f32 %v3356_v5, %v7143_v10  ;;  %v7276_v52 = vpop.f32.mrf.mxu0  ;;  %v4149_v8 = vadd.f32 %v4021_v28, %v3893_v62 }
 0x2bd   : > { %v3358_v25 = vpop.f32.mrf.mxu1  ;;  %v4030_v24 = vunpack.c.h.bf16 %v5813_v58 }
 0x2be   : > { %4651 = vst [vmem:[%s7250_s18 + $0x30] sm:$0xff] %v5228_v57  ;;  %v4150_v47 = vadd.f32 %v4022_v35, %v3894_v38  ;;  %v3897_v48 = vmax.f32 %v3357_v39, 0.0  ;;  %v3359_v55 = vadd.f32 %v3358_v25, %v7145_v56  ;;  %v7280_v22 = vpop.f32.mrf.mxu0  ;;  %v5814_v38 = vld [vmem:[%s6191_s30 + $0x70] sm:$0xff] }
 0x2bf   : > { %v3362_v23 = vpop.f32.mrf.mxu1  ;;  %3827 = vmatmul.mubr.bf16.gmra.mxu1 %v7080_v33  ;;  %v4033_v39 = vunpack.c.l.bf16 %v5814_v38 }
 0x2c0   : > { %v5230_v10 = vpack.c.bf16 %v4150_v47, %v4149_v8  ;;  %v3898_v0 = vmax.f32 %v3359_v55, 0.0  ;;  %v3363_v60 = vadd.f32 %v3362_v23, %v7149_v3  ;;  %3836 = vmatprep.mubr.bf16.mxu1 %v7086_v2  ;;  %v7286_v28 = vpop.f32.mrf.mxu0  ;;  %v4153_v56 = vadd.f32 %v4025_v14, %v3897_v48 }
 0x2c1   : > { %v3364_v35 = vpop.f32.mrf.mxu1  ;;  %v4034_v8 = vunpack.c.h.bf16 %v5814_v38 }
 0x2c2   : > { %4653 = vst [vmem:[%s7250_s18 + $0x40] sm:$0xff] %v5230_v10  ;;  %v4154_v4 = vadd.f32 %v4026_v50, %v3898_v0  ;;  %v3901_v62 = vmax.f32 %v3363_v60, 0.0  ;;  %v3365_v33 = vadd.f32 %v3364_v35, %v7153_v37  ;;  %v7290_v6 = vpop.f32.mrf.mxu0  ;;  %v5815_v0 = vld [vmem:[%s6191_s30 + $0x80] sm:$0xff] }
 0x2c3   : > { %v3366_v5 = vpop.f32.mrf.mxu1  ;;  %v4037_v60 = vunpack.c.l.bf16 %v5815_v0  ;;  %v4038_v35 = vunpack.c.h.bf16 %v5815_v0 }
 0x2c4   : > { %v5232_v3 = vpack.c.bf16 %v4154_v4, %v4153_v56  ;;  %v3902_v57 = vmax.f32 %v3365_v33, 0.0  ;;  %v3367_v2 = vadd.f32 %v3366_v5, %v7155_v9  ;;  %v7294_v18 = vpop.f32.mrf.mxu0  ;;  %v4157_v14 = vadd.f32 %v4029_v19, %v3901_v62  ;;  %v5816_v5 = vld [vmem:[%s6191_s30 + $0x90] sm:$0xff] }
 0x2c5   : > { %v3368_v25 = vpop.f32.mrf.mxu1  ;;  %v4042_v38 = vunpack.c.h.bf16 %v5816_v5 }
 0x2c6   : > { %4655 = vst [vmem:[%s7250_s18 + $0x50] sm:$0xff] %v5232_v3  ;;  %v4158_v50 = vadd.f32 %v4030_v24, %v3902_v57  ;;  %v3905_v47 = vmax.f32 %v3367_v2, 0.0  ;;  %v3369_v37 = vadd.f32 %v3368_v25, %v7157_v11  ;;  %v7298_v48 = vpop.f32.mrf.mxu0  ;;  %v4041_v3 = vunpack.c.l.bf16 %v5816_v5 }
 0x2c7   : > { %v3372_v55 = vpop.f32.mrf.mxu1  ;;  %3837 = vmatmul.mubr.bf16.gmra.mxu1 %v7088_v31 }
 0x2c8   : > { %v5234_v9 = vpack.c.bf16 %v4158_v50, %v4157_v14  ;;  %v3906_v23 = vmax.f32 %v3369_v37, 0.0  ;;  %v3373_v10 = vadd.f32 %v3372_v55, %v7161_v27  ;;  %3846 = vmatprep.mubr.bf16.mxu1 %v7094_v32  ;;  %v7304_v58 = vpop.f32.mrf.mxu0  ;;  %v4161_v11 = vadd.f32 %v4033_v39, %v3905_v47  ;;  %v5817_v55 = vld [vmem:[%s6191_s30 + $0xa0] sm:$0xff] }
 0x2c9   : > { %v3374_v19 = vpop.f32.mrf.mxu1  ;;  %v4046_v0 = vunpack.c.h.bf16 %v5817_v55 }
 0x2ca   : > { %4657 = vst [vmem:[%s7250_s18 + $0x60] sm:$0xff] %v5234_v9  ;;  %v4162_v24 = vadd.f32 %v4034_v8, %v3906_v23  ;;  %v3909_v56 = vmax.f32 %v3373_v10, 0.0  ;;  %v3375_v31 = vadd.f32 %v3374_v19, %v7165_v63  ;;  %v7308_v4 = vpop.f32.mrf.mxu0  ;;  %v4045_v9 = vunpack.c.l.bf16 %v5817_v55 }
 0x2cb   : > { %v3376_v62 = vpop.f32.mrf.mxu1 }
 0x2cc   : > { %v5236_v27 = vpack.c.bf16 %v4162_v24, %v4161_v11  ;;  %v3910_v33 = vmax.f32 %v3375_v31, 0.0  ;;  %v3377_v32 = vadd.f32 %v3376_v62, %v7167_v12  ;;  %v7312_v57 = vpop.f32.mrf.mxu0  ;;  %v4165_v39 = vadd.f32 %v4037_v60, %v3909_v56  ;;  %v5818_v56 = vld [vmem:[%s6191_s30 + $0xb0] sm:$0xff] }
 0x2cd   : > { %v3378_v2 = vpop.f32.mrf.mxu1  ;;  %v4049_v31 = vunpack.c.l.bf16 %v5818_v56 }
 0x2ce   : > { %4659 = vst [vmem:[%s7250_s18 + $0x70] sm:$0xff] %v5236_v27  ;;  %v4166_v25 = vadd.f32 %v4038_v35, %v3910_v33  ;;  %v3913_v8 = vmax.f32 %v3377_v32, 0.0  ;;  %v3379_v63 = vadd.f32 %v3378_v2, %v7169_v29  ;;  %v7316_v14 = vpop.f32.mrf.mxu0  ;;  %v4050_v33 = vunpack.c.h.bf16 %v5818_v56 }
 0x2cf   : > { %v3382_v50 = vpop.f32.mrf.mxu1  ;;  %3847 = vmatmul.mubr.bf16.gmra.mxu1 %v7096_v61 }
 0x2d0   : > { %v5238_v12 = vpack.c.bf16 %v4166_v25, %v4165_v39  ;;  %v3914_v47 = vmax.f32 %v3379_v63, 0.0  ;;  %v3383_v37 = vadd.f32 %v3382_v50, %v7173_v40  ;;  %3856 = vmatprep.mubr.bf16.mxu1 %v7102_v16  ;;  %v7322_v23 = vpop.f32.mrf.mxu0  ;;  %v4169_v29 = vadd.f32 %v4041_v3, %v3913_v8  ;;  %v5819_v8 = vld [vmem:[%s6191_s30 + $0xc0] sm:$0xff] }
 0x2d1   : > { %v3384_v10 = vpop.f32.mrf.mxu1  ;;  %v4053_v63 = vunpack.c.l.bf16 %v5819_v8 }
 0x2d2   : > { %4661 = vst [vmem:[%s7250_s18 + $0x80] sm:$0xff] %v5238_v12  ;;  %v4170_v60 = vadd.f32 %v4042_v38, %v3914_v47  ;;  %v3917_v19 = vmax.f32 %v3383_v37, 0.0  ;;  %v3385_v61 = vadd.f32 %v3384_v10, %v7177_v36  ;;  %v7326_v35 = vpop.f32.mrf.mxu0  ;;  %v4054_v12 = vunpack.c.h.bf16 %v5819_v8 }
 0x2d3   : > { %v3386_v11 = vpop.f32.mrf.mxu1 }
 0x2d4   : > { %v5240_v40 = vpack.c.bf16 %v4170_v60, %v4169_v29  ;;  %v3918_v24 = vmax.f32 %v3385_v61, 0.0  ;;  %v3387_v16 = vadd.f32 %v3386_v11, %v7179_v53  ;;  %v7330_v62 = vpop.f32.mrf.mxu0  ;;  %v4173_v32 = vadd.f32 %v4045_v9, %v3917_v19  ;;  %v5820_v29 = vld [vmem:[%s6191_s30 + $0xd0] sm:$0xff] }
 0x2d5   : > { %v3388_v27 = vpop.f32.mrf.mxu1  ;;  %v4057_v60 = vunpack.c.l.bf16 %v5820_v29  ;;  %v4058_v61 = vunpack.c.h.bf16 %v5820_v29 }
 0x2d6   : > { %4663 = vst [vmem:[%s7250_s18 + $0x90] sm:$0xff] %v5240_v40  ;;  %v4174_v5 = vadd.f32 %v4046_v0, %v3918_v24  ;;  %v3921_v3 = vmax.f32 %v3387_v16, 0.0  ;;  %v3389_v36 = vadd.f32 %v3388_v27, %v7181_v44  ;;  %v7334_v2 = vpop.f32.mrf.mxu0 }
 0x2d7   : > { %v3392_v38 = vpop.f32.mrf.mxu1  ;;  %3857 = vmatmul.mubr.bf16.gmra.mxu1 %v7104_v26 }
 0x2d8   : > { %v5242_v53 = vpack.c.bf16 %v4174_v5, %v4173_v32  ;;  %v3922_v39 = vmax.f32 %v3389_v36, 0.0  ;;  %v3393_v25 = vadd.f32 %v3392_v38, %v7185_v54  ;;  %3866 = vmatprep.mubr.bf16.mxu1 %v7114_v15  ;;  %v7340_v47 = vpop.f32.mrf.mxu0  ;;  %v4177_v44 = vadd.f32 %v4049_v31, %v3921_v3  ;;  %v5821_v32 = vld [vmem:[%s6191_s30 + $0xe0] sm:$0xff] }
 0x2d9   : > { %v3394_v50 = vpop.f32.mrf.mxu1  ;;  %v4061_v5 = vunpack.c.l.bf16 %v5821_v32  ;;  %v4062_v36 = vunpack.c.h.bf16 %v5821_v32 }
 0x2da   : > { %4665 = vst [vmem:[%s7250_s18 + $0xa0] sm:$0xff] %v5242_v53  ;;  %v4178_v37 = vadd.f32 %v4050_v33, %v3922_v39  ;;  %v3925_v55 = vmax.f32 %v3393_v25, 0.0  ;;  %v3395_v26 = vadd.f32 %v3394_v50, %v7189_v17  ;;  %v7344_v10 = vpop.f32.mrf.mxu0 }
 0x2db   : > { %v3396_v9 = vpop.f32.mrf.mxu1 }
 0x2dc   : > { %v5244_v54 = vpack.c.bf16 %v4178_v37, %v4177_v44  ;;  %v3926_v0 = vmax.f32 %v3395_v26, 0.0  ;;  %v3397_v15 = vadd.f32 %v3396_v9, %v7191_v13  ;;  %v7348_v11 = vpop.f32.mrf.mxu0  ;;  %v4181_v40 = vadd.f32 %v4053_v63, %v3925_v55 }
 0x2dd   : > { %v3398_v19 = vpop.f32.mrf.mxu1 }
 0x2de   : > { %4667 = vst [vmem:[%s7250_s18 + $0xb0] sm:$0xff] %v5244_v54  ;;  %v4182_v24 = vadd.f32 %v4054_v12, %v3926_v0  ;;  %v3929_v16 = vmax.f32 %v3397_v15, 0.0  ;;  %v3399_v17 = vadd.f32 %v3398_v19, %v7193_v45  ;;  %v7352_v31 = vpop.f32.mrf.mxu0  ;;  %v5822_v12 = vld [vmem:[%s6191_s30 + $0xf0] sm:$0xff] }
 0x2df   : > { %v3402_v56 = vpop.f32.mrf.mxu1  ;;  %3867 = vmatmul.mubr.bf16.gmra.mxu1 %v7116_v7  ;;  %v4065_v44 = vunpack.c.l.bf16 %v5822_v12  ;;  %v4066_v55 = vunpack.c.h.bf16 %v5822_v12 }
 0x2e0   : > { %v5246_v13 = vpack.c.bf16 %v4182_v24, %v4181_v40  ;;  %v3930_v27 = vmax.f32 %v3399_v17, 0.0  ;;  %v3403_v33 = vadd.f32 %v3402_v56, %v7197_v34  ;;  %v7357_v38 = vpop.f32.mrf.mxu0  ;;  %v4185_v53 = vadd.f32 %v4057_v60, %v3929_v16 }
 0x2e1   : > { %v3404_v3 = vpop.f32.mrf.mxu1 }
 0x2e2   : > { %4669 = vst [vmem:[%s7250_s18 + $0xc0] sm:$0xff] %v5246_v13  ;;  %v4186_v45 = vadd.f32 %v4058_v61, %v3930_v27  ;;  %v3933_v39 = vmax.f32 %v3403_v33, 0.0  ;;  %v3405_v25 = vadd.f32 %v3404_v3, %v7200_v41  ;;  %v7361_v7 = vpop.f32.mrf.mxu0  ;;  %v5823_v61 = vld [vmem:[%s6191_s30 + $0x100] sm:$0xff] }
 0x2e3   : > { %v3406_v8 = vpop.f32.mrf.mxu1  ;;  %v4069_v40 = vunpack.c.l.bf16 %v5823_v61  ;;  %v4070_v16 = vunpack.c.h.bf16 %v5823_v61 }
 0x2e4   : > { %v5248_v63 = vpack.c.bf16 %v4186_v45, %v4185_v53  ;;  %v3934_v50 = vmax.f32 %v3405_v25, 0.0  ;;  %v3407_v34 = vadd.f32 %v3406_v8, %v7202_v46  ;;  %v7365_v26 = vpop.f32.mrf.mxu0  ;;  %v4189_v9 = vadd.f32 %v4061_v5, %v3933_v39  ;;  %v5824_v53 = vld [vmem:[%s6191_s30 + $0x110] sm:$0xff] }
 0x2e5   : > { %v3408_v37 = vpop.f32.mrf.mxu1  ;;  %v4073_v45 = vunpack.c.l.bf16 %v5824_v53  ;;  %v4074_v25 = vunpack.c.h.bf16 %v5824_v53 }
 0x2e6   : > { %4671 = vst [vmem:[%s7250_s18 + $0xd0] sm:$0xff] %v5248_v63  ;;  %v4190_v54 = vadd.f32 %v4062_v36, %v3934_v50  ;;  %v3937_v0 = vmax.f32 %v3407_v34, 0.0  ;;  %v3409_v41 = vadd.f32 %v3408_v37, %v7204_v43  ;;  %v7369_v29 = vpop.f32.mrf.mxu0 }
 0x2e7   : > { %v3412_v15 = vpop.f32.mrf.mxu1 }
 0x2e8   : > { %v5250_v60 = vpack.c.bf16 %v4190_v54, %v4189_v9  ;;  %v3938_v19 = vmax.f32 %v3409_v41, 0.0  ;;  %v3413_v46 = vadd.f32 %v3412_v15, %v7208_v42  ;;  %v7373_v17 = vpop.f32.mrf.mxu0  ;;  %v4193_v56 = vadd.f32 %v4065_v44, %v3937_v0  ;;  %v7820_v42 = vld [vmem:[#allocation28_spill] sm:$0xff]  ;;  %v7822_v54 = vld [vmem:[#allocation31_spill] sm:$0xff] }
 0x2e9   : > { %v3414_v24 = vpop.f32.mrf.mxu1  ;;  %v5825_v41 = vld [vmem:[%s6191_s30 + $0x120] sm:$0xff] }
 0x2ea   : > { %4673 = vst [vmem:[%s7250_s18 + $0xe0] sm:$0xff] %v5250_v60  ;;  %v4194_v13 = vadd.f32 %v4066_v55, %v3938_v19  ;;  %v3941_v27 = vmax.f32 %v3413_v46, 0.0  ;;  %v3415_v43 = vadd.f32 %v3414_v24, %v7210_v1  ;;  %v7377_v32 = vpop.f32.mrf.mxu0  ;;  %v7821_v1 = vld [vmem:[#allocation15_spill] sm:$0xff]  ;;  %v4077_v15 = vunpack.c.l.bf16 %v5825_v41 }
 0x2eb   : > { %v3416_v33 = vpop.f32.mrf.mxu1  ;;  %v4078_v19 = vunpack.c.h.bf16 %v5825_v41  ;;  %v5827_v41 = vld [vmem:[%s6191_s30 + $0x140] sm:$0xff] }
 0x2ec   : > { %v5252_v5 = vpack.c.bf16 %v4194_v13, %v4193_v56  ;;  %v3942_v3 = vmax.f32 %v3415_v43, 0.0  ;;  %v3417_v36 = vadd.f32 %v3416_v33, %v7820_v42  ;;  %v7381_v8 = vpop.f32.mrf.mxu0  ;;  %v4197_v63 = vadd.f32 %v4069_v40, %v3941_v27  ;;  %v5826_v42 = vld [vmem:[%s6191_s30 + $0x130] sm:$0xff] }
 0x2ed   : > { %v3418_v39 = vpop.f32.mrf.mxu1 }
 0x2ee   : > { %4675 = vst [vmem:[%s7250_s18 + $0xf0] sm:$0xff] %v5252_v5  ;;  %v4198_v50 = vadd.f32 %v4070_v16, %v3942_v3  ;;  %v3945_v34 = vmax.f32 %v3417_v36, 0.0  ;;  %v3419_v12 = vadd.f32 %v3418_v39, %v7821_v1  ;;  %v7385_v37 = vpop.f32.mrf.mxu0  ;;  %v7823_v16 = vld [vmem:[#allocation12_spill] sm:$0xff]  ;;  %v7824_v5 = vld [vmem:[#allocation13_spill] sm:$0xff]  ;;  %v4081_v36 = vunpack.c.l.bf16 %v5826_v42 }
 0x2ef   : > { %v3422_v44 = vpop.f32.mrf.mxu1  ;;  %v4082_v39 = vunpack.c.h.bf16 %v5826_v42 }
 0x2f0   : > { %v5254_v55 = vpack.c.bf16 %v4198_v50, %v4197_v63  ;;  %v3946_v9 = vmax.f32 %v3419_v12, 0.0  ;;  %v3423_v0 = vadd.f32 %v3422_v44, %v7822_v54  ;;  %v7389_v46 = vpop.f32.mrf.mxu0  ;;  %v4201_v61 = vadd.f32 %v4073_v45, %v3945_v34  ;;  %v7825_v34 = vld [vmem:[#allocation14_spill] sm:$0xff]  ;;  %v7826_v54 = vld [vmem:[#allocation16_spill] sm:$0xff] }
 0x2f1   : > { %v3424_v60 = vpop.f32.mrf.mxu1 }
 0x2f2   : > { %4677 = vst [vmem:[%s7250_s18 + $0x100] sm:$0xff] %v5254_v55  ;;  %v4202_v40 = vadd.f32 %v4074_v25, %v3946_v9  ;;  %v3949_v24 = vmax.f32 %v3423_v0, 0.0  ;;  %v3425_v56 = vadd.f32 %v3424_v60, %v7823_v16  ;;  %v7393_v27 = vpop.f32.mrf.mxu0  ;;  %v4085_v60 = vunpack.c.l.bf16 %v5827_v41 }
 0x2f3   : > { %v3426_v13 = vpop.f32.mrf.mxu1 }
 0x2f4   : > { %v5256_v43 = vpack.c.bf16 %v4202_v40, %v4201_v61  ;;  %v3950_v33 = vmax.f32 %v3425_v56, 0.0  ;;  %v3427_v3 = vadd.f32 %v3426_v13, %v7824_v5  ;;  %v7397_v63 = vpop.f32.mrf.mxu0  ;;  %v4205_v45 = vadd.f32 %v4077_v15, %v3949_v24 }
 0x2f5   : > { %v3428_v53 = vpop.f32.mrf.mxu1  ;;  %v4086_v40 = vunpack.c.h.bf16 %v5827_v41  ;;  %v7829_v41 = vld [vmem:[#allocation19_spill] sm:$0xff] }
 0x2f6   : > { %4679 = vst [vmem:[%s7250_s18 + $0x110] sm:$0xff] %v5256_v43  ;;  %v4206_v25 = vadd.f32 %v4078_v19, %v3950_v33  ;;  %v3953_v50 = vmax.f32 %v3427_v3, 0.0  ;;  %v3429_v1 = vadd.f32 %v3428_v53, %v7825_v34  ;;  %v7401_v44 = vpop.f32.mrf.mxu0  ;;  %v7827_v3 = vld [vmem:[#allocation17_spill] sm:$0xff]  ;;  %v5828_v53 = vld [vmem:[%s6191_s30 + $0x150] sm:$0xff] }
 0x2f7   : > { %v3432_v12 = vpop.f32.mrf.mxu1  ;;  %v4090_v34 = vunpack.c.h.bf16 %v5828_v53 }
 0x2f8   : > { %v5258_v55 = vpack.c.bf16 %v4206_v25, %v4205_v45  ;;  %v3954_v9 = vmax.f32 %v3429_v1, 0.0  ;;  %v3433_v0 = vadd.f32 %v3432_v12, %v7826_v54  ;;  %v7405_v16 = vpop.f32.mrf.mxu0  ;;  %v4209_v15 = vadd.f32 %v4081_v36, %v3953_v50 }
 0x2f9   : > { %v3434_v61 = vpop.f32.mrf.mxu1  ;;  %v4089_v45 = vunpack.c.l.bf16 %v5828_v53 }
 0x2fa   : > { %4681 = vst [vmem:[%s7250_s18 + $0x120] sm:$0xff] %v5258_v55  ;;  %v4210_v19 = vadd.f32 %v4082_v39, %v3954_v9  ;;  %v3957_v24 = vmax.f32 %v3433_v0, 0.0  ;;  %v3435_v56 = vadd.f32 %v3434_v61, %v7233_v20  ;;  %v7409_v43 = vpop.f32.mrf.mxu0  ;;  %v7828_v20 = vld [vmem:[#allocation18_spill] sm:$0xff] }
 0x2fb   : > { %v3436_v13 = vpop.f32.mrf.mxu1 }
 0x2fc   : > { %v5260_v33 = vpack.c.bf16 %v4210_v19, %v4209_v15  ;;  %v3958_v5 = vmax.f32 %v3435_v56, 0.0  ;;  %v3437_v42 = vadd.f32 %v3436_v13, %v7827_v3  ;;  %v7413_v1 = vpop.f32.mrf.mxu0  ;;  %v4213_v36 = vadd.f32 %v4085_v60, %v3957_v24  ;;  %v5829_v15 = vld [vmem:[%s6191_s30 + $0x160] sm:$0xff] }
 0x2fd   : > { %v3438_v25 = vpop.f32.mrf.mxu1  ;;  %v4093_v19 = vunpack.c.l.bf16 %v5829_v15  ;;  %v4094_v13 = vunpack.c.h.bf16 %v5829_v15 }
 0x2fe   : > { %4683 = vst [vmem:[%s7250_s18 + $0x130] sm:$0xff] %v5260_v33  ;;  %v4214_v39 = vadd.f32 %v4086_v40, %v3958_v5  ;;  %v3961_v50 = vmax.f32 %v3437_v42, 0.0  ;;  %v3439_v12 = vadd.f32 %v3438_v25, %v7828_v20  ;;  %v7417_v9 = vpop.f32.mrf.mxu0 }
 0x2ff   : > { %v3442_v55 = vpop.f32.mrf.mxu1 }
 0x300   : > { %v5262_v54 = vpack.c.bf16 %v4214_v39, %v4213_v36  ;;  %v3962_v0 = vmax.f32 %v3439_v12, 0.0  ;;  %v3443_v61 = vadd.f32 %v3442_v55, %v7829_v41  ;;  %v7421_v3 = vpop.f32.mrf.mxu0  ;;  %v4217_v60 = vadd.f32 %v4089_v45, %v3961_v50  ;;  %v5830_v39 = vld [vmem:[%s6191_s30 + $0x170] sm:$0xff] }
 0x301   : > { %v3444_v56 = vpop.f32.mrf.mxu1  ;;  %v4097_v20 = vunpack.c.l.bf16 %v5830_v39  ;;  %v4098_v55 = vunpack.c.h.bf16 %v5830_v39 }
 0x302   : > { %4685 = vst [vmem:[%s7250_s18 + $0x140] sm:$0xff] %v5262_v54  ;;  %v4218_v40 = vadd.f32 %v4090_v34, %v3962_v0  ;;  %v3965_v24 = vmax.f32 %v3443_v61, 0.0  ;;  %v3445_v33 = vadd.f32 %v3444_v56, %v7254_v59  ;;  %v7425_v42 = vpop.f32.mrf.mxu0  ;;  %v5831_v56 = vld [vmem:[%s6191_s30 + $0x180] sm:$0xff] }
 0x303   : > { %v3446_v5 = vpop.f32.mrf.mxu1 }
 0x304   : > { %v5264_v53 = vpack.c.bf16 %v4218_v40, %v4217_v60  ;;  %v3966_v25 = vmax.f32 %v3445_v33, 0.0  ;;  %v3447_v36 = vadd.f32 %v3446_v5, %v7258_v51  ;;  %v7429_v41 = vpop.f32.mrf.mxu0  ;;  %v4221_v45 = vadd.f32 %v4093_v19, %v3965_v24 }
 0x305   : > { %v3448_v12 = vpop.f32.mrf.mxu1  ;;  %v4101_v60 = vunpack.c.l.bf16 %v5831_v56  ;;  %v4102_v33 = vunpack.c.h.bf16 %v5831_v56  ;;  %v5833_v56 = vld [vmem:[%s6191_s30 + $0x1a0] sm:$0xff] }
 0x306   : > { %4687 = vst [vmem:[%s7250_s18 + $0x150] sm:$0xff] %v5264_v53  ;;  %v4222_v34 = vadd.f32 %v4094_v13, %v3966_v25  ;;  %v3969_v50 = vmax.f32 %v3447_v36, 0.0  ;;  %v3449_v59 = vadd.f32 %v3448_v12, %v7262_v49  ;;  %v7433_v0 = vpop.f32.mrf.mxu0 }
 0x307   : > { %v3452_v54 = vpop.f32.mrf.mxu1 }
 0x308   : > { %v5266_v61 = vpack.c.bf16 %v4222_v34, %v4221_v45  ;;  %v3970_v15 = vmax.f32 %v3449_v59, 0.0  ;;  %v3453_v51 = vadd.f32 %v3452_v54, %v7268_v21  ;;  %v7437_v5 = vpop.f32.mrf.mxu0  ;;  %v4225_v19 = vadd.f32 %v4097_v20, %v3969_v50  ;;  %v5832_v21 = vld [vmem:[%s6191_s30 + $0x190] sm:$0xff] }
 0x309   : > { %v3454_v40 = vpop.f32.mrf.mxu1  ;;  %v4105_v12 = vunpack.c.l.bf16 %v5832_v21  ;;  %v4106_v59 = vunpack.c.h.bf16 %v5832_v21 }
 0x30a   : > { %4689 = vst [vmem:[%s7250_s18 + $0x160] sm:$0xff] %v5266_v61  ;;  %v4226_v13 = vadd.f32 %v4098_v55, %v3970_v15  ;;  %v3973_v24 = vmax.f32 %v3453_v51, 0.0  ;;  %v3455_v49 = vadd.f32 %v3454_v40, %v7272_v30  ;;  %v7443_v45 = vpop.f32.mrf.mxu0  ;;  %v4109_v40 = vunpack.c.l.bf16 %v5833_v56 }
 0x30b   : > { %v3456_v53 = vpop.f32.mrf.mxu1 }
 0x30c   : > { %v5268_v25 = vpack.c.bf16 %v4226_v13, %v4225_v19  ;;  %v3974_v36 = vmax.f32 %v3455_v49, 0.0  ;;  %v3457_v39 = vadd.f32 %v3456_v53, %v7276_v52  ;;  %v4229_v54 = vadd.f32 %v4101_v60, %v3973_v24  ;;  %v7448_v52 = vpop.f32.mrf.mxu0 }
 0x30d   : > { %v3458_v34 = vpop.f32.mrf.mxu1  ;;  %v4110_v13 = vunpack.c.h.bf16 %v5833_v56 }
 0x30e   : > { %4691 = vst [vmem:[%s7250_s18 + $0x170] sm:$0xff] %v5268_v25  ;;  %v4230_v20 = vadd.f32 %v4102_v33, %v3974_v36  ;;  %v3977_v55 = vmax.f32 %v3457_v39, 0.0  ;;  %v3459_v50 = vadd.f32 %v3458_v34, %v7280_v22  ;;  %v5834_v39 = vld [vmem:[%s6191_s30 + $0x1b0] sm:$0xff] }
 0x30f   : > { %v3462_v30 = vpop.f32.mrf.mxu1  ;;  %v4113_v21 = vunpack.c.l.bf16 %v5834_v39 }
 0x310   : > { %v5270_v61 = vpack.c.bf16 %v4230_v20, %v4229_v54  ;;  %v3978_v15 = vmax.f32 %v3459_v50, 0.0  ;;  %v3463_v51 = vadd.f32 %v3462_v30, %v7286_v28  ;;  %v4233_v49 = vadd.f32 %v4105_v12, %v3977_v55  ;;  %v7454_v28 = vpop.f32.mrf.mxu0 }
 0x311   : > { %v3464_v19 = vpop.f32.mrf.mxu1  ;;  %v4114_v54 = vunpack.c.h.bf16 %v5834_v39 }
 0x312   : > { %4693 = vst [vmem:[%s7250_s18 + $0x180] sm:$0xff] %v5270_v61  ;;  %v4234_v60 = vadd.f32 %v4106_v59, %v3978_v15  ;;  %v3981_v33 = vmax.f32 %v3463_v51, 0.0  ;;  %v3465_v24 = vadd.f32 %v3464_v19, %v7290_v6  ;;  %v5835_v15 = vld [vmem:[%s6191_s30 + $0x1c0] sm:$0xff] }
 0x313   : > { %v3466_v22 = vpop.f32.mrf.mxu1  ;;  %v4117_v51 = vunpack.c.l.bf16 %v5835_v15  ;;  %v4118_v19 = vunpack.c.h.bf16 %v5835_v15 }
 0x314   : > { %v5272_v53 = vpack.c.bf16 %v4234_v60, %v4233_v49  ;;  %v3982_v25 = vmax.f32 %v3465_v24, 0.0  ;;  %v3467_v36 = vadd.f32 %v3466_v22, %v7294_v18  ;;  %v4237_v20 = vadd.f32 %v4109_v40, %v3981_v33  ;;  %v7460_v18 = vpop.f32.mrf.mxu0 }
 0x315   : > { %v3468_v34 = vpop.f32.mrf.mxu1 }
 0x316   : > { %4695 = vst [vmem:[%s7250_s18 + $0x190] sm:$0xff] %v5272_v53  ;;  %v4238_v12 = vadd.f32 %v4110_v13, %v3982_v25  ;;  %v3985_v59 = vmax.f32 %v3467_v36, 0.0  ;;  %v3469_v55 = vadd.f32 %v3468_v34, %v7298_v48  ;;  %v5836_v53 = vld [vmem:[%s6191_s30 + $0x1d0] sm:$0xff] }
 0x317   : > { %v3472_v6 = vpop.f32.mrf.mxu1  ;;  %v4121_v25 = vunpack.c.l.bf16 %v5836_v53  ;;  %v4122_v39 = vunpack.c.h.bf16 %v5836_v53 }
 0x318   : > { %v5274_v50 = vpack.c.bf16 %v4238_v12, %v4237_v20  ;;  %v3986_v30 = vmax.f32 %v3469_v55, 0.0  ;;  %v3473_v61 = vadd.f32 %v3472_v6, %v7304_v58  ;;  %v4241_v49 = vadd.f32 %v4113_v21, %v3985_v59  ;;  %v7466_v58 = vpop.f32.mrf.mxu0  ;;  %v5837_v6 = vld [vmem:[%s6191_s30 + $0x1e0] sm:$0xff] }
 0x319   : > { %v3474_v56 = vpop.f32.mrf.mxu1 }
 0x31a   : > { %4697 = vst [vmem:[%s7250_s18 + $0x1a0] sm:$0xff] %v5274_v50  ;;  %v4242_v40 = vadd.f32 %v4114_v54, %v3986_v30  ;;  %v3989_v13 = vmax.f32 %v3473_v61, 0.0  ;;  %v3475_v60 = vadd.f32 %v3474_v56, %v7308_v4  ;;  %v4125_v50 = vunpack.c.l.bf16 %v5837_v6 }
 0x31b   : > { %v3476_v48 = vpop.f32.mrf.mxu1  ;;  %v4126_v61 = vunpack.c.h.bf16 %v5837_v6 }
 0x31c   : > { %v5276_v33 = vpack.c.bf16 %v4242_v40, %v4241_v49  ;;  %v3990_v24 = vmax.f32 %v3475_v60, 0.0  ;;  %v3477_v22 = vadd.f32 %v3476_v48, %v7312_v57  ;;  %v4245_v34 = vadd.f32 %v4117_v51, %v3989_v13  ;;  %v7472_v57 = vpop.f32.mrf.mxu0  ;;  %v5838_v60 = vld [vmem:[%s6191_s30 + $0x1f0] sm:$0xff] }
 0x31d   : > { %v3478_v36 = vpop.f32.mrf.mxu1  ;;  %v4129_v48 = vunpack.c.l.bf16 %v5838_v60 }
 0x31e   : > { %4699 = vst [vmem:[%s7250_s18 + $0x1b0] sm:$0xff] %v5276_v33  ;;  %v4246_v21 = vadd.f32 %v4118_v19, %v3990_v24  ;;  %v3993_v54 = vmax.f32 %v3477_v22, 0.0  ;;  %v3479_v20 = vadd.f32 %v3478_v36, %v7316_v14  ;;  %v4130_v24 = vunpack.c.h.bf16 %v5838_v60 }
 0x31f   : > { %v3482_v4 = vpop.f32.mrf.mxu1 }
 0x320   : > { %v5278_v12 = vpack.c.bf16 %v4246_v21, %v4245_v34  ;;  %v3994_v59 = vmax.f32 %v3479_v20, 0.0  ;;  %v3483_v55 = vadd.f32 %v3482_v4, %v7322_v23  ;;  %v4249_v15 = vadd.f32 %v4121_v25, %v3993_v54  ;;  %v7478_v23 = vpop.f32.mrf.mxu0  ;;  %v5839_v54 = vld [vmem:[%s6191_s30 + $0x8] sm:$0xff] }
 0x321   : > { %v3484_v30 = vpop.f32.mrf.mxu1  ;;  %v4007_v20 = vunpack.c.l.bf16 %v5839_v54 }
 0x322   : > { %4701 = vst [vmem:[%s7250_s18 + $0x1c0] sm:$0xff] %v5278_v12  ;;  %v4250_v51 = vadd.f32 %v4122_v39, %v3994_v59  ;;  %v3997_v56 = vmax.f32 %v3483_v55, 0.0  ;;  %v3485_v19 = vadd.f32 %v3484_v30, %v7326_v35  ;;  %v4008_v12 = vunpack.c.h.bf16 %v5839_v54 }
 0x323   : > { %v3486_v14 = vpop.f32.mrf.mxu1 }
 0x324   : > { %v5280_v49 = vpack.c.bf16 %v4250_v51, %v4249_v15  ;;  %v3998_v40 = vmax.f32 %v3485_v19, 0.0  ;;  %v3487_v13 = vadd.f32 %v3486_v14, %v7330_v62  ;;  %v4253_v22 = vadd.f32 %v4125_v50, %v3997_v56  ;;  %v7484_v62 = vpop.f32.mrf.mxu0  ;;  %v5840_v51 = vld [vmem:[%s6191_s30 + $0x18] sm:$0xff] }
 0x325   : > { %v3488_v33 = vpop.f32.mrf.mxu1  ;;  %v4011_v56 = vunpack.c.l.bf16 %v5840_v51  ;;  %v4012_v14 = vunpack.c.h.bf16 %v5840_v51 }
 0x326   : > { %4703 = vst [vmem:[%s7250_s18 + $0x1d0] sm:$0xff] %v5280_v49  ;;  %v4254_v53 = vadd.f32 %v4126_v61, %v3998_v40  ;;  %v4001_v25 = vmax.f32 %v3487_v13, 0.0  ;;  %v3489_v36 = vadd.f32 %v3488_v33, %v7334_v2 }
 0x327   : > { %v3718_v35 = vpop.f32.mrf.mxu1 }
 0x328   : > { %v5282_v39 = vpack.c.bf16 %v4254_v53, %v4253_v22  ;;  %v4002_v34 = vmax.f32 %v3489_v36, 0.0  ;;  %v3719_v21 = vadd.f32 %v3718_v35, %v7340_v47  ;;  %v4257_v59 = vadd.f32 %v4129_v48, %v4001_v25  ;;  %v7490_v47 = vpop.f32.mrf.mxu0  ;;  %v5841_v22 = vld [vmem:[%s6191_s30 + $0x28] sm:$0xff] }
 0x329   : > { %v3720_v4 = vpop.f32.mrf.mxu1  ;;  %v4015_v53 = vunpack.c.l.bf16 %v5841_v22  ;;  %v4016_v36 = vunpack.c.h.bf16 %v5841_v22 }
 0x32a   : > { %4705 = vst [vmem:[%s7250_s18 + $0x1e0] sm:$0xff] %v5282_v39  ;;  %v4258_v55 = vadd.f32 %v4130_v24, %v4002_v34  ;;  %v3879_v6 = vmax.f32 %v3719_v21, 0.0  ;;  %v3721_v50 = vadd.f32 %v3720_v4, %v7344_v10 }
 0x32b   : > { %v3722_v2 = vpop.f32.mrf.mxu1 }
 0x32c   : > { %v5284_v30 = vpack.c.bf16 %v4258_v55, %v4257_v59  ;;  %v3880_v61 = vmax.f32 %v3721_v50, 0.0  ;;  %v3723_v15 = vadd.f32 %v3722_v2, %v7348_v11  ;;  %v4135_v49 = vadd.f32 %v4007_v20, %v3879_v6  ;;  %v7496_v11 = vpop.f32.mrf.mxu0 }
 0x32d   : > { %v3724_v19 = vpop.f32.mrf.mxu1 }
 0x32e   : > { %4707 = vst [vmem:[%s7250_s18 + $0x1f0] sm:$0xff] %v5284_v30  ;;  %v4136_v40 = vadd.f32 %v4008_v12, %v3880_v61  ;;  %v3883_v13 = vmax.f32 %v3723_v15, 0.0  ;;  %v3725_v60 = vadd.f32 %v3724_v19, %v7352_v31  ;;  %v5842_v12 = vld [vmem:[%s6191_s30 + $0x38] sm:$0xff]  ;;  %v5843_v19 = vld [vmem:[%s6191_s30 + $0x48] sm:$0xff] }
 0x32f   : > { %v3728_v10 = vpop.f32.mrf.mxu1  ;;  %v4019_v59 = vunpack.c.l.bf16 %v5842_v12  ;;  %v4020_v6 = vunpack.c.h.bf16 %v5842_v12  ;;  %v5845_v12 = vld [vmem:[%s6191_s30 + $0x68] sm:$0xff] }
 0x330   : > { %v5223_v48 = vpack.c.bf16 %v4136_v40, %v4135_v49  ;;  %v3884_v33 = vmax.f32 %v3725_v60, 0.0  ;;  %v3729_v24 = vadd.f32 %v3728_v10, %v7357_v38  ;;  %v4139_v35 = vadd.f32 %v4011_v56, %v3883_v13  ;;  %v7502_v38 = vpop.f32.mrf.mxu0 }
 0x331   : > { %v3730_v25 = vpop.f32.mrf.mxu1  ;;  %v4024_v40 = vunpack.c.h.bf16 %v5843_v19 }
 0x332   : > { %4646 = vst [vmem:[%s7250_s18 + $0x8] sm:$0xff] %v5223_v48  ;;  %v4140_v39 = vadd.f32 %v4012_v14, %v3884_v33  ;;  %v3887_v34 = vmax.f32 %v3729_v24, 0.0  ;;  %v3731_v21 = vadd.f32 %v3730_v25, %v7361_v7  ;;  %v4023_v14 = vunpack.c.l.bf16 %v5843_v19 }
 0x333   : > { %v3732_v31 = vpop.f32.mrf.mxu1 }
 0x334   : > { %v5225_v54 = vpack.c.bf16 %v4140_v39, %v4139_v35  ;;  %v3888_v20 = vmax.f32 %v3731_v21, 0.0  ;;  %v3733_v4 = vadd.f32 %v3732_v31, %v7365_v26  ;;  %v4143_v50 = vadd.f32 %v4015_v53, %v3887_v34  ;;  %v7508_v26 = vpop.f32.mrf.mxu0  ;;  %v5844_v53 = vld [vmem:[%s6191_s30 + $0x58] sm:$0xff] }
 0x335   : > { %v3734_v55 = vpop.f32.mrf.mxu1  ;;  %v4027_v25 = vunpack.c.l.bf16 %v5844_v53  ;;  %v4028_v35 = vunpack.c.h.bf16 %v5844_v53 }
 0x336   : > { %4648 = vst [vmem:[%s7250_s18 + $0x18] sm:$0xff] %v5225_v54  ;;  %v4144_v2 = vadd.f32 %v4016_v36, %v3888_v20  ;;  %v3891_v30 = vmax.f32 %v3733_v4, 0.0  ;;  %v3735_v61 = vadd.f32 %v3734_v55, %v7369_v29 }
 0x337   : > { %v3738_v7 = vpop.f32.mrf.mxu1 }
 0x338   : > { %v5227_v15 = vpack.c.bf16 %v4144_v2, %v4143_v50  ;;  %v3892_v51 = vmax.f32 %v3735_v61, 0.0  ;;  %v3739_v56 = vadd.f32 %v3738_v7, %v7373_v17  ;;  %v4147_v13 = vadd.f32 %v4019_v59, %v3891_v30  ;;  %v7514_v17 = vpop.f32.mrf.mxu0 }
 0x339   : > { %v3740_v49 = vpop.f32.mrf.mxu1  ;;  %v4031_v59 = vunpack.c.l.bf16 %v5845_v12 }
 0x33a   : > { %4650 = vst [vmem:[%s7250_s18 + $0x28] sm:$0xff] %v5227_v15  ;;  %v4148_v60 = vadd.f32 %v4020_v6, %v3892_v51  ;;  %v3895_v10 = vmax.f32 %v3739_v56, 0.0  ;;  %v3741_v48 = vadd.f32 %v3740_v49, %v7377_v32  ;;  %v4032_v6 = vunpack.c.h.bf16 %v5845_v12  ;;  %v5846_v56 = vld [vmem:[%s6191_s30 + $0x78] sm:$0xff] }
 0x33b   : > { %v3742_v29 = vpop.f32.mrf.mxu1  ;;  %v4035_v19 = vunpack.c.l.bf16 %v5846_v56  ;;  %v4036_v49 = vunpack.c.h.bf16 %v5846_v56 }
 0x33c   : > { %v5229_v33 = vpack.c.bf16 %v4148_v60, %v4147_v13  ;;  %v3896_v24 = vmax.f32 %v3741_v48, 0.0  ;;  %v3743_v22 = vadd.f32 %v3742_v29, %v7381_v8  ;;  %v4151_v39 = vadd.f32 %v4023_v14, %v3895_v10  ;;  %v7520_v8 = vpop.f32.mrf.mxu0 }
 0x33d   : > { %v3744_v36 = vpop.f32.mrf.mxu1 }
 0x33e   : > { %4652 = vst [vmem:[%s7250_s18 + $0x38] sm:$0xff] %v5229_v33  ;;  %v4152_v34 = vadd.f32 %v4024_v40, %v3896_v24  ;;  %v3899_v21 = vmax.f32 %v3743_v22, 0.0  ;;  %v3745_v31 = vadd.f32 %v3744_v36, %v7385_v37  ;;  %v5847_v24 = vld [vmem:[%s6191_s30 + $0x88] sm:$0xff] }
 0x33f   : > { %v3748_v32 = vpop.f32.mrf.mxu1  ;;  %v4039_v22 = vunpack.c.l.bf16 %v5847_v24 }
 0x340   : > { %v5231_v54 = vpack.c.bf16 %v4152_v34, %v4151_v39  ;;  %v3900_v20 = vmax.f32 %v3745_v31, 0.0  ;;  %v3749_v4 = vadd.f32 %v3748_v32, %v7389_v46  ;;  %v4155_v50 = vadd.f32 %v4027_v25, %v3899_v21  ;;  %v7526_v46 = vpop.f32.mrf.mxu0 }
 0x341   : > { %v3750_v55 = vpop.f32.mrf.mxu1  ;;  %v4040_v25 = vunpack.c.h.bf16 %v5847_v24 }
 0x342   : > { %4654 = vst [vmem:[%s7250_s18 + $0x48] sm:$0xff] %v5231_v54  ;;  %v4156_v2 = vadd.f32 %v4028_v35, %v3900_v20  ;;  %v3903_v30 = vmax.f32 %v3749_v4, 0.0  ;;  %v3751_v61 = vadd.f32 %v3750_v55, %v7393_v27  ;;  %v5848_v54 = vld [vmem:[%s6191_s30 + $0x98] sm:$0xff] }
 0x343   : > { %v3752_v37 = vpop.f32.mrf.mxu1  ;;  %v4043_v20 = vunpack.c.l.bf16 %v5848_v54  ;;  %v4044_v12 = vunpack.c.h.bf16 %v5848_v54 }
 0x344   : > { %v5233_v7 = vpack.c.bf16 %v4156_v2, %v4155_v50  ;;  %v3904_v15 = vmax.f32 %v3751_v61, 0.0  ;;  %v3753_v51 = vadd.f32 %v3752_v37, %v7397_v63  ;;  %v4159_v40 = vadd.f32 %v4031_v59, %v3903_v30  ;;  %v7532_v63 = vpop.f32.mrf.mxu0  ;;  %v5849_v37 = vld [vmem:[%s6191_s30 + $0xa8] sm:$0xff] }
 0x345   : > { %v3754_v14 = vpop.f32.mrf.mxu1 }
 0x346   : > { %4656 = vst [vmem:[%s7250_s18 + $0x58] sm:$0xff] %v5233_v7  ;;  %v4160_v13 = vadd.f32 %v4032_v6, %v3904_v15  ;;  %v3907_v60 = vmax.f32 %v3753_v51, 0.0  ;;  %v3755_v10 = vadd.f32 %v3754_v14, %v7401_v44  ;;  %v4047_v7 = vunpack.c.l.bf16 %v5849_v37 }
 0x347   : > { %v3758_v27 = vpop.f32.mrf.mxu1  ;;  %v4048_v51 = vunpack.c.h.bf16 %v5849_v37 }
 0x348   : > { %v5235_v48 = vpack.c.bf16 %v4160_v13, %v4159_v40  ;;  %v3908_v29 = vmax.f32 %v3755_v10, 0.0  ;;  %v3759_v33 = vadd.f32 %v3758_v27, %v7405_v16  ;;  %v4163_v36 = vadd.f32 %v4035_v19, %v3907_v60  ;;  %v7538_v16 = vpop.f32.mrf.mxu0  ;;  %v5850_v10 = vld [vmem:[%s6191_s30 + $0xb8] sm:$0xff] }
 0x349   : > { %v3760_v53 = vpop.f32.mrf.mxu1  ;;  %v4051_v27 = vunpack.c.l.bf16 %v5850_v10 }
 0x34a   : > { %4658 = vst [vmem:[%s7250_s18 + $0x68] sm:$0xff] %v5235_v48  ;;  %v4164_v35 = vadd.f32 %v4036_v49, %v3908_v29  ;;  %v3911_v39 = vmax.f32 %v3759_v33, 0.0  ;;  %v3761_v34 = vadd.f32 %v3760_v53, %v7409_v43  ;;  %v4052_v29 = vunpack.c.h.bf16 %v5850_v10 }
 0x34b   : > { %v3762_v44 = vpop.f32.mrf.mxu1 }
 0x34c   : > { %v5237_v21 = vpack.c.bf16 %v4164_v35, %v4163_v36  ;;  %v3912_v31 = vmax.f32 %v3761_v34, 0.0  ;;  %v3763_v32 = vadd.f32 %v3762_v44, %v7413_v1  ;;  %v4167_v59 = vadd.f32 %v4039_v22, %v3911_v39  ;;  %v7544_v1 = vpop.f32.mrf.mxu0  ;;  %v5851_v39 = vld [vmem:[%s6191_s30 + $0xc8] sm:$0xff] }
 0x34d   : > { %v3764_v4 = vpop.f32.mrf.mxu1  ;;  %v4055_v34 = vunpack.c.l.bf16 %v5851_v39 }
 0x34e   : > { %4660 = vst [vmem:[%s7250_s18 + $0x78] sm:$0xff] %v5237_v21  ;;  %v4168_v55 = vadd.f32 %v4040_v25, %v3912_v31  ;;  %v3915_v6 = vmax.f32 %v3763_v32, 0.0  ;;  %v3765_v50 = vadd.f32 %v3764_v4, %v7417_v9  ;;  %v4056_v21 = vunpack.c.h.bf16 %v5851_v39 }
 0x34f   : > { %v3768_v43 = vpop.f32.mrf.mxu1 }
 0x350   : > { %v5239_v2 = vpack.c.bf16 %v4168_v55, %v4167_v59  ;;  %v3916_v30 = vmax.f32 %v3765_v50, 0.0  ;;  %v3769_v61 = vadd.f32 %v3768_v43, %v7421_v3  ;;  %v4171_v56 = vadd.f32 %v4043_v20, %v3915_v6  ;;  %v7550_v3 = vpop.f32.mrf.mxu0  ;;  %v5852_v55 = vld [vmem:[%s6191_s30 + $0xd8] sm:$0xff] }
 0x351   : > { %v3770_v15 = vpop.f32.mrf.mxu1  ;;  %v4059_v6 = vunpack.c.l.bf16 %v5852_v55  ;;  %v4060_v43 = vunpack.c.h.bf16 %v5852_v55 }
 0x352   : > { %4662 = vst [vmem:[%s7250_s18 + $0x88] sm:$0xff] %v5239_v2  ;;  %v4172_v19 = vadd.f32 %v4044_v12, %v3916_v30  ;;  %v3919_v14 = vmax.f32 %v3769_v61, 0.0  ;;  %v3771_v49 = vadd.f32 %v3770_v15, %v7425_v42 }
 0x353   : > { %v3772_v9 = vpop.f32.mrf.mxu1 }
 0x354   : > { %v5241_v40 = vpack.c.bf16 %v4172_v19, %v4171_v56  ;;  %v3920_v13 = vmax.f32 %v3771_v49, 0.0  ;;  %v3773_v60 = vadd.f32 %v3772_v9, %v7429_v41  ;;  %v4175_v33 = vadd.f32 %v4047_v7, %v3919_v14  ;;  %v7556_v41 = vpop.f32.mrf.mxu0  ;;  %v5853_v56 = vld [vmem:[%s6191_s30 + $0xe8] sm:$0xff] }
 0x355   : > { %v3774_v48 = vpop.f32.mrf.mxu1  ;;  %v4063_v19 = vunpack.c.l.bf16 %v5853_v56  ;;  %v4064_v49 = vunpack.c.h.bf16 %v5853_v56  ;;  %v5857_v56 = vld [vmem:[%s6191_s30 + $0x128] sm:$0xff] }
 0x356   : > { %4664 = vst [vmem:[%s7250_s18 + $0x98] sm:$0xff] %v5241_v40  ;;  %v4176_v24 = vadd.f32 %v4048_v51, %v3920_v13  ;;  %v3923_v22 = vmax.f32 %v3773_v60, 0.0  ;;  %v3775_v53 = vadd.f32 %v3774_v48, %v7433_v0 }
 0x357   : > { %v3778_v42 = vpop.f32.mrf.mxu1 }
 0x358   : > { %v5243_v25 = vpack.c.bf16 %v4176_v24, %v4175_v33  ;;  %v3924_v36 = vmax.f32 %v3775_v53, 0.0  ;;  %v3779_v35 = vadd.f32 %v3778_v42, %v7437_v5  ;;  %v4179_v31 = vadd.f32 %v4051_v27, %v3923_v22  ;;  %v7562_v5 = vpop.f32.mrf.mxu0 }
 0x359   : > { %v3780_v44 = vpop.f32.mrf.mxu1 }
 0x35a   : > { %4666 = vst [vmem:[%s7250_s18 + $0xa8] sm:$0xff] %v5243_v25  ;;  %v4180_v32 = vadd.f32 %v4052_v29, %v3924_v36  ;;  %v3927_v54 = vmax.f32 %v3779_v35, 0.0  ;;  %v3781_v20 = vadd.f32 %v3780_v44, %v7443_v45  ;;  %v5854_v29 = vld [vmem:[%s6191_s30 + $0xf8] sm:$0xff]  ;;  %v5855_v44 = vld [vmem:[%s6191_s30 + $0x108] sm:$0xff] }
 0x35b   : > { %v3782_v0 = vpop.f32.mrf.mxu1  ;;  %v4067_v33 = vunpack.c.l.bf16 %v5854_v29  ;;  %v4068_v22 = vunpack.c.h.bf16 %v5854_v29 }
 0x35c   : > { %v5245_v4 = vpack.c.bf16 %v4180_v32, %v4179_v31  ;;  %v3928_v12 = vmax.f32 %v3781_v20, 0.0  ;;  %v3783_v59 = vadd.f32 %v3782_v0, %v7448_v52  ;;  %v4183_v2 = vadd.f32 %v4055_v34, %v3927_v54  ;;  %v7568_v52 = vpop.f32.mrf.mxu0 }
 0x35d   : > { %v3784_v50 = vpop.f32.mrf.mxu1  ;;  %v4072_v32 = vunpack.c.h.bf16 %v5855_v44 }
 0x35e   : > { %4668 = vst [vmem:[%s7250_s18 + $0xb8] sm:$0xff] %v5245_v4  ;;  %v4184_v30 = vadd.f32 %v4056_v21, %v3928_v12  ;;  %v3931_v61 = vmax.f32 %v3783_v59, 0.0  ;;  %v3785_v37 = vadd.f32 %v3784_v50, %v7454_v28  ;;  %v4071_v21 = vunpack.c.l.bf16 %v5855_v44 }
 0x35f   : > { %v3788_v45 = vpop.f32.mrf.mxu1 }
 0x360   : > { %v5247_v7 = vpack.c.bf16 %v4184_v30, %v4183_v2  ;;  %v3932_v15 = vmax.f32 %v3785_v37, 0.0  ;;  %v3789_v51 = vadd.f32 %v3788_v45, %v7460_v18  ;;  %v4187_v9 = vadd.f32 %v4059_v6, %v3931_v61  ;;  %v7574_v18 = vpop.f32.mrf.mxu0  ;;  %v5856_v6 = vld [vmem:[%s6191_s30 + $0x118] sm:$0xff] }
 0x361   : > { %v3790_v14 = vpop.f32.mrf.mxu1  ;;  %v4075_v50 = vunpack.c.l.bf16 %v5856_v6  ;;  %v4076_v2 = vunpack.c.h.bf16 %v5856_v6 }
 0x362   : > { %4670 = vst [vmem:[%s7250_s18 + $0xc8] sm:$0xff] %v5247_v7  ;;  %v4188_v40 = vadd.f32 %v4060_v43, %v3932_v15  ;;  %v3935_v13 = vmax.f32 %v3789_v51, 0.0  ;;  %v3791_v60 = vadd.f32 %v3790_v14, %v7466_v58 }
 0x363   : > { %v3792_v28 = vpop.f32.mrf.mxu1 }
 0x364   : > { %v5249_v10 = vpack.c.bf16 %v4188_v40, %v4187_v9  ;;  %v3936_v27 = vmax.f32 %v3791_v60, 0.0  ;;  %v3793_v48 = vadd.f32 %v3792_v28, %v7472_v57  ;;  %v4191_v53 = vadd.f32 %v4063_v19, %v3935_v13  ;;  %v7580_v57 = vpop.f32.mrf.mxu0 }
 0x365   : > { %v3794_v24 = vpop.f32.mrf.mxu1  ;;  %v4079_v19 = vunpack.c.l.bf16 %v5857_v56 }
 0x366   : > { %4672 = vst [vmem:[%s7250_s18 + $0xd8] sm:$0xff] %v5249_v10  ;;  %v4192_v42 = vadd.f32 %v4064_v49, %v3936_v27  ;;  %v3939_v25 = vmax.f32 %v3793_v48, 0.0  ;;  %v3795_v36 = vadd.f32 %v3794_v24, %v7478_v23  ;;  %v4080_v49 = vunpack.c.h.bf16 %v5857_v56  ;;  %v5858_v48 = vld [vmem:[%s6191_s30 + $0x138] sm:$0xff] }
 0x367   : > { %v3798_v58 = vpop.f32.mrf.mxu1  ;;  %v4083_v29 = vunpack.c.l.bf16 %v5858_v48  ;;  %v4084_v24 = vunpack.c.h.bf16 %v5858_v48 }
 0x368   : > { %v5251_v35 = vpack.c.bf16 %v4192_v42, %v4191_v53  ;;  %v3940_v39 = vmax.f32 %v3795_v36, 0.0  ;;  %v3799_v34 = vadd.f32 %v3798_v58, %v7484_v62  ;;  %v4195_v54 = vadd.f32 %v4067_v33, %v3939_v25  ;;  %v7586_v62 = vpop.f32.mrf.mxu0 }
 0x369   : > { %v3800_v31 = vpop.f32.mrf.mxu1 }
 0x36a   : > { %4674 = vst [vmem:[%s7250_s18 + $0xe8] sm:$0xff] %v5251_v35  ;;  %v4196_v20 = vadd.f32 %v4068_v22, %v3940_v39  ;;  %v3943_v0 = vmax.f32 %v3799_v34, 0.0  ;;  %v3801_v4 = vadd.f32 %v3800_v31, %v7490_v47  ;;  %v5859_v39 = vld [vmem:[%s6191_s30 + $0x148] sm:$0xff] }
 0x36b   : > { %v3802_v23 = vpop.f32.mrf.mxu1  ;;  %v4087_v34 = vunpack.c.l.bf16 %v5859_v39 }
 0x36c   : > { %v5253_v12 = vpack.c.bf16 %v4196_v20, %v4195_v54  ;;  %v3944_v59 = vmax.f32 %v3801_v4, 0.0  ;;  %v3803_v55 = vadd.f32 %v3802_v23, %v7496_v11  ;;  %v4199_v30 = vadd.f32 %v4071_v21, %v3943_v0  ;;  %v7592_v11 = vpop.f32.mrf.mxu0 }
 0x36d   : > { %v3804_v43 = vpop.f32.mrf.mxu1  ;;  %v4088_v21 = vunpack.c.h.bf16 %v5859_v39 }
 0x36e   : > { %4676 = vst [vmem:[%s7250_s18 + $0xf8] sm:$0xff] %v5253_v12  ;;  %v4200_v61 = vadd.f32 %v4072_v32, %v3944_v59  ;;  %v3947_v37 = vmax.f32 %v3803_v55, 0.0  ;;  %v3805_v45 = vadd.f32 %v3804_v43, %v7502_v38  ;;  %v5860_v12 = vld [vmem:[%s6191_s30 + $0x158] sm:$0xff] }
 0x36f   : > { %v3808_v47 = vpop.f32.mrf.mxu1  ;;  %v4091_v59 = vunpack.c.l.bf16 %v5860_v12  ;;  %v4092_v6 = vunpack.c.h.bf16 %v5860_v12 }
 0x370   : > { %v5255_v7 = vpack.c.bf16 %v4200_v61, %v4199_v30  ;;  %v3948_v15 = vmax.f32 %v3805_v45, 0.0  ;;  %v3809_v51 = vadd.f32 %v3808_v47, %v7508_v26  ;;  %v4203_v9 = vadd.f32 %v4075_v50, %v3947_v37  ;;  %v7598_v26 = vpop.f32.mrf.mxu0  ;;  %v5861_v47 = vld [vmem:[%s6191_s30 + $0x168] sm:$0xff] }
 0x371   : > { %v3810_v14 = vpop.f32.mrf.mxu1 }
 0x372   : > { %4678 = vst [vmem:[%s7250_s18 + $0x108] sm:$0xff] %v5255_v7  ;;  %v4204_v40 = vadd.f32 %v4076_v2, %v3948_v15  ;;  %v3951_v13 = vmax.f32 %v3809_v51, 0.0  ;;  %v3811_v60 = vadd.f32 %v3810_v14, %v7514_v17  ;;  %v4095_v7 = vunpack.c.l.bf16 %v5861_v47 }
 0x373   : > { %v3812_v38 = vpop.f32.mrf.mxu1  ;;  %v4096_v51 = vunpack.c.h.bf16 %v5861_v47 }
 0x374   : > { %v5257_v28 = vpack.c.bf16 %v4204_v40, %v4203_v9  ;;  %v3952_v10 = vmax.f32 %v3811_v60, 0.0  ;;  %v3813_v27 = vadd.f32 %v3812_v38, %v7520_v8  ;;  %v4207_v22 = vadd.f32 %v4079_v19, %v3951_v13  ;;  %v7604_v8 = vpop.f32.mrf.mxu0  ;;  %v5862_v60 = vld [vmem:[%s6191_s30 + $0x178] sm:$0xff] }
 0x375   : > { %v3814_v33 = vpop.f32.mrf.mxu1  ;;  %v4099_v38 = vunpack.c.l.bf16 %v5862_v60 }
 0x376   : > { %4680 = vst [vmem:[%s7250_s18 + $0x118] sm:$0xff] %v5257_v28  ;;  %v4208_v53 = vadd.f32 %v4080_v49, %v3952_v10  ;;  %v3955_v42 = vmax.f32 %v3813_v27, 0.0  ;;  %v3815_v25 = vadd.f32 %v3814_v33, %v7526_v46  ;;  %v4100_v10 = vunpack.c.h.bf16 %v5862_v60 }
 0x377   : > { %v3818_v17 = vpop.f32.mrf.mxu1 }
 0x378   : > { %v5259_v36 = vpack.c.bf16 %v4208_v53, %v4207_v22  ;;  %v3956_v58 = vmax.f32 %v3815_v25, 0.0  ;;  %v3819_v35 = vadd.f32 %v3818_v17, %v7532_v63  ;;  %v4211_v31 = vadd.f32 %v4083_v29, %v3955_v42  ;;  %v7610_v63 = vpop.f32.mrf.mxu0  ;;  %v5863_v42 = vld [vmem:[%s6191_s30 + $0x188] sm:$0xff] }
 0x379   : > { %v3820_v44 = vpop.f32.mrf.mxu1  ;;  %v4103_v25 = vunpack.c.l.bf16 %v5863_v42 }
 0x37a   : > { %4682 = vst [vmem:[%s7250_s18 + $0x128] sm:$0xff] %v5259_v36  ;;  %v4212_v32 = vadd.f32 %v4084_v24, %v3956_v58  ;;  %v3959_v54 = vmax.f32 %v3819_v35, 0.0  ;;  %v3821_v20 = vadd.f32 %v3820_v44, %v7538_v16  ;;  %v4104_v36 = vunpack.c.h.bf16 %v5863_v42 }
 0x37b   : > { %v3822_v46 = vpop.f32.mrf.mxu1 }
 0x37c   : > { %v5261_v0 = vpack.c.bf16 %v4212_v32, %v4211_v31  ;;  %v3960_v4 = vmax.f32 %v3821_v20, 0.0  ;;  %v3823_v23 = vadd.f32 %v3822_v46, %v7544_v1  ;;  %v4215_v50 = vadd.f32 %v4087_v34, %v3959_v54  ;;  %v7616_v1 = vpop.f32.mrf.mxu0  ;;  %v5864_v32 = vld [vmem:[%s6191_s30 + $0x198] sm:$0xff] }
 0x37d   : > { %v3824_v55 = vpop.f32.mrf.mxu1  ;;  %v4107_v54 = vunpack.c.l.bf16 %v5864_v32  ;;  %v4108_v46 = vunpack.c.h.bf16 %v5864_v32 }
 0x37e   : > { %4684 = vst [vmem:[%s7250_s18 + $0x138] sm:$0xff] %v5261_v0  ;;  %v4216_v43 = vadd.f32 %v4088_v21, %v3960_v4  ;;  %v3963_v2 = vmax.f32 %v3823_v23, 0.0  ;;  %v3825_v30 = vadd.f32 %v3824_v55, %v7550_v3 }
 0x37f   : > { %v3828_v16 = vpop.f32.mrf.mxu1 }
 0x380   : > { %v5263_v61 = vpack.c.bf16 %v4216_v43, %v4215_v50  ;;  %v3964_v37 = vmax.f32 %v3825_v30, 0.0  ;;  %v3829_v45 = vadd.f32 %v3828_v16, %v7556_v41  ;;  %v4219_v56 = vadd.f32 %v4091_v59, %v3963_v2  ;;  %v7622_v41 = vpop.f32.mrf.mxu0  ;;  %v5865_v50 = vld [vmem:[%s6191_s30 + $0x1a8] sm:$0xff] }
 0x381   : > { %v3830_v15 = vpop.f32.mrf.mxu1  ;;  %v4111_v43 = vunpack.c.l.bf16 %v5865_v50  ;;  %v4112_v30 = vunpack.c.h.bf16 %v5865_v50 }
 0x382   : > { %4686 = vst [vmem:[%s7250_s18 + $0x148] sm:$0xff] %v5263_v61  ;;  %v4220_v19 = vadd.f32 %v4092_v6, %v3964_v37  ;;  %v3967_v14 = vmax.f32 %v3829_v45, 0.0  ;;  %v3831_v49 = vadd.f32 %v3830_v15, %v7562_v5 }
 0x383   : > { %v3832_v3 = vpop.f32.mrf.mxu1 }
 0x384   : > { %v5265_v9 = vpack.c.bf16 %v4220_v19, %v4219_v56  ;;  %v3968_v40 = vmax.f32 %v3831_v49, 0.0  ;;  %v3833_v13 = vadd.f32 %v3832_v3, %v7568_v52  ;;  %v4223_v27 = vadd.f32 %v4095_v7, %v3967_v14  ;;  %v3665_v52 = vpop.f32.mrf.mxu0 }
 0x385   : > { %v3834_v28 = vpop.f32.mrf.mxu1 }
 0x386   : > { %4688 = vst [vmem:[%s7250_s18 + $0x158] sm:$0xff] %v5265_v9  ;;  %v4224_v48 = vadd.f32 %v4096_v51, %v3968_v40  ;;  %v3971_v29 = vmax.f32 %v3833_v13, 0.0  ;;  %v3835_v33 = vadd.f32 %v3834_v28, %v7574_v18  ;;  %v5866_v51 = vld [vmem:[%s6191_s30 + $0x1b8] sm:$0xff] }
 0x387   : > { %v3838_v5 = vpop.f32.mrf.mxu1  ;;  %v4115_v56 = vunpack.c.l.bf16 %v5866_v51  ;;  %v4116_v14 = vunpack.c.h.bf16 %v5866_v51 }
 0x388   : > { %v5267_v24 = vpack.c.bf16 %v4224_v48, %v4223_v27  ;;  %v3972_v22 = vmax.f32 %v3835_v33, 0.0  ;;  %v3839_v53 = vadd.f32 %v3838_v5, %v7580_v57  ;;  %v4227_v58 = vadd.f32 %v4099_v38, %v3971_v29  ;;  %v3667_v57 = vpop.f32.mrf.mxu0 }
 0x389   : > { %v3840_v17 = vpop.f32.mrf.mxu1 }
 0x38a   : > { %4690 = vst [vmem:[%s7250_s18 + $0x168] sm:$0xff] %v5267_v24  ;;  %v4228_v35 = vadd.f32 %v4100_v10, %v3972_v22  ;;  %v3975_v39 = vmax.f32 %v3839_v53, 0.0  ;;  %v3841_v34 = vadd.f32 %v3840_v17, %v7586_v62  ;;  %v5868_v17 = vld [vmem:[%s6191_s30 + $0x1d8] sm:$0xff] }
 0x38b   : > { %v3842_v44 = vpop.f32.mrf.mxu1 }
 0x38c   : > { %v5269_v18 = vpack.c.bf16 %v4228_v35, %v4227_v58  ;;  %v3976_v21 = vmax.f32 %v3841_v34, 0.0  ;;  %v3843_v31 = vadd.f32 %v3842_v44, %v7592_v11  ;;  %v4231_v0 = vadd.f32 %v4103_v25, %v3975_v39  ;;  %v3669_v11 = vpop.f32.mrf.mxu0 }
 0x38d   : > { %v3844_v20 = vpop.f32.mrf.mxu1  ;;  %v4124_v58 = vunpack.c.h.bf16 %v5868_v17 }
 0x38e   : > { %4692 = vst [vmem:[%s7250_s18 + $0x178] sm:$0xff] %v5269_v18  ;;  %v4232_v4 = vadd.f32 %v4104_v36, %v3976_v21  ;;  %v3979_v23 = vmax.f32 %v3843_v31, 0.0  ;;  %v3845_v12 = vadd.f32 %v3844_v20, %v7598_v26 }
 0x38f   : > { %v3848_v59 = vpop.f32.mrf.mxu1 }
 0x390   : > { %v5271_v62 = vpack.c.bf16 %v4232_v4, %v4231_v0  ;;  %v3980_v55 = vmax.f32 %v3845_v12, 0.0  ;;  %v3849_v6 = vadd.f32 %v3848_v59, %v7604_v8  ;;  %v4235_v16 = vadd.f32 %v4107_v54, %v3979_v23  ;;  %v3671_v8 = vpop.f32.mrf.mxu0  ;;  %v5869_v54 = vld [vmem:[%s6191_s30 + $0x1e8] sm:$0xff] }
 0x391   : > { %v3850_v2 = vpop.f32.mrf.mxu1  ;;  %v4127_v20 = vunpack.c.l.bf16 %v5869_v54  ;;  %v4128_v0 = vunpack.c.h.bf16 %v5869_v54 }
 0x392   : > { %4694 = vst [vmem:[%s7250_s18 + $0x188] sm:$0xff] %v5271_v62  ;;  %v4236_v61 = vadd.f32 %v4108_v46, %v3980_v55  ;;  %v3983_v37 = vmax.f32 %v3849_v6, 0.0  ;;  %v3851_v45 = vadd.f32 %v3850_v2, %v7610_v63  ;;  %v3675_v28 = vpop.f32.mrf.mxu0 }
 0x393   : > { %v3852_v47 = vpop.f32.mrf.mxu1 }
 0x394   : > { %v5273_v26 = vpack.c.bf16 %v4236_v61, %v4235_v16  ;;  %v3984_v7 = vmax.f32 %v3851_v45, 0.0  ;;  %v3853_v15 = vadd.f32 %v3852_v47, %v7616_v1  ;;  %v4239_v49 = vadd.f32 %v4111_v43, %v3983_v37  ;;  %v5867_v1 = vld [vmem:[%s6191_s30 + $0x1c8] sm:$0xff]  ;;  %v3677_v25 = vpop.f32.mrf.mxu0  ;;  %v5870_v43 = vld [vmem:[%s6191_s30 + $0x1f8] sm:$0xff] }
 0x395   : > { %v3854_v19 = vpop.f32.mrf.mxu1  ;;  %v4119_v10 = vunpack.c.l.bf16 %v5867_v1  ;;  %v4120_v48 = vunpack.c.h.bf16 %v5867_v1  ;;  %v4131_v2 = vunpack.c.l.bf16 %v5870_v43  ;;  %v4132_v16 = vunpack.c.h.bf16 %v5870_v43 }
 0x396   : > { %4696 = vst [vmem:[%s7250_s18 + $0x198] sm:$0xff] %v5273_v26  ;;  %v4240_v3 = vadd.f32 %v4112_v30, %v3984_v7  ;;  %v3987_v9 = vmax.f32 %v3853_v15, 0.0  ;;  %v3855_v40 = vadd.f32 %v3854_v19, %v7622_v41  ;;  %v3679_v32 = vpop.f32.mrf.mxu0 }
 0x397   : > { %v3858_v13 = vpop.f32.mrf.mxu1 }
 0x398   : > { %v5275_v63 = vpack.c.bf16 %v4240_v3, %v4239_v49  ;;  %v3988_v60 = vmax.f32 %v3855_v40, 0.0  ;;  %v3859_v38 = vadd.f32 %v3858_v13, %v3665_v52  ;;  %v4243_v29 = vadd.f32 %v4115_v56, %v3987_v9  ;;  %v3681_v50 = vpop.f32.mrf.mxu0 }
 0x399   : > { %v3860_v27 = vpop.f32.mrf.mxu1  ;;  %v4123_v52 = vunpack.c.l.bf16 %v5868_v17 }
 0x39a   : > { %4698 = vst [vmem:[%s7250_s18 + $0x1a8] sm:$0xff] %v5275_v63  ;;  %v4244_v33 = vadd.f32 %v4116_v14, %v3988_v60  ;;  %v3991_v5 = vmax.f32 %v3859_v38, 0.0  ;;  %v3861_v24 = vadd.f32 %v3860_v27, %v3667_v57 }
 0x39b   : > { %v3862_v22 = vpop.f32.mrf.mxu1 }
 0x39c   : > { %v5277_v53 = vpack.c.bf16 %v4244_v33, %v4243_v29  ;;  %v3992_v42 = vmax.f32 %v3861_v24, 0.0  ;;  %v3863_v41 = vadd.f32 %v3862_v22, %v3669_v11  ;;  %v4247_v35 = vadd.f32 %v4119_v10, %v3991_v5 }
 0x39d   : > { %v3864_v36 = vpop.f32.mrf.mxu1 }
 0x39e   : > { %4700 = vst [vmem:[%s7250_s18 + $0x1b8] sm:$0xff] %v5277_v53  ;;  %v4248_v39 = vadd.f32 %v4120_v48, %v3992_v42  ;;  %v3995_v34 = vmax.f32 %v3863_v41, 0.0  ;;  %v3865_v44 = vadd.f32 %v3864_v36, %v3671_v8 }
 0x39f   : > { %v3868_v18 = vpop.f32.mrf.mxu1 }
 0x3a0   : > { %v5279_v21 = vpack.c.bf16 %v4248_v39, %v4247_v35  ;;  %v3996_v31 = vmax.f32 %v3865_v44, 0.0  ;;  %v3869_v57 = vadd.f32 %v3868_v18, %v3675_v28  ;;  %v4251_v4 = vadd.f32 %v4123_v52, %v3995_v34 }
 0x3a1   : > { %v3870_v46 = vpop.f32.mrf.mxu1 }
 0x3a2   : > { %4702 = vst [vmem:[%s7250_s18 + $0x1c8] sm:$0xff] %v5279_v21  ;;  %v4252_v23 = vadd.f32 %v4124_v58, %v3996_v31  ;;  %v3999_v12 = vmax.f32 %v3869_v57, 0.0  ;;  %v3871_v59 = vadd.f32 %v3870_v46, %v3677_v25 }
 0x3a3   : > { %v3872_v62 = vpop.f32.mrf.mxu1 }
 0x3a4   : > { %v5281_v55 = vpack.c.bf16 %v4252_v23, %v4251_v4  ;;  %v4000_v6 = vmax.f32 %v3871_v59, 0.0  ;;  %v3873_v11 = vadd.f32 %v3872_v62, %v3679_v32  ;;  %v4255_v61 = vadd.f32 %v4127_v20, %v3999_v12 }
 0x3a5   : > { %v3874_v30 = vpop.f32.mrf.mxu1 }
 0x3a6   : > { %4704 = vst [vmem:[%s7250_s18 + $0x1d8] sm:$0xff] %v5281_v55  ;;  %v4256_v37 = vadd.f32 %v4128_v0, %v4000_v6  ;;  %v4003_v45 = vmax.f32 %v3873_v11, 0.0  ;;  %v3875_v47 = vadd.f32 %v3874_v30, %v3681_v50 }
 0x3a8   : > { %v5283_v26 = vpack.c.bf16 %v4256_v37, %v4255_v61  ;;  %v4004_v7 = vmax.f32 %v3875_v47, 0.0  ;;  %v4259_v15 = vadd.f32 %v4131_v2, %v4003_v45 }
 0x3aa   : > { %4706 = vst [vmem:[%s7250_s18 + $0x1e8] sm:$0xff] %v5283_v26  ;;  %v4260_v8 = vadd.f32 %v4132_v16, %v4004_v7 }
 0x3ac   : > { %v5285_v51 = vpack.c.bf16 %v4260_v8, %v4259_v15 }
 0x3ae   : > { %4708 = vst [vmem:[%s7250_s18 + $0x1f8] sm:$0xff] %v5285_v51 }
 0x3af   : > { %5964 = shalt.err (!%p5961_p3)
}
 0x3b0   : > { %s5965_s17 = scalar_lea.hbm %s7657_s29, 8192  ;;  %s5969_s26 = scalar_lea.hbm %s7706_s3, 16384 }
 0x3b1   : > { %p5966_p11 = scmp.ne.s32.totalorder %s7657_s29, %s5965_s17  ;;  %p5970_p4 = scmp.lt.s32.totalorder %s7657_s29, %s7706_s3 }
 0x3b2   : > { %p5971_p6 = scmp.lt.s32.totalorder %s5969_s26, %s5965_s17 }
 0x3b3   : > { %p5967_p9 = pnand %p5966_p11, %p7830_p2 }
 0x3b4   : > { %p5972_p8 = por %p5971_p6, %p5970_p4 }
 0x3b5   : > { %p5968_p1 = pneg %p5967_p9 }
 0x3b7   : > { %p5973_p5 = pnand %p5972_p8, %p5968_p1 }
 0x3b9   : > { %5976 = shalt.err (!%p5973_p5)
}
 0x3ba   : > { %s6027_s30 = smov 256   ;;  %s6028_s18 = smov 16  }
 0x3bb   : > { %5298 = dma.vmem_to_hbm [thread:$0]  (%p7830_p2), %s7659_s27, 8192, %s7657_s29, %s4710_s4, %s6027_s30, %s6027_s30, %s6028_s18  }
 0x3bc PF: > { %s4739_s20 = sand.u32 1, %s6007_s12   ;;  %p7831_p7 = scmp.ne.s32.totalorder %s7739_s19, 0 }
 0x3bd   : > { %p7832_p12 = scmp.ge.s32.totalorder %s6019_s15, 2  ;;  %s4740_s28 = scalar_lea.sflag [#allocation4], %s4739_s20 }
 0x3bf   : > { %p5312_p13 = pnand %p7832_p12, %p7831_p7 }
 0x3c1   : > { %p5313_p0 = pneg %p5312_p13 }
 0x3c3   : > { %6002 = dma.done.wait (%p5313_p0), %s4740_s28, 8192  }
 0x3c4   : > { %6004 = vsyncadd (%p5313_p0), %s4740_s28, 4294959104  ;;  %p17_p10 = scmp.ge.s32.totalorder %s6127_s7, 4   ;;  %s7833_s12 = smov %s6011_s13 }
 0x3c5   : > { %s7834_s13 = smov %s6015_s14  ;;  %s7835_s14 = smov %s6143_s11 }
 0x3c6   : > { %s7836_s15 = smov %s6127_s7  ;;  %19 = sbr.rel (!%p17_p10) target bundleno = 6 (0x6), region = 85 }
 0x3cb   :  { %4745 = vsyncpa [#allocation3], 1 }
 0x3cc   :  { %4747 = vsyncpa [#allocation3 + $0x1], 1 }
 0x3cd   :  { %4748 = vsyncpa [#allocation6], 1 }
 0x3ce   :  { %4749 = vsyncpa [#allocation4], 1 }
 0x3cf   :  { %4751 = vsyncpa [#allocation4 + $0x1], 1 }

</bundles_post_ra>
